<compile_context>
chip_gen: v7x
topology: tpu7x:2x2x1
jax: 0.10.0
libtpu: 0.0.40
codegen_flags: <defaults>
</compile_context>

<pallas_src>
import functools

import jax
import jax.numpy as jnp
from jax import lax
from jax.experimental import pallas as pl
from jax.experimental.pallas import tpu as pltpu


# ---------------------------------------------------------------------------
# small helpers
# ---------------------------------------------------------------------------
def _vmem_limit_bytes():
    """3/4 of physical VMEM, capped at 96 MiB (v5e/v6e: 96/128, v7x: 48/64)."""
    try:
        cap = pltpu.get_tpu_info().vmem_capacity_bytes
    except Exception:  # query unavailable -> assume the smallest generation
        cap = 64 * 1024 * 1024
    return int(min(96 * 1024 * 1024, (cap * 3) // 4))


def _group_onehot(channels, groups):
    """(C, G) one-hot group membership and its transpose (f32)."""
    cg = channels // groups
    m = (jnp.arange(channels)[:, None] // cg == jnp.arange(groups)[None, :])
    m = m.astype(jnp.float32)
    return m, m.T


def _const_spec(shape):
    """BlockSpec for an array that is identical for every grid step (resident)."""
    nd = len(shape)
    return pl.BlockSpec(shape, lambda *_: (0,) * nd)


# ---------------------------------------------------------------------------
# in-kernel building blocks
# ---------------------------------------------------------------------------
def _swish(y):
    # y * sigmoid(y), sigmoid via tanh: one EUP op per element (v5e-friendly).
    return y * (0.5 * jnp.tanh(0.5 * y) + 0.5)


def _gn_swish(x2d, beta, m, mt, mtg, eps):
    """GroupNorm (per-group stats over rows x C/G, f32) + affine + Swish.

    x2d:  (R, C) f32.
    m:    (C, G) one-hot membership;  mt = m.T (G, C);  mtg = m.T * gamma (G, C).
    Group reduce / broadcast are tiny MXU matmuls; the elementwise pass is a
    single fused scale/shift followed by Swish.
    """
    rows, c = x2d.shape
    g = m.shape[1]
    inv_count = 1.0 / float(rows * (c // g))

    s1 = jnp.sum(x2d, axis=0, keepdims=True)                        # (1, C) f32
    s2 = jnp.sum(x2d * x2d, axis=0, keepdims=True)                  # (1, C) f32
    gs1 = jnp.dot(s1, m, preferred_element_type=jnp.float32)        # (1, G)
    gs2 = jnp.dot(s2, m, preferred_element_type=jnp.float32)        # (1, G)
    mean = gs1 * inv_count
    # clamp: E[x^2] - mean^2 can go slightly negative from f32 cancellation
    var = jnp.maximum(gs2 * inv_count - mean * mean, 0.0)
    inv = lax.rsqrt(var + eps)                                      # (1, G)

    scale = jnp.dot(inv, mtg, preferred_element_type=jnp.float32)   # (1, C) = inv_c*gamma
    mean_c = jnp.dot(mean, mt, preferred_element_type=jnp.float32)  # (1, C)
    shift = beta - mean_c * scale                                   # (1, C)
    return _swish(x2d * scale + shift)          # one FMA per element + Swish


def _zero_halo(hp_ref, hh, ww):
    """Zero only the 1-element border of the padded scratch tile."""
    c = hp_ref.shape[-1]
    dt = hp_ref.dtype
    z_row = jnp.zeros((1, ww + 2, c), dt)
    z_col = jnp.zeros((hh, 1, c), dt)
    hp_ref[0:1, :, :] = z_row
    hp_ref[hh + 1:hh + 2, :, :] = z_row
    hp_ref[1:hh + 1, 0:1, :] = z_col
    hp_ref[1:hh + 1, ww + 1:ww + 2, :] = z_col


def _conv3x3_rows(hp_ref, w_ref, bias, hh, ww):
    """3x3 / pad=1 / stride=1 conv over a zero-padded bf16 VMEM tile.

    One MXU matmul per kernel row with contraction depth K = 3*Cin (the three
    kx-shifted windows are concatenated on the channel axis), instead of 9 taps
    of K = Cin -- much better fill of the 256-deep MXU on v6e/v7x.

    hp_ref: (H+2, W+2, Cin) bf16 ref (zero halo).
    w_ref:  (3, 3*Cin, Cout) bf16 ref, K ordered as (kx, cin).
    bias:   (1, Cout) f32; the accumulator is seeded with it.
    """
    cin = hp_ref.shape[-1]
    acc = bias                                          # broadcasts on first add
    for ky in range(3):
        rows = hp_ref[ky:ky + hh, :, :]                 # (H, W+2, Cin) bf16
        win = jnp.concatenate(
            [rows[:, 0:ww, :], rows[:, 1:ww + 1, :], rows[:, 2:ww + 2, :]],
            axis=-1).reshape(hh * ww, 3 * cin)          # (HW, 3*Cin) bf16
        acc = acc + jnp.dot(win, w_ref[ky], preferred_element_type=jnp.float32)
    return acc                                          # (HW, Cout) f32


# ---------------------------------------------------------------------------
# fused ResBlock kernel (one batch sample per grid step)
# ---------------------------------------------------------------------------
def _resblock_kernel(*refs, hh, ww, eps, has_res):
    if has_res:
        (x_ref, be1_ref, m1_ref, mt1_ref, mtg1_ref, w1_ref, cb1_ref,
         be2_ref, m2_ref, mt2_ref, mtg2_ref, w2_ref, cb2_ref,
         wres_ref, bres_ref, o_ref, hp1_ref, hp2_ref) = refs
    else:
        (x_ref, be1_ref, m1_ref, mt1_ref, mtg1_ref, w1_ref, cb1_ref,
         be2_ref, m2_ref, mt2_ref, mtg2_ref, w2_ref, cb2_ref,
         o_ref, hp1_ref, hp2_ref) = refs
        wres_ref = bres_ref = None

    cin = x_ref.shape[-1]
    cout = o_ref.shape[-1]

    # Halo-only zeroing: the interior is fully overwritten by y1/y2 below.
    # (Done every step -- safe when the "parallel" batch axis is split across
    #  cores, unlike a pl.when(program_id == 0) one-time init.)
    _zero_halo(hp1_ref, hh, ww)
    _zero_halo(hp2_ref, hh, ww)

    x2d = x_ref[...].reshape(hh * ww, cin)                          # (HW, Cin) f32

    # block1: GroupNorm -> Swish -> Conv3x3(pad=1)
    y1 = _gn_swish(x2d, be1_ref[...], m1_ref[...], mt1_ref[...], mtg1_ref[...], eps)
    hp1_ref[1:hh + 1, 1:ww + 1, :] = y1.reshape(hh, ww, cin).astype(jnp.bfloat16)
    h1 = _conv3x3_rows(hp1_ref, w1_ref, cb1_ref[...], hh, ww)       # (HW, Cout) f32

    # block2: GroupNorm -> Swish -> Conv3x3(pad=1)   (dropout=0 -> Identity)
    y2 = _gn_swish(h1, be2_ref[...], m2_ref[...], mt2_ref[...], mtg2_ref[...], eps)
    hp2_ref[1:hh + 1, 1:ww + 1, :] = y2.reshape(hh, ww, cout).astype(jnp.bfloat16)
    h2 = _conv3x3_rows(hp2_ref, w2_ref, cb2_ref[...], hh, ww)       # (HW, Cout) f32

    # residual: learned 1x1 conv if dim != dim_out, identity otherwise
    if has_res:
        res = jnp.dot(x2d.astype(jnp.bfloat16), wres_ref[...],
                      preferred_element_type=jnp.float32) + bres_ref[...]
    else:
        res = x2d

    o_ref[...] = (h2 + res).reshape(1, hh, ww, cout)


# ---------------------------------------------------------------------------
# public wrapper (NCHW in / NCHW out, like the PyTorch module)
# ---------------------------------------------------------------------------
def resblock_normal_forward(params, x_nchw, *, groups=32, eps=1e-5):
    x = jnp.transpose(x_nchw, (0, 2, 3, 1)).astype(jnp.float32)     # NHWC
    n, h, w, cin = x.shape
    cout = params["conv1_w"].shape[-1]
    has_res = "res_w" in params
    bf16 = jnp.bfloat16

    m1, mt1 = _group_onehot(cin, groups)
    m2, mt2 = _group_onehot(cout, groups)
    mtg1 = mt1 * params["gn1_g"].reshape(1, cin)     # fold gamma into broadcast-back
    mtg2 = mt2 * params["gn2_g"].reshape(1, cout)
    # HWIO (3,3,Cin,Cout) -> (3, 3*Cin, Cout): one matmul per kernel row (ky),
    # contraction ordered (kx, cin) to match the in-kernel window concat.
    w1 = params["conv1_w"].reshape(3, 3 * cin, cout).astype(bf16)
    w2 = params["conv2_w"].reshape(3, 3 * cout, cout).astype(bf16)

    inputs = [
        x,
        params["gn1_b"].reshape(1, cin), m1, mt1, mtg1,
        w1, params["conv1_b"].reshape(1, cout),
        params["gn2_b"].reshape(1, cout), m2, mt2, mtg2,
        w2, params["conv2_b"].reshape(1, cout),
    ]
    in_specs = [pl.BlockSpec((1, h, w, cin), lambda i: (i, 0, 0, 0))]
    in_specs += [_const_spec(a.shape) for a in inputs[1:]]
    if has_res:
        wres = params["res_w"].astype(bf16)
        bres = params["res_b"].reshape(1, cout)
        inputs += [wres, bres]
        in_specs += [_const_spec(wres.shape), _const_spec(bres.shape)]

    out = pl.pallas_call(
        functools.partial(_resblock_kernel, hh=h, ww=w, eps=eps, has_res=has_res),
        grid=(n,),
        out_shape=jax.ShapeDtypeStruct((n, h, w, cout), jnp.float32),
        in_specs=in_specs,
        out_specs=pl.BlockSpec((1, h, w, cout), lambda i: (i, 0, 0, 0)),
        scratch_shapes=[pltpu.VMEM((h + 2, w + 2, cin), bf16),     # bf16 padded halo tiles
                        pltpu.VMEM((h + 2, w + 2, cout), bf16)],
        compiler_params=pltpu.CompilerParams(
            dimension_semantics=("parallel",),
            vmem_limit_bytes=_vmem_limit_bytes()),
    )(*inputs)
    return jnp.transpose(out, (0, 3, 1, 2))                         # back to NCHW


# ---------------------------------------------------------------------------
# pure-JAX f32 reference (PyTorch semantics) + synthetic params
# ---------------------------------------------------------------------------
def _gn_ref(x, gamma, beta, groups, eps):
    n, h, w, c = x.shape
    xg = x.reshape(n, h * w, groups, c // groups)
    mean = xg.mean(axis=(1, 3), keepdims=True)
    var = jnp.mean((xg - mean) ** 2, axis=(1, 3), keepdims=True)
    xn = ((xg - mean) * lax.rsqrt(var + eps)).reshape(n, h, w, c)
    return xn * gamma.reshape(1, 1, 1, c) + beta.reshape(1, 1, 1, c)


def _conv3x3_ref(x, w_hwio, b):
    y = lax.conv_general_dilated(x, w_hwio, (1, 1), "SAME",
                                 dimension_numbers=("NHWC", "HWIO", "NHWC"),
                                 precision=lax.Precision.HIGHEST)
    return y + b.reshape(1, 1, 1, -1)


def resblock_normal_ref(params, x_nchw, *, groups=32, eps=1e-5):
    x = jnp.transpose(x_nchw, (0, 2, 3, 1)).astype(jnp.float32)
    h = _gn_ref(x, params["gn1_g"], params["gn1_b"], groups, eps)
    h = h * jax.nn.sigmoid(h)
    h = _conv3x3_ref(h, params["conv1_w"], params["conv1_b"])
    h = _gn_ref(h, params["gn2_g"], params["gn2_b"], groups, eps)
    h = h * jax.nn.sigmoid(h)
    h = _conv3x3_ref(h, params["conv2_w"], params["conv2_b"])
    if "res_w" in params:
        res = jnp.einsum("nhwc,co->nhwo", x, params["res_w"],
                         precision=lax.Precision.HIGHEST) + params["res_b"]
    else:
        res = x
    return jnp.transpose(h + res, (0, 3, 1, 2))


def init_resblock_params(key, dim, dim_out):
    ks = jax.random.split(key, 10)
    p = {
        "gn1_g": 1.0 + 0.1 * jax.random.normal(ks[0], (dim,), jnp.float32),
        "gn1_b": 0.1 * jax.random.normal(ks[1], (dim,), jnp.float32),
        "conv1_w": jax.random.normal(ks[2], (3, 3, dim, dim_out), jnp.float32)
                   / float((9 * dim) ** 0.5),
        "conv1_b": 0.02 * jax.random.normal(ks[3], (dim_out,), jnp.float32),
        "gn2_g": 1.0 + 0.1 * jax.random.normal(ks[4], (dim_out,), jnp.float32),
        "gn2_b": 0.1 * jax.random.normal(ks[5], (dim_out,), jnp.float32),
        "conv2_w": jax.random.normal(ks[6], (3, 3, dim_out, dim_out), jnp.float32)
                   / float((9 * dim_out) ** 0.5),
        "conv2_b": 0.02 * jax.random.normal(ks[7], (dim_out,), jnp.float32),
    }
    if dim != dim_out:  # res_conv = Conv2d(dim, dim_out, 1)
        p["res_w"] = jax.random.normal(ks[8], (dim, dim_out), jnp.float32) / float(dim ** 0.5)
        p["res_b"] = 0.02 * jax.random.normal(ks[9], (dim_out,), jnp.float32)
    return p


# ---------------------------------------------------------------------------
if __name__ == "__main__":
    key = jax.random.PRNGKey(0)
    kx, kp_a, kp_b = jax.random.split(key, 3)

    n, hgt, wid = 2, 16, 16
    dim, dim_out = 64, 128
    groups = 32

    x = jax.random.normal(kx, (n, dim, hgt, wid), jnp.float32)      # NCHW

    params_a = init_resblock_params(kp_a, dim, dim_out)             # 1x1 res conv
    params_b = init_resblock_params(kp_b, dim, dim)                 # identity res

    fwd = jax.jit(functools.partial(resblock_normal_forward, groups=groups))

    out_a = jax.block_until_ready(fwd(params_a, x))
    out_b = jax.block_until_ready(fwd(params_b, x))

    assert out_a.shape == (n, dim_out, hgt, wid), out_a.shape
    assert out_b.shape == (n, dim, hgt, wid), out_b.shape
    for out, p in ((out_a, params_a), (out_b, params_b)):
        assert out.dtype == jnp.float32
        ref = resblock_normal_ref(p, x, groups=groups)
        err = float(jnp.max(jnp.abs(out - ref)))
        assert bool(jnp.allclose(out, ref, rtol=5e-2, atol=5e-2)), err
    print("KERNEL_OK")
</pallas_src>

<mosaic_0001>
module attributes {stable_mosaic.version = 11 : i64} {
  func.func @_resblock_kernel(%arg0: i32, %arg1: memref<1x16x16x64xf32, #tpu.memory_space<vmem>>, %arg2: memref<1x64xf32, #tpu.memory_space<vmem>>, %arg3: memref<64x32xf32, #tpu.memory_space<vmem>>, %arg4: memref<32x64xf32, #tpu.memory_space<vmem>>, %arg5: memref<32x64xf32, #tpu.memory_space<vmem>>, %arg6: memref<3x192x128xbf16, #tpu.memory_space<vmem>>, %arg7: memref<1x128xf32, #tpu.memory_space<vmem>>, %arg8: memref<1x128xf32, #tpu.memory_space<vmem>>, %arg9: memref<128x32xf32, #tpu.memory_space<vmem>>, %arg10: memref<32x128xf32, #tpu.memory_space<vmem>>, %arg11: memref<32x128xf32, #tpu.memory_space<vmem>>, %arg12: memref<3x384x128xbf16, #tpu.memory_space<vmem>>, %arg13: memref<1x128xf32, #tpu.memory_space<vmem>>, %arg14: memref<64x128xbf16, #tpu.memory_space<vmem>>, %arg15: memref<1x128xf32, #tpu.memory_space<vmem>>, %arg16: memref<1x16x16x128xf32, #tpu.memory_space<vmem>>, %arg17: memref<18x18x64xbf16, #tpu.memory_space<vmem>>, %arg18: memref<18x18x128xbf16, #tpu.memory_space<vmem>>) attributes {dimension_semantics = [#tpu.dimension_semantics<parallel>], iteration_bounds = array<i64: 2>, scalar_prefetch = 0 : i64, scratch_operands = 2 : i64, tpu.core_type = #tpu.core_type<tc>, window_params = [{transform_indices = @transform_0, window_bounds = array<i64: 1, 16, 16, 64>}, {pipeline_mode = #tpu.pipeline_mode<synchronous>, transform_indices = @transform_1, window_bounds = array<i64: 1, 64>}, {pipeline_mode = #tpu.pipeline_mode<synchronous>, transform_indices = @transform_2, window_bounds = array<i64: 64, 32>}, {pipeline_mode = #tpu.pipeline_mode<synchronous>, transform_indices = @transform_3, window_bounds = array<i64: 32, 64>}, {pipeline_mode = #tpu.pipeline_mode<synchronous>, transform_indices = @transform_4, window_bounds = array<i64: 32, 64>}, {pipeline_mode = #tpu.pipeline_mode<synchronous>, transform_indices = @transform_5, window_bounds = array<i64: 3, 192, 128>}, {pipeline_mode = #tpu.pipeline_mode<synchronous>, transform_indices = @transform_6, window_bounds = array<i64: 1, 128>}, {pipeline_mode = #tpu.pipeline_mode<synchronous>, transform_indices = @transform_7, window_bounds = array<i64: 1, 128>}, {pipeline_mode = #tpu.pipeline_mode<synchronous>, transform_indices = @transform_8, window_bounds = array<i64: 128, 32>}, {pipeline_mode = #tpu.pipeline_mode<synchronous>, transform_indices = @transform_9, window_bounds = array<i64: 32, 128>}, {pipeline_mode = #tpu.pipeline_mode<synchronous>, transform_indices = @transform_10, window_bounds = array<i64: 32, 128>}, {pipeline_mode = #tpu.pipeline_mode<synchronous>, transform_indices = @transform_11, window_bounds = array<i64: 3, 384, 128>}, {pipeline_mode = #tpu.pipeline_mode<synchronous>, transform_indices = @transform_12, window_bounds = array<i64: 1, 128>}, {pipeline_mode = #tpu.pipeline_mode<synchronous>, transform_indices = @transform_13, window_bounds = array<i64: 64, 128>}, {pipeline_mode = #tpu.pipeline_mode<synchronous>, transform_indices = @transform_14, window_bounds = array<i64: 1, 128>}, {transform_indices = @transform_15, window_bounds = array<i64: 1, 16, 16, 128>}]} {
    %cst = arith.constant 0.000000e+00 : bf16
    %0 = vector.broadcast %cst : bf16 to vector<1x18x64xbf16>
    %cst_0 = arith.constant 0.000000e+00 : bf16
    %1 = vector.broadcast %cst_0 : bf16 to vector<16x1x64xbf16>
    %c0 = arith.constant 0 : index
    %c0_1 = arith.constant 0 : index
    %c0_2 = arith.constant 0 : index
    %2 = vector.load %arg17[%c0, %c0_1, %c0_2] : memref<18x18x64xbf16, #tpu.memory_space<vmem>>, vector<1x18x64xbf16>
    tpu.vector_store %arg17[%c0, %c0_1, %c0_2], %0 {strides = array<i32>} : memref<18x18x64xbf16, #tpu.memory_space<vmem>>, vector<1x18x64xbf16>,
    %c17 = arith.constant 17 : index
    %c0_3 = arith.constant 0 : index
    %c0_4 = arith.constant 0 : index
    %3 = vector.load %arg17[%c17, %c0_3, %c0_4] : memref<18x18x64xbf16, #tpu.memory_space<vmem>>, vector<1x18x64xbf16>
    tpu.vector_store %arg17[%c17, %c0_3, %c0_4], %0 {strides = array<i32>} : memref<18x18x64xbf16, #tpu.memory_space<vmem>>, vector<1x18x64xbf16>,
    %c1 = arith.constant 1 : index
    %c0_5 = arith.constant 0 : index
    %c0_6 = arith.constant 0 : index
    %4 = vector.load %arg17[%c1, %c0_5, %c0_6] : memref<18x18x64xbf16, #tpu.memory_space<vmem>>, vector<16x1x64xbf16>
    tpu.vector_store %arg17[%c1, %c0_5, %c0_6], %1 {strides = array<i32>} : memref<18x18x64xbf16, #tpu.memory_space<vmem>>, vector<16x1x64xbf16>,
    %c1_7 = arith.constant 1 : index
    %c17_8 = arith.constant 17 : index
    %c0_9 = arith.constant 0 : index
    %5 = vector.load %arg17[%c1_7, %c17_8, %c0_9] : memref<18x18x64xbf16, #tpu.memory_space<vmem>>, vector<16x1x64xbf16>
    tpu.vector_store %arg17[%c1_7, %c17_8, %c0_9], %1 {strides = array<i32>} : memref<18x18x64xbf16, #tpu.memory_space<vmem>>, vector<16x1x64xbf16>,
    %cst_10 = arith.constant 0.000000e+00 : bf16
    %6 = vector.broadcast %cst_10 : bf16 to vector<1x18x128xbf16>
    %cst_11 = arith.constant 0.000000e+00 : bf16
    %7 = vector.broadcast %cst_11 : bf16 to vector<16x1x128xbf16>
    %c0_12 = arith.constant 0 : index
    %c0_13 = arith.constant 0 : index
    %c0_14 = arith.constant 0 : index
    %8 = vector.load %arg18[%c0_12, %c0_13, %c0_14] : memref<18x18x128xbf16, #tpu.memory_space<vmem>>, vector<1x18x128xbf16>
    tpu.vector_store %arg18[%c0_12, %c0_13, %c0_14], %6 {strides = array<i32>} : memref<18x18x128xbf16, #tpu.memory_space<vmem>>, vector<1x18x128xbf16>,
    %c17_15 = arith.constant 17 : index
    %c0_16 = arith.constant 0 : index
    %c0_17 = arith.constant 0 : index
    %9 = vector.load %arg18[%c17_15, %c0_16, %c0_17] : memref<18x18x128xbf16, #tpu.memory_space<vmem>>, vector<1x18x128xbf16>
    tpu.vector_store %arg18[%c17_15, %c0_16, %c0_17], %6 {strides = array<i32>} : memref<18x18x128xbf16, #tpu.memory_space<vmem>>, vector<1x18x128xbf16>,
    %c1_18 = arith.constant 1 : index
    %c0_19 = arith.constant 0 : index
    %c0_20 = arith.constant 0 : index
    %10 = vector.load %arg18[%c1_18, %c0_19, %c0_20] : memref<18x18x128xbf16, #tpu.memory_space<vmem>>, vector<16x1x128xbf16>
    tpu.vector_store %arg18[%c1_18, %c0_19, %c0_20], %7 {strides = array<i32>} : memref<18x18x128xbf16, #tpu.memory_space<vmem>>, vector<16x1x128xbf16>,
    %c1_21 = arith.constant 1 : index
    %c17_22 = arith.constant 17 : index
    %c0_23 = arith.constant 0 : index
    %11 = vector.load %arg18[%c1_21, %c17_22, %c0_23] : memref<18x18x128xbf16, #tpu.memory_space<vmem>>, vector<16x1x128xbf16>
    tpu.vector_store %arg18[%c1_21, %c17_22, %c0_23], %7 {strides = array<i32>} : memref<18x18x128xbf16, #tpu.memory_space<vmem>>, vector<16x1x128xbf16>,
    %c0_24 = arith.constant 0 : index
    %c0_25 = arith.constant 0 : index
    %c0_26 = arith.constant 0 : index
    %c0_27 = arith.constant 0 : index
    %12 = vector.load %arg1[%c0_24, %c0_25, %c0_26, %c0_27] : memref<1x16x16x64xf32, #tpu.memory_space<vmem>>, vector<1x16x16x64xf32>
    %13 = vector.shape_cast %12 : vector<1x16x16x64xf32> to vector<256x64xf32>
    %c0_28 = arith.constant 0 : index
    %c0_29 = arith.constant 0 : index
    %14 = vector.load %arg2[%c0_28, %c0_29] : memref<1x64xf32, #tpu.memory_space<vmem>>, vector<1x64xf32>
    %c0_30 = arith.constant 0 : index
    %c0_31 = arith.constant 0 : index
    %15 = vector.load %arg3[%c0_30, %c0_31] : memref<64x32xf32, #tpu.memory_space<vmem>>, vector<64x32xf32>
    %c0_32 = arith.constant 0 : index
    %c0_33 = arith.constant 0 : index
    %16 = vector.load %arg4[%c0_32, %c0_33] : memref<32x64xf32, #tpu.memory_space<vmem>>, vector<32x64xf32>
    %c0_34 = arith.constant 0 : index
    %c0_35 = arith.constant 0 : index
    %17 = vector.load %arg5[%c0_34, %c0_35] : memref<32x64xf32, #tpu.memory_space<vmem>>, vector<32x64xf32>
    %cst_36 = arith.constant dense<0.000000e+00> : vector<64xf32>
    %18 = vector.multi_reduction <add>, %13, %cst_36 [0] : vector<256x64xf32> to vector<64xf32>
    %19 = vector.shape_cast %18 : vector<64xf32> to vector<1x64xf32>
    %20 = arith.mulf %13, %13 : vector<256x64xf32>
    %cst_37 = arith.constant dense<0.000000e+00> : vector<64xf32>
    %21 = vector.multi_reduction <add>, %20, %cst_37 [0] : vector<256x64xf32> to vector<64xf32>
    %22 = vector.shape_cast %21 : vector<64xf32> to vector<1x64xf32>
    %cst_38 = arith.constant dense<0.000000e+00> : vector<1x32xf32>
    %23 = tpu.matmul %19, %15, %cst_38 {dimension_numbers = #tpu.dot_dimension_numbers<[1], [0], [0], [1], [0, 0, 1, 1], [], []>} : vector<1x64xf32>, vector<64x32xf32>, vector<1x32xf32> -> vector<1x32xf32>
    %cst_39 = arith.constant dense<0.000000e+00> : vector<1x32xf32>
    %24 = tpu.matmul %22, %15, %cst_39 {dimension_numbers = #tpu.dot_dimension_numbers<[1], [0], [0], [1], [0, 0, 1, 1], [], []>} : vector<1x64xf32>, vector<64x32xf32>, vector<1x32xf32> -> vector<1x32xf32>
    %cst_40 = arith.constant 0.001953125 : f32
    %25 = vector.broadcast %cst_40 : f32 to vector<1x32xf32>
    %26 = arith.mulf %23, %25 : vector<1x32xf32>
    %cst_41 = arith.constant 0.001953125 : f32
    %27 = vector.broadcast %cst_41 : f32 to vector<1x32xf32>
    %28 = arith.mulf %24, %27 : vector<1x32xf32>
    %29 = arith.mulf %26, %26 : vector<1x32xf32>
    %30 = arith.subf %28, %29 : vector<1x32xf32>
    %cst_42 = arith.constant 0.000000e+00 : f32
    %31 = vector.broadcast %cst_42 : f32 to vector<1x32xf32>
    %32 = arith.maximumf %30, %31 : vector<1x32xf32>
    %cst_43 = arith.constant 9.99999974E-6 : f32
    %33 = vector.broadcast %cst_43 : f32 to vector<1x32xf32>
    %34 = arith.addf %32, %33 : vector<1x32xf32>
    %35 = math.rsqrt %34 : vector<1x32xf32>
    %cst_44 = arith.constant dense<0.000000e+00> : vector<1x64xf32>
    %36 = tpu.matmul %35, %17, %cst_44 {dimension_numbers = #tpu.dot_dimension_numbers<[1], [0], [0], [1], [0, 0, 1, 1], [], []>} : vector<1x32xf32>, vector<32x64xf32>, vector<1x64xf32> -> vector<1x64xf32>
    %cst_45 = arith.constant dense<0.000000e+00> : vector<1x64xf32>
    %37 = tpu.matmul %26, %16, %cst_45 {dimension_numbers = #tpu.dot_dimension_numbers<[1], [0], [0], [1], [0, 0, 1, 1], [], []>} : vector<1x32xf32>, vector<32x64xf32>, vector<1x64xf32> -> vector<1x64xf32>
    %38 = arith.mulf %37, %36 : vector<1x64xf32>
    %39 = arith.subf %14, %38 : vector<1x64xf32>
    %40 = vector.broadcast %36 : vector<1x64xf32> to vector<256x64xf32>
    %41 = arith.mulf %13, %40 : vector<256x64xf32>
    %42 = vector.broadcast %39 : vector<1x64xf32> to vector<256x64xf32>
    %43 = arith.addf %41, %42 : vector<256x64xf32>
    %cst_46 = arith.constant 5.000000e-01 : f32
    %44 = vector.broadcast %cst_46 : f32 to vector<256x64xf32>
    %45 = arith.mulf %44, %43 : vector<256x64xf32>
    %46 = math.tanh %45 : vector<256x64xf32>
    %cst_47 = arith.constant 5.000000e-01 : f32
    %47 = vector.broadcast %cst_47 : f32 to vector<256x64xf32>
    %48 = arith.mulf %47, %46 : vector<256x64xf32>
    %cst_48 = arith.constant 5.000000e-01 : f32
    %49 = vector.broadcast %cst_48 : f32 to vector<256x64xf32>
    %50 = arith.addf %48, %49 : vector<256x64xf32>
    %51 = arith.mulf %43, %50 : vector<256x64xf32>
    %52 = vector.shape_cast %51 : vector<256x64xf32> to vector<16x16x64xf32>
    %53 = arith.truncf %52 : vector<16x16x64xf32> to vector<16x16x64xbf16>
    %c1_49 = arith.constant 1 : index
    %c1_50 = arith.constant 1 : index
    %c0_51 = arith.constant 0 : index
    %54 = vector.load %arg17[%c1_49, %c1_50, %c0_51] : memref<18x18x64xbf16, #tpu.memory_space<vmem>>, vector<16x16x64xbf16>
    tpu.vector_store %arg17[%c1_49, %c1_50, %c0_51], %53 {strides = array<i32>} : memref<18x18x64xbf16, #tpu.memory_space<vmem>>, vector<16x16x64xbf16>,
    %c0_52 = arith.constant 0 : index
    %c0_53 = arith.constant 0 : index
    %55 = vector.load %arg7[%c0_52, %c0_53] : memref<1x128xf32, #tpu.memory_space<vmem>>, vector<1x128xf32>
    %c0_54 = arith.constant 0 : index
    %c0_55 = arith.constant 0 : index
    %c0_56 = arith.constant 0 : index
    %56 = vector.load %arg17[%c0_54, %c0_55, %c0_56] : memref<18x18x64xbf16, #tpu.memory_space<vmem>>, vector<16x18x64xbf16>
    %57 = vector.extract_strided_slice %56 {offsets = [0, 0, 0], sizes = [16, 16, 64], strides = [1, 1, 1]} : vector<16x18x64xbf16> to vector<16x16x64xbf16>
    %58 = vector.extract_strided_slice %56 {offsets = [0, 1, 0], sizes = [16, 16, 64], strides = [1, 1, 1]} : vector<16x18x64xbf16> to vector<16x16x64xbf16>
    %59 = vector.extract_strided_slice %56 {offsets = [0, 2, 0], sizes = [16, 16, 64], strides = [1, 1, 1]} : vector<16x18x64xbf16> to vector<16x16x64xbf16>
    %60 = tpu.concatenate %57, %58, %59 in 2 : vector<16x16x64xbf16>, vector<16x16x64xbf16>, vector<16x16x64xbf16> -> vector<16x16x192xbf16>
    %61 = vector.shape_cast %60 : vector<16x16x192xbf16> to vector<256x192xbf16>
    %c0_57 = arith.constant 0 : index
    %c0_58 = arith.constant 0 : index
    %c0_59 = arith.constant 0 : index
    %62 = vector.load %arg6[%c0_57, %c0_58, %c0_59] : memref<3x192x128xbf16, #tpu.memory_space<vmem>>, vector<1x192x128xbf16>
    %63 = vector.shape_cast %62 : vector<1x192x128xbf16> to vector<192x128xbf16>
    %cst_60 = arith.constant dense<0.000000e+00> : vector<256x128xf32>
    %64 = tpu.matmul %61, %63, %cst_60 {dimension_numbers = #tpu.dot_dimension_numbers<[1], [0], [0], [1], [0, 0, 1, 1], [], []>} : vector<256x192xbf16>, vector<192x128xbf16>, vector<256x128xf32> -> vector<256x128xf32>
    %65 = vector.broadcast %55 : vector<1x128xf32> to vector<256x128xf32>
    %66 = arith.addf %65, %64 : vector<256x128xf32>
    %c1_61 = arith.constant 1 : index
    %c0_62 = arith.constant 0 : index
    %c0_63 = arith.constant 0 : index
    %67 = vector.load %arg17[%c1_61, %c0_62, %c0_63] : memref<18x18x64xbf16, #tpu.memory_space<vmem>>, vector<16x18x64xbf16>
    %68 = vector.extract_strided_slice %67 {offsets = [0, 0, 0], sizes = [16, 16, 64], strides = [1, 1, 1]} : vector<16x18x64xbf16> to vector<16x16x64xbf16>
    %69 = vector.extract_strided_slice %67 {offsets = [0, 1, 0], sizes = [16, 16, 64], strides = [1, 1, 1]} : vector<16x18x64xbf16> to vector<16x16x64xbf16>
    %70 = vector.extract_strided_slice %67 {offsets = [0, 2, 0], sizes = [16, 16, 64], strides = [1, 1, 1]} : vector<16x18x64xbf16> to vector<16x16x64xbf16>
    %71 = tpu.concatenate %68, %69, %70 in 2 : vector<16x16x64xbf16>, vector<16x16x64xbf16>, vector<16x16x64xbf16> -> vector<16x16x192xbf16>
    %72 = vector.shape_cast %71 : vector<16x16x192xbf16> to vector<256x192xbf16>
    %c1_64 = arith.constant 1 : index
    %c0_65 = arith.constant 0 : index
    %c0_66 = arith.constant 0 : index
    %73 = vector.load %arg6[%c1_64, %c0_65, %c0_66] : memref<3x192x128xbf16, #tpu.memory_space<vmem>>, vector<1x192x128xbf16>
    %74 = vector.shape_cast %73 : vector<1x192x128xbf16> to vector<192x128xbf16>
    %cst_67 = arith.constant dense<0.000000e+00> : vector<256x128xf32>
    %75 = tpu.matmul %72, %74, %cst_67 {dimension_numbers = #tpu.dot_dimension_numbers<[1], [0], [0], [1], [0, 0, 1, 1], [], []>} : vector<256x192xbf16>, vector<192x128xbf16>, vector<256x128xf32> -> vector<256x128xf32>
    %76 = arith.addf %66, %75 : vector<256x128xf32>
    %c2 = arith.constant 2 : index
    %c0_68 = arith.constant 0 : index
    %c0_69 = arith.constant 0 : index
    %77 = vector.load %arg17[%c2, %c0_68, %c0_69] : memref<18x18x64xbf16, #tpu.memory_space<vmem>>, vector<16x18x64xbf16>
    %78 = vector.extract_strided_slice %77 {offsets = [0, 0, 0], sizes = [16, 16, 64], strides = [1, 1, 1]} : vector<16x18x64xbf16> to vector<16x16x64xbf16>
    %79 = vector.extract_strided_slice %77 {offsets = [0, 1, 0], sizes = [16, 16, 64], strides = [1, 1, 1]} : vector<16x18x64xbf16> to vector<16x16x64xbf16>
    %80 = vector.extract_strided_slice %77 {offsets = [0, 2, 0], sizes = [16, 16, 64], strides = [1, 1, 1]} : vector<16x18x64xbf16> to vector<16x16x64xbf16>
    %81 = tpu.concatenate %78, %79, %80 in 2 : vector<16x16x64xbf16>, vector<16x16x64xbf16>, vector<16x16x64xbf16> -> vector<16x16x192xbf16>
    %82 = vector.shape_cast %81 : vector<16x16x192xbf16> to vector<256x192xbf16>
    %c2_70 = arith.constant 2 : index
    %c0_71 = arith.constant 0 : index
    %c0_72 = arith.constant 0 : index
    %83 = vector.load %arg6[%c2_70, %c0_71, %c0_72] : memref<3x192x128xbf16, #tpu.memory_space<vmem>>, vector<1x192x128xbf16>
    %84 = vector.shape_cast %83 : vector<1x192x128xbf16> to vector<192x128xbf16>
    %cst_73 = arith.constant dense<0.000000e+00> : vector<256x128xf32>
    %85 = tpu.matmul %82, %84, %cst_73 {dimension_numbers = #tpu.dot_dimension_numbers<[1], [0], [0], [1], [0, 0, 1, 1], [], []>} : vector<256x192xbf16>, vector<192x128xbf16>, vector<256x128xf32> -> vector<256x128xf32>
    %86 = arith.addf %76, %85 : vector<256x128xf32>
    %c0_74 = arith.constant 0 : index
    %c0_75 = arith.constant 0 : index
    %87 = vector.load %arg8[%c0_74, %c0_75] : memref<1x128xf32, #tpu.memory_space<vmem>>, vector<1x128xf32>
    %c0_76 = arith.constant 0 : index
    %c0_77 = arith.constant 0 : index
    %88 = vector.load %arg9[%c0_76, %c0_77] : memref<128x32xf32, #tpu.memory_space<vmem>>, vector<128x32xf32>
    %c0_78 = arith.constant 0 : index
    %c0_79 = arith.constant 0 : index
    %89 = vector.load %arg10[%c0_78, %c0_79] : memref<32x128xf32, #tpu.memory_space<vmem>>, vector<32x128xf32>
    %c0_80 = arith.constant 0 : index
    %c0_81 = arith.constant 0 : index
    %90 = vector.load %arg11[%c0_80, %c0_81] : memref<32x128xf32, #tpu.memory_space<vmem>>, vector<32x128xf32>
    %cst_82 = arith.constant dense<0.000000e+00> : vector<128xf32>
    %91 = vector.multi_reduction <add>, %86, %cst_82 [0] : vector<256x128xf32> to vector<128xf32>
    %92 = vector.shape_cast %91 : vector<128xf32> to vector<1x128xf32>
    %93 = arith.mulf %86, %86 : vector<256x128xf32>
    %cst_83 = arith.constant dense<0.000000e+00> : vector<128xf32>
    %94 = vector.multi_reduction <add>, %93, %cst_83 [0] : vector<256x128xf32> to vector<128xf32>
    %95 = vector.shape_cast %94 : vector<128xf32> to vector<1x128xf32>
    %cst_84 = arith.constant dense<0.000000e+00> : vector<1x32xf32>
    %96 = tpu.matmul %92, %88, %cst_84 {dimension_numbers = #tpu.dot_dimension_numbers<[1], [0], [0], [1], [0, 0, 1, 1], [], []>} : vector<1x128xf32>, vector<128x32xf32>, vector<1x32xf32> -> vector<1x32xf32>
    %cst_85 = arith.constant dense<0.000000e+00> : vector<1x32xf32>
    %97 = tpu.matmul %95, %88, %cst_85 {dimension_numbers = #tpu.dot_dimension_numbers<[1], [0], [0], [1], [0, 0, 1, 1], [], []>} : vector<1x128xf32>, vector<128x32xf32>, vector<1x32xf32> -> vector<1x32xf32>
    %cst_86 = arith.constant 9.765625E-4 : f32
    %98 = vector.broadcast %cst_86 : f32 to vector<1x32xf32>
    %99 = arith.mulf %96, %98 : vector<1x32xf32>
    %cst_87 = arith.constant 9.765625E-4 : f32
    %100 = vector.broadcast %cst_87 : f32 to vector<1x32xf32>
    %101 = arith.mulf %97, %100 : vector<1x32xf32>
    %102 = arith.mulf %99, %99 : vector<1x32xf32>
    %103 = arith.subf %101, %102 : vector<1x32xf32>
    %cst_88 = arith.constant 0.000000e+00 : f32
    %104 = vector.broadcast %cst_88 : f32 to vector<1x32xf32>
    %105 = arith.maximumf %103, %104 : vector<1x32xf32>
    %cst_89 = arith.constant 9.99999974E-6 : f32
    %106 = vector.broadcast %cst_89 : f32 to vector<1x32xf32>
    %107 = arith.addf %105, %106 : vector<1x32xf32>
    %108 = math.rsqrt %107 : vector<1x32xf32>
    %cst_90 = arith.constant dense<0.000000e+00> : vector<1x128xf32>
    %109 = tpu.matmul %108, %90, %cst_90 {dimension_numbers = #tpu.dot_dimension_numbers<[1], [0], [0], [1], [0, 0, 1, 1], [], []>} : vector<1x32xf32>, vector<32x128xf32>, vector<1x128xf32> -> vector<1x128xf32>
    %cst_91 = arith.constant dense<0.000000e+00> : vector<1x128xf32>
    %110 = tpu.matmul %99, %89, %cst_91 {dimension_numbers = #tpu.dot_dimension_numbers<[1], [0], [0], [1], [0, 0, 1, 1], [], []>} : vector<1x32xf32>, vector<32x128xf32>, vector<1x128xf32> -> vector<1x128xf32>
    %111 = arith.mulf %110, %109 : vector<1x128xf32>
    %112 = arith.subf %87, %111 : vector<1x128xf32>
    %113 = vector.broadcast %109 : vector<1x128xf32> to vector<256x128xf32>
    %114 = arith.mulf %86, %113 : vector<256x128xf32>
    %115 = vector.broadcast %112 : vector<1x128xf32> to vector<256x128xf32>
    %116 = arith.addf %114, %115 : vector<256x128xf32>
    %cst_92 = arith.constant 5.000000e-01 : f32
    %117 = vector.broadcast %cst_92 : f32 to vector<256x128xf32>
    %118 = arith.mulf %117, %116 : vector<256x128xf32>
    %119 = math.tanh %118 : vector<256x128xf32>
    %cst_93 = arith.constant 5.000000e-01 : f32
    %120 = vector.broadcast %cst_93 : f32 to vector<256x128xf32>
    %121 = arith.mulf %120, %119 : vector<256x128xf32>
    %cst_94 = arith.constant 5.000000e-01 : f32
    %122 = vector.broadcast %cst_94 : f32 to vector<256x128xf32>
    %123 = arith.addf %121, %122 : vector<256x128xf32>
    %124 = arith.mulf %116, %123 : vector<256x128xf32>
    %125 = vector.shape_cast %124 : vector<256x128xf32> to vector<16x16x128xf32>
    %126 = arith.truncf %125 : vector<16x16x128xf32> to vector<16x16x128xbf16>
    %c1_95 = arith.constant 1 : index
    %c1_96 = arith.constant 1 : index
    %c0_97 = arith.constant 0 : index
    %127 = vector.load %arg18[%c1_95, %c1_96, %c0_97] : memref<18x18x128xbf16, #tpu.memory_space<vmem>>, vector<16x16x128xbf16>
    tpu.vector_store %arg18[%c1_95, %c1_96, %c0_97], %126 {strides = array<i32>} : memref<18x18x128xbf16, #tpu.memory_space<vmem>>, vector<16x16x128xbf16>,
    %c0_98 = arith.constant 0 : index
    %c0_99 = arith.constant 0 : index
    %128 = vector.load %arg13[%c0_98, %c0_99] : memref<1x128xf32, #tpu.memory_space<vmem>>, vector<1x128xf32>
    %c0_100 = arith.constant 0 : index
    %c0_101 = arith.constant 0 : index
    %c0_102 = arith.constant 0 : index
    %129 = vector.load %arg18[%c0_100, %c0_101, %c0_102] : memref<18x18x128xbf16, #tpu.memory_space<vmem>>, vector<16x18x128xbf16>
    %130 = vector.extract_strided_slice %129 {offsets = [0, 0, 0], sizes = [16, 16, 128], strides = [1, 1, 1]} : vector<16x18x128xbf16> to vector<16x16x128xbf16>
    %131 = vector.extract_strided_slice %129 {offsets = [0, 1, 0], sizes = [16, 16, 128], strides = [1, 1, 1]} : vector<16x18x128xbf16> to vector<16x16x128xbf16>
    %132 = vector.extract_strided_slice %129 {offsets = [0, 2, 0], sizes = [16, 16, 128], strides = [1, 1, 1]} : vector<16x18x128xbf16> to vector<16x16x128xbf16>
    %133 = tpu.concatenate %130, %131, %132 in 2 : vector<16x16x128xbf16>, vector<16x16x128xbf16>, vector<16x16x128xbf16> -> vector<16x16x384xbf16>
    %134 = vector.shape_cast %133 : vector<16x16x384xbf16> to vector<256x384xbf16>
    %c0_103 = arith.constant 0 : index
    %c0_104 = arith.constant 0 : index
    %c0_105 = arith.constant 0 : index
    %135 = vector.load %arg12[%c0_103, %c0_104, %c0_105] : memref<3x384x128xbf16, #tpu.memory_space<vmem>>, vector<1x384x128xbf16>
    %136 = vector.shape_cast %135 : vector<1x384x128xbf16> to vector<384x128xbf16>
    %cst_106 = arith.constant dense<0.000000e+00> : vector<256x128xf32>
    %137 = tpu.matmul %134, %136, %cst_106 {dimension_numbers = #tpu.dot_dimension_numbers<[1], [0], [0], [1], [0, 0, 1, 1], [], []>} : vector<256x384xbf16>, vector<384x128xbf16>, vector<256x128xf32> -> vector<256x128xf32>
    %138 = vector.broadcast %128 : vector<1x128xf32> to vector<256x128xf32>
    %139 = arith.addf %138, %137 : vector<256x128xf32>
    %c1_107 = arith.constant 1 : index
    %c0_108 = arith.constant 0 : index
    %c0_109 = arith.constant 0 : index
    %140 = vector.load %arg18[%c1_107, %c0_108, %c0_109] : memref<18x18x128xbf16, #tpu.memory_space<vmem>>, vector<16x18x128xbf16>
    %141 = vector.extract_strided_slice %140 {offsets = [0, 0, 0], sizes = [16, 16, 128], strides = [1, 1, 1]} : vector<16x18x128xbf16> to vector<16x16x128xbf16>
    %142 = vector.extract_strided_slice %140 {offsets = [0, 1, 0], sizes = [16, 16, 128], strides = [1, 1, 1]} : vector<16x18x128xbf16> to vector<16x16x128xbf16>
    %143 = vector.extract_strided_slice %140 {offsets = [0, 2, 0], sizes = [16, 16, 128], strides = [1, 1, 1]} : vector<16x18x128xbf16> to vector<16x16x128xbf16>
    %144 = tpu.concatenate %141, %142, %143 in 2 : vector<16x16x128xbf16>, vector<16x16x128xbf16>, vector<16x16x128xbf16> -> vector<16x16x384xbf16>
    %145 = vector.shape_cast %144 : vector<16x16x384xbf16> to vector<256x384xbf16>
    %c1_110 = arith.constant 1 : index
    %c0_111 = arith.constant 0 : index
    %c0_112 = arith.constant 0 : index
    %146 = vector.load %arg12[%c1_110, %c0_111, %c0_112] : memref<3x384x128xbf16, #tpu.memory_space<vmem>>, vector<1x384x128xbf16>
    %147 = vector.shape_cast %146 : vector<1x384x128xbf16> to vector<384x128xbf16>
    %cst_113 = arith.constant dense<0.000000e+00> : vector<256x128xf32>
    %148 = tpu.matmul %145, %147, %cst_113 {dimension_numbers = #tpu.dot_dimension_numbers<[1], [0], [0], [1], [0, 0, 1, 1], [], []>} : vector<256x384xbf16>, vector<384x128xbf16>, vector<256x128xf32> -> vector<256x128xf32>
    %149 = arith.addf %139, %148 : vector<256x128xf32>
    %c2_114 = arith.constant 2 : index
    %c0_115 = arith.constant 0 : index
    %c0_116 = arith.constant 0 : index
    %150 = vector.load %arg18[%c2_114, %c0_115, %c0_116] : memref<18x18x128xbf16, #tpu.memory_space<vmem>>, vector<16x18x128xbf16>
    %151 = vector.extract_strided_slice %150 {offsets = [0, 0, 0], sizes = [16, 16, 128], strides = [1, 1, 1]} : vector<16x18x128xbf16> to vector<16x16x128xbf16>
    %152 = vector.extract_strided_slice %150 {offsets = [0, 1, 0], sizes = [16, 16, 128], strides = [1, 1, 1]} : vector<16x18x128xbf16> to vector<16x16x128xbf16>
    %153 = vector.extract_strided_slice %150 {offsets = [0, 2, 0], sizes = [16, 16, 128], strides = [1, 1, 1]} : vector<16x18x128xbf16> to vector<16x16x128xbf16>
    %154 = tpu.concatenate %151, %152, %153 in 2 : vector<16x16x128xbf16>, vector<16x16x128xbf16>, vector<16x16x128xbf16> -> vector<16x16x384xbf16>
    %155 = vector.shape_cast %154 : vector<16x16x384xbf16> to vector<256x384xbf16>
    %c2_117 = arith.constant 2 : index
    %c0_118 = arith.constant 0 : index
    %c0_119 = arith.constant 0 : index
    %156 = vector.load %arg12[%c2_117, %c0_118, %c0_119] : memref<3x384x128xbf16, #tpu.memory_space<vmem>>, vector<1x384x128xbf16>
    %157 = vector.shape_cast %156 : vector<1x384x128xbf16> to vector<384x128xbf16>
    %cst_120 = arith.constant dense<0.000000e+00> : vector<256x128xf32>
    %158 = tpu.matmul %155, %157, %cst_120 {dimension_numbers = #tpu.dot_dimension_numbers<[1], [0], [0], [1], [0, 0, 1, 1], [], []>} : vector<256x384xbf16>, vector<384x128xbf16>, vector<256x128xf32> -> vector<256x128xf32>
    %159 = arith.addf %149, %158 : vector<256x128xf32>
    %160 = arith.truncf %13 : vector<256x64xf32> to vector<256x64xbf16>
    %c0_121 = arith.constant 0 : index
    %c0_122 = arith.constant 0 : index
    %161 = vector.load %arg14[%c0_121, %c0_122] : memref<64x128xbf16, #tpu.memory_space<vmem>>, vector<64x128xbf16>
    %cst_123 = arith.constant dense<0.000000e+00> : vector<256x128xf32>
    %162 = tpu.matmul %160, %161, %cst_123 {dimension_numbers = #tpu.dot_dimension_numbers<[1], [0], [0], [1], [0, 0, 1, 1], [], []>} : vector<256x64xbf16>, vector<64x128xbf16>, vector<256x128xf32> -> vector<256x128xf32>
    %c0_124 = arith.constant 0 : index
    %c0_125 = arith.constant 0 : index
    %163 = vector.load %arg15[%c0_124, %c0_125] : memref<1x128xf32, #tpu.memory_space<vmem>>, vector<1x128xf32>
    %164 = vector.broadcast %163 : vector<1x128xf32> to vector<256x128xf32>
    %165 = arith.addf %162, %164 : vector<256x128xf32>
    %166 = arith.addf %159, %165 : vector<256x128xf32>
    %167 = vector.shape_cast %166 : vector<256x128xf32> to vector<1x16x16x128xf32>
    %c0_126 = arith.constant 0 : index
    %c0_127 = arith.constant 0 : index
    %c0_128 = arith.constant 0 : index
    %c0_129 = arith.constant 0 : index
    %168 = vector.load %arg16[%c0_126, %c0_127, %c0_128, %c0_129] : memref<1x16x16x128xf32, #tpu.memory_space<vmem>>, vector<1x16x16x128xf32>
    tpu.vector_store %arg16[%c0_126, %c0_127, %c0_128, %c0_129], %167 {strides = array<i32>} : memref<1x16x16x128xf32, #tpu.memory_space<vmem>>, vector<1x16x16x128xf32>,
    return
  }
  func.func @transform_0(%arg0: i32) -> (i32, i32, i32, i32) {
    %c0_i32 = arith.constant 0 : i32
    %c0_i32_0 = arith.constant 0 : i32
    %c0_i32_1 = arith.constant 0 : i32
    %c0_i32_2 = arith.constant 0 : i32
    return %arg0, %c0_i32, %c0_i32_0, %c0_i32_1 : i32, i32, i32, i32
  }
  func.func @transform_1(%arg0: i32) -> (i32, i32) {
    %c0_i32 = arith.constant 0 : i32
    %c0_i32_0 = arith.constant 0 : i32
    %c0_i32_1 = arith.constant 0 : i32
    return %c0_i32, %c0_i32_0 : i32, i32
  }
  func.func @transform_2(%arg0: i32) -> (i32, i32) {
    %c0_i32 = arith.constant 0 : i32
    %c0_i32_0 = arith.constant 0 : i32
    %c0_i32_1 = arith.constant 0 : i32
    return %c0_i32, %c0_i32_0 : i32, i32
  }
  func.func @transform_3(%arg0: i32) -> (i32, i32) {
    %c0_i32 = arith.constant 0 : i32
    %c0_i32_0 = arith.constant 0 : i32
    %c0_i32_1 = arith.constant 0 : i32
    return %c0_i32, %c0_i32_0 : i32, i32
  }
  func.func @transform_4(%arg0: i32) -> (i32, i32) {
    %c0_i32 = arith.constant 0 : i32
    %c0_i32_0 = arith.constant 0 : i32
    %c0_i32_1 = arith.constant 0 : i32
    return %c0_i32, %c0_i32_0 : i32, i32
  }
  func.func @transform_5(%arg0: i32) -> (i32, i32, i32) {
    %c0_i32 = arith.constant 0 : i32
    %c0_i32_0 = arith.constant 0 : i32
    %c0_i32_1 = arith.constant 0 : i32
    %c0_i32_2 = arith.constant 0 : i32
    return %c0_i32, %c0_i32_0, %c0_i32_1 : i32, i32, i32
  }
  func.func @transform_6(%arg0: i32) -> (i32, i32) {
    %c0_i32 = arith.constant 0 : i32
    %c0_i32_0 = arith.constant 0 : i32
    %c0_i32_1 = arith.constant 0 : i32
    return %c0_i32, %c0_i32_0 : i32, i32
  }
  func.func @transform_7(%arg0: i32) -> (i32, i32) {
    %c0_i32 = arith.constant 0 : i32
    %c0_i32_0 = arith.constant 0 : i32
    %c0_i32_1 = arith.constant 0 : i32
    return %c0_i32, %c0_i32_0 : i32, i32
  }
  func.func @transform_8(%arg0: i32) -> (i32, i32) {
    %c0_i32 = arith.constant 0 : i32
    %c0_i32_0 = arith.constant 0 : i32
    %c0_i32_1 = arith.constant 0 : i32
    return %c0_i32, %c0_i32_0 : i32, i32
  }
  func.func @transform_9(%arg0: i32) -> (i32, i32) {
    %c0_i32 = arith.constant 0 : i32
    %c0_i32_0 = arith.constant 0 : i32
    %c0_i32_1 = arith.constant 0 : i32
    return %c0_i32, %c0_i32_0 : i32, i32
  }
  func.func @transform_10(%arg0: i32) -> (i32, i32) {
    %c0_i32 = arith.constant 0 : i32
    %c0_i32_0 = arith.constant 0 : i32
    %c0_i32_1 = arith.constant 0 : i32
    return %c0_i32, %c0_i32_0 : i32, i32
  }
  func.func @transform_11(%arg0: i32) -> (i32, i32, i32) {
    %c0_i32 = arith.constant 0 : i32
    %c0_i32_0 = arith.constant 0 : i32
    %c0_i32_1 = arith.constant 0 : i32
    %c0_i32_2 = arith.constant 0 : i32
    return %c0_i32, %c0_i32_0, %c0_i32_1 : i32, i32, i32
  }
  func.func @transform_12(%arg0: i32) -> (i32, i32) {
    %c0_i32 = arith.constant 0 : i32
    %c0_i32_0 = arith.constant 0 : i32
    %c0_i32_1 = arith.constant 0 : i32
    return %c0_i32, %c0_i32_0 : i32, i32
  }
  func.func @transform_13(%arg0: i32) -> (i32, i32) {
    %c0_i32 = arith.constant 0 : i32
    %c0_i32_0 = arith.constant 0 : i32
    %c0_i32_1 = arith.constant 0 : i32
    return %c0_i32, %c0_i32_0 : i32, i32
  }
  func.func @transform_14(%arg0: i32) -> (i32, i32) {
    %c0_i32 = arith.constant 0 : i32
    %c0_i32_0 = arith.constant 0 : i32
    %c0_i32_1 = arith.constant 0 : i32
    return %c0_i32, %c0_i32_0 : i32, i32
  }
  func.func @transform_15(%arg0: i32) -> (i32, i32, i32, i32) {
    %c0_i32 = arith.constant 0 : i32
    %c0_i32_0 = arith.constant 0 : i32
    %c0_i32_1 = arith.constant 0 : i32
    %c0_i32_2 = arith.constant 0 : i32
    return %arg0, %c0_i32, %c0_i32_0, %c0_i32_1 : i32, i32, i32, i32
  }
}

</mosaic_0001>

<bundles_post_ra>
// kernel: resblock_normal_forward.1
= control target key start
LH: loop header
LB: loop body
LE: loop exit
PB: predicated region body
PF: predicated region fallthrough
CT: control target
= control target key end

     0   :  { %s15857_s0 = inlined_call_operand.vmem [shape: f32[2,16,16,64], index: 0, kind: input, shape index: {}]   ;;  %s15858_s1 = inlined_call_operand.vmem [shape: f32[1,64], index: 1, kind: input, shape index: {}]   ;;  %s15859_s2 = inlined_call_operand.vmem [shape: f32[64,32], index: 2, kind: input, shape index: {}]   ;;  %s15860_s3 = inlined_call_operand.vmem [shape: f32[32,64], index: 3, kind: input, shape index: {}]   ;;  %s15861_s4 = inlined_call_operand.vmem [shape: f32[32,64], index: 4, kind: input, shape index: {}]   ;;  %s15862_s5 = inlined_call_operand.vmem [shape: bf16[3,192,128], index: 5, kind: input, shape index: {}]   ;;  %s15863_s6 = inlined_call_operand.vmem [shape: f32[1,128], index: 6, kind: input, shape index: {}]   ;;  %s15864_s7 = inlined_call_operand.vmem [shape: f32[1,128], index: 7, kind: input, shape index: {}]   ;;  %s15865_s8 = inlined_call_operand.vmem [shape: f32[128,32], index: 8, kind: input, shape index: {}]   ;;  %s15866_s9 = inlined_call_operand.vmem [shape: f32[32,128], index: 9, kind: input, shape index: {}]   ;;  %s15867_s10 = inlined_call_operand.vmem [shape: f32[32,128], index: 10, kind: input, shape index: {}]   ;;  %s15868_s11 = inlined_call_operand.vmem [shape: bf16[3,384,128], index: 11, kind: input, shape index: {}]   ;;  %s15869_s12 = inlined_call_operand.vmem [shape: f32[1,128], index: 12, kind: input, shape index: {}]   ;;  %s15870_s13 = inlined_call_operand.vmem [shape: bf16[64,128], index: 13, kind: input, shape index: {}]   ;;  %s15871_s14 = inlined_call_operand.vmem [shape: f32[1,128], index: 14, kind: input, shape index: {}]   ;;  %s15872_s15 = inlined_call_operand.hbm [shape: f32[2,16,16,128], index: 15, kind: output, shape index: {}]  }
   0x1   :  { %15913 = sst [smem:[#allocation42_spill]] %s15857_s0 }
   0x2   :  { %15914 = sst [smem:[#allocation43_spill]] %s15859_s2 }
   0x3   :  { %20 = vsyncpa [#allocation5], 0 }
   0x4   :  { %22 = vsyncpa [#allocation5 + $0x1], 0  ;;  %s11942_s18 = smov 0   ;;  %s11944_s19 = smov 0  }
   0x5   :  { %s11946_s20 = smov 0   ;;  %s11948_s21 = smov 0  }
   0x6 LB: > { %15915 = sst [smem:[#allocation7_spill]] %s11848_s20  ;;  %s11963_s22 = sadd.s32 4294967295, %s11852_s21   ;;  %s11852_s21 = sphi %s11948_s21, %s16089_s21   ;;  %s11848_s20 = sphi %s11946_s20, %s16091_s20   ;;  %s11844_s19 = sphi %s11944_s19, %s16093_s19   ;;  %s11840_s18 = sphi %s11942_s18, %s16092_s18  }
   0x7   : > { %s9145_s23 = sadd.s32 4294967294, %s11852_s21   ;;  %s11967_s24 = sadd.s32 1, %s11852_s21  }
   0x8   : > { %15916 = sst [smem:[#allocation8_spill]] %s11967_s24  ;;  %s355_s25 = sadd.s32 1, %s11848_s20 }
   0x9   : > { %s352_s26 = ssub.s32 %s11852_s21, %s11967_s24  ;;  %p365_p0 = scmp.ne.s32.totalorder %s11848_s20, %s11844_s19 }
   0xa   : > { %p353_p1 = scmp.eq.s32.totalorder %s352_s26, 0  ;;  %p366_p2 = scmp.eq.s32.totalorder %s11963_s22, 1 }
   0xb   : > { %p371_p3 = scmp.ne.s32.totalorder %s11844_s19, %s11840_s18  ;;  %p372_p4 = scmp.eq.s32.totalorder %s9145_s23, 1 }
   0xc   : > { %s11978_s27 = scalar_select %p353_p1, %s11848_s20, %s355_s25  }
   0xd   : > { %p11980_p5 = por %p366_p2, %p365_p0  ;;  %p11984_p6 = por %p372_p4, %p371_p3 }
   0xe   : > { %15917 = sst [smem:[#allocation9_spill]] %s11978_s27  ;;  %p9148_p7 = scmp.ge.s32.totalorder %s11852_s21, 1 }
   0xf   : > { %p440_p8 = scmp.lt.s32.totalorder %s11852_s21, 3 }
  0x11   : > { %p441_p9 = pnand %p9148_p7, %p440_p8 }
  0x13   : > { %444 = sbr.rel (%p441_p9) target bundleno = 2701 (0xa8d), region = 80 }
  0x1a   : > { %s15920_s2 = sld [smem:[#allocation43_spill]]  ;;  %v15876_v3 = vmov 0.0|0.0   ;;  %p488_p10 = scmp.lt.s32.totalorder %s11963_s22, 1  ;;  %vm11855_vm0 = vmmov 0   ;;  %v15878_v8 = vmov 0.0   ;;  %vm497_vm1 = vcmask 516096  }
  0x1b   : > { %10644 = vmatprep.subr.bf16.mxu0 %v15876_v3  ;;  %10656 = vmatprep.subr.bf16.mxu1 %v15876_v3  ;;  %vm505_vm2 = vsmask.f32 256  ;;  %v543_v9 = vld [vmem:[#allocation2 + $0x9c] sm:$0x1]  ;;  %v15921_v11 = vmov 0  ;;  %vm761_vm4 = vcmask 523264  }
  0x1c   : > { %10324 = vmatprep.mubr.msk.f32.mxu0 %vm11855_vm0, %v15878_v8  ;;  %10343 = vmatprep.mubr.msk.f32.mxu1 %vm11855_vm0, %v15878_v8  ;;  %s489_s20 = scalar_select %p488_p10, %s11963_s22, 1  ;;  %vm12018_vm3 = vmand %vm497_vm1, %vm505_vm2  ;;  %v546_v12 = vld [vmem:[#allocation2 + $0xa8] sm:$0x1]  ;;  %v549_v13 = vld [vmem:[#allocation2 + $0xb4] sm:$0x1]  ;;  %v15925_v22 = vmov 0 }
  0x1d   : > { %v15922_v11 = vsel %vm12018_vm3, 4294967295, %v15921_v11  ;;  %v544_v14 = vsel %vm12018_vm3, 0, %v543_v9  ;;  %v547_v15 = vsel %vm12018_vm3, 0, %v546_v12  ;;  %v550_v16 = vsel %vm12018_vm3, 0, %v549_v13  ;;  %v552_v17 = vld [vmem:[#allocation2 + $0xc0] sm:$0x1] }
  0x1e   : > { %15923 = vst [vmem:[#allocation10_spill] sm:$0xff] %v15922_v11  ;;  %s9742_s16 = sshll.u32 %s489_s20, 8  ;;  %545 = vst [vmem:[#allocation2 + $0x9c] sm:$0x1] %v544_v14  ;;  %v553_v20 = vsel %vm12018_vm3, 0, %v552_v17  ;;  %s15924_s0 = sld [smem:[#allocation42_spill]] }
  0x1f   : > { %548 = vst [vmem:[#allocation2 + $0xa8] sm:$0x1] %v547_v15  ;;  %551 = vst [vmem:[#allocation2 + $0xb4] sm:$0x1] %v550_v16  ;;  %vm555_vm5 = vsmask.f32 7938 }
  0x20   : > { %v745_v0 = vld [vmem:[%s15920_s2] sm:$0xff]  ;;  %v746_v1 = vld [vmem:[%s15920_s2 + $0x8] sm:$0xff]  ;;  %v747_v2 = vld [vmem:[%s15920_s2 + $0x10] sm:$0xff]  ;;  %554 = vst [vmem:[#allocation2 + $0xc0] sm:$0x1] %v553_v20  ;;  %vm494_vm7 = vcmask 519168  }
  0x21   : > { %v10645_v4 = vpack.c.bf16 %v746_v1, %v745_v0  ;;  %v748_v5 = vld [vmem:[%s15920_s2 + $0x18] sm:$0xff]  ;;  %v749_v6 = vld [vmem:[%s15920_s2 + $0x20] sm:$0xff]  ;;  %v750_v7 = vld [vmem:[%s15920_s2 + $0x28] sm:$0xff]  ;;  %vm2177_vm8 = vsmask.f32 7424  ;;  %vm1085_vm9 = vcmask 261120  }
  0x22   : > { %v10648_v10 = vpack.c.bf16 %v748_v5, %v747_v2  ;;  %v751_v18 = vld [vmem:[%s15920_s2 + $0x30] sm:$0xff]  ;;  %v752_v19 = vld [vmem:[%s15920_s2 + $0x38] sm:$0xff]  ;;  %vm12045_vm6 = vmand %vm497_vm1, %vm555_vm5  ;;  %v10651_v25 = vpack.c.bf16 %v750_v7, %v749_v6  ;;  %vm2402_vm10 = vcmask 1046528   ;;  %vm1564_vm11 = vsmask.f32 4368  ;;  %s9807_s2 = sshll.u32 %s11963_s22, 12 }
  0x23   : > { %10646 = vmatpush3.bf16.msra.mxu0 %v10645_v4  ;;  %10658 = vmatpush3.bf16.msra.mxu1 %v10645_v4  ;;  %v596_v21 = vld [vmem:[#allocation2 + $0xb0] sm:$0x1]  ;;  %v15926_v22 = vsel %vm12045_vm6, 4294967295, %v15925_v22  ;;  %v599_v23 = vld [vmem:[#allocation2 + $0xbc] sm:$0x1]  ;;  %v10654_v42 = vpack.c.bf16 %v752_v19, %v751_v18  ;;  %vm12820_vm12 = vmor %vm505_vm2, %vm1564_vm11  ;;  %vm613_vm14 = vcmask 1040384   ;;  %s15807_s22 = scalar_lea.hbm %s15872_s15, %s9807_s2 }
  0x24   : > { %10647 = vmatprep.subr.bf16.mxu0 %v15876_v3  ;;  %10659 = vmatprep.subr.bf16.mxu1 %v15876_v3  ;;  %s12041_s24 = scalar_lea.vmem %s15924_s0, %s9742_s16  ;;  %15927 = vst [vmem:[#allocation11_spill] sm:$0xff] %v15926_v22  ;;  %v602_v24 = vld [vmem:[#allocation2 + $0xc8] sm:$0x1]  ;;  %v597_v26 = vsel %vm12045_vm6, 0, %v596_v21  ;;  %v600_v27 = vsel %vm12045_vm6, 0, %v599_v23  ;;  %s11858_s0 = smov 64   ;;  %vm12834_vm13 = vmand %vm494_vm7, %vm555_vm5 }
  0x25   : > { %v603_v28 = vsel %vm12045_vm6, 0, %v602_v24  ;;  %v712_v29 = vld [vmem:[%s12041_s24] sm:$0xff]  ;;  %v713_v30 = vld [vmem:[%s12041_s24 + $0x8] sm:$0xff]  ;;  %v714_v31 = vld [vmem:[%s12041_s24 + $0x10] sm:$0xff]  ;;  %598 = vst [vmem:[#allocation2 + $0xb0] sm:$0x1] %v597_v26 }
  0x26   : > { %601 = vst [vmem:[#allocation2 + $0xbc] sm:$0x1] %v600_v27  ;;  %604 = vst [vmem:[#allocation2 + $0xc8] sm:$0x1] %v603_v28  ;;  %v715_v32 = vld [vmem:[%s12041_s24 + $0x18] sm:$0xff]  ;;  %v12062_v33 = vld [vmem:[%s12041_s24 + $0x20] sm:$0xff]  ;;  %v12102_v53 = vmul.f32 %v712_v29, %v712_v29  ;;  %v12121_v60 = vmul.f32 %v713_v30, %v713_v30  ;;  %v833_v13 = vmul.f32 %v714_v31, %v714_v31 }
  0x27   : > { %10649 = vmatpush3.bf16.msra.mxu0 %v10648_v10  ;;  %10661 = vmatpush3.bf16.msra.mxu1 %v10648_v10  ;;  %v12065_v34 = vld [vmem:[%s12041_s24 + $0x28] sm:$0xff]  ;;  %v762_v35 = vsel %vm761_vm4, %v712_v29, 0.0  ;;  %v763_v36 = vsel %vm761_vm4, %v713_v30, 0.0  ;;  %v765_v37 = vsel %vm761_vm4, %v714_v31, 0.0  ;;  %v12071_v38 = vld [vmem:[%s12041_s24 + $0x30] sm:$0xff]  ;;  %v12074_v39 = vld [vmem:[%s12041_s24 + $0x38] sm:$0xff]  ;;  %v834_v28 = vmul.f32 %v715_v32, %v715_v32 }
  0x28   : > { %10650 = vmatprep.subr.bf16.mxu0 %v15876_v3  ;;  %10662 = vmatprep.subr.bf16.mxu1 %v15876_v3  ;;  %v12077_v40 = vld [vmem:[%s12041_s24 + $0x40] sm:$0xff]  ;;  %v764_v41 = vadd.f32 %v763_v36, %v762_v35  ;;  %v12080_v43 = vld [vmem:[%s12041_s24 + $0x48] sm:$0xff]  ;;  %v12083_v44 = vld [vmem:[%s12041_s24 + $0x50] sm:$0xff]  ;;  %v767_v46 = vsel %vm761_vm4, %v715_v32, 0.0  ;;  %v769_v51 = vsel %vm761_vm4, %v12062_v33, 0.0  ;;  %v771_v52 = vsel %vm761_vm4, %v12065_v34, 0.0 }
  0x29   : > { %v12086_v45 = vld [vmem:[%s12041_s24 + $0x58] sm:$0xff]  ;;  %v12090_v47 = vld [vmem:[%s12041_s24 + $0x60] sm:$0xff]  ;;  %v12093_v48 = vld [vmem:[%s12041_s24 + $0x68] sm:$0xff]  ;;  %v773_v57 = vsel %vm761_vm4, %v12071_v38, 0.0  ;;  %v775_v58 = vsel %vm761_vm4, %v12074_v39, 0.0  ;;  %v777_v59 = vsel %vm761_vm4, %v12077_v40, 0.0  ;;  %v838_v8 = vmul.f32 %v12074_v39, %v12074_v39 }
  0x2a   : > { %v12096_v49 = vld [vmem:[%s12041_s24 + $0x70] sm:$0xff]  ;;  %v766_v50 = vadd.f32 %v765_v37, %v764_v41  ;;  %v12107_v54 = vld [vmem:[%s12041_s24 + $0x78] sm:$0xff]  ;;  %v12110_v55 = vld [vmem:[%s12041_s24 + $0x80] sm:$0xff]  ;;  %v779_v1 = vsel %vm761_vm4, %v12080_v43, 0.0  ;;  %v12136_v2 = vsel %vm761_vm4, %v12083_v44, 0.0  ;;  %v12140_v4 = vsel %vm761_vm4, %v12086_v45, 0.0 }
  0x2b   : > { %10652 = vmatpush3.bf16.msra.mxu0 %v10651_v25  ;;  %10664 = vmatpush3.bf16.msra.mxu1 %v10651_v25  ;;  %v12113_v56 = vld [vmem:[%s12041_s24 + $0x88] sm:$0xff]  ;;  %v12124_v61 = vld [vmem:[%s12041_s24 + $0x90] sm:$0xff]  ;;  %v12127_v62 = vld [vmem:[%s12041_s24 + $0x98] sm:$0xff]  ;;  %v12147_v9 = vsel %vm761_vm4, %v12090_v47, 0.0  ;;  %v12151_v10 = vsel %vm761_vm4, %v12093_v48, 0.0  ;;  %v12155_v12 = vsel %vm761_vm4, %v12096_v49, 0.0  ;;  %v839_v22 = vmul.f32 %v12077_v40, %v12077_v40 }
  0x2c   : > { %10653 = vmatprep.subr.bf16.mxu0 %v15876_v3  ;;  %10665 = vmatprep.subr.bf16.mxu1 %v15876_v3  ;;  %v12130_v63 = vld [vmem:[%s12041_s24 + $0xa0] sm:$0xff]  ;;  %v768_v0 = vadd.f32 %v767_v46, %v766_v50  ;;  %v733_v5 = vld [vmem:[%s12041_s24 + $0xa8] sm:$0xff]  ;;  %v734_v6 = vld [vmem:[%s12041_s24 + $0xb0] sm:$0xff]  ;;  %v12162_v18 = vsel %vm761_vm4, %v12107_v54, 0.0  ;;  %v12166_v19 = vsel %vm761_vm4, %v12110_v55, 0.0  ;;  %v12170_v20 = vsel %vm761_vm4, %v12113_v56, 0.0 }
  0x2d   : > { %v735_v7 = vld [vmem:[%s12041_s24 + $0xb8] sm:$0xff]  ;;  %v736_v14 = vld [vmem:[%s12041_s24 + $0xc0] sm:$0xff]  ;;  %v737_v15 = vld [vmem:[%s12041_s24 + $0xc8] sm:$0xff]  ;;  %v12179_v25 = vsel %vm761_vm4, %v12124_v61, 0.0  ;;  %v12183_v26 = vsel %vm761_vm4, %v12127_v62, 0.0  ;;  %v12187_v27 = vsel %vm761_vm4, %v12130_v63, 0.0  ;;  %v835_v46 = vmul.f32 %v12062_v33, %v12062_v33 }
  0x2e   : > { %v738_v16 = vld [vmem:[%s12041_s24 + $0xd0] sm:$0xff]  ;;  %v770_v17 = vadd.f32 %v769_v51, %v768_v0  ;;  %v739_v21 = vld [vmem:[%s12041_s24 + $0xd8] sm:$0xff]  ;;  %v740_v23 = vld [vmem:[%s12041_s24 + $0xe0] sm:$0xff]  ;;  %v12198_v35 = vsel %vm761_vm4, %v733_v5, 0.0  ;;  %v12201_v36 = vsel %vm761_vm4, %v734_v6, 0.0  ;;  %v12204_v37 = vsel %vm761_vm4, %v735_v7, 0.0 }
  0x2f   : > { %10655 = vmatpush3.bf16.msra.mxu0 %v10654_v42  ;;  %10667 = vmatpush3.bf16.msra.mxu1 %v10654_v42  ;;  %v12175_v24 = vld [vmem:[%s12041_s24 + $0xe8] sm:$0xff]  ;;  %v12192_v29 = vld [vmem:[%s12041_s24 + $0xf0] sm:$0xff]  ;;  %v12195_v30 = vld [vmem:[%s12041_s24 + $0xf8] sm:$0xff]  ;;  %v12207_v32 = vsel %vm761_vm4, %v736_v14, 0.0  ;;  %v12210_v41 = vsel %vm761_vm4, %v737_v15, 0.0  ;;  %v12213_v42 = vsel %vm761_vm4, %v738_v16, 0.0  ;;  %v836_v33 = vmul.f32 %v12065_v34, %v12065_v34 }
  0x30   : > { %15928 = vst [vmem:[#allocation12_spill] sm:$0xff] %v12175_v24  ;;  %10674 = vmatprep.subr.bf16.mxu1 %v15876_v3  ;;  %10668 = vmatprep.subr.bf16.mxu0 %v15876_v3  ;;  %15929 = vst [vmem:[#allocation13_spill] sm:$0xff] %v12192_v29  ;;  %v772_v31 = vadd.f32 %v771_v52, %v770_v17  ;;  %v12218_v51 = vsel %vm761_vm4, %v739_v21, 0.0  ;;  %v12221_v52 = vsel %vm761_vm4, %v740_v23, 0.0  ;;  %v12225_v0 = vsel %vm761_vm4, %v12175_v24, 0.0 }
  0x31   : > { %15930 = vst [vmem:[#allocation14_spill] sm:$0xff] %v12195_v30  ;;  %15931 = vst [vmem:[#allocation15_spill] sm:$0xff] %v12225_v0  ;;  %v12229_v17 = vsel %vm761_vm4, %v12192_v29, 0.0  ;;  %v12233_v3 = vsel %vm761_vm4, %v12195_v30, 0.0  ;;  %v840_v11 = vmul.f32 %v12080_v43, %v12080_v43  ;;  %v841_v30 = vmul.f32 %v12083_v44, %v12083_v44 }
  0x32   : > { %v774_v50 = vadd.f32 %v773_v57, %v772_v31  ;;  %15932 = vst [vmem:[#allocation16_spill] sm:$0xff] %v12229_v17  ;;  %15933 = vst [vmem:[#allocation17_spill] sm:$0xff] %v12233_v3  ;;  %v837_v57 = vmul.f32 %v12071_v38, %v12071_v38  ;;  %v842_v29 = vmul.f32 %v12086_v45, %v12086_v45  ;;  %v866_v3 = vsel %vm761_vm4, %v833_v13, 0.0 }
  0x33   : > { %v843_v34 = vmul.f32 %v12090_v47, %v12090_v47  ;;  %v844_v38 = vmul.f32 %v12093_v48, %v12093_v48  ;;  %v845_v39 = vmul.f32 %v12096_v49, %v12096_v49  ;;  %v846_v40 = vmul.f32 %v12107_v54, %v12107_v54  ;;  %vm13530_vm15 = vmand %vm613_vm14, %vm505_vm2 }
  0x34   : > { %v776_v31 = vadd.f32 %v775_v58, %v774_v50  ;;  %v847_v43 = vmul.f32 %v12110_v55, %v12110_v55  ;;  %v848_v44 = vmul.f32 %v12113_v56, %v12113_v56  ;;  %v849_v45 = vmul.f32 %v12124_v61, %v12124_v61 }
  0x35   : > { %v850_v47 = vmul.f32 %v12127_v62, %v12127_v62  ;;  %v851_v48 = vmul.f32 %v12130_v63, %v12130_v63  ;;  %v852_v49 = vmul.f32 %v733_v5, %v733_v5  ;;  %v853_v50 = vmul.f32 %v734_v6, %v734_v6 }
  0x36   : > { %v778_v58 = vadd.f32 %v777_v59, %v776_v31  ;;  %v854_v31 = vmul.f32 %v735_v7, %v735_v7  ;;  %v855_v54 = vmul.f32 %v736_v14, %v736_v14  ;;  %v863_v55 = vsel %vm761_vm4, %v12102_v53, 0.0 }
  0x37   : > { %v864_v56 = vsel %vm761_vm4, %v12121_v60, 0.0  ;;  %v856_v24 = vmul.f32 %v737_v15, %v737_v15  ;;  %v857_v62 = vmul.f32 %v738_v16, %v738_v16  ;;  %v858_v0 = vmul.f32 %v739_v21, %v739_v21 }
  0x38   : > { %v780_v59 = vadd.f32 %v779_v1, %v778_v58  ;;  %v865_v17 = vadd.f32 %v864_v56, %v863_v55  ;;  %v859_v63 = vmul.f32 %v740_v23, %v740_v23  ;;  %v868_v1 = vsel %vm761_vm4, %v834_v28, 0.0 }
  0x39   : > { %v870_v5 = vsel %vm761_vm4, %v835_v46, 0.0  ;;  %v872_v53 = vsel %vm761_vm4, %v836_v33, 0.0  ;;  %v874_v60 = vsel %vm761_vm4, %v837_v57, 0.0  ;;  %v876_v13 = vsel %vm761_vm4, %v838_v8, 0.0 }
  0x3a   : > { %v782_v61 = vadd.f32 %v12136_v2, %v780_v59  ;;  %v867_v7 = vadd.f32 %v866_v3, %v865_v17  ;;  %v878_v2 = vsel %vm761_vm4, %v839_v22, 0.0  ;;  %v880_v14 = vsel %vm761_vm4, %v840_v11, 0.0 }
  0x3b   : > { %v882_v15 = vsel %vm761_vm4, %v841_v30, 0.0  ;;  %v884_v23 = vsel %vm761_vm4, %v842_v29, 0.0  ;;  %v888_v3 = vsel %vm761_vm4, %v844_v38, 0.0  ;;  %v890_v28 = vsel %vm761_vm4, %v845_v39, 0.0 }
  0x3c   : > { %v784_v6 = vadd.f32 %v12140_v4, %v782_v61  ;;  %v869_v21 = vadd.f32 %v868_v1, %v867_v7  ;;  %v886_v4 = vsel %vm761_vm4, %v843_v34, 0.0  ;;  %v892_v46 = vsel %vm761_vm4, %v846_v40, 0.0 }
  0x3d   : > { %v894_v8 = vsel %vm761_vm4, %v847_v43, 0.0  ;;  %v896_v30 = vsel %vm761_vm4, %v848_v44, 0.0  ;;  %v900_v17 = vsel %vm761_vm4, %v850_v47, 0.0  ;;  %v902_v29 = vsel %vm761_vm4, %v851_v48, 0.0 }
  0x3e   : > { %v786_v16 = vadd.f32 %v12147_v9, %v784_v6  ;;  %v871_v11 = vadd.f32 %v870_v5, %v869_v21  ;;  %v898_v9 = vsel %vm761_vm4, %v849_v45, 0.0  ;;  %v904_v33 = vsel %vm761_vm4, %v852_v49, 0.0 }
  0x3f   : > { %v906_v57 = vsel %vm761_vm4, %v853_v50, 0.0  ;;  %v908_v58 = vsel %vm761_vm4, %v854_v31, 0.0  ;;  %v912_v39 = vsel %vm761_vm4, %v856_v24, 0.0  ;;  %v914_v40 = vsel %vm761_vm4, %v857_v62, 0.0 }
  0x40   : > { %v788_v22 = vadd.f32 %v12151_v10, %v786_v16  ;;  %v873_v38 = vadd.f32 %v872_v53, %v871_v11  ;;  %v910_v10 = vsel %vm761_vm4, %v855_v54, 0.0  ;;  %v916_v43 = vsel %vm761_vm4, %v858_v0, 0.0 }
  0x41   : > { %v918_v44 = vsel %vm761_vm4, %v859_v63, 0.0 }
  0x42   : > { %v790_v34 = vadd.f32 %v12155_v12, %v788_v22  ;;  %v875_v47 = vadd.f32 %v874_v60, %v873_v38 }
  0x44   : > { %v792_v45 = vadd.f32 %v12162_v18, %v790_v34  ;;  %v877_v59 = vadd.f32 %v876_v13, %v875_v47 }
  0x46   : > { %v794_v48 = vadd.f32 %v12166_v19, %v792_v45  ;;  %v879_v49 = vadd.f32 %v878_v2, %v877_v59  ;;  %v15940_v45 = vmov 0.0  }
  0x48   : > { %v796_v12 = vadd.f32 %v12170_v20, %v794_v48  ;;  %v881_v31 = vadd.f32 %v880_v14, %v879_v49  ;;  %v15936_v14 = vld [vmem:[#allocation12_spill] sm:$0xff] }
  0x4a   : > { %v798_v50 = vadd.f32 %v12179_v25, %v796_v12  ;;  %v883_v54 = vadd.f32 %v882_v15, %v881_v31  ;;  %v15941_v31 = vmov 0.0|0.0  }
  0x4c   : > { %v800_v24 = vadd.f32 %v12183_v26, %v798_v50  ;;  %v885_v0 = vadd.f32 %v884_v23, %v883_v54  ;;  %v15938_v23 = vld [vmem:[#allocation13_spill] sm:$0xff]  ;;  %v756_v54 = vld [vmem:[%s15860_s3 + $0x18] sm:$0xff] }
  0x4e   : > { %v802_v55 = vadd.f32 %v12187_v27, %v800_v24  ;;  %v887_v61 = vadd.f32 %v886_v4, %v885_v0  ;;  %v755_v24 = vld [vmem:[%s15860_s3 + $0x10] sm:$0xff]  ;;  %v757_v0 = vld [vmem:[%s15861_s4] sm:$0xff] }
  0x50   : > { %v804_v56 = vadd.f32 %v12198_v35, %v802_v55  ;;  %v889_v62 = vadd.f32 %v888_v3, %v887_v61  ;;  %v10678_v55 = vpack.c.bf16 %v756_v54, %v755_v24  ;;  %v759_v61 = vld [vmem:[%s15861_s4 + $0x10] sm:$0xff]  ;;  %v566_v24 = vld [vmem:[#allocation2 + $0x38] sm:$0x1] }
  0x52   : > { %v806_v18 = vadd.f32 %v12201_v36, %v804_v56  ;;  %v891_v63 = vadd.f32 %v890_v28, %v889_v62  ;;  %v15934_v36 = vld [vmem:[#allocation15_spill] sm:$0xff]  ;;  %v758_v56 = vld [vmem:[%s15861_s4 + $0x8] sm:$0xff] }
  0x53   : > { %v760_v62 = vld [vmem:[%s15861_s4 + $0x18] sm:$0xff] }
  0x54   : > { %v808_v19 = vadd.f32 %v12204_v37, %v806_v18  ;;  %v893_v1 = vadd.f32 %v892_v46, %v891_v63  ;;  %v15935_v37 = vld [vmem:[#allocation16_spill] sm:$0xff]  ;;  %v10669_v18 = vpack.c.bf16 %v758_v56, %v757_v0  ;;  %v15887_v63 = vmov 0   ;;  %v519_v0 = vld [vmem:[#allocation2 + $0x3c] sm:$0x1] }
  0x55   : > { %495 = vst.msk [vmem:[#allocation2] sm:$0xf] %vm494_vm7, %v15887_v63  ;;  %496 = vst.msk [vmem:[#allocation2 + $0x4] sm:$0xf] %vm494_vm7, %v15887_v63  ;;  %v520_v56 = vsel %vm12018_vm3, 0, %v519_v0  ;;  %v11645_v0 = vld [vmem:[%s12041_s24 + $0xa0] sm:$0xff] }
  0x56   : > { %v810_v20 = vadd.f32 %v12207_v32, %v808_v19  ;;  %v895_v5 = vadd.f32 %v894_v8, %v893_v1  ;;  %v860_v32 = vmul.f32 %v15936_v14, %v15936_v14  ;;  %v15939_v8 = vld [vmem:[#allocation14_spill] sm:$0xff]  ;;  %v10672_v19 = vpack.c.bf16 %v760_v62, %v759_v61  ;;  %498 = vst.msk [vmem:[#allocation2 + $0x8] sm:$0x1] %vm497_vm1, %v15887_v63  ;;  %v569_v61 = vld [vmem:[#allocation2 + $0x44] sm:$0x1] }
  0x57   : > { %v862_v22 = vmul.f32 %v15939_v8, %v15939_v8  ;;  %500 = vst.msk [vmem:[#allocation2 + $0xcc] sm:$0xf] %vm494_vm7, %v15887_v63  ;;  %501 = vst.msk [vmem:[#allocation2 + $0xd0] sm:$0xf] %vm494_vm7, %v15887_v63  ;;  %v11211_v8 = vld [vmem:[%s15862_s5 + $0x38] sm:$0xff]   ;;  %v570_v62 = vsel %vm12045_vm6, 0, %v569_v61 }
  0x58   : > { %v812_v25 = vadd.f32 %v12210_v41, %v810_v20  ;;  %v897_v6 = vadd.f32 %v896_v30, %v895_v5  ;;  %v15937_v41 = vld [vmem:[#allocation17_spill] sm:$0xff]  ;;  %502 = vst.msk [vmem:[#allocation2 + $0xd4] sm:$0x1] %vm497_vm1, %v15887_v63  ;;  %605 = vst [vmem:[#allocation3] sm:$0xf] %v15887_v63 }
  0x59   : > { %606 = vst [vmem:[#allocation3 + $0x4] sm:$0xf] %v15887_v63  ;;  %607 = vst [vmem:[#allocation3 + $0x8] sm:$0x1] %v15887_v63  ;;  %v11646_v61 = vld [vmem:[%s12041_s24 + $0xa8] sm:$0xff] }
  0x5a   : > { %v814_v26 = vadd.f32 %v12213_v42, %v812_v25  ;;  %v899_v7 = vadd.f32 %v898_v9, %v897_v6  ;;  %609 = vst [vmem:[#allocation3 + $0xcc] sm:$0xf] %v15887_v63  ;;  %610 = vst [vmem:[#allocation3 + $0xd0] sm:$0xf] %v15887_v63 }
  0x5b   : > { %611 = vst [vmem:[#allocation3 + $0xd4] sm:$0x1] %v15887_v63  ;;  %521 = vst [vmem:[#allocation2 + $0x3c] sm:$0x1] %v520_v56 }
  0x5c   : > { %v816_v27 = vadd.f32 %v12218_v51, %v814_v26  ;;  %v901_v53 = vadd.f32 %v900_v17, %v899_v7  ;;  %v861_v51 = vmul.f32 %v15938_v23, %v15938_v23  ;;  %v12381_v20 = vld [vmem:[#allocation2] sm:$0xff]   ;;  %v11206_v23 = vld [vmem:[%s15862_s5 + $0x10] sm:$0xff]   ;;  %571 = vst [vmem:[#allocation2 + $0x44] sm:$0x1] %v570_v62  ;;  %vm13604_vm1 = vmand %vm613_vm14, %vm555_vm5 }
  0x5d   : > { %v12383_v1 = vld [vmem:[#allocation2 + $0x8] ss:$0 sps:$4 sm:$0x11]   ;;  %v2179_v25 = vshrl.u32 %v12381_v20, 16  ;;  %v2181_v5 = vshll.u32 %v12381_v20, 16  ;;  %v11647_v62 = vld [vmem:[%s12041_s24 + $0xb0] sm:$0xff] }
  0x5e   : > { %v818_v35 = vadd.f32 %v12221_v52, %v816_v27  ;;  %v903_v13 = vadd.f32 %v902_v29, %v901_v53  ;;  %v920_v52 = vsel %vm761_vm4, %v860_v32, 0.0  ;;  %v922_v30 = vsel %vm761_vm4, %v861_v51, 0.0  ;;  %v11207_v51 = vld [vmem:[%s15862_s5 + $0x18] sm:$0xff]  }
  0x5f   : > { %v2186_v26 = vshll.u32 %v12383_v1, 16  ;;  %v2183_v6 = vrot.slane %v2181_v5, 1 }
  0x60   : > { %v820_v60 = vadd.f32 %v15934_v36, %v818_v35  ;;  %v905_v15 = vadd.f32 %v904_v33, %v903_v13 }
  0x61   : > { %v2188_v27 = vrot.slane %v2186_v26, 1  ;;  %v2184_v7 = vor.u32 %v2183_v6, %v2179_v25  ;;  %v525_v26 = vld [vmem:[#allocation2 + $0x54] sm:$0x1]  ;;  %v575_v6 = vld [vmem:[#allocation2 + $0x5c] sm:$0x1] }
  0x62   : > { %v822_v2 = vadd.f32 %v15935_v37, %v820_v60  ;;  %v907_v21 = vadd.f32 %v906_v57, %v905_v15  ;;  %v924_v57 = vsel %vm761_vm4, %v862_v22, 0.0 }
  0x63   : > { %v2189_v35 = vsel %vm2177_vm8, %v2184_v7, %v2188_v27  ;;  %v526_v27 = vsel %vm12018_vm3, 0, %v525_v26  ;;  %v576_v7 = vsel %vm12045_vm6, 0, %v575_v6  ;;  %v11650_v26 = vld [vmem:[%s12041_s24 + $0xc8] sm:$0xff] }
  0x64   : > { %v824_v16 = vadd.f32 %v15937_v41, %v822_v2  ;;  %v909_v4 = vadd.f32 %v908_v58, %v907_v21  ;;  %2370 = vrot.lane.b32.xlu0 %v2189_v35, %s11858_s0  ;;  %v11204_v21 = vld [vmem:[%s15862_s5] sm:$0xff]   ;;  %527 = vst [vmem:[#allocation2 + $0x54] sm:$0x1] %v526_v27  ;;  %577 = vst [vmem:[#allocation2 + $0x5c] sm:$0x1] %v576_v7  ;;  %v11651_v27 = vld [vmem:[%s12041_s24 + $0xd0] sm:$0xff] }
  0x65   : > { %v528_v35 = vld [vmem:[#allocation2 + $0x60] sm:$0x1] }
  0x66   : > { %v825_v42 = vrot.slane %v824_v16, 4  ;;  %v911_v28 = vadd.f32 %v910_v10, %v909_v4  ;;  %v11208_v4 = vld [vmem:[%s15862_s5 + $0x20] sm:$0xff]  }
  0x68   : > { %v826_v3 = vadd.f32 %v825_v42, %v824_v16  ;;  %v913_v11 = vadd.f32 %v912_v39, %v911_v28  ;;  %v11205_v42 = vld [vmem:[%s15862_s5 + $0x8] sm:$0xff]  }
  0x69   : > { %v507_v28 = vld [vmem:[#allocation2 + $0xc] sm:$0x1] }
  0x6a   : > { %v827_v46 = vrot.slane %v826_v3, 2  ;;  %v915_v17 = vadd.f32 %v914_v40, %v913_v11  ;;  %v753_v40 = vld [vmem:[%s15860_s3] sm:$0xff]  ;;  %v508_v11 = vsel %vm12018_vm3, 0, %v507_v28  ;;  %v590_v28 = vld [vmem:[#allocation2 + $0x98] sm:$0x1] }
  0x6b   : > { %509 = vst [vmem:[#allocation2 + $0xc] sm:$0x1] %v508_v11 }
  0x6c   : > { %v828_v9 = vadd.f32 %v827_v46, %v826_v3  ;;  %v917_v33 = vadd.f32 %v916_v43, %v915_v17  ;;  %v754_v43 = vld [vmem:[%s15860_s3 + $0x8] sm:$0xff]  ;;  %v11210_v3 = vld [vmem:[%s15862_s5 + $0x30] sm:$0xff]   ;;  %v11212_v17 = vld [vmem:[%s15862_s5 + $0x40] sm:$0xff]  }
  0x6d   : > { %v10675_v49 = vpack.c.bf16 %v754_v43, %v753_v40  ;;  %v557_v46 = vld [vmem:[#allocation2 + $0x14] sm:$0x1]  ;;  %v513_v43 = vld [vmem:[#allocation2 + $0x24] sm:$0x1] }
  0x6e   : > { %v829_v29 = vrot.slane %v828_v9, 1  ;;  %v919_v38 = vadd.f32 %v918_v44, %v917_v33  ;;  %v11214_v33 = vld [vmem:[%s15862_s5 + $0x50] sm:$0xff]  }
  0x70   : > { %v830_v34 = vadd.f32 %v829_v29, %v828_v9  ;;  %v921_v58 = vadd.f32 %v920_v52, %v919_v38  ;;  %v11209_v52 = vld [vmem:[%s15862_s5 + $0x28] sm:$0xff]   ;;  %v558_v9 = vsel %vm12045_vm6, 0, %v557_v46  ;;  %v593_v46 = vld [vmem:[#allocation2 + $0xa4] sm:$0x1] }
  0x71   : > { %559 = vst [vmem:[#allocation2 + $0x14] sm:$0x1] %v558_v9  ;;  %v11213_v29 = vld [vmem:[%s15862_s5 + $0x48] sm:$0xff]   ;;  %v591_v9 = vsel %vm12045_vm6, 0, %v590_v28 }
  0x72   : > { %10325 = vmatmul.mubr.msk.f32.vlgmr.msra.gmra.mrb[0].mxu0 %vm761_vm4, %v830_v34  ;;  %v923_v10 = vadd.f32 %v922_v30, %v921_v58  ;;  %v2404_v34 = vrot.slane %v12383_v1, 1  ;;  %v510_v58 = vld [vmem:[#allocation2 + $0x18] sm:$0x1]  ;;  %v572_v1 = vld [vmem:[#allocation2 + $0x50] sm:$0x1]  ;;  %v11638_v30 = vld [vmem:[%s12041_s24 + $0x60] sm:$0xff] }
  0x73   : > { %10354 = vmatprep.mubr.msk.f32.mxu0 %vm11855_vm0, %v15940_v45  ;;  %10670 = vmatpush3.bf16.msra.mxu0 %v10669_v18  ;;  %v573_v5 = vsel %vm12045_vm6, 0, %v572_v1  ;;  %592 = vst [vmem:[#allocation2 + $0x98] sm:$0x1] %v591_v9 }
  0x74   : > { %v925_v47 = vadd.f32 %v924_v57, %v923_v10  ;;  %10671 = vmatprep.subr.bf16.mxu0 %v15941_v31  ;;  %v2403_v57 = vrot.slane %v12381_v20, 1  ;;  %v560_v10 = vld [vmem:[#allocation2 + $0x20] sm:$0x1]  ;;  %574 = vst [vmem:[#allocation2 + $0x50] sm:$0x1] %v573_v5 }
  0x76   : > { %v926_v48 = vrot.slane %v925_v47, 4  ;;  %v2405_v38 = vsel %vm2402_vm10, %v2403_v57, %v2404_v34 }
  0x77   : > { %10673 = vmatpush3.bf16.msra.mxu0 %v10672_v19 }
  0x78   : > { %v927_v39 = vadd.f32 %v926_v48, %v925_v47  ;;  %2643 = vmatprep.subr.bf16.mxu0 %v15887_v63  ;;  %v11215_v47 = vld [vmem:[%s15862_s5 + $0x58] sm:$0xff]   ;;  %v511_v48 = vsel %vm12018_vm3, 0, %v510_v58 }
  0x79   : > { %512 = vst [vmem:[#allocation2 + $0x18] sm:$0x1] %v511_v48 }
  0x7a   : > { %v928_v59 = vrot.slane %v927_v39, 2 }
  0x7c   : > { %v929_v44 = vadd.f32 %v928_v59, %v927_v39  ;;  %v561_v39 = vsel %vm12045_vm6, 0, %v560_v10 }
  0x7d   : > { %562 = vst [vmem:[#allocation2 + $0x20] sm:$0x1] %v561_v39  ;;  %v11640_v39 = vld [vmem:[%s12041_s24 + $0x78] sm:$0xff] }
  0x7e   : > { %v930_v12 = vrot.slane %v929_v44, 1 }
  0x80   : > { %v931_v50 = vadd.f32 %v930_v12, %v929_v44  ;;  %v563_v44 = vld [vmem:[#allocation2 + $0x2c] sm:$0x1]  ;;  %v514_v12 = vsel %vm12018_vm3, 0, %v513_v43 }
  0x81   : > { %515 = vst [vmem:[#allocation2 + $0x24] sm:$0x1] %v514_v12 }
  0x82   : > { %10344 = vmatmul.mubr.msk.f32.vlgmr.msra.gmra.mrb[0].mxu1 %vm761_vm4, %v931_v50  ;;  %v516_v50 = vld [vmem:[#allocation2 + $0x30] sm:$0x1] }
  0x83   : > { %10676 = vmatpush3.bf16.msra.mxu1 %v10675_v49  ;;  %10365 = vmatprep.mubr.msk.f32.mxu1 %vm11855_vm0, %v15940_v45  ;;  %v564_v49 = vsel %vm12045_vm6, 0, %v563_v44  ;;  %v517_v54 = vsel %vm12018_vm3, 0, %v516_v50  ;;  %v11642_v44 = vld [vmem:[%s12041_s24 + $0x88] sm:$0xff] }
  0x84   : > { %10677 = vmatprep.subr.bf16.mxu1 %v15941_v31  ;;  %565 = vst [vmem:[#allocation2 + $0x2c] sm:$0x1] %v564_v49  ;;  %518 = vst [vmem:[#allocation2 + $0x30] sm:$0x1] %v517_v54  ;;  %v11643_v49 = vld [vmem:[%s12041_s24 + $0x90] sm:$0xff] }
  0x87   : > { %10679 = vmatpush3.bf16.msra.mxu1 %v10678_v55  ;;  %v567_v55 = vsel %vm12045_vm6, 0, %v566_v24  ;;  %v11644_v24 = vld [vmem:[%s12041_s24 + $0x98] sm:$0xff] }
  0x88   : > { %10704 = vmatprep.subr.bf16.mxu1 %v15941_v31  ;;  %568 = vst [vmem:[#allocation2 + $0x38] sm:$0x1] %v567_v55 }
  0xd6   : > { %v2371_v59 = vpop.permute.xlu0 %2370 }
  0xd7   : > { %v2452_v40 = vsel %vm761_vm4, %v12381_v20, %v2371_v59  ;;  %v522_v20 = vld [vmem:[#allocation2 + $0x48] sm:$0x1] }
  0xd8   : > { %v523_v25 = vsel %vm12018_vm3, 0, %v522_v20  ;;  %v11648_v20 = vld [vmem:[%s12041_s24 + $0xb8] sm:$0xff] }
  0xd9   : > { %524 = vst [vmem:[#allocation2 + $0x48] sm:$0x1] %v523_v25  ;;  %v11649_v25 = vld [vmem:[%s12041_s24 + $0xc0] sm:$0xff] }
 0x145   : > { %v1001_v53 = vpop.f32.mrb[0].mxu0 }
 0x146   : > { %v1078_v36 = vmul.f32 0.001953125, %v1001_v53  ;;  %v10326_v60 = vpop.f32.mrb[1].mxu0  ;;  %v578_v53 = vld [vmem:[#allocation2 + $0x68] sm:$0x1] }
 0x147   : > { %v579_v60 = vsel %vm12045_vm6, 0, %v578_v53 }
 0x148   : > { %10366 = vmatmul.mubr.msk.f32.vlgmr.msra.gmra.mrb[2].mxu1 %vm1085_vm9, %v1078_v36  ;;  %v1080_v13 = vmul.f32 %v1078_v36, %v1078_v36  ;;  %v529_v36 = vsel %vm12018_vm3, 0, %v528_v35  ;;  %580 = vst [vmem:[#allocation2 + $0x68] sm:$0x1] %v579_v60  ;;  %v11652_v35 = vld [vmem:[%s12041_s24 + $0xd8] sm:$0xff] }
 0x149   : > { %10435 = vmatprep.mubr.msk.f32.mxu1 %vm11855_vm0, %v15940_v45  ;;  %530 = vst [vmem:[#allocation2 + $0x60] sm:$0x1] %v529_v36  ;;  %v11653_v36 = vld [vmem:[%s12041_s24 + $0xe0] sm:$0xff] }
 0x155   : > { %v1074_v37 = vpop.f32.mrb[0].mxu1 }
 0x156   : > { %v1079_v2 = vmul.f32 0.001953125, %v1074_v37  ;;  %v10345_v14 = vpop.f32.mrb[1].mxu1  ;;  %v531_v37 = vld [vmem:[#allocation2 + $0x6c] sm:$0x1] }
 0x157   : > { %v534_v14 = vld [vmem:[#allocation2 + $0x78] sm:$0x1] }
 0x158   : > { %v1081_v32 = vsub.f32 %v1079_v2, %v1080_v13  ;;  %v1234_v13 = vlaneseq  ;;  %v581_v2 = vld [vmem:[#allocation2 + $0x74] sm:$0x1] }
 0x15a   : > { %v1082_v15 = vmax.f32 %v1081_v32, 0.0  ;;  %v1235_v32 = vshrl.u32 %v1234_v13, 7  ;;  %v11654_v13 = vld [vmem:[%s12041_s24 + $0xe8] sm:$0xff] }
 0x15c   : > { %v1083_v41 = vadd.f32 1e-05, %v1082_v15  ;;  %v532_v15 = vsel %vm12018_vm3, 0, %v531_v37 }
 0x15d   : > { %533 = vst [vmem:[#allocation2 + $0x6c] sm:$0x1] %v532_v15 }
 0x15e   : > { %11506 = vrsqrt.f32 %v1083_v41  ;;  %v582_v41 = vsel %vm12045_vm6, 0, %v581_v2  ;;  %v11655_v2 = vld [vmem:[%s12041_s24 + $0xf0] sm:$0xff] }
 0x15f   : > { %583 = vst [vmem:[#allocation2 + $0x74] sm:$0x1] %v582_v41 }
 0x168   : > { %v11507_v16 = vpop.eup %11506 }
 0x169   : > { %10355 = vmatmul.mubr.msk.f32.vlgmr.msra.gmra.mrb[2].mxu0 %vm1085_vm9, %v11507_v16  ;;  %v535_v16 = vsel %vm12018_vm3, 0, %v534_v14 }
 0x16a   : > { %2644 = vmatpush1.bf16.msra.mxu0 %v11204_v21  ;;  %9232 = vmatprep.mubr.msk.bf16.mxu0 %vm761_vm4, %v2405_v38  ;;  %v584_v21 = vld [vmem:[#allocation2 + $0x80] sm:$0x1]  ;;  %536 = vst [vmem:[#allocation2 + $0x78] sm:$0x1] %v535_v16 }
 0x16b   : > { %2645 = vmatprep.subr.bf16.mxu0 %v15887_v63 }
 0x16e   : > { %2646 = vmatpush1.bf16.msra.mxu0 %v11205_v42  ;;  %v585_v42 = vsel %vm12045_vm6, 0, %v584_v21 }
 0x16f   : > { %2647 = vmatprep.subr.bf16.mxu0 %v15887_v63  ;;  %586 = vst [vmem:[#allocation2 + $0x80] sm:$0x1] %v585_v42 }
 0x172   : > { %2648 = vmatpush1.bf16.msra.mxu0 %v11206_v23  ;;  %v537_v23 = vld [vmem:[#allocation2 + $0x84] sm:$0x1] }
 0x173   : > { %2649 = vmatprep.subr.bf16.mxu0 %v15887_v63 }
 0x176   : > { %2650 = vmatpush1.bf16.msra.mxu0 %v11207_v51  ;;  %v587_v51 = vld [vmem:[#allocation2 + $0x8c] sm:$0x1] }
 0x177   : > { %2651 = vmatprep.subr.bf16.mxu0 %v15887_v63 }
 0x17a   : > { %2652 = vmatpush1.bf16.msra.mxu0 %v11208_v4  ;;  %v538_v4 = vsel %vm12018_vm3, 0, %v537_v23 }
 0x17b   : > { %2653 = vmatprep.subr.bf16.mxu0 %v15887_v63  ;;  %539 = vst [vmem:[#allocation2 + $0x84] sm:$0x1] %v538_v4 }
 0x17e   : > { %2654 = vmatpush1.bf16.msra.mxu0 %v11209_v52  ;;  %v588_v52 = vsel %vm12045_vm6, 0, %v587_v51 }
 0x17f   : > { %2655 = vmatprep.subr.bf16.mxu0 %v15887_v63  ;;  %589 = vst [vmem:[#allocation2 + $0x8c] sm:$0x1] %v588_v52 }
 0x182   : > { %2656 = vmatpush1.bf16.msra.mxu0 %v11210_v3  ;;  %v540_v3 = vld [vmem:[#allocation2 + $0x90] sm:$0x1] }
 0x183   : > { %2657 = vmatprep.subr.bf16.mxu0 %v15887_v63  ;;  %v541_v11 = vsel %vm12018_vm3, 0, %v540_v3 }
 0x184   : > { %542 = vst [vmem:[#allocation2 + $0x90] sm:$0x1] %v541_v11 }
 0x186   : > { %2658 = vmatpush1.bf16.msra.mxu0 %v11211_v8  ;;  %v12492_v8 = vsub.s32 0, %v1235_v32  ;;  %v11656_v32 = vld [vmem:[%s12041_s24 + $0xf8] sm:$0xff] }
 0x187   : > { %2659 = vmatprep.subr.bf16.mxu0 %v15887_v63 }
 0x188   : > { %15944 = vst [vmem:[#allocation15_spill] sm:$0xff] %v12492_v8 }
 0x18a   : > { %2660 = vmatpush1.bf16.msra.mxu0 %v11212_v17  ;;  %v594_v17 = vsel %vm12045_vm6, 0, %v593_v46 }
 0x18b   : > { %2661 = vmatprep.subr.bf16.mxu0 %v15887_v63  ;;  %595 = vst [vmem:[#allocation2 + $0xa4] sm:$0x1] %v594_v17 }
 0x18e   : > { %2662 = vmatpush1.bf16.msra.mxu0 %v11213_v29  ;;  %v744_v29 = vld [vmem:[%s15858_s1] sm:$0x1] }
 0x18f   : > { %2663 = vmatprep.subr.bf16.mxu0 %v15887_v63 }
 0x192   : > { %2664 = vmatpush1.bf16.msra.mxu0 %v11214_v33 }
 0x193   : > { %2665 = vmatprep.subr.bf16.mxu0 %v15887_v63 }
 0x196   : > { %2666 = vmatpush1.bf16.msra.mxu0 %v11215_v47  ;;  %v11639_v47 = vld [vmem:[%s12041_s24 + $0x70] sm:$0xff] }
 0x197   : > { %3483 = vmatprep.subr.bf16.mxu0 %v15887_v63 }
 0x199   : > { %2676 = vmatmul.mubr.bf16.vlgmr.msra.gmra.mrb[4].mxu0 %v2452_v40  ;;  %v11641_v40 = vld [vmem:[%s12041_s24 + $0x80] sm:$0xff] }
 0x21b   : > { %v1228_v18 = vpop.f32.mrb[2].mxu1 }
 0x21c   : > { %v10367_v19 = vpop.f32.mrb[3].mxu1 }
 0x23c   : > { %v1155_v33 = vpop.f32.mrb[2].mxu0 }
 0x23d   : > { %v1232_v57 = vmul.f32 %v1228_v18, %v1155_v33  ;;  %v12504_v34 = vrot.slane %v1155_v33, %v12492_v8  ;;  %v10356_v38 = vpop.f32.mrb[3].mxu0 }
 0x23f   : > { %v1233_v58 = vsub.f32 %v744_v29, %v1232_v57  ;;  %v12508_v10 = vmul.f32 %v11638_v30, %v12504_v34  ;;  %v1252_v48 = vmul.f32 %v11639_v47, %v12504_v34  ;;  %v12514_v59 = vmul.f32 %v11640_v39, %v12504_v34 }
 0x240   : > { %v1254_v43 = vmul.f32 %v11641_v40, %v12504_v34  ;;  %v1255_v12 = vmul.f32 %v11642_v44, %v12504_v34  ;;  %v1256_v50 = vmul.f32 %v11643_v49, %v12504_v34  ;;  %v1257_v54 = vmul.f32 %v11644_v24, %v12504_v34 }
 0x241   : > { %v12525_v55 = vrot.slane %v1233_v58, %v12492_v8  ;;  %v1258_v56 = vmul.f32 %v11645_v0, %v12504_v34  ;;  %v1259_v18 = vmul.f32 %v11646_v61, %v12504_v34  ;;  %v1260_v19 = vmul.f32 %v11647_v62, %v12504_v34 }
 0x242   : > { %v1261_v1 = vmul.f32 %v11648_v20, %v12504_v34  ;;  %v1262_v5 = vmul.f32 %v11649_v25, %v12504_v34  ;;  %v1263_v6 = vmul.f32 %v11650_v26, %v12504_v34  ;;  %v1264_v7 = vmul.f32 %v11651_v27, %v12504_v34 }
 0x243   : > { %v1265_v53 = vmul.f32 %v11652_v35, %v12504_v34  ;;  %v1266_v60 = vmul.f32 %v11653_v36, %v12504_v34  ;;  %v1267_v37 = vmul.f32 %v11654_v13, %v12504_v34  ;;  %v1268_v14 = vmul.f32 %v11655_v2, %v12504_v34 }
 0x244   : > { %v1269_v15 = vmul.f32 %v11656_v32, %v12504_v34  ;;  %v12552_v41 = vadd.f32 %v12525_v55, %v1252_v48  ;;  %v12555_v16 = vadd.f32 %v12525_v55, %v1254_v43  ;;  %v12558_v21 = vadd.f32 %v12525_v55, %v1255_v12 }
 0x245   : > { %v12561_v42 = vadd.f32 %v12525_v55, %v1256_v50  ;;  %v12564_v23 = vadd.f32 %v12525_v55, %v1257_v54  ;;  %v12567_v51 = vadd.f32 %v12525_v55, %v1258_v56  ;;  %v12570_v4 = vadd.f32 %v12525_v55, %v1259_v18  ;;  %v11657_v18 = vld [vmem:[%s12041_s24] sm:$0xff] }
 0x246   : > { %v12573_v52 = vadd.f32 %v12525_v55, %v1260_v19  ;;  %v12576_v3 = vadd.f32 %v12525_v55, %v1261_v1  ;;  %v12579_v28 = vadd.f32 %v12525_v55, %v1262_v5  ;;  %v12582_v46 = vadd.f32 %v12525_v55, %v1263_v6  ;;  %v11658_v19 = vld [vmem:[%s12041_s24 + $0x8] sm:$0xff]  ;;  %v11659_v1 = vld [vmem:[%s12041_s24 + $0x10] sm:$0xff]  ;;  %v11660_v5 = vld [vmem:[%s12041_s24 + $0x18] sm:$0xff] }
 0x247   : > { %v12585_v11 = vadd.f32 %v12525_v55, %v1264_v7  ;;  %v12588_v9 = vadd.f32 %v12525_v55, %v1265_v53  ;;  %v12591_v17 = vadd.f32 %v12525_v55, %v1266_v60  ;;  %v12594_v29 = vadd.f32 %v12525_v55, %v1267_v37  ;;  %v11661_v6 = vld [vmem:[%s12041_s24 + $0x20] sm:$0xff]  ;;  %v11662_v7 = vld [vmem:[%s12041_s24 + $0x28] sm:$0xff] }
 0x248   : > { %v12597_v33 = vadd.f32 %v12525_v55, %v1268_v14  ;;  %v12600_v57 = vadd.f32 %v12525_v55, %v1269_v15  ;;  %v1322_v38 = vmul.f32 0.5, %v12552_v41  ;;  %v1324_v58 = vmul.f32 0.5, %v12555_v16 }
 0x249   : > { %v1325_v30 = vmul.f32 0.5, %v12558_v21  ;;  %v1326_v47 = vmul.f32 0.5, %v12561_v42  ;;  %v1327_v48 = vmul.f32 0.5, %v12564_v23  ;;  %v1328_v39 = vmul.f32 0.5, %v12567_v51 }
 0x24a   : > { %v1329_v40 = vmul.f32 0.5, %v12570_v4  ;;  %v1330_v43 = vmul.f32 0.5, %v12573_v52  ;;  %v1331_v44 = vmul.f32 0.5, %v12576_v3  ;;  %v1332_v12 = vmul.f32 0.5, %v12579_v28 }
 0x24b   : > { %v1333_v49 = vmul.f32 0.5, %v12582_v46  ;;  %v1334_v50 = vmul.f32 0.5, %v12585_v11  ;;  %v12615_v24 = vmul.f32 0.5, %v12588_v9  ;;  %v12618_v54 = vmul.f32 0.5, %v12591_v17 }
 0x24c   : > { %v12621_v0 = vmul.f32 0.5, %v12594_v29  ;;  %v12624_v56 = vmul.f32 0.5, %v12597_v33  ;;  %v12627_v61 = vmul.f32 0.5, %v12600_v57  ;;  %11508 = vtanh.f32 %v1322_v38 }
 0x24d   : > { %11510 = vtanh.f32 %v1324_v58  ;;  %v1238_v62 = vmul.f32 %v11657_v18, %v12504_v34  ;;  %v1239_v20 = vmul.f32 %v11658_v19, %v12504_v34  ;;  %v1240_v25 = vmul.f32 %v11659_v1, %v12504_v34  ;;  %v11666_v19 = vld [vmem:[%s12041_s24 + $0x48] sm:$0xff]  ;;  %v11667_v1 = vld [vmem:[%s12041_s24 + $0x50] sm:$0xff] }
 0x24e   : > { %11512 = vtanh.f32 %v1325_v30  ;;  %v1241_v26 = vmul.f32 %v11660_v5, %v12504_v34  ;;  %v1242_v27 = vmul.f32 %v11661_v6, %v12504_v34  ;;  %v1243_v35 = vmul.f32 %v11662_v7, %v12504_v34  ;;  %v11668_v5 = vld [vmem:[%s12041_s24 + $0x58] sm:$0xff] }
 0x24f   : > { %11514 = vtanh.f32 %v1326_v47  ;;  %v12642_v53 = vadd.f32 %v12525_v55, %v1238_v62  ;;  %v12645_v36 = vadd.f32 %v12525_v55, %v1239_v20  ;;  %v12648_v60 = vadd.f32 %v12525_v55, %v1240_v25  ;;  %v11663_v47 = vld [vmem:[%s12041_s24 + $0x30] sm:$0xff]  ;;  %v11665_v62 = vld [vmem:[%s12041_s24 + $0x40] sm:$0xff] }
 0x250   : > { %11516 = vtanh.f32 %v1327_v48  ;;  %v12651_v13 = vadd.f32 %v12525_v55, %v1241_v26  ;;  %v12654_v37 = vadd.f32 %v12525_v55, %v1242_v27  ;;  %v12657_v2 = vadd.f32 %v12525_v55, %v1243_v35 }
 0x251   : > { %11518 = vtanh.f32 %v1328_v39  ;;  %v12660_v14 = vmul.f32 0.5, %v12642_v53  ;;  %v12663_v32 = vmul.f32 0.5, %v12645_v36  ;;  %v12666_v15 = vmul.f32 0.5, %v12648_v60  ;;  %v11664_v39 = vld [vmem:[%s12041_s24 + $0x38] sm:$0xff] }
 0x252   : > { %11520 = vtanh.f32 %v1329_v40  ;;  %v12669_v38 = vmul.f32 0.5, %v12651_v13  ;;  %v12672_v58 = vmul.f32 0.5, %v12654_v37  ;;  %v12675_v30 = vmul.f32 0.5, %v12657_v2 }
 0x253   : > { %11522 = vtanh.f32 %v1330_v43  ;;  %v1244_v48 = vmul.f32 %v11663_v47, %v12504_v34  ;;  %v1245_v18 = vmul.f32 %v11664_v39, %v12504_v34  ;;  %v1246_v40 = vmul.f32 %v11665_v62, %v12504_v34 }
 0x254   : > { %11524 = vtanh.f32 %v1331_v44  ;;  %v1247_v20 = vmul.f32 %v11666_v19, %v12504_v34  ;;  %v1248_v25 = vmul.f32 %v11667_v1, %v12504_v34  ;;  %v1249_v26 = vmul.f32 %v11668_v5, %v12504_v34  ;;  %v11669_v1 = vld [vmem:[%s12041_s24 + $0x68] sm:$0xff] }
 0x255   : > { %11526 = vtanh.f32 %v1332_v12  ;;  %v12690_v43 = vadd.f32 %v12525_v55, %v1244_v48  ;;  %v12693_v6 = vadd.f32 %v12525_v55, %v1245_v18  ;;  %v12696_v27 = vadd.f32 %v12525_v55, %v1246_v40 }
 0x256   : > { %v12698_v44 = vpop.eup %11508  ;;  %11528 = vtanh.f32 %v1333_v49  ;;  %v12701_v7 = vadd.f32 %v12525_v55, %v1247_v20  ;;  %v12704_v35 = vadd.f32 %v12525_v55, %v1248_v25  ;;  %v12707_v12 = vadd.f32 %v12525_v55, %v1249_v26 }
 0x257   : > { %15945 = vst [vmem:[#allocation16_spill] sm:$0xff] %v12696_v27  ;;  %v11511_v47 = vpop.eup %11510  ;;  %11530 = vtanh.f32 %v1334_v50  ;;  %v12710_v48 = vmul.f32 0.5, %v12690_v43  ;;  %v12713_v39 = vmul.f32 0.5, %v12693_v6  ;;  %v12716_v49 = vmul.f32 0.5, %v12696_v27 }
 0x258   : > { %15946 = vst [vmem:[#allocation12_spill] sm:$0xff] %v12701_v7  ;;  %15947 = vst [vmem:[#allocation17_spill] sm:$0xff] %v12704_v35  ;;  %v12718_v18 = vpop.eup %11512  ;;  %11532 = vtanh.f32 %v12615_v24  ;;  %v1388_v62 = vmul.f32 0.5, %v11511_v47  ;;  %v12722_v40 = vmul.f32 0.5, %v12701_v7  ;;  %v12725_v19 = vmul.f32 0.5, %v12704_v35 }
 0x259   : > { %15948 = vst [vmem:[#allocation13_spill] sm:$0xff] %v12707_v12  ;;  %v11515_v50 = vpop.eup %11514  ;;  %11534 = vtanh.f32 %v12618_v54  ;;  %v12729_v20 = vmul.f32 0.5, %v12707_v12  ;;  %v1251_v25 = vmul.f32 %v11669_v1, %v12504_v34  ;;  %v12735_v5 = vadd.f32 %v12525_v55, %v12508_v10 }
 0x25a   : > { %v11517_v24 = vpop.eup %11516  ;;  %11536 = vtanh.f32 %v12621_v0  ;;  %v1390_v26 = vmul.f32 0.5, %v11515_v50  ;;  %v1420_v47 = vadd.f32 0.5, %v1388_v62  ;;  %v12740_v63 = vadd.f32 %v12525_v55, %v12514_v59 }
 0x25b   : > { %15949 = vst [vmem:[#allocation14_spill] sm:$0xff] %v12735_v5  ;;  %v11519_v54 = vpop.eup %11518  ;;  %11538 = vtanh.f32 %v12624_v56  ;;  %v1391_v8 = vmul.f32 0.5, %v11517_v24  ;;  %v12744_v45 = vadd.f32 %v12525_v55, %v1251_v25  ;;  %v12747_v34 = vmul.f32 0.5, %v12735_v5 }
 0x25c   : > { %v11521_v10 = vpop.eup %11520  ;;  %11540 = vtanh.f32 %v12627_v61  ;;  %v1392_v0 = vmul.f32 0.5, %v11519_v54  ;;  %v1422_v50 = vadd.f32 0.5, %v1390_v26  ;;  %v1452_v62 = vmul.f32 %v1420_v47, %v12555_v16 }
 0x25d   : > { %15950 = vst [vmem:[#allocation10_spill] sm:$0xff] %v12744_v45  ;;  %v11523_v1 = vpop.eup %11522  ;;  %v1393_v59 = vmul.f32 0.5, %v11521_v10  ;;  %v1423_v31 = vadd.f32 0.5, %v1391_v8  ;;  %11542 = vtanh.f32 %v12660_v14  ;;  %v12753_v56 = vmul.f32 0.5, %v12744_v45 }
 0x25e   : > { %v11525_v55 = vpop.eup %11524  ;;  %v1394_v25 = vmul.f32 0.5, %v11523_v1  ;;  %v1424_v24 = vadd.f32 0.5, %v1392_v0  ;;  %v1454_v5 = vmul.f32 %v1422_v50, %v12561_v42  ;;  %v12756_v12 = vpack.c.bf16 %v1452_v62, %v1452_v62 }
 0x25f   : > { %v11527_v61 = vpop.eup %11526  ;;  %v1395_v54 = vmul.f32 0.5, %v11525_v55  ;;  %v1425_v26 = vadd.f32 0.5, %v1393_v59  ;;  %v1455_v16 = vmul.f32 %v1423_v31, %v12564_v23  ;;  %11544 = vtanh.f32 %v12663_v32 }
 0x260   : > { %v11529_v8 = vpop.eup %11528  ;;  %v1396_v47 = vmul.f32 0.5, %v11527_v61  ;;  %v1426_v14 = vadd.f32 0.5, %v1394_v25  ;;  %v1456_v10 = vmul.f32 %v1424_v24, %v12567_v51  ;;  %v9761_v45 = vpack.c.bf16 %v1454_v5, %v1454_v5 }
 0x261   : > { %v11531_v35 = vpop.eup %11530  ;;  %v1397_v1 = vmul.f32 0.5, %v11529_v8  ;;  %v1427_v0 = vadd.f32 0.5, %v1395_v54  ;;  %v1457_v42 = vmul.f32 %v1425_v26, %v12570_v4  ;;  %v12762_v50 = vpack.c.bf16 %v1455_v16, %v1455_v16 }
 0x262   : > { %v11533_v62 = vpop.eup %11532  ;;  %v1398_v55 = vmul.f32 0.5, %v11531_v35  ;;  %v1428_v59 = vadd.f32 0.5, %v1396_v47  ;;  %v1458_v31 = vmul.f32 %v1426_v14, %v12573_v52  ;;  %v9763_v23 = vpack.c.bf16 %v1456_v10, %v1456_v10 }
 0x263   : > { %v11535_v32 = vpop.eup %11534  ;;  %v1399_v7 = vmul.f32 0.5, %v11533_v62  ;;  %v1429_v61 = vadd.f32 0.5, %v1397_v1  ;;  %v1459_v25 = vmul.f32 %v1427_v0, %v12576_v3  ;;  %v9764_v51 = vpack.c.bf16 %v1457_v42, %v1457_v42 }
 0x264   : > { %v11537_v5 = vpop.eup %11536  ;;  %v1400_v24 = vmul.f32 0.5, %v11535_v32  ;;  %v1430_v8 = vadd.f32 0.5, %v1398_v55  ;;  %v1460_v54 = vmul.f32 %v1428_v59, %v12579_v28  ;;  %v9765_v4 = vpack.c.bf16 %v1458_v31, %v1458_v31 }
 0x265   : > { %v11539_v26 = vpop.eup %11538  ;;  %v1401_v16 = vmul.f32 0.5, %v11537_v5  ;;  %v1431_v27 = vadd.f32 0.5, %v1399_v7  ;;  %v1461_v35 = vmul.f32 %v1429_v61, %v12582_v46  ;;  %v9766_v47 = vpack.c.bf16 %v1459_v25, %v1459_v25 }
 0x266   : > { %v11541_v52 = vpop.eup %11540  ;;  %v1402_v14 = vmul.f32 0.5, %v11539_v26  ;;  %v1432_v10 = vadd.f32 0.5, %v1400_v24  ;;  %v1462_v1 = vmul.f32 %v1430_v8, %v12585_v11  ;;  %v9767_v62 = vpack.c.bf16 %v1460_v54, %v1460_v54 }
 0x267   : > { %v12769_v3 = vpop.eup %11542  ;;  %v1403_v0 = vmul.f32 0.5, %v11541_v52  ;;  %v1433_v42 = vadd.f32 0.5, %v1401_v16  ;;  %v1463_v55 = vmul.f32 %v1431_v27, %v12588_v9  ;;  %v9768_v28 = vpack.c.bf16 %v1461_v35, %v1461_v35 }
 0x268   : > { %v1434_v59 = vadd.f32 0.5, %v1402_v14  ;;  %v1464_v7 = vmul.f32 %v1432_v10, %v12591_v17  ;;  %v9769_v31 = vpack.c.bf16 %v1462_v1, %v1462_v1  ;;  %v1720_v5 = vshrl.u32 %v9761_v45, 16 }
 0x269   : > { %v12774_v32 = vpop.eup %11544  ;;  %v1435_v61 = vadd.f32 0.5, %v1403_v0  ;;  %v1465_v11 = vmul.f32 %v1433_v42, %v12594_v29  ;;  %v9770_v25 = vpack.c.bf16 %v1463_v55, %v1463_v55  ;;  %v1723_v9 = vshll.u32 %v9761_v45, 16 }
 0x26a   : > { %v1466_v24 = vmul.f32 %v1434_v59, %v12597_v33  ;;  %v12778_v8 = vpack.c.bf16 %v1464_v7, %v1464_v7  ;;  %v12784_v26 = vrot.slane %v1720_v5, 7  ;;  %v1737_v16 = vshrl.u32 %v9763_v23, 16 }
 0x26b   : > { %v1467_v54 = vmul.f32 %v1435_v61, %v12600_v57  ;;  %v12782_v17 = vpack.c.bf16 %v1465_v11, %v1465_v11  ;;  %v1740_v52 = vshll.u32 %v9763_v23, 16  ;;  %v1745_v29 = vshrl.u32 %v9764_v51, 16 }
 0x26c   : > { %v12786_v35 = vpack.c.bf16 %v1466_v24, %v1466_v24  ;;  %v1748_v14 = vshll.u32 %v9764_v51, 16  ;;  %v12791_v33 = vor.u32 %v1723_v9, %v12784_v26  ;;  %v12793_v45 = vrot.slane %v1737_v16, 7 }
 0x26d   : > { %v12788_v10 = vpack.c.bf16 %v1467_v54, %v1467_v54  ;;  %v1754_v1 = vshrl.u32 %v9765_v4, 16  ;;  %v12795_v0 = vrot.slane %v1745_v29, 7  ;;  %v1757_v57 = vshll.u32 %v9765_v4, 16 }
 0x26e   : > { %15951 = vst [vmem:[#allocation11_spill] sm:$0xff] %v12793_v45  ;;  %v1762_v42 = vshrl.u32 %v9766_v47, 16  ;;  %v1765_v55 = vshll.u32 %v9766_v47, 16  ;;  %v12798_v59 = vor.u32 %v1740_v52, %v12793_v45  ;;  %v1771_v51 = vshrl.u32 %v9767_v62, 16  ;;  %v1997_v45 = vld [vmem:[#allocation2 + $0xc8] sm:$0x1] }
 0x26f   : > { %15952 = vst [vmem:[#allocation18_spill] sm:$0xff] %v12795_v0  ;;  %v12801_v7 = vrot.slane %v1754_v1, 7  ;;  %v12804_v61 = vor.u32 %v1748_v14, %v12795_v0  ;;  %v1774_v5 = vshll.u32 %v9767_v62, 16  ;;  %v1779_v24 = vshrl.u32 %v9768_v28, 16  ;;  %v1972_v0 = vld [vmem:[#allocation2 + $0x9c] sm:$0xf] }
 0x270   : > { %15953 = vst [vmem:[#allocation19_spill] sm:$0xff] %v12798_v59  ;;  %v12806_v11 = vrot.slane %v1762_v42, 7  ;;  %v1773_v47 = vrot.slane %v1771_v51, 7  ;;  %v1782_v54 = vshll.u32 %v9768_v28, 16  ;;  %v1788_v14 = vshrl.u32 %v9769_v31, 16 }
 0x271   : > { %15954 = vst [vmem:[#allocation20_spill] sm:$0xff] %v12801_v7  ;;  %v12809_v9 = vor.u32 %v1757_v57, %v12801_v7  ;;  %v12816_v29 = vrot.slane %v1779_v24, 7  ;;  %v15959_v62 = vmov 0  ;;  %v1791_v42 = vshll.u32 %v9769_v31, 16 }
 0x272   : > { %15955 = vst [vmem:[#allocation21_spill] sm:$0xff] %v12806_v11  ;;  %v12813_v16 = vor.u32 %v1765_v55, %v12806_v11  ;;  %v15960_v62 = vsel %vm12820_vm12, 4294967295, %v15959_v62  ;;  %v1776_v1 = vor.u32 %v1774_v5, %v1773_v47  ;;  %v1777_v57 = vrot.slane %v1773_v47, 4  ;;  %v1979_v11 = vld [vmem:[#allocation2 + $0xa8] sm:$0xf] }
 0x273   : > { %15956 = vst [vmem:[#allocation22_spill] sm:$0xff] %v12809_v9  ;;  %15958 = vst [vmem:[#allocation24_spill] sm:$0xff] %v12816_v29  ;;  %v1796_v27 = vshrl.u32 %v9770_v25, 16  ;;  %v1784_v28 = vor.u32 %v1782_v54, %v12816_v29  ;;  %v1790_v51 = vrot.slane %v1788_v14, 7  ;;  %v1799_v4 = vshll.u32 %v9770_v25, 16 }
 0x274   : > { %15957 = vst [vmem:[#allocation23_spill] sm:$0xff] %v12813_v16  ;;  %15961 = vst [vmem:[#allocation25_spill] sm:$0xff] %v15960_v62  ;;  %v1805_v24 = vshrl.u32 %v12778_v8, 16  ;;  %v1808_v23 = vshll.u32 %v12778_v8, 16  ;;  %v1813_v46 = vshrl.u32 %v12782_v17, 16  ;;  %v1816_v54 = vshll.u32 %v12782_v17, 16 }
 0x275   : > { %v1798_v52 = vrot.slane %v1796_v27, 7  ;;  %v1785_v5 = vsel %vm12820_vm12, %v1777_v57, %v1784_v28  ;;  %v1793_v31 = vor.u32 %v1791_v42, %v1790_v51  ;;  %v1794_v47 = vrot.slane %v1790_v51, 4  ;;  %v1983_v27 = vld [vmem:[#allocation2 + $0xb0] sm:$0x1]  ;;  %v1986_v9 = vld [vmem:[#allocation2 + $0xb4] sm:$0xf] }
 0x276   : > { %v1807_v55 = vrot.slane %v1805_v24, 7  ;;  %v1815_v29 = vrot.slane %v1813_v46, 7  ;;  %1975 = vst.msk [vmem:[#allocation2 + $0xa0] sm:$0xf] %vm494_vm7, %v1785_v5  ;;  %v1822_v57 = vshrl.u32 %v12786_v35, 16  ;;  %v1825_v42 = vshll.u32 %v12786_v35, 16 }
 0x277   : > { %v1801_v14 = vor.u32 %v1799_v4, %v1798_v52  ;;  %v1803_v8 = vrot.slane %v1798_v52, 4  ;;  %v1830_v17 = vshrl.u32 %v12788_v10, 16  ;;  %v1833_v28 = vshll.u32 %v12788_v10, 16  ;;  %v1990_v52 = vld [vmem:[#allocation2 + $0xbc] sm:$0x1] }
 0x278   : > { %v1810_v7 = vor.u32 %v1808_v23, %v1807_v55  ;;  %v1811_v16 = vrot.slane %v1807_v55, 4  ;;  %v1818_v4 = vor.u32 %v1816_v54, %v1815_v29  ;;  %v1820_v24 = vrot.slane %v1815_v29, 4  ;;  %v1993_v35 = vld [vmem:[#allocation2 + $0xc0] sm:$0xf] }
 0x279   : > { %v1802_v51 = vsel %vm12820_vm12, %v1794_v47, %v1801_v14  ;;  %v1824_v46 = vrot.slane %v1822_v57, 7  ;;  %v1832_v59 = vrot.slane %v1830_v17, 7  ;;  %v1973_v5 = vsel %vm12834_vm13, %v1776_v1, %v1972_v0 }
 0x27a   : > { %1982 = vst.msk [vmem:[#allocation2 + $0xac] sm:$0xf] %vm494_vm7, %v1802_v51  ;;  %v1819_v10 = vsel %vm12820_vm12, %v1811_v16, %v1818_v4  ;;  %v1980_v47 = vsel %vm12834_vm13, %v1793_v31, %v1979_v11  ;;  %v1984_v23 = vsel %vm12018_vm3, %v1803_v8, %v1983_v27  ;;  %v1987_v29 = vsel %vm12834_vm13, %v1810_v7, %v1986_v9 }
 0x27b   : > { %1974 = vst [vmem:[#allocation2 + $0x9c] sm:$0xf] %v1973_v5  ;;  %v1827_v55 = vor.u32 %v1825_v42, %v1824_v46  ;;  %v1828_v54 = vrot.slane %v1824_v46, 4  ;;  %v1835_v0 = vor.u32 %v1833_v28, %v1832_v59  ;;  %v1837_v1 = vrot.slane %v1832_v59, 4  ;;  %1988 = vst [vmem:[#allocation2 + $0xb4] sm:$0xf] %v1987_v29 }
 0x27c   : > { %1989 = vst.msk [vmem:[#allocation2 + $0xb8] sm:$0xf] %vm494_vm7, %v1819_v10  ;;  %1981 = vst [vmem:[#allocation2 + $0xa8] sm:$0xf] %v1980_v47  ;;  %v1991_v16 = vsel %vm12018_vm3, %v1820_v24, %v1990_v52  ;;  %v1372_v11 = vmul.f32 0.5, %v12769_v3  ;;  %v1373_v31 = vmul.f32 0.5, %v12774_v32  ;;  %11546 = vtanh.f32 %v12666_v15 }
 0x27d   : > { %1985 = vst [vmem:[#allocation2 + $0xb0] sm:$0x1] %v1984_v23  ;;  %v1836_v7 = vsel %vm12820_vm12, %v1828_v54, %v1835_v0  ;;  %v1994_v59 = vsel %vm12834_vm13, %v1827_v55, %v1993_v35  ;;  %v1998_v9 = vsel %vm12018_vm3, %v1837_v1, %v1997_v45  ;;  %1992 = vst [vmem:[#allocation2 + $0xbc] sm:$0x1] %v1991_v16  ;;  %11548 = vtanh.f32 %v12669_v38  ;;  %v1944_v28 = vld [vmem:[#allocation2 + $0x6c] sm:$0xf] }
 0x27e   : > { %1995 = vst [vmem:[#allocation2 + $0xc0] sm:$0xf] %v1994_v59  ;;  %1996 = vst.msk [vmem:[#allocation2 + $0xc4] sm:$0xf] %vm494_vm7, %v1836_v7  ;;  %v1404_v3 = vadd.f32 0.5, %v1372_v11  ;;  %v1405_v32 = vadd.f32 0.5, %v1373_v31  ;;  %11550 = vtanh.f32 %v12672_v58 }
 0x27f   : > { %1999 = vst [vmem:[#allocation2 + $0xc8] sm:$0x1] %v1998_v9  ;;  %v12872_v15 = vmul.f32 0.5, %v12740_v63  ;;  %11552 = vtanh.f32 %v12675_v30  ;;  %v1386_v27 = vmul.f32 0.5, %v12698_v44  ;;  %v1389_v45 = vmul.f32 0.5, %v12718_v18 }
 0x280   : > { %v1703_v14 = vshrl.u32 %v12756_v12, 16  ;;  %v1436_v38 = vmul.f32 %v1404_v3, %v12642_v53  ;;  %v1437_v8 = vmul.f32 %v1405_v32, %v12645_v36  ;;  %11554 = vtanh.f32 %v12710_v48  ;;  %v1888_v46 = vld [vmem:[#allocation2 + $0xc] sm:$0xf]  ;;  %v1892_v10 = vld [vmem:[#allocation2 + $0x14] sm:$0x1] }
 0x281   : > { %v1726_v57 = vrot.slane %v12784_v26, 4  ;;  %11556 = vtanh.f32 %v12713_v39  ;;  %v1418_v58 = vadd.f32 0.5, %v1386_v27  ;;  %v1421_v42 = vadd.f32 0.5, %v1389_v45 }
 0x282   : > { %v12883_v17 = vrot.slane %v1703_v14, 7  ;;  %v9743_v30 = vpack.c.bf16 %v1436_v38, %v1436_v38  ;;  %v9744_v44 = vpack.c.bf16 %v1437_v8, %v1437_v8  ;;  %11558 = vtanh.f32 %v12716_v49 }
 0x283   : > { %v1728_v18 = vshrl.u32 %v12762_v50, 16  ;;  %11560 = vtanh.f32 %v12722_v40  ;;  %v1450_v53 = vmul.f32 %v1418_v58, %v12552_v41  ;;  %v1453_v36 = vmul.f32 %v1421_v42, %v12558_v21 }
 0x284   : > { %v15964_v48 = vshll.u32 %v12756_v12, 16  ;;  %v1567_v51 = vshrl.u32 %v9743_v30, 16  ;;  %v1570_v4 = vshll.u32 %v9743_v30, 16  ;;  %v1575_v52 = vshrl.u32 %v9744_v44, 16 }
 0x285   : > { %v1578_v24 = vshll.u32 %v9744_v44, 16  ;;  %11562 = vtanh.f32 %v12725_v19  ;;  %v12894_v49 = vpack.c.bf16 %v1450_v53, %v1450_v53  ;;  %v12896_v5 = vpack.c.bf16 %v1453_v36, %v1453_v36 }
 0x286   : > { %v1708_v39 = vor.u32 %v15964_v48, %v12883_v17  ;;  %v1709_v41 = vrot.slane %v12883_v17, 4  ;;  %v11547_v40 = vpop.eup %11546  ;;  %v1569_v21 = vrot.slane %v1567_v51, 7  ;;  %v1577_v35 = vrot.slane %v1575_v52, 7 }
 0x287   : > { %11564 = vtanh.f32 %v12729_v20  ;;  %v11549_v47 = vpop.eup %11548  ;;  %v1374_v23 = vmul.f32 0.5, %v11547_v40  ;;  %v1686_v19 = vshrl.u32 %v12894_v49, 16  ;;  %v1689_v29 = vshll.u32 %v12894_v49, 16 }
 0x288   : > { %v1945_v12 = vsel %vm12834_vm13, %v1708_v39, %v1944_v28  ;;  %11566 = vtanh.f32 %v12747_v34  ;;  %v11551_v55 = vpop.eup %11550  ;;  %v1572_v54 = vor.u32 %v1570_v4, %v1569_v21  ;;  %v1573_v0 = vrot.slane %v1569_v21, 4 }
 0x289   : > { %1946 = vst [vmem:[#allocation2 + $0x6c] sm:$0xf] %v1945_v12  ;;  %v1580_v1 = vor.u32 %v1578_v24, %v1577_v35  ;;  %v1582_v16 = vrot.slane %v1577_v35, 4  ;;  %v11553_v11 = vpop.eup %11552  ;;  %v1375_v31 = vmul.f32 0.5, %v11549_v47  ;;  %v1406_v20 = vadd.f32 0.5, %v1374_v23 }
 0x28a   : > { %v1376_v7 = vmul.f32 0.5, %v11551_v55  ;;  %11568 = vtanh.f32 %v12753_v56  ;;  %v11555_v59 = vpop.eup %11554  ;;  %v1889_v9 = vsel %vm12834_vm13, %v1572_v54, %v1888_v46  ;;  %v1377_v32 = vmul.f32 0.5, %v11553_v11  ;;  %v1899_v54 = vld [vmem:[#allocation2 + $0x20] sm:$0x1] }
 0x28b   : > { %v1581_v34 = vsel %vm12820_vm12, %v1573_v0, %v1580_v1  ;;  %v1893_v3 = vsel %vm12018_vm3, %v1582_v16, %v1892_v10  ;;  %v11557_v27 = vpop.eup %11556  ;;  %1890 = vst [vmem:[#allocation2 + $0xc] sm:$0xf] %v1889_v9  ;;  %v1407_v45 = vadd.f32 0.5, %v1375_v31  ;;  %v1438_v14 = vmul.f32 %v1406_v20, %v12648_v60  ;;  %v1951_v10 = vld [vmem:[#allocation2 + $0x78] sm:$0xf]  ;;  %v15965_v16 = vld [vmem:[#allocation16_spill] sm:$0xff] }
 0x28c   : > { %1891 = vst.msk [vmem:[#allocation2 + $0x10] sm:$0xf] %vm494_vm7, %v1581_v34  ;;  %1894 = vst [vmem:[#allocation2 + $0x14] sm:$0x1] %v1893_v3  ;;  %v1408_v56 = vadd.f32 0.5, %v1376_v7  ;;  %v1378_v38 = vmul.f32 0.5, %v11555_v59  ;;  %v11559_v8 = vpop.eup %11558  ;;  %11570 = vtanh.f32 %v12872_v15  ;;  %v1952_v9 = vsel %vm12834_vm13, %v12791_v33, %v1951_v10 }
 0x28d   : > { %v1409_v58 = vadd.f32 0.5, %v1377_v32  ;;  %v1379_v42 = vmul.f32 0.5, %v11557_v27  ;;  %v12915_v30 = vrot.slane %v1686_v19, 7  ;;  %v11561_v44 = vpop.eup %11560  ;;  %v1439_v53 = vmul.f32 %v1407_v45, %v12651_v13  ;;  %v1895_v19 = vld [vmem:[#allocation2 + $0x18] sm:$0xf] }
 0x28e   : > { %v9745_v36 = vpack.c.bf16 %v1438_v14, %v1438_v14  ;;  %v1440_v48 = vmul.f32 %v1408_v56, %v12654_v37  ;;  %v1410_v39 = vadd.f32 0.5, %v1378_v38  ;;  %v1380_v60 = vmul.f32 0.5, %v11559_v8  ;;  %v1902_v14 = vld [vmem:[#allocation2 + $0x24] sm:$0xf]  ;;  %1953 = vst [vmem:[#allocation2 + $0x78] sm:$0xf] %v1952_v9 }
 0x28f   : > { %v1441_v28 = vmul.f32 %v1409_v58, %v12657_v2  ;;  %v1411_v51 = vadd.f32 0.5, %v1379_v42  ;;  %v12920_v4 = vmul.f32 0.5, %v11561_v44  ;;  %v12922_v52 = vpop.eup %11562  ;;  %v9746_v24 = vpack.c.bf16 %v1439_v53, %v1439_v53 }
 0x290   : > { %v1584_v46 = vshrl.u32 %v9745_v36, 16  ;;  %v1587_v15 = vshll.u32 %v9745_v36, 16  ;;  %v9747_v49 = vpack.c.bf16 %v1440_v48, %v1440_v48  ;;  %v1442_v13 = vmul.f32 %v1410_v39, %v12690_v43 }
 0x291   : > { %v12924_v40 = vpop.eup %11564  ;;  %v9748_v21 = vpack.c.bf16 %v1441_v28, %v1441_v28  ;;  %v1443_v37 = vmul.f32 %v1411_v51, %v12693_v6  ;;  %v1412_v35 = vadd.f32 0.5, %v1380_v60  ;;  %v1592_v47 = vshrl.u32 %v9746_v24, 16 }
 0x292   : > { %v12928_v2 = vpop.eup %11566  ;;  %v1586_v12 = vrot.slane %v1584_v46, 7  ;;  %v1595_v23 = vshll.u32 %v9746_v24, 16  ;;  %v1601_v55 = vshrl.u32 %v9747_v49, 16  ;;  %v12930_v0 = vpack.c.bf16 %v1442_v13, %v1442_v13 }
 0x293   : > { %v12932_v1 = vpack.c.bf16 %v1443_v37, %v1443_v37  ;;  %v1444_v11 = vmul.f32 %v1412_v35, %v15965_v16  ;;  %v12936_v43 = vor.u32 %v1689_v29, %v12915_v30  ;;  %v11216_v31 = vld [vmem:[#allocation2 + $0xc] sm:$0xff]   ;;  %v11217_v20 = vld [vmem:[#allocation2 + $0x14] ss:$0 sps:$4 sm:$0x11]   ;;  %v1594_v34 = vrot.slane %v1592_v47, 7 }
 0x294   : > { %v12938_v6 = vpop.eup %11568  ;;  %v1589_v7 = vor.u32 %v1587_v15, %v1586_v12  ;;  %v1590_v59 = vrot.slane %v1586_v12, 4  ;;  %v1603_v3 = vrot.slane %v1601_v55, 7  ;;  %v1604_v32 = vshll.u32 %v9747_v49, 16  ;;  %v1906_v49 = vld [vmem:[#allocation2 + $0x2c] sm:$0x1] }
 0x295   : > { %v1609_v27 = vshrl.u32 %v9748_v21, 16  ;;  %v1612_v45 = vshll.u32 %v9748_v21, 16  ;;  %v2406_v56 = vrot.slane %v11216_v31, 1  ;;  %v2407_v29 = vrot.slane %v11217_v20, 1 }
 0x296   : > { %v1597_v38 = vor.u32 %v1595_v23, %v1594_v34  ;;  %v1599_v8 = vrot.slane %v1594_v34, 4  ;;  %v12943_v58 = vpop.eup %11570  ;;  %v1896_v42 = vsel %vm12834_vm13, %v1589_v7, %v1895_v19  ;;  %v2191_v44 = vshrl.u32 %v11216_v31, 16  ;;  %v1909_v23 = vld [vmem:[#allocation2 + $0x30] sm:$0xf]  ;;  %v1913_v19 = vld [vmem:[#allocation2 + $0x38] sm:$0x1] }
 0x297   : > { %v2193_v53 = vshll.u32 %v11216_v31, 16  ;;  %v2198_v36 = vshll.u32 %v11217_v20, 16  ;;  %v2408_v33 = vsel %vm2402_vm10, %v2406_v56, %v2407_v29  ;;  %1897 = vst [vmem:[#allocation2 + $0x18] sm:$0xf] %v1896_v42  ;;  %v1606_v28 = vor.u32 %v1604_v32, %v1603_v3  ;;  %v11308_v20 = vld [vmem:[%s15862_s5 + $0x60] sm:$0xff]  }
 0x298   : > { %v1598_v48 = vsel %vm12820_vm12, %v1590_v59, %v1597_v38  ;;  %v1900_v39 = vsel %vm12018_vm3, %v1599_v8, %v1899_v54  ;;  %9233 = vmatprep.mubr.msk.bf16.mxu0 %vm761_vm4, %v2408_v33  ;;  %v1607_v24 = vrot.slane %v1603_v3, 4  ;;  %v1611_v46 = vrot.slane %v1609_v27, 7  ;;  %3484 = vmatpush1.bf16.msra.mxu0 %v11308_v20  ;;  %v15966_v3 = vld [vmem:[#allocation12_spill] sm:$0xff]  ;;  %v1916_v42 = vld [vmem:[#allocation2 + $0x3c] sm:$0xf] }
 0x299   : > { %1898 = vst.msk [vmem:[#allocation2 + $0x1c] sm:$0xf] %vm494_vm7, %v1598_v48  ;;  %1901 = vst [vmem:[#allocation2 + $0x20] sm:$0x1] %v1900_v39  ;;  %v2195_v51 = vrot.slane %v2193_v53, 1  ;;  %v2200_v60 = vrot.slane %v2198_v36, 1  ;;  %v1903_v15 = vsel %vm12834_vm13, %v1606_v28, %v1902_v14  ;;  %v9751_v31 = vpack.c.bf16 %v1444_v11, %v1444_v11 }
 0x29a   : > { %v1618_v21 = vshrl.u32 %v12930_v0, 16  ;;  %v1621_v13 = vshll.u32 %v12930_v0, 16  ;;  %v1626_v37 = vshrl.u32 %v12932_v1, 16  ;;  %v1614_v10 = vor.u32 %v1612_v45, %v1611_v46  ;;  %1904 = vst [vmem:[#allocation2 + $0x24] sm:$0xf] %v1903_v15 }
 0x29b   : > { %v2196_v35 = vor.u32 %v2195_v51, %v2191_v44  ;;  %v1616_v12 = vrot.slane %v1611_v46, 4  ;;  %v1629_v47 = vshll.u32 %v12932_v1, 16  ;;  %v1413_v16 = vadd.f32 0.5, %v12920_v4  ;;  %v1937_v53 = vld [vmem:[#allocation2 + $0x60] sm:$0xf] }
 0x29c   : > { %v1620_v55 = vrot.slane %v1618_v21, 7  ;;  %v1628_v54 = vrot.slane %v1626_v37, 7  ;;  %v1615_v7 = vsel %vm12820_vm12, %v1607_v24, %v1614_v10  ;;  %v1382_v1 = vmul.f32 0.5, %v12922_v52  ;;  %v1958_v37 = vld [vmem:[#allocation2 + $0x84] sm:$0xf] }
 0x29d   : > { %v2201_v0 = vsel %vm2177_vm8, %v2196_v35, %v2200_v60  ;;  %v1907_v59 = vsel %vm12018_vm3, %v1616_v12, %v1906_v49  ;;  %1905 = vst.msk [vmem:[#allocation2 + $0x28] sm:$0xf] %vm494_vm7, %v1615_v7  ;;  %v1445_v32 = vmul.f32 %v1413_v16, %v15966_v3  ;;  %v1635_v27 = vshrl.u32 %v9751_v31, 16  ;;  %v15968_v60 = vld [vmem:[#allocation17_spill] sm:$0xff]  ;;  %v15970_v16 = vld [vmem:[#allocation11_spill] sm:$0xff] }
 0x29e   : > { %2372 = vrot.lane.b32.xlu0 %v2201_v0, %s11858_s0  ;;  %1908 = vst [vmem:[#allocation2 + $0x2c] sm:$0x1] %v1907_v59  ;;  %v1623_v4 = vor.u32 %v1621_v13, %v1620_v55  ;;  %v1624_v11 = vrot.slane %v1620_v55, 4  ;;  %v1631_v34 = vor.u32 %v1629_v47, %v1628_v54  ;;  %v1633_v9 = vrot.slane %v1628_v54, 4  ;;  %v15969_v12 = vld [vmem:[#allocation13_spill] sm:$0xff] }
 0x29f   : > { %v1638_v45 = vshll.u32 %v9751_v31, 16  ;;  %v1383_v14 = vmul.f32 0.5, %v12924_v40  ;;  %v15967_v56 = vmov 0   ;;  %v1414_v44 = vadd.f32 0.5, %v1382_v1 }
 0x2a0   : > { %3485 = vmatprep.subr.bf16.mxu0 %v15967_v56  ;;  %v11218_v29 = vld [vmem:[#allocation2 + $0x18] sm:$0xff]   ;;  %v1632_v52 = vsel %vm12820_vm12, %v1624_v11, %v1631_v34  ;;  %v1910_v38 = vsel %vm12834_vm13, %v1623_v4, %v1909_v23  ;;  %v1914_v8 = vsel %vm12018_vm3, %v1633_v9, %v1913_v19  ;;  %v11219_v36 = vld [vmem:[#allocation2 + $0x20] ss:$0 sps:$4 sm:$0x11]   ;;  %v9752_v40 = vpack.c.bf16 %v1445_v32, %v1445_v32  ;;  %v1965_v19 = vld [vmem:[#allocation2 + $0x90] sm:$0xf] }
 0x2a1   : > { %1911 = vst [vmem:[#allocation2 + $0x30] sm:$0xf] %v1910_v38  ;;  %1912 = vst.msk [vmem:[#allocation2 + $0x34] sm:$0xf] %vm494_vm7, %v1632_v52  ;;  %v1637_v33 = vrot.slane %v1635_v27, 7  ;;  %v1415_v48 = vadd.f32 0.5, %v1383_v14  ;;  %v1446_v24 = vmul.f32 %v1414_v44, %v15968_v60 }
 0x2a2   : > { %1915 = vst [vmem:[#allocation2 + $0x38] sm:$0x1] %v1914_v8  ;;  %v1384_v39 = vmul.f32 0.5, %v12928_v2  ;;  %v2203_v28 = vshrl.u32 %v11218_v29, 16  ;;  %v2205_v51 = vshll.u32 %v11218_v29, 16  ;;  %v1385_v46 = vmul.f32 0.5, %v12938_v6 }
 0x2a3   : > { %v2210_v15 = vshll.u32 %v11219_v36, 16  ;;  %v1640_v49 = vor.u32 %v1638_v45, %v1637_v33  ;;  %v1641_v21 = vrot.slane %v1637_v33, 4  ;;  %v1643_v13 = vshrl.u32 %v9752_v40, 16  ;;  %v1920_v14 = vld [vmem:[#allocation2 + $0x44] sm:$0x1]  ;;  %v15973_v8 = vld [vmem:[#allocation14_spill] sm:$0xff] }
 0x2a4   : > { %v2207_v35 = vrot.slane %v2205_v51, 1  ;;  %v1646_v10 = vshll.u32 %v9752_v40, 16  ;;  %v1447_v47 = vmul.f32 %v1415_v48, %v15969_v12  ;;  %v9753_v23 = vpack.c.bf16 %v1446_v24, %v1446_v24  ;;  %v11220_v54 = vld [vmem:[#allocation2 + $0x24] sm:$0xff]   ;;  %v15974_v44 = vld [vmem:[#allocation23_spill] sm:$0xff]  ;;  %v15977_v33 = vld [vmem:[#allocation22_spill] sm:$0xff] }
 0x2a5   : > { %v2212_v55 = vrot.slane %v2210_v15, 1  ;;  %v1917_v2 = vsel %vm12834_vm13, %v1640_v49, %v1916_v42  ;;  %v1938_v6 = vsel %vm12834_vm13, %v12936_v43, %v1937_v53  ;;  %v15971_v31 = vrot.slane %v15970_v16, 4  ;;  %v11221_v7 = vld [vmem:[#allocation2 + $0x2c] ss:$0 sps:$4 sm:$0x11]   ;;  %v15975_v53 = vld [vmem:[#allocation20_spill] sm:$0xff] }
 0x2a6   : > { %v2208_v0 = vor.u32 %v2207_v35, %v2203_v28  ;;  %v1645_v59 = vrot.slane %v1643_v13, 7  ;;  %1918 = vst [vmem:[#allocation2 + $0x3c] sm:$0xf] %v1917_v2  ;;  %v9754_v1 = vpack.c.bf16 %v1447_v47, %v1447_v47  ;;  %v1652_v4 = vshrl.u32 %v9753_v23, 16  ;;  %1939 = vst [vmem:[#allocation2 + $0x60] sm:$0xf] %v1938_v6 }
 0x2a7   : > { %v1751_v20 = vsel %vm12820_vm12, %v15971_v31, %v12804_v61  ;;  %v2215_v11 = vshrl.u32 %v11220_v54, 16  ;;  %v2217_v34 = vshll.u32 %v11220_v54, 16  ;;  %v1655_v9 = vshll.u32 %v9753_v23, 16  ;;  %v15972_v61 = vld [vmem:[#allocation19_spill] sm:$0xff]  ;;  %v1923_v24 = vld [vmem:[#allocation2 + $0x48] sm:$0xf] }
 0x2a8   : > { %1961 = vst.msk [vmem:[#allocation2 + $0x88] sm:$0xf] %vm494_vm7, %v1751_v20  ;;  %v1416_v3 = vadd.f32 0.5, %v1384_v39  ;;  %v2213_v43 = vsel %vm2177_vm8, %v2208_v0, %v2212_v55  ;;  %v2222_v32 = vshll.u32 %v11221_v7, 16  ;;  %v11222_v27 = vld [vmem:[#allocation2 + $0x30] sm:$0xff]   ;;  %v1648_v45 = vor.u32 %v1646_v10, %v1645_v59 }
 0x2a9   : > { %v1959_v29 = vsel %vm12834_vm13, %v15972_v61, %v1958_v37  ;;  %2374 = vrot.lane.b32.xlu1 %v2213_v43, %s11858_s0  ;;  %v2219_v52 = vrot.slane %v2217_v34, 1  ;;  %v11223_v38 = vld [vmem:[#allocation2 + $0x38] ss:$0 sps:$4 sm:$0x11]   ;;  %v15976_v36 = vrot.slane %v15975_v53, 4  ;;  %v1966_v48 = vsel %vm12834_vm13, %v15977_v33, %v1965_v19  ;;  %v15978_v16 = vld [vmem:[#allocation10_spill] sm:$0xff] }
 0x2aa   : > { %v1448_v42 = vmul.f32 %v1416_v3, %v15973_v8  ;;  %1960 = vst [vmem:[#allocation2 + $0x84] sm:$0xf] %v1959_v29  ;;  %v2224_v39 = vrot.slane %v2222_v32, 1  ;;  %v2227_v28 = vshrl.u32 %v11222_v27, 16  ;;  %v2229_v51 = vshll.u32 %v11222_v27, 16 }
 0x2ab   : > { %v1768_v40 = vsel %vm12820_vm12, %v15976_v36, %v15974_v44  ;;  %v1649_v60 = vsel %vm12820_vm12, %v1641_v21, %v1648_v45  ;;  %1967 = vst [vmem:[#allocation2 + $0x90] sm:$0xf] %v1966_v48  ;;  %v2220_v15 = vor.u32 %v2219_v52, %v2215_v11  ;;  %v2234_v49 = vshll.u32 %v11223_v38, 16  ;;  %v1927_v0 = vld [vmem:[#allocation2 + $0x50] sm:$0x1] }
 0x2ac   : > { %1968 = vst.msk [vmem:[#allocation2 + $0x94] sm:$0xf] %vm494_vm7, %v1768_v40  ;;  %v1650_v13 = vrot.slane %v1645_v59, 4  ;;  %1919 = vst.msk [vmem:[#allocation2 + $0x40] sm:$0xf] %vm494_vm7, %v1649_v60  ;;  %v1654_v37 = vrot.slane %v1652_v4, 7 }
 0x2ad   : > { %v2231_v35 = vrot.slane %v2229_v51, 1  ;;  %v1660_v10 = vshrl.u32 %v9754_v1, 16  ;;  %v1663_v12 = vshll.u32 %v9754_v1, 16  ;;  %v1417_v47 = vadd.f32 0.5, %v1385_v46  ;;  %v1930_v29 = vld [vmem:[#allocation2 + $0x54] sm:$0xf] }
 0x2ae   : > { %v2225_v23 = vsel %vm2177_vm8, %v2220_v15, %v2224_v39  ;;  %v2236_v19 = vrot.slane %v2234_v49, 1  ;;  %v1921_v21 = vsel %vm12018_vm3, %v1650_v13, %v1920_v14  ;;  %v1657_v55 = vor.u32 %v1655_v9, %v1654_v37  ;;  %v1934_v38 = vld [vmem:[#allocation2 + $0x5c] sm:$0x1]  ;;  %v1948_v33 = vld [vmem:[#allocation2 + $0x74] sm:$0x1] }
 0x2af   : > { %2376 = vrot.lane.b32.xlu1 %v2225_v23, %s11858_s0  ;;  %v2232_v54 = vor.u32 %v2231_v35, %v2227_v28  ;;  %1922 = vst [vmem:[#allocation2 + $0x44] sm:$0x1] %v1921_v21  ;;  %v1658_v2 = vrot.slane %v1654_v37, 4  ;;  %v1662_v6 = vrot.slane %v1660_v10, 7  ;;  %v1449_v31 = vmul.f32 %v1417_v47, %v15978_v16  ;;  %v1969_v15 = vld [vmem:[#allocation2 + $0x98] sm:$0x1] }
 0x2b0   : > { %v1924_v20 = vsel %vm12834_vm13, %v1657_v55, %v1923_v24  ;;  %v9755_v46 = vpack.c.bf16 %v1448_v42, %v1448_v42  ;;  %v1387_v7 = vmul.f32 0.5, %v12943_v58  ;;  %v1692_v59 = vrot.slane %v12915_v30, 4  ;;  %v1976_v35 = vld [vmem:[#allocation2 + $0xa4] sm:$0x1]  ;;  %v1955_v23 = vld [vmem:[#allocation2 + $0x80] sm:$0x1] }
 0x2b1   : > { %v2237_v1 = vsel %vm2177_vm8, %v2232_v54, %v2236_v19  ;;  %v1665_v4 = vor.u32 %v1663_v12, %v1662_v6  ;;  %v1667_v11 = vrot.slane %v1662_v6, 4  ;;  %1925 = vst [vmem:[#allocation2 + $0x48] sm:$0xf] %v1924_v20  ;;  %v9756_v34 = vpack.c.bf16 %v1449_v31, %v1449_v31  ;;  %v1941_v55 = vld [vmem:[#allocation2 + $0x68] sm:$0x1] }
 0x2b2   : > { %2378 = vrot.lane.b32.xlu0 %v2237_v1, %s11858_s0  ;;  %v1669_v9 = vshrl.u32 %v9755_v46, 16  ;;  %v1672_v3 = vshll.u32 %v9755_v46, 16  ;;  %v1419_v43 = vadd.f32 0.5, %v1387_v7  ;;  %v1711_v32 = vshrl.u32 %v12896_v5, 16  ;;  %v1962_v20 = vld [vmem:[#allocation2 + $0x8c] sm:$0x1] }
 0x2b3   : > { %v11224_v27 = vld [vmem:[#allocation2 + $0x3c] sm:$0xff]   ;;  %v1666_v45 = vsel %vm12820_vm12, %v1658_v2, %v1665_v4  ;;  %v1928_v58 = vsel %vm12018_vm3, %v1667_v11, %v1927_v0  ;;  %v1677_v14 = vshrl.u32 %v9756_v34, 16  ;;  %v1680_v61 = vshll.u32 %v9756_v34, 16  ;;  %v13052_v0 = vld [vmem:[#allocation2 + $0x84] sm:$0xff]  }
 0x2b4   : > { %1926 = vst.msk [vmem:[#allocation2 + $0x4c] sm:$0xf] %vm494_vm7, %v1666_v45  ;;  %1929 = vst [vmem:[#allocation2 + $0x50] sm:$0x1] %v1928_v58  ;;  %v1671_v52 = vrot.slane %v1669_v9, 7  ;;  %v1451_v8 = vmul.f32 %v1419_v43, %v12740_v63  ;;  %v1713_v42 = vrot.slane %v1711_v32, 7 }
 0x2b5   : > { %v1714_v44 = vshll.u32 %v12896_v5, 16  ;;  %v2239_v53 = vshrl.u32 %v11224_v27, 16  ;;  %v2241_v36 = vshll.u32 %v11224_v27, 16  ;;  %v1679_v40 = vrot.slane %v1677_v14, 7  ;;  %v15982_v4 = vld [vmem:[#allocation24_spill] sm:$0xff]  ;;  %v15984_v58 = vld [vmem:[#allocation18_spill] sm:$0xff] }
 0x2b6   : > { %v1730_v48 = vrot.slane %v1728_v18, 7  ;;  %v11225_v39 = vld [vmem:[#allocation2 + $0x44] ss:$0 sps:$4 sm:$0x11]   ;;  %v1674_v28 = vor.u32 %v1672_v3, %v1671_v52  ;;  %v1675_v51 = vrot.slane %v1671_v52, 4  ;;  %v9758_v60 = vpack.c.bf16 %v1451_v8, %v1451_v8  ;;  %v13081_v8 = vld [vmem:[#allocation2 + $0x90] sm:$0xff]  }
 0x2b7   : > { %v1716_v24 = vor.u32 %v1714_v44, %v1713_v42  ;;  %v2243_v49 = vrot.slane %v2241_v36, 1  ;;  %v1682_v13 = vor.u32 %v1680_v61, %v1679_v40  ;;  %v1684_v37 = vrot.slane %v1679_v40, 4 }
 0x2b8   : > { %v1718_v63 = vrot.slane %v1713_v42, 4  ;;  %v2246_v10 = vshll.u32 %v11225_v39, 16  ;;  %v1931_v5 = vsel %vm12834_vm13, %v1674_v28, %v1930_v29  ;;  %v1694_v12 = vshrl.u32 %v9758_v60, 16  ;;  %v11240_v28 = vld [vmem:[#allocation2 + $0x9c] sm:$0xff]  }
 0x2b9   : > { %v1697_v47 = vshll.u32 %v9758_v60, 16  ;;  %v2244_v19 = vor.u32 %v2243_v49, %v2239_v53  ;;  %v1683_v18 = vsel %vm12820_vm12, %v1675_v51, %v1682_v13  ;;  %1932 = vst [vmem:[#allocation2 + $0x54] sm:$0xf] %v1931_v5  ;;  %v1935_v21 = vsel %vm12018_vm3, %v1684_v37, %v1934_v38 }
 0x2ba   : > { %v1717_v54 = vsel %vm12820_vm12, %v1709_v41, %v1716_v24  ;;  %v2248_v2 = vrot.slane %v2246_v10, 1  ;;  %1933 = vst.msk [vmem:[#allocation2 + $0x58] sm:$0xf] %vm494_vm7, %v1683_v18  ;;  %1936 = vst [vmem:[#allocation2 + $0x5c] sm:$0x1] %v1935_v21  ;;  %v1696_v25 = vrot.slane %v1694_v12, 7  ;;  %v1949_v6 = vsel %vm12018_vm3, %v1718_v63, %v1948_v33 }
 0x2bb   : > { %1947 = vst.msk [vmem:[#allocation2 + $0x70] sm:$0xf] %vm494_vm7, %v1717_v54  ;;  %v15979_v16 = vshll.u32 %v12762_v50, 16  ;;  %v11226_v17 = vld [vmem:[#allocation2 + $0x48] sm:$0xff]   ;;  %1950 = vst [vmem:[#allocation2 + $0x74] sm:$0x1] %v1949_v6 }
 0x2bc   : > { %v1735_v46 = vrot.slane %v1730_v48, 4  ;;  %v15980_v41 = vld [vmem:[#allocation21_spill] sm:$0xff]  ;;  %v15983_v11 = vrot.slane %v15982_v4, 4  ;;  %v2249_v9 = vsel %vm2177_vm8, %v2244_v19, %v2248_v2  ;;  %v11227_v50 = vld [vmem:[#allocation2 + $0x50] ss:$0 sps:$4 sm:$0x11]   ;;  %v1699_v3 = vor.u32 %v1697_v47, %v1696_v25 }
 0x2bd   : > { %v1733_v31 = vor.u32 %v15979_v16, %v1730_v48  ;;  %v15981_v7 = vrot.slane %v15980_v41, 4  ;;  %v1701_v43 = vrot.slane %v1696_v25, 4  ;;  %2380 = vrot.lane.b32.xlu1 %v2249_v9, %s11858_s0  ;;  %v2253_v27 = vshll.u32 %v11226_v17, 16  ;;  %v13092_v25 = vld [vmem:[#allocation2 + $0xa8] sm:$0xff]  }
 0x2be   : > { %v1977_v34 = vsel %vm12018_vm3, %v15983_v11, %v1976_v35  ;;  %v1956_v45 = vsel %vm12018_vm3, %v1735_v46, %v1955_v23  ;;  %v1752_v14 = vrot.slane %v15984_v58, 4  ;;  %v2258_v61 = vshll.u32 %v11227_v50, 16  ;;  %v11243_v50 = vld [vmem:[#allocation2 + $0xb0] ss:$0 sps:$4 sm:$0x11]  }
 0x2bf   : > { %v1970_v1 = vsel %vm12018_vm3, %v15981_v7, %v1969_v15  ;;  %v1734_v32 = vsel %vm12820_vm12, %v1726_v57, %v1733_v31  ;;  %1978 = vst [vmem:[#allocation2 + $0xa4] sm:$0x1] %v1977_v34  ;;  %v1700_v26 = vsel %vm12820_vm12, %v1692_v59, %v1699_v3  ;;  %v1942_v57 = vsel %vm12018_vm3, %v1701_v43, %v1941_v55  ;;  %v13095_v3 = vld [vmem:[#allocation2 + $0xc] sm:$0xff]   ;;  %v11245_v58 = vld [vmem:[#allocation2 + $0xbc] ss:$0 sps:$4 sm:$0x11]  }
 0x2c0   : > { %1971 = vst [vmem:[#allocation2 + $0x98] sm:$0x1] %v1970_v1  ;;  %1954 = vst.msk [vmem:[#allocation2 + $0x7c] sm:$0xf] %vm494_vm7, %v1734_v32  ;;  %v2251_v29 = vshrl.u32 %v11226_v17, 16  ;;  %v2255_v52 = vrot.slane %v2253_v27, 1  ;;  %v1963_v38 = vsel %vm12018_vm3, %v1752_v14, %v1962_v20 }
 0x2c1   : > { %1957 = vst [vmem:[#allocation2 + $0x80] sm:$0x1] %v1956_v45  ;;  %1940 = vst.msk [vmem:[#allocation2 + $0x64] sm:$0xf] %vm494_vm7, %v1700_v26  ;;  %v2311_v30 = vshrl.u32 %v13052_v0, 16  ;;  %v2313_v42 = vshll.u32 %v13052_v0, 16 }
 0x2c2   : > { %1943 = vst [vmem:[#allocation2 + $0x68] sm:$0x1] %v1942_v57  ;;  %1964 = vst [vmem:[#allocation2 + $0x8c] sm:$0x1] %v1963_v38  ;;  %v2256_v59 = vor.u32 %v2255_v52, %v2251_v29  ;;  %v2260_v44 = vrot.slane %v2258_v61, 1  ;;  %v11228_v53 = vld [vmem:[#allocation2 + $0x54] sm:$0xff]  }
 0x2c3   : > { %v11229_v36 = vld [vmem:[#allocation2 + $0x5c] ss:$0 sps:$4 sm:$0x11]   ;;  %v11232_v40 = vld [vmem:[#allocation2 + $0x6c] sm:$0xff]   ;;  %v2265_v48 = vshll.u32 %v11228_v53, 16  ;;  %v2325_v39 = vshll.u32 %v13081_v8, 16 }
 0x2c4   : > { %v2261_v33 = vsel %vm2177_vm8, %v2256_v59, %v2260_v44  ;;  %v2263_v22 = vshrl.u32 %v11228_v53, 16  ;;  %v2270_v51 = vshll.u32 %v11229_v36, 16  ;;  %v11233_v60 = vld [vmem:[#allocation2 + $0x74] ss:$0 sps:$4 sm:$0x11]   ;;  %v2289_v24 = vshll.u32 %v11232_v40, 16 }
 0x2c5   : > { %2382 = vrot.lane.b32.xlu0 %v2261_v33, %s11858_s0  ;;  %v2267_v15 = vrot.slane %v2265_v48, 1  ;;  %v2287_v37 = vshrl.u32 %v11232_v40, 16  ;;  %v2294_v12 = vshll.u32 %v11233_v60, 16  ;;  %v2315_v18 = vrot.slane %v2313_v42, 1  ;;  %v11244_v0 = vld [vmem:[#allocation2 + $0xb4] sm:$0xff]   ;;  %v11250_v48 = vld [vmem:[#allocation2 + $0x24] sm:$0xff]  }
 0x2c6   : > { %v2272_v35 = vrot.slane %v2270_v51, 1  ;;  %v2291_v5 = vrot.slane %v2289_v24, 1  ;;  %v2337_v2 = vshll.u32 %v11240_v28, 16  ;;  %v11241_v9 = vld [vmem:[#allocation2 + $0xa4] ss:$0 sps:$4 sm:$0x11]  }
 0x2c7   : > { %v11234_v49 = vld [vmem:[#allocation2 + $0x78] sm:$0xff]   ;;  %v2268_v63 = vor.u32 %v2267_v15, %v2263_v22  ;;  %v2296_v17 = vrot.slane %v2294_v12, 1  ;;  %v2316_v11 = vor.u32 %v2315_v18, %v2311_v30  ;;  %v2327_v27 = vrot.slane %v2325_v39, 1  ;;  %v11249_v33 = vld [vmem:[#allocation2 + $0x20] ss:$0 sps:$4 sm:$0x11]  }
 0x2c8   : > { %v11230_v13 = vld [vmem:[#allocation2 + $0x60] sm:$0xff]   ;;  %v2301_v19 = vshll.u32 %v11234_v49, 16  ;;  %v2292_v54 = vor.u32 %v2291_v5, %v2287_v37  ;;  %v2299_v46 = vshrl.u32 %v11234_v49, 16  ;;  %v11239_v7 = vld [vmem:[#allocation2 + $0x98] ss:$0 sps:$4 sm:$0x11]  }
 0x2c9   : > { %v13088_v10 = vld [vmem:[#allocation2 + $0x68] ss:$0 sps:$4 sm:$0x11]   ;;  %v2277_v47 = vshll.u32 %v11230_v13, 16  ;;  %v2273_v21 = vsel %vm2177_vm8, %v2268_v63, %v2272_v35  ;;  %v2275_v6 = vshrl.u32 %v11230_v13, 16  ;;  %v2339_v45 = vrot.slane %v2337_v2, 1 }
 0x2ca   : > { %v11235_v23 = vld [vmem:[#allocation2 + $0x80] ss:$0 sps:$4 sm:$0x11]   ;;  %v2282_v55 = vshll.u32 %v13088_v10, 16  ;;  %2384 = vrot.lane.b32.xlu1 %v2273_v21, %s11858_s0  ;;  %v2303_v31 = vrot.slane %v2301_v19, 1  ;;  %v2297_v43 = vsel %vm2177_vm8, %v2292_v54, %v2296_v17  ;;  %v11248_v14 = vld [vmem:[#allocation2 + $0x18] sm:$0xff]  }
 0x2cb   : > { %v2279_v16 = vrot.slane %v2277_v47, 1  ;;  %v11237_v20 = vld [vmem:[#allocation2 + $0x8c] ss:$0 sps:$4 sm:$0x11]   ;;  %v2306_v41 = vshll.u32 %v11235_v23, 16  ;;  %v2323_v26 = vshrl.u32 %v13081_v8, 16 }
 0x2cc   : > { %v2284_v4 = vrot.slane %v2282_v55, 1  ;;  %v2318_v34 = vshll.u32 %v11237_v20, 16  ;;  %v2304_v32 = vor.u32 %v2303_v31, %v2299_v46  ;;  %v2335_v57 = vshrl.u32 %v11240_v28, 16  ;;  %v13106_v22 = vld [vmem:[#allocation2 + $0x14] ss:$0 sps:$4 sm:$0x11]  }
 0x2cd   : > { %v2280_v1 = vor.u32 %v2279_v16, %v2275_v6  ;;  %v2308_v29 = vrot.slane %v2306_v41, 1  ;;  %v2342_v38 = vshll.u32 %v11241_v9, 16  ;;  %v2349_v30 = vshll.u32 %v13092_v25, 16  ;;  %v11252_v60 = vld [vmem:[#allocation2 + $0x30] sm:$0xff]   ;;  %v11254_v18 = vld [vmem:[#allocation2 + $0x3c] sm:$0xff]   ;;  %v11256_v55 = vld [vmem:[#allocation2 + $0x48] sm:$0xff]  }
 0x2ce   : > { %2388 = vrot.lane.b32.xlu1 %v2297_v43, %s11858_s0  ;;  %v2320_v52 = vrot.slane %v2318_v34, 1  ;;  %v2330_v42 = vshll.u32 %v11239_v7, 16  ;;  %v2361_v59 = vshll.u32 %v11244_v0, 16  ;;  %v2328_v36 = vor.u32 %v2327_v27, %v2323_v26  ;;  %v11251_v35 = vld [vmem:[#allocation2 + $0x2c] ss:$0 sps:$4 sm:$0x11]  }
 0x2cf   : > { %v2285_v61 = vsel %vm2177_vm8, %v2280_v1, %v2284_v4  ;;  %v2309_v44 = vsel %vm2177_vm8, %v2304_v32, %v2308_v29  ;;  %v2340_v40 = vor.u32 %v2339_v45, %v2335_v57  ;;  %v2351_v8 = vrot.slane %v2349_v30, 1  ;;  %v11253_v19 = vld [vmem:[#allocation2 + $0x38] ss:$0 sps:$4 sm:$0x11]  }
 0x2d0   : > { %2386 = vrot.lane.b32.xlu0 %v2285_v61, %s11858_s0  ;;  %v2321_v53 = vsel %vm2177_vm8, %v2316_v11, %v2320_v52  ;;  %v2354_v39 = vshll.u32 %v11243_v50, 16  ;;  %v2363_v28 = vrot.slane %v2361_v59, 1  ;;  %v3021_v51 = vshll.u32 %v13095_v3, 16  ;;  %v11255_v21 = vld [vmem:[#allocation2 + $0x44] ss:$0 sps:$4 sm:$0x11]  }
 0x2d1   : > { %v2344_v24 = vrot.slane %v2342_v38, 1  ;;  %v2359_v15 = vshrl.u32 %v11244_v0, 16  ;;  %v2366_v49 = vshll.u32 %v11245_v58, 16  ;;  %v3033_v13 = vshll.u32 %v11248_v14, 16  ;;  %v13115_v17 = vld [vmem:[#allocation2 + $0x54] sm:$0xff]   ;;  %v11260_v58 = vld [vmem:[#allocation2 + $0x60] sm:$0xff]  }
 0x2d2   : > { %2392 = vrot.lane.b32.xlu1 %v2321_v53, %s11858_s0  ;;  %v2332_v37 = vrot.slane %v2330_v42, 1  ;;  %v2347_v63 = vshrl.u32 %v13092_v25, 16  ;;  %v3045_v23 = vshll.u32 %v11250_v48, 16  ;;  %v2356_v6 = vrot.slane %v2354_v39, 1  ;;  %v11262_v39 = vld [vmem:[#allocation2 + $0x6c] sm:$0xff]  }
 0x2d3   : > { %v2345_v5 = vsel %vm2177_vm8, %v2340_v40, %v2344_v24  ;;  %v2364_v12 = vor.u32 %v2363_v28, %v2359_v15  ;;  %v3035_v47 = vrot.slane %v3033_v13, 1  ;;  %v3023_v16 = vrot.slane %v3021_v51, 1  ;;  %v11257_v50 = vld [vmem:[#allocation2 + $0x50] ss:$0 sps:$4 sm:$0x11]   ;;  %v11266_v15 = vld [vmem:[#allocation2 + $0x84] sm:$0xff]  }
 0x2d4   : > { %2390 = vrot.lane.b32.xlu0 %v2309_v44, %s11858_s0  ;;  %v2333_v54 = vsel %vm2177_vm8, %v2328_v36, %v2332_v37  ;;  %v2352_v2 = vor.u32 %v2351_v8, %v2347_v63  ;;  %v2368_v25 = vrot.slane %v2366_v49, 1  ;;  %v3031_v31 = vshrl.u32 %v11248_v14, 16  ;;  %v11259_v57 = vld [vmem:[#allocation2 + $0x5c] ss:$0 sps:$4 sm:$0x11]  }
 0x2d5   : > { %v3038_v20 = vshll.u32 %v11249_v33, 16  ;;  %v3057_v0 = vshll.u32 %v11252_v60, 16  ;;  %v3019_v46 = vshrl.u32 %v13095_v3, 16  ;;  %v3026_v41 = vshll.u32 %v13106_v22, 16  ;;  %v11264_v36 = vld [vmem:[#allocation2 + $0x78] sm:$0xff]  }
 0x2d6   : > { %2396 = vrot.lane.b32.xlu1 %v2345_v5, %s11858_s0  ;;  %v3043_v7 = vshrl.u32 %v11250_v48, 16  ;;  %v3047_v1 = vrot.slane %v3045_v23, 1  ;;  %v2369_v4 = vsel %vm2177_vm8, %v2364_v12, %v2368_v25  ;;  %v3036_v11 = vor.u32 %v3035_v47, %v3031_v31  ;;  %v11261_v53 = vld [vmem:[#allocation2 + $0x68] ss:$0 sps:$4 sm:$0x11]   ;;  %v13133_v25 = vld [vmem:[#allocation2 + $0x9c] sm:$0xff]  }
 0x2d7   : > { %v3059_v34 = vrot.slane %v3057_v0, 1  ;;  %v3069_v9 = vshll.u32 %v11254_v18, 16  ;;  %v2357_v43 = vsel %vm2177_vm8, %v2352_v2, %v2356_v6  ;;  %v3024_v32 = vor.u32 %v3023_v16, %v3019_v46  ;;  %v11265_v5 = vld [vmem:[#allocation2 + $0x80] ss:$0 sps:$4 sm:$0x11]  }
 0x2d8   : > { %2394 = vrot.lane.b32.xlu0 %v2333_v54, %s11858_s0  ;;  %v3050_v27 = vshll.u32 %v11251_v35, 16  ;;  %v3081_v45 = vshll.u32 %v11256_v55, 16  ;;  %v3040_v3 = vrot.slane %v3038_v20, 1  ;;  %v3055_v14 = vshrl.u32 %v11252_v60, 16 }
 0x2d9   : > { %v3062_v61 = vshll.u32 %v11253_v19, 16  ;;  %v3074_v26 = vshll.u32 %v11255_v21, 16  ;;  %v3028_v29 = vrot.slane %v3026_v41, 1  ;;  %v3048_v52 = vor.u32 %v3047_v1, %v3043_v7  ;;  %v11263_v35 = vld [vmem:[#allocation2 + $0x74] ss:$0 sps:$4 sm:$0x11]  }
 0x2da   : > { %2400 = vrot.lane.b32.xlu1 %v2369_v4, %s11858_s0  ;;  %v3071_v38 = vrot.slane %v3069_v9, 1  ;;  %v3093_v30 = vshll.u32 %v13115_v17, 16  ;;  %v3041_v42 = vsel %vm2177_vm8, %v3036_v11, %v3040_v3  ;;  %v3060_v59 = vor.u32 %v3059_v34, %v3055_v14  ;;  %v11267_v16 = vld [vmem:[#allocation2 + $0x8c] ss:$0 sps:$4 sm:$0x11]  }
 0x2db   : > { %v3083_v44 = vrot.slane %v3081_v45, 1  ;;  %v3029_v40 = vsel %vm2177_vm8, %v3024_v32, %v3028_v29  ;;  %v3052_v33 = vrot.slane %v3050_v27, 1  ;;  %v3067_v48 = vshrl.u32 %v11254_v18, 16  ;;  %v11268_v18 = vld [vmem:[#allocation2 + $0x90] sm:$0xff]   ;;  %v13136_v41 = vld [vmem:[#allocation2 + $0xa8] sm:$0xff]  }
 0x2dc   : > { %2398 = vrot.lane.b32.xlu0 %v2357_v43, %s11858_s0  ;;  %v3105_v8 = vshll.u32 %v11260_v58, 16  ;;  %v3064_v28 = vrot.slane %v3062_v61, 1  ;;  %v3076_v51 = vrot.slane %v3074_v26, 1  ;;  %v3079_v60 = vshrl.u32 %v11256_v55, 16  ;;  %v13147_v26 = vld [vmem:[#allocation2 + $0xc0] sm:$0xff]  }
 0x2dd   : > { %v3086_v24 = vshll.u32 %v11257_v50, 16  ;;  %v3053_v49 = vsel %vm2177_vm8, %v3048_v52, %v3052_v33  ;;  %v3072_v13 = vor.u32 %v3071_v38, %v3067_v48  ;;  %v3095_v37 = vrot.slane %v3093_v30, 1  ;;  %v13139_v4 = vld [vmem:[#allocation2 + $0x98] ss:$0 sps:$4 sm:$0x11]  }
 0x2de   : > { %3212 = vrot.lane.b32.xlu1 %v3041_v42, %s11858_s0  ;;  %v3107_v63 = vrot.slane %v3105_v8, 1  ;;  %v3065_v12 = vsel %vm2177_vm8, %v3060_v59, %v3064_v28  ;;  %v3084_v47 = vor.u32 %v3083_v44, %v3079_v60  ;;  %v3098_v23 = vshll.u32 %v11259_v57, 16  ;;  %v13142_v32 = vld [vmem:[#allocation2 + $0xa4] ss:$0 sps:$4 sm:$0x11]  }
 0x2df   : > { %v3129_v19 = vshll.u32 %v11264_v36, 16  ;;  %v3091_v21 = vshrl.u32 %v13115_v17, 16  ;;  %v3103_v55 = vshrl.u32 %v11260_v58, 16  ;;  %v3110_v54 = vshll.u32 %v11261_v53, 16  ;;  %v13162_v60 = vld [vmem:[#allocation2 + $0x24] sm:$0xff]  }
 0x2e0   : > { %3210 = vrot.lane.b32.xlu0 %v3029_v40, %s11858_s0  ;;  %v3117_v2 = vshll.u32 %v11262_v39, 16  ;;  %v3088_v6 = vrot.slane %v3086_v24, 1  ;;  %v3077_v31 = vsel %vm2177_vm8, %v3072_v13, %v3076_v51  ;;  %v3141_v46 = vshll.u32 %v11266_v15, 16  ;;  %v13150_v38 = vld [vmem:[#allocation2 + $0xb0] ss:$0 sps:$4 sm:$0x11]  }
 0x2e1   : > { %v3096_v20 = vor.u32 %v3095_v37, %v3091_v21  ;;  %v3108_v0 = vor.u32 %v3107_v63, %v3103_v55  ;;  %v3100_v1 = vrot.slane %v3098_v23, 1  ;;  %v3131_v17 = vrot.slane %v3129_v19, 1  ;;  %v13158_v48 = vld [vmem:[#allocation2 + $0xc8] ss:$0 sps:$4 sm:$0x11]   ;;  %v13167_v63 = vld [vmem:[#allocation2 + $0x18] sm:$0xff]  }
 0x2e2   : > { %3216 = vrot.lane.b32.xlu1 %v3065_v12, %s11858_s0  ;;  %v3089_v7 = vsel %vm2177_vm8, %v3084_v47, %v3088_v6  ;;  %v3153_v11 = vshll.u32 %v11268_v18, 16  ;;  %v3112_v34 = vrot.slane %v3110_v54, 1  ;;  %v3119_v9 = vrot.slane %v3117_v2, 1  ;;  %v13165_v37 = vld [vmem:[#allocation2 + $0xbc] ss:$0 sps:$4 sm:$0x11]  }
 0x2e3   : > { %v3122_v50 = vshll.u32 %v11263_v35, 16  ;;  %v3134_v43 = vshll.u32 %v11265_v5, 16  ;;  %v3115_v27 = vshrl.u32 %v11262_v39, 16  ;;  %v3127_v45 = vshrl.u32 %v11264_v36, 16  ;;  %v13154_v36 = vld [vmem:[#allocation2 + $0xb4] sm:$0xff]   ;;  %v13180_v6 = vld [vmem:[#allocation2 + $0x3c] sm:$0xff]  }
 0x2e4   : > { %3214 = vrot.lane.b32.xlu0 %v3053_v49, %s11858_s0  ;;  %v3101_v58 = vsel %vm2177_vm8, %v3096_v20, %v3100_v1  ;;  %v3113_v3 = vsel %vm2177_vm8, %v3108_v0, %v3112_v34  ;;  %v3143_v14 = vrot.slane %v3141_v46, 1  ;;  %v3146_v61 = vshll.u32 %v11267_v16, 16  ;;  %v13178_v2 = vld [vmem:[#allocation2 + $0x30] sm:$0xff]   ;;  %v11309_v16 = vld [vmem:[%s15862_s5 + $0x68] sm:$0xff]  }
 0x2e5   : > { %v3132_v57 = vor.u32 %v3131_v17, %v3127_v45  ;;  %v3155_v29 = vrot.slane %v3153_v11, 1  ;;  %v3165_v52 = vshll.u32 %v13133_v25, 16  ;;  %v3177_v30 = vshll.u32 %v13136_v41, 16  ;;  %v13187_v46 = vld [vmem:[#allocation2 + $0x20] ss:$0 sps:$4 sm:$0x11]   ;;  %3486 = vmatpush1.bf16.msra.mxu0 %v11309_v16 }
 0x2e6   : > { %3220 = vrot.lane.b32.xlu1 %v3089_v7, %s11858_s0  ;;  %v3120_v42 = vor.u32 %v3119_v9, %v3115_v27  ;;  %v3124_v59 = vrot.slane %v3122_v50, 1  ;;  %v3136_v44 = vrot.slane %v3134_v43, 1  ;;  %v3139_v53 = vshrl.u32 %v11266_v15, 16  ;;  %v13194_v34 = vld [vmem:[#allocation2 + $0x38] ss:$0 sps:$4 sm:$0x11]   ;;  %3487 = vmatprep.subr.bf16.mxu0 %v15967_v56 }
 0x2e7   : > { %v3151_v40 = vshrl.u32 %v11268_v18, 16  ;;  %v3158_v33 = vshll.u32 %v13139_v4, 16  ;;  %v3148_v39 = vrot.slane %v3146_v61, 1  ;;  %v3170_v28 = vshll.u32 %v13142_v32, 16  ;;  %v11310_v9 = vld [vmem:[%s15862_s5 + $0x70] sm:$0xff]   ;;  %v13203_v27 = vld [vmem:[#allocation2 + $0x48] sm:$0xff]  }
 0x2e8   : > { %3218 = vrot.lane.b32.xlu0 %v3077_v31, %s11858_s0  ;;  %v3144_v8 = vor.u32 %v3143_v14, %v3139_v53  ;;  %v3201_v51 = vshll.u32 %v13147_v26, 16  ;;  %v3137_v24 = vsel %vm2177_vm8, %v3132_v57, %v3136_v44  ;;  %v3167_v49 = vrot.slane %v3165_v52, 1  ;;  %v13201_v43 = vld [vmem:[#allocation2 + $0x44] ss:$0 sps:$4 sm:$0x11]   ;;  %v13208_v61 = vld [vmem:[#allocation2 + $0x54] sm:$0xff]  }
 0x2e9   : > { %v3156_v15 = vor.u32 %v3155_v29, %v3151_v40  ;;  %v3179_v13 = vrot.slane %v3177_v30, 1  ;;  %v3125_v35 = vsel %vm2177_vm8, %v3120_v42, %v3124_v59  ;;  %v3182_v5 = vshll.u32 %v13150_v38, 16  ;;  %3488 = vmatpush1.bf16.msra.mxu0 %v11310_v9  ;;  %v11311_v53 = vld [vmem:[%s15862_s5 + $0x78] sm:$0xff]  }
 0x2ea   : > { %3224 = vrot.lane.b32.xlu1 %v3113_v3, %s11858_s0  ;;  %v3189_v12 = vshll.u32 %v13154_v36, 16  ;;  %v3160_v47 = vrot.slane %v3158_v33, 1  ;;  %v3163_v23 = vshrl.u32 %v13133_v25, 16  ;;  %v3175_v19 = vshrl.u32 %v13136_v41, 16  ;;  %3489 = vmatprep.subr.bf16.mxu0 %v15967_v56 }
 0x2eb   : > { %v3149_v18 = vsel %vm2177_vm8, %v3144_v8, %v3148_v39  ;;  %v3172_v21 = vrot.slane %v3170_v28, 1  ;;  %v3203_v55 = vrot.slane %v3201_v51, 1  ;;  %v3868_v54 = vshll.u32 %v13162_v60, 16  ;;  %v13189_v41 = vld [vmem:[#allocation2 + $0x2c] ss:$0 sps:$4 sm:$0x11]  }
 0x2ec   : > { %3222 = vrot.lane.b32.xlu0 %v3101_v58, %s11858_s0  ;;  %v3161_v31 = vsel %vm2177_vm8, %v3156_v15, %v3160_v47  ;;  %v3168_v20 = vor.u32 %v3167_v49, %v3163_v23  ;;  %v3180_v25 = vor.u32 %v3179_v13, %v3175_v19  ;;  %v3206_v0 = vshll.u32 %v13158_v48, 16  ;;  %v13233_v19 = vld [vmem:[#allocation2 + $0x50] ss:$0 sps:$4 sm:$0x11]  }
 0x2ed   : > { %v3184_v7 = vrot.slane %v3182_v5, 1  ;;  %v3191_v1 = vrot.slane %v3189_v12, 1  ;;  %v3199_v17 = vshrl.u32 %v13147_v26, 16  ;;  %v3856_v11 = vshll.u32 %v13167_v63, 16  ;;  %3490 = vmatpush1.bf16.msra.mxu0 %v11311_v53 }
 0x2ee   : > { %3228 = vrot.lane.b32.xlu1 %v3137_v24, %s11858_s0  ;;  %v3194_v50 = vshll.u32 %v13165_v37, 16  ;;  %v3187_v45 = vshrl.u32 %v13154_v36, 16  ;;  %v3870_v3 = vrot.slane %v3868_v54, 1  ;;  %v3880_v14 = vshll.u32 %v13178_v2, 16  ;;  %v13225_v24 = vld [vmem:[#allocation2 + $0x6c] sm:$0xff]   ;;  %3491 = vmatprep.subr.bf16.mxu0 %v15967_v56 }
 0x2ef   : > { %v3204_v58 = vor.u32 %v3203_v55, %v3199_v17  ;;  %v3173_v26 = vsel %vm2177_vm8, %v3168_v20, %v3172_v21  ;;  %v3185_v57 = vsel %vm2177_vm8, %v3180_v25, %v3184_v7  ;;  %v3208_v29 = vrot.slane %v3206_v0, 1  ;;  %v11312_v21 = vld [vmem:[%s15862_s5 + $0x80] sm:$0xff]   ;;  %v13242_v16 = vld [vmem:[#allocation2 + $0x5c] ss:$0 sps:$4 sm:$0x11]  }
 0x2f0   : > { %3226 = vrot.lane.b32.xlu0 %v3125_v35, %s11858_s0  ;;  %v3892_v52 = vshll.u32 %v13180_v6, 16  ;;  %v3192_v30 = vor.u32 %v3191_v1, %v3187_v45  ;;  %v3858_v42 = vrot.slane %v3856_v11, 1  ;;  %v3866_v59 = vshrl.u32 %v13162_v60, 16  ;;  %v13246_v20 = vld [vmem:[#allocation2 + $0x84] sm:$0xff]  }
 0x2f1   : > { %v3873_v44 = vshll.u32 %v13189_v41, 16  ;;  %v3196_v40 = vrot.slane %v3194_v50, 1  ;;  %v3854_v33 = vshrl.u32 %v13167_v63, 16  ;;  %v3861_v8 = vshll.u32 %v13187_v46, 16  ;;  %v11313_v45 = vld [vmem:[%s15862_s5 + $0x88] sm:$0xff]   ;;  %3492 = vmatpush1.bf16.msra.mxu0 %v11312_v21 }
 0x2f2   : > { %3232 = vrot.lane.b32.xlu1 %v3161_v31, %s11858_s0  ;;  %v3209_v39 = vsel %vm2177_vm8, %v3204_v58, %v3208_v29  ;;  %v3871_v28 = vor.u32 %v3870_v3, %v3866_v59  ;;  %v3882_v51 = vrot.slane %v3880_v14, 1  ;;  %v3885_v60 = vshll.u32 %v13194_v34, 16  ;;  %v13244_v31 = vld [vmem:[#allocation2 + $0x78] sm:$0xff]   ;;  %v13257_v14 = vld [vmem:[#allocation2 + $0x74] ss:$0 sps:$4 sm:$0x11]   ;;  %3493 = vmatprep.subr.bf16.mxu0 %v15967_v56 }
 0x2f3   : > { %v3894_v15 = vrot.slane %v3892_v52, 1  ;;  %v3897_v49 = vshll.u32 %v13201_v43, 16  ;;  %v3904_v13 = vshll.u32 %v13203_v27, 16  ;;  %v3916_v35 = vshll.u32 %v13208_v61, 16  ;;  %v13262_v29 = vld [vmem:[#allocation2 + $0x9c] sm:$0xff]  }
 0x2f4   : > { %3230 = vrot.lane.b32.xlu0 %v3149_v18, %s11858_s0  ;;  %v3197_v5 = vsel %vm2177_vm8, %v3192_v30, %v3196_v40  ;;  %v3859_v12 = vor.u32 %v3858_v42, %v3854_v33  ;;  %v3875_v47 = vrot.slane %v3873_v44, 1  ;;  %v3878_v23 = vshrl.u32 %v13178_v2, 16  ;;  %v13235_v18 = vld [vmem:[#allocation2 + $0x60] sm:$0xff]   ;;  %v13268_v59 = vld [vmem:[#allocation2 + $0x68] ss:$0 sps:$4 sm:$0x11]  }
 0x2f5   : > { %v3863_v55 = vrot.slane %v3861_v8, 1  ;;  %v3890_v54 = vshrl.u32 %v13180_v6, 16  ;;  %v3887_v7 = vrot.slane %v3885_v60, 1  ;;  %v3940_v1 = vshll.u32 %v13225_v24, 16  ;;  %3494 = vmatpush1.bf16.msra.mxu0 %v11313_v45 }
 0x2f6   : > { %3236 = vrot.lane.b32.xlu1 %v3185_v57, %s11858_s0  ;;  %v3876_v25 = vsel %vm2177_vm8, %v3871_v28, %v3875_v47  ;;  %v3883_v0 = vor.u32 %v3882_v51, %v3878_v23  ;;  %v3899_v11 = vrot.slane %v3897_v49, 1  ;;  %v3906_v9 = vrot.slane %v3904_v13, 1  ;;  %v11314_v28 = vld [vmem:[%s15862_s5 + $0x90] sm:$0xff]   ;;  %v13281_v13 = vld [vmem:[#allocation2 + $0x80] ss:$0 sps:$4 sm:$0x11]   ;;  %3495 = vmatprep.subr.bf16.mxu0 %v15967_v56 }
 0x2f7   : > { %v3895_v17 = vor.u32 %v3894_v15, %v3890_v54  ;;  %v3918_v50 = vrot.slane %v3916_v35, 1  ;;  %v3864_v58 = vsel %vm2177_vm8, %v3859_v12, %v3863_v55  ;;  %v3928_v3 = vshll.u32 %v13235_v18, 16  ;;  %v13298_v45 = vld [vmem:[#allocation2 + $0xa4] ss:$0 sps:$4 sm:$0x11]  }
 0x2f8   : > { %3234 = vrot.lane.b32.xlu0 %v3173_v26, %s11858_s0  ;;  %v3914_v26 = vshrl.u32 %v13208_v61, 16  ;;  %v3921_v57 = vshll.u32 %v13242_v16, 16  ;;  %v3888_v52 = vsel %vm2177_vm8, %v3883_v0, %v3887_v7  ;;  %v3902_v30 = vshrl.u32 %v13203_v27, 16  ;;  %v13291_v7 = vld [vmem:[#allocation2 + $0xa8] sm:$0xff]  }
 0x2f9   : > { %v3909_v42 = vshll.u32 %v13233_v19, 16  ;;  %v3942_v44 = vrot.slane %v3940_v1, 1  ;;  %v3900_v53 = vsel %vm2177_vm8, %v3895_v17, %v3899_v11  ;;  %v3952_v33 = vshll.u32 %v13244_v31, 16  ;;  %v13293_v1 = vld [vmem:[#allocation2 + $0xb4] sm:$0xff]   ;;  %3496 = vmatpush1.bf16.msra.mxu0 %v11314_v28 }
 0x2fa   : > { %3240 = vrot.lane.b32.xlu1 %v3209_v39, %s11858_s0  ;;  %v3919_v40 = vor.u32 %v3918_v50, %v3914_v26  ;;  %v3964_v8 = vshll.u32 %v13246_v20, 16  ;;  %v13273_v39 = vld [vmem:[#allocation2 + $0x90] sm:$0xff]   ;;  %v3907_v51 = vor.u32 %v3906_v9, %v3902_v30  ;;  %v3930_v60 = vrot.slane %v3928_v3, 1  ;;  %3497 = vmatprep.subr.bf16.mxu0 %v15967_v56 }
 0x2fb   : > { %v3938_v15 = vshrl.u32 %v13225_v24, 16  ;;  %v3945_v49 = vshll.u32 %v13257_v14, 16  ;;  %v3923_v35 = vrot.slane %v3921_v57, 1  ;;  %v3911_v12 = vrot.slane %v3909_v42, 1 }
 0x2fc   : > { %3238 = vrot.lane.b32.xlu0 %v3197_v5, %s11858_s0  ;;  %v13284_v5 = vld [vmem:[#allocation2 + $0x8c] ss:$0 sps:$4 sm:$0x11]   ;;  %v3926_v47 = vshrl.u32 %v13235_v18, 16  ;;  %v3933_v23 = vshll.u32 %v13268_v59, 16  ;;  %v3954_v54 = vrot.slane %v3952_v33, 1 }
 0x2fd   : > { %v3943_v21 = vor.u32 %v3942_v44, %v3938_v15  ;;  %v3924_v55 = vsel %vm2177_vm8, %v3919_v40, %v3923_v35  ;;  %v3988_v0 = vshll.u32 %v13262_v29, 16  ;;  %v3912_v17 = vsel %vm2177_vm8, %v3907_v51, %v3911_v12  ;;  %v13310_v44 = vld [vmem:[#allocation2 + $0x98] ss:$0 sps:$4 sm:$0x11]   ;;  %v11316_v35 = vld [vmem:[%s15862_s5 + $0xa0] sm:$0xff]  }
 0x2fe   : > { %4047 = vrot.lane.b32.xlu1 %v3876_v25, %s11858_s0  ;;  %v3966_v25 = vrot.slane %v3964_v8, 1  ;;  %v3931_v11 = vor.u32 %v3930_v60, %v3926_v47  ;;  %v3947_v9 = vrot.slane %v3945_v49, 1  ;;  %v3976_v50 = vshll.u32 %v13273_v39, 16  ;;  %v13317_v49 = vld [vmem:[#allocation2 + $0xc0] sm:$0xff]  }
 0x2ff   : > { %v3950_v3 = vshrl.u32 %v13244_v31, 16  ;;  %v3957_v26 = vshll.u32 %v13281_v13, 16  ;;  %v3962_v57 = vshrl.u32 %v13246_v20, 16  ;;  %v3935_v30 = vrot.slane %v3933_v23, 1 }
 0x300   : > { %4045 = vrot.lane.b32.xlu0 %v3864_v58, %s11858_s0  ;;  %v11315_v58 = vld [vmem:[%s15862_s5 + $0x98] sm:$0xff]   ;;  %v3948_v42 = vsel %vm2177_vm8, %v3943_v21, %v3947_v9  ;;  %v3990_v33 = vrot.slane %v3988_v0, 1  ;;  %v4012_v8 = vshll.u32 %v13293_v1, 16  ;;  %v3978_v51 = vrot.slane %v3976_v50, 1 }
 0x301   : > { %v3967_v40 = vor.u32 %v3966_v25, %v3962_v57  ;;  %v3936_v28 = vsel %vm2177_vm8, %v3931_v11, %v3935_v30  ;;  %v3993_v60 = vshll.u32 %v13298_v45, 16  ;;  %v4000_v15 = vshll.u32 %v13291_v7, 16  ;;  %3498 = vmatpush1.bf16.msra.mxu0 %v11315_v58  ;;  %v13324_v21 = vld [vmem:[#allocation2 + $0xbc] ss:$0 sps:$4 sm:$0x11]   ;;  %v11317_v57 = vld [vmem:[%s15862_s5 + $0xa8] sm:$0xff]  }
 0x302   : > { %4051 = vrot.lane.b32.xlu1 %v3900_v53, %s11858_s0  ;;  %v3955_v53 = vor.u32 %v3954_v54, %v3950_v3  ;;  %v3959_v12 = vrot.slane %v3957_v26, 1  ;;  %v3986_v23 = vshrl.u32 %v13262_v29, 16  ;;  %3499 = vmatprep.subr.bf16.mxu0 %v15967_v56  ;;  %v3981_v54 = vshll.u32 %v13310_v44, 16  ;;  %v13329_v25 = vld [vmem:[#allocation2 + $0xb0] ss:$0 sps:$4 sm:$0x11]  }
 0x303   : > { %v4014_v9 = vrot.slane %v4012_v8, 1  ;;  %v3995_v58 = vrot.slane %v3993_v60, 1  ;;  %v4002_v3 = vrot.slane %v4000_v15, 1  ;;  %v4024_v26 = vshll.u32 %v13317_v49, 16 }
 0x304   : > { %4049 = vrot.lane.b32.xlu0 %v3888_v52, %s11858_s0  ;;  %v3969_v52 = vshll.u32 %v13284_v5, 16  ;;  %v3960_v0 = vsel %vm2177_vm8, %v3955_v53, %v3959_v12  ;;  %v3991_v11 = vor.u32 %v3990_v33, %v3986_v23  ;;  %v4017_v30 = vshll.u32 %v13324_v21, 16  ;;  %v13344_v60 = vld [vmem:[#allocation2 + $0xc8] ss:$0 sps:$4 sm:$0x11]  }
 0x305   : > { %3500 = vmatpush1.bf16.msra.mxu0 %v11316_v35  ;;  %v3983_v8 = vrot.slane %v3981_v54, 1  ;;  %v11318_v54 = vld [vmem:[%s15862_s5 + $0xb0] sm:$0xff]  }
 0x306   : > { %4055 = vrot.lane.b32.xlu1 %v3924_v55, %s11858_s0  ;;  %v3971_v47 = vrot.slane %v3969_v52, 1  ;;  %v3974_v55 = vshrl.u32 %v13273_v39, 16  ;;  %v4010_v52 = vshrl.u32 %v13293_v1, 16  ;;  %3501 = vmatprep.subr.bf16.mxu0 %v15967_v56  ;;  %v3996_v15 = vsel %vm2177_vm8, %v3991_v11, %v3995_v58 }
 0x307   : > { %v4029_v58 = vshll.u32 %v13344_v60, 16 }
 0x308   : > { %4053 = vrot.lane.b32.xlu0 %v3912_v17, %s11858_s0  ;;  %v3972_v17 = vsel %vm2177_vm8, %v3967_v40, %v3971_v47  ;;  %v3979_v50 = vor.u32 %v3978_v51, %v3974_v55  ;;  %v11671_v40 = vld [vmem:[#allocation2 + $0x20] ss:$0 sps:$4 sm:$0x11]   ;;  %v4005_v51 = vshll.u32 %v13329_v25, 16  ;;  %v4015_v35 = vor.u32 %v4014_v9, %v4010_v52  ;;  %v11319_v52 = vld [vmem:[%s15862_s5 + $0xb8] sm:$0xff]  }
 0x309   : > { %v2410_v33 = vrot.slane %v11671_v40, 1  ;;  %v4026_v55 = vrot.slane %v4024_v26, 1  ;;  %3502 = vmatpush1.bf16.msra.mxu0 %v11317_v57  ;;  %v4019_v40 = vrot.slane %v4017_v30, 1  ;;  %v4031_v30 = vrot.slane %v4029_v58, 1 }
 0x30a   : > { %4059 = vrot.lane.b32.xlu1 %v3948_v42, %s11858_s0  ;;  %v11670_v42 = vld [vmem:[#allocation2 + $0x18] sm:$0xff]   ;;  %v3984_v47 = vsel %vm2177_vm8, %v3979_v50, %v3983_v8  ;;  %v4007_v9 = vrot.slane %v4005_v51, 1  ;;  %v4022_v50 = vshrl.u32 %v13317_v49, 16  ;;  %3503 = vmatprep.subr.bf16.mxu0 %v15967_v56 }
 0x30b   : > { %v2409_v53 = vrot.slane %v11670_v42, 1 }
 0x30c   : > { %4057 = vrot.lane.b32.xlu0 %v3936_v28, %s11858_s0  ;;  %v3998_v28 = vshrl.u32 %v13291_v7, 16  ;;  %v4027_v57 = vor.u32 %v4026_v55, %v4022_v50  ;;  %v11678_v50 = vld [vmem:[#allocation2 + $0x44] ss:$0 sps:$4 sm:$0x11]  }
 0x30d   : > { %v2411_v11 = vsel %vm2402_vm10, %v2409_v53, %v2410_v33  ;;  %3504 = vmatpush1.bf16.msra.mxu0 %v11318_v54  ;;  %v11673_v33 = vld [vmem:[#allocation2 + $0x24] sm:$0xff]   ;;  %v2419_v58 = vrot.slane %v11678_v50, 1  ;;  %v11684_v50 = vld [vmem:[#allocation2 + $0x6c] sm:$0xff]  }
 0x30e   : > { %4063 = vrot.lane.b32.xlu1 %v3972_v17, %s11858_s0  ;;  %v4003_v23 = vor.u32 %v4002_v3, %v3998_v28  ;;  %v4020_v3 = vsel %vm2177_vm8, %v4015_v35, %v4019_v40  ;;  %3505 = vmatprep.subr.bf16.mxu0 %v15967_v56  ;;  %v4032_v53 = vsel %vm2177_vm8, %v4027_v57, %v4031_v30  ;;  %v2412_v8 = vrot.slane %v11673_v33, 1  ;;  %v11674_v28 = vld [vmem:[#allocation2 + $0x2c] ss:$0 sps:$4 sm:$0x11]  }
 0x30f   : > { %v2413_v51 = vrot.slane %v11674_v28, 1 }
 0x310   : > { %4061 = vrot.lane.b32.xlu0 %v3960_v0, %s11858_s0  ;;  %v2373_v12 = vpop.permute.xlu0 %2372  ;;  %v11672_v0 = vld [vmem:[#allocation2 + $0xc] sm:$0xff]   ;;  %v4008_v26 = vsel %vm2177_vm8, %v4003_v23, %v4007_v9  ;;  %v11677_v9 = vld [vmem:[#allocation2 + $0x3c] sm:$0xff]  }
 0x311   : > { %v2455_v17 = vsel %vm761_vm4, %v11672_v0, %v2373_v12  ;;  %3506 = vmatpush1.bf16.msra.mxu0 %v11319_v52  ;;  %v2414_v12 = vsel %vm2402_vm10, %v2412_v8, %v2413_v51  ;;  %v11675_v23 = vld [vmem:[#allocation2 + $0x30] sm:$0xff]   ;;  %v11676_v0 = vld [vmem:[#allocation2 + $0x38] ss:$0 sps:$4 sm:$0x11]   ;;  %v11679_v52 = vld [vmem:[#allocation2 + $0x48] sm:$0xff]  }
 0x312   : > { %4067 = vrot.lane.b32.xlu1 %v3996_v15, %s11858_s0  ;;  %2684 = vmatmul.mubr.bf16.gmra.mrb[8].mxu0 %v2455_v17  ;;  %v2415_v55 = vrot.slane %v11675_v23, 1  ;;  %v2416_v17 = vrot.slane %v11676_v0, 1  ;;  %v2421_v30 = vrot.slane %v11679_v52, 1 }
 0x313   : > { %9234 = vmatprep.mubr.msk.bf16.mxu0 %vm761_vm4, %v2411_v11  ;;  %4318 = vmatprep.subr.bf16.mxu0 %v15967_v56 }
 0x314   : > { %4065 = vrot.lane.b32.xlu0 %v3984_v47, %s11858_s0  ;;  %v2417_v40 = vsel %vm2402_vm10, %v2415_v55, %v2416_v17  ;;  %v11683_v17 = vld [vmem:[#allocation2 + $0x60] sm:$0xff]  }
 0x316   : > { %4071 = vrot.lane.b32.xlu1 %v4020_v3, %s11858_s0 }
 0x318   : > { %4069 = vrot.lane.b32.xlu0 %v4008_v26, %s11858_s0 }
 0x31b   : > { %v2375_v15 = vpop.permute.xlu1 %2374 }
 0x31c   : > { %4073 = vrot.lane.b32.xlu0 %v4032_v53, %s11858_s0  ;;  %v2458_v35 = vsel %vm761_vm4, %v11670_v42, %v2375_v15  ;;  %v2418_v42 = vrot.slane %v11677_v9, 1  ;;  %v11680_v53 = vld [vmem:[#allocation2 + $0x50] ss:$0 sps:$4 sm:$0x11]   ;;  %v11681_v15 = vld [vmem:[#allocation2 + $0x54] sm:$0xff]  }
 0x31d   : > { %2692 = vmatmul.mubr.bf16.gmra.mrb[12].mxu0 %v2458_v35  ;;  %v2424_v35 = vrot.slane %v11681_v15, 1 }
 0x31e   : > { %9235 = vmatprep.mubr.msk.bf16.mxu0 %vm761_vm4, %v2414_v12  ;;  %v2420_v26 = vsel %vm2402_vm10, %v2418_v42, %v2419_v58  ;;  %v11682_v12 = vld [vmem:[#allocation2 + $0x5c] ss:$0 sps:$4 sm:$0x11]   ;;  %v2430_v58 = vrot.slane %v11684_v50, 1 }
 0x321   : > { %v2377_v47 = vpop.permute.xlu1 %2376 }
 0x322   : > { %v2461_v54 = vsel %vm761_vm4, %v11673_v33, %v2377_v47  ;;  %v2422_v33 = vrot.slane %v11680_v53, 1  ;;  %v2425_v47 = vrot.slane %v11682_v12, 1 }
 0x324   : > { %v2379_v11 = vpop.permute.xlu0 %2378  ;;  %v2423_v28 = vsel %vm2402_vm10, %v2421_v30, %v2422_v33  ;;  %v2426_v55 = vsel %vm2402_vm10, %v2424_v35, %v2425_v47  ;;  %v11686_v30 = vld [vmem:[#allocation2 + $0x78] sm:$0xff]   ;;  %v11687_v33 = vld [vmem:[#allocation2 + $0x80] ss:$0 sps:$4 sm:$0x11]   ;;  %v11688_v35 = vld [vmem:[#allocation2 + $0x84] sm:$0xff]  }
 0x325   : > { %2700 = vmatmul.mubr.bf16.gmra.mrb[16].mxu0 %v2461_v54  ;;  %v2464_v3 = vsel %vm761_vm4, %v11675_v23, %v2379_v11  ;;  %v2427_v54 = vrot.slane %v11683_v17, 1  ;;  %v2433_v53 = vrot.slane %v11686_v30, 1  ;;  %v2436_v12 = vrot.slane %v11688_v35, 1  ;;  %v11689_v47 = vld [vmem:[#allocation2 + $0x8c] ss:$0 sps:$4 sm:$0x11]  }
 0x326   : > { %9236 = vmatprep.mubr.msk.bf16.mxu0 %vm761_vm4, %v2417_v40  ;;  %v2428_v40 = vrot.slane %v13088_v10, 1 }
 0x32d   : > { %2708 = vmatmul.mubr.bf16.gmra.mrb[20].mxu0 %v2464_v3  ;;  %v11685_v3 = vld [vmem:[#allocation2 + $0x74] ss:$0 sps:$4 sm:$0x11]  }
 0x32e   : > { %9237 = vmatprep.mubr.msk.bf16.mxu0 %vm761_vm4, %v2420_v26  ;;  %v2431_v26 = vrot.slane %v11685_v3, 1  ;;  %v11692_v3 = vld [vmem:[#allocation2 + $0x9c] sm:$0xff]  }
 0x32f   : > { %v2381_v57 = vpop.permute.xlu1 %2380 }
 0x330   : > { %v2467_v8 = vsel %vm761_vm4, %v11677_v9, %v2381_v57  ;;  %v2429_v9 = vsel %vm2402_vm10, %v2427_v54, %v2428_v40  ;;  %v11690_v54 = vld [vmem:[#allocation2 + $0x90] sm:$0xff]  }
 0x331   : > { %v2439_v40 = vrot.slane %v11690_v54, 1 }
 0x335   : > { %2716 = vmatmul.mubr.bf16.gmra.mrb[24].mxu0 %v2467_v8  ;;  %v2434_v8 = vrot.slane %v11687_v33, 1  ;;  %v11694_v33 = vld [vmem:[#allocation2 + $0xa8] sm:$0xff]  }
 0x336   : > { %9238 = vmatprep.mubr.msk.bf16.mxu0 %vm761_vm4, %v2423_v28 }
 0x337   : > { %v2383_v51 = vpop.permute.xlu0 %2382 }
 0x338   : > { %v2470_v23 = vsel %vm761_vm4, %v11679_v52, %v2383_v51  ;;  %v2432_v52 = vsel %vm2402_vm10, %v2430_v58, %v2431_v26  ;;  %v2435_v51 = vsel %vm2402_vm10, %v2433_v53, %v2434_v8  ;;  %v2442_v26 = vrot.slane %v11692_v3, 1 }
 0x339   : > { %v2445_v8 = vrot.slane %v11694_v33, 1 }
 0x33c   : > { %v2385_v0 = vpop.permute.xlu1 %2384 }
 0x33d   : > { %2724 = vmatmul.mubr.bf16.gmra.mrb[28].mxu0 %v2470_v23  ;;  %v2473_v11 = vsel %vm761_vm4, %v11681_v15, %v2385_v0  ;;  %v2437_v23 = vrot.slane %v11689_v47, 1  ;;  %v11696_v47 = vld [vmem:[#allocation2 + $0xb4] sm:$0xff]  }
 0x33e   : > { %9239 = vmatprep.mubr.msk.bf16.mxu0 %vm761_vm4, %v2426_v55 }
 0x33f   : > { %v2438_v0 = vsel %vm2402_vm10, %v2436_v12, %v2437_v23  ;;  %v2448_v23 = vrot.slane %v11696_v47, 1 }
 0x340   : > { %v2389_v10 = vpop.permute.xlu1 %2388 }
 0x341   : > { %v2479_v28 = vsel %vm761_vm4, %v11684_v50, %v2389_v10 }
 0x342   : > { %v2387_v42 = vpop.permute.xlu0 %2386 }
 0x343   : > { %v2476_v57 = vsel %vm761_vm4, %v11683_v17, %v2387_v42 }
 0x344   : > { %v2393_v17 = vpop.permute.xlu1 %2392 }
 0x345   : > { %2732 = vmatmul.mubr.bf16.gmra.mrb[32].mxu0 %v2473_v11  ;;  %v11691_v11 = vld [vmem:[#allocation2 + $0x98] ss:$0 sps:$4 sm:$0x11]   ;;  %v2485_v42 = vsel %vm761_vm4, %v11688_v35, %v2393_v17 }
 0x346   : > { %9240 = vmatprep.mubr.msk.bf16.mxu0 %vm761_vm4, %v2429_v9  ;;  %v2391_v15 = vpop.permute.xlu0 %2390  ;;  %v2440_v9 = vrot.slane %v11691_v11, 1  ;;  %v11698_v11 = vld [vmem:[#allocation2 + $0xc] sm:$0xff]  }
 0x347   : > { %v2482_v55 = vsel %vm761_vm4, %v11686_v30, %v2391_v15 }
 0x348   : > { %v2441_v50 = vsel %vm2402_vm10, %v2439_v40, %v2440_v9  ;;  %v2397_v53 = vpop.permute.xlu1 %2396  ;;  %v3242_v9 = vrot.slane %v11698_v11, 1 }
 0x349   : > { %v2491_v15 = vsel %vm761_vm4, %v11692_v3, %v2397_v53 }
 0x34a   : > { %v2395_v58 = vpop.permute.xlu0 %2394 }
 0x34b   : > { %v2488_v10 = vsel %vm761_vm4, %v11690_v54, %v2395_v58 }
 0x34c   : > { %v2401_v40 = vpop.permute.xlu1 %2400 }
 0x34d   : > { %2740 = vmatmul.mubr.bf16.gmra.mrb[36].mxu0 %v2476_v57  ;;  %v11693_v57 = vld [vmem:[#allocation2 + $0xa4] ss:$0 sps:$4 sm:$0x11]  }
 0x34e   : > { %9241 = vmatprep.mubr.msk.bf16.mxu0 %vm761_vm4, %v2432_v52  ;;  %v2443_v52 = vrot.slane %v11693_v57, 1  ;;  %v2399_v12 = vpop.permute.xlu0 %2398 }
 0x34f   : > { %v2494_v17 = vsel %vm761_vm4, %v11694_v33, %v2399_v12  ;;  %v11321_v33 = vld [vmem:[%s15862_s5 + $0xc8] sm:$0xff]  }
 0x350   : > { %v2444_v30 = vsel %vm2402_vm10, %v2442_v26, %v2443_v52  ;;  %v11699_v26 = vld [vmem:[#allocation2 + $0x18] sm:$0xff]   ;;  %v11700_v52 = vld [vmem:[#allocation2 + $0x20] ss:$0 sps:$4 sm:$0x11]   ;;  %v3213_v12 = vpop.permute.xlu1 %3212 }
 0x351   : > { %v3245_v57 = vrot.slane %v11699_v26, 1 }
 0x352   : > { %v3211_v3 = vpop.permute.xlu0 %3210 }
 0x353   : > { %v3291_v53 = vsel %vm761_vm4, %v11698_v11, %v3211_v3  ;;  %v3294_v11 = vsel %vm761_vm4, %v11699_v26, %v3213_v12  ;;  %v11706_v12 = vld [vmem:[#allocation2 + $0x44] ss:$0 sps:$4 sm:$0x11]  }
 0x355   : > { %2748 = vmatmul.mubr.bf16.gmra.mrb[40].mxu0 %v2479_v28  ;;  %v11695_v28 = vld [vmem:[#allocation2 + $0xb0] ss:$0 sps:$4 sm:$0x11]  }
 0x356   : > { %9242 = vmatprep.mubr.msk.bf16.mxu0 %vm761_vm4, %v2435_v51  ;;  %v2446_v51 = vrot.slane %v11695_v28, 1  ;;  %v13425_v28 = vld [vmem:[#allocation2 + $0xd4] ss:$0 sps:$4 sm:$0x11]   ;;  %v3215_v3 = vpop.permute.xlu0 %3214 }
 0x358   : > { %v2447_v35 = vsel %vm2402_vm10, %v2445_v8, %v2446_v51  ;;  %v13423_v8 = vld [vmem:[#allocation2 + $0xcc] sm:$0xff]  }
 0x359   : > { %v4034_v51 = vshrl.u32 %v13423_v8, 16 }
 0x35d   : > { %2756 = vmatmul.mubr.bf16.gmra.mrb[44].mxu0 %v2482_v55  ;;  %v11697_v55 = vld [vmem:[#allocation2 + $0xbc] ss:$0 sps:$4 sm:$0x11]  }
 0x35e   : > { %9243 = vmatprep.mubr.msk.bf16.mxu0 %vm761_vm4, %v2438_v0  ;;  %v2449_v0 = vrot.slane %v11697_v55, 1  ;;  %v11702_v55 = vld [vmem:[#allocation2 + $0x2c] ss:$0 sps:$4 sm:$0x11]  }
 0x360   : > { %v2450_v54 = vsel %vm2402_vm10, %v2448_v23, %v2449_v0  ;;  %v3249_v0 = vrot.slane %v11702_v55, 1 }
 0x365   : > { %2764 = vmatmul.mubr.bf16.gmra.mrb[48].mxu0 %v2485_v42  ;;  %v3243_v42 = vrot.slane %v13106_v22, 1 }
 0x366   : > { %9244 = vmatprep.mubr.msk.bf16.mxu0 %vm761_vm4, %v2441_v50  ;;  %v2497_v50 = vsel %vm761_vm4, %v11696_v47, %v2401_v40  ;;  %v11701_v47 = vld [vmem:[#allocation2 + $0x24] sm:$0xff]  }
 0x367   : > { %v3244_v58 = vsel %vm2402_vm10, %v3242_v9, %v3243_v42  ;;  %v3248_v23 = vrot.slane %v11701_v47, 1 }
 0x369   : > { %v3250_v42 = vsel %vm2402_vm10, %v3248_v23, %v3249_v0  ;;  %v3255_v23 = vrot.slane %v11706_v12, 1  ;;  %v11711_v12 = vld [vmem:[#allocation2 + $0x60] sm:$0xff]  }
 0x36d   : > { %2772 = vmatmul.mubr.bf16.gmra.mrb[52].mxu0 %v2488_v10  ;;  %v3246_v10 = vrot.slane %v11700_v52, 1  ;;  %v11704_v52 = vld [vmem:[#allocation2 + $0x38] ss:$0 sps:$4 sm:$0x11]  }
 0x36e   : > { %9245 = vmatprep.mubr.msk.bf16.mxu0 %vm761_vm4, %v2444_v30  ;;  %v11320_v30 = vld [vmem:[%s15862_s5 + $0xc0] sm:$0xff]  }
 0x36f   : > { %v3247_v22 = vsel %vm2402_vm10, %v3245_v57, %v3246_v10  ;;  %v11703_v57 = vld [vmem:[#allocation2 + $0x30] sm:$0xff]   ;;  %v3252_v10 = vrot.slane %v11704_v52, 1 }
 0x370   : > { %v3251_v26 = vrot.slane %v11703_v57, 1  ;;  %v11709_v52 = vld [vmem:[#allocation2 + $0x54] sm:$0xff]  }
 0x375   : > { %2780 = vmatmul.mubr.bf16.gmra.mrb[56].mxu0 %v2491_v15  ;;  %v4036_v15 = vshll.u32 %v13423_v8, 16 }
 0x376   : > { %9246 = vmatprep.mubr.msk.bf16.mxu0 %vm761_vm4, %v2447_v35  ;;  %v4041_v35 = vshll.u32 %v13425_v28, 16 }
 0x378   : > { %v4043_v40 = vrot.slane %v4041_v35, 1 }
 0x37d   : > { %2788 = vmatmul.mubr.bf16.gmra.mrb[60].mxu0 %v2494_v17  ;;  %v11322_v17 = vld [vmem:[%s15862_s5 + $0xd0] sm:$0xff]  }
 0x37e   : > { %9247 = vmatprep.mubr.msk.bf16.mxu0 %vm761_vm4, %v2450_v54  ;;  %v4038_v54 = vrot.slane %v4036_v15, 1  ;;  %v11705_v15 = vld [vmem:[#allocation2 + $0x3c] sm:$0xff]  }
 0x37f   : > { %v3254_v35 = vrot.slane %v11705_v15, 1 }
 0x380   : > { %v4039_v9 = vor.u32 %v4038_v54, %v4034_v51  ;;  %v3217_v51 = vpop.permute.xlu1 %3216  ;;  %v3219_v54 = vpop.permute.xlu0 %3218 }
 0x381   : > { %v3300_v55 = vsel %vm761_vm4, %v11703_v57, %v3217_v51  ;;  %v3256_v0 = vsel %vm2402_vm10, %v3254_v35, %v3255_v23  ;;  %v11329_v57 = vld [vmem:[%s15862_s5 + $0x108] sm:$0xff]   ;;  %v3263_v23 = vrot.slane %v11711_v12, 1 }
 0x384   : > { %v3223_v35 = vpop.permute.xlu0 %3222 }
 0x385   : > { %2796 = vmatmul.mubr.bf16.gmra.mrb[64].mxu0 %v2497_v50  ;;  %v11323_v50 = vld [vmem:[%s15862_s5 + $0xd8] sm:$0xff]  }
 0x386   : > { %9317 = vmatprep.mubr.msk.bf16.mxu0 %vm761_vm4, %v3244_v58  ;;  %v4044_v58 = vsel %vm2177_vm8, %v4039_v9, %v4043_v40  ;;  %v11707_v40 = vld [vmem:[#allocation2 + $0x48] sm:$0xff]   ;;  %v11708_v9 = vld [vmem:[#allocation2 + $0x50] ss:$0 sps:$4 sm:$0x11]  }
 0x387   : > { %4075 = vrot.lane.b32.xlu1 %v4044_v58, %s11858_s0  ;;  %v3303_v58 = vsel %vm761_vm4, %v11705_v15, %v3219_v54  ;;  %v11331_v15 = vld [vmem:[%s15862_s5 + $0x118] sm:$0xff]  }
 0x38d   : > { %3516 = vmatmul.mubr.bf16.vlgmr.msra.gmra.mrb[4].mxu0 %v3291_v53  ;;  %v3297_v53 = vsel %vm761_vm4, %v11701_v47, %v3215_v3  ;;  %v11326_v47 = vld [vmem:[%s15862_s5 + $0xf0] sm:$0xff]  }
 0x38e   : > { %4319 = vmatpush1.bf16.msra.mxu0 %v11320_v30  ;;  %9318 = vmatprep.mubr.msk.bf16.mxu0 %vm761_vm4, %v3247_v22  ;;  %v11324_v30 = vld [vmem:[%s15862_s5 + $0xe0] sm:$0xff]   ;;  %v3253_v22 = vsel %vm2402_vm10, %v3251_v26, %v3252_v10  ;;  %v3221_v26 = vpop.permute.xlu1 %3220  ;;  %v3260_v10 = vrot.slane %v11709_v52, 1 }
 0x38f   : > { %4320 = vmatprep.subr.bf16.mxu0 %v15967_v56 }
 0x392   : > { %4321 = vmatpush1.bf16.msra.mxu0 %v11321_v33  ;;  %v11325_v33 = vld [vmem:[%s15862_s5 + $0xe8] sm:$0xff]  }
 0x393   : > { %4322 = vmatprep.subr.bf16.mxu0 %v15967_v56 }
 0x395   : > { %3524 = vmatmul.mubr.bf16.gmra.mrb[8].mxu0 %v3294_v11  ;;  %v3257_v11 = vrot.slane %v11707_v40, 1 }
 0x396   : > { %9319 = vmatprep.mubr.msk.bf16.mxu0 %vm761_vm4, %v3250_v42  ;;  %4323 = vmatpush1.bf16.msra.mxu0 %v11322_v17  ;;  %v11327_v17 = vld [vmem:[%s15862_s5 + $0xf8] sm:$0xff]   ;;  %v3258_v42 = vrot.slane %v11708_v9, 1 }
 0x397   : > { %4324 = vmatprep.subr.bf16.mxu0 %v15967_v56 }
 0x398   : > { %v3259_v3 = vsel %vm2402_vm10, %v3257_v11, %v3258_v42  ;;  %v11713_v11 = vld [vmem:[#allocation2 + $0x6c] sm:$0xff]   ;;  %v11714_v42 = vld [vmem:[#allocation2 + $0x74] ss:$0 sps:$4 sm:$0x11]  }
 0x399   : > { %v3266_v9 = vrot.slane %v11713_v11, 1 }
 0x39a   : > { %4325 = vmatpush1.bf16.msra.mxu0 %v11323_v50  ;;  %v11328_v50 = vld [vmem:[%s15862_s5 + $0x100] sm:$0xff]  }
 0x39b   : > { %4326 = vmatprep.subr.bf16.mxu0 %v15967_v56 }
 0x39d   : > { %3532 = vmatmul.mubr.bf16.gmra.mrb[12].mxu0 %v3297_v53 }
 0x39e   : > { %9320 = vmatprep.mubr.msk.bf16.mxu0 %vm761_vm4, %v3253_v22  ;;  %4327 = vmatpush1.bf16.msra.mxu0 %v11324_v30  ;;  %v11710_v30 = vld [vmem:[#allocation2 + $0x5c] ss:$0 sps:$4 sm:$0x11]   ;;  %v11330_v22 = vld [vmem:[%s15862_s5 + $0x110] sm:$0xff]  }
 0x39f   : > { %4328 = vmatprep.subr.bf16.mxu0 %v15967_v56  ;;  %v3261_v53 = vrot.slane %v11710_v30, 1 }
 0x3a1   : > { %v3262_v51 = vsel %vm2402_vm10, %v3260_v10, %v3261_v53 }
 0x3a2   : > { %4329 = vmatpush1.bf16.msra.mxu0 %v11325_v33  ;;  %v3306_v33 = vsel %vm761_vm4, %v11707_v40, %v3221_v26  ;;  %v3225_v40 = vpop.permute.xlu1 %3224 }
 0x3a3   : > { %4330 = vmatprep.subr.bf16.mxu0 %v15967_v56 }
 0x3a5   : > { %3540 = vmatmul.mubr.bf16.gmra.mrb[16].mxu0 %v3300_v55 }
 0x3a6   : > { %9321 = vmatprep.mubr.msk.bf16.mxu0 %vm761_vm4, %v3256_v0  ;;  %4331 = vmatpush1.bf16.msra.mxu0 %v11326_v47  ;;  %v11712_v47 = vld [vmem:[#allocation2 + $0x68] ss:$0 sps:$4 sm:$0x11]   ;;  %v15985_v0 = vmov 0.0|0.0  }
 0x3a7   : > { %4332 = vmatprep.subr.bf16.mxu0 %v15967_v56  ;;  %v3264_v55 = vrot.slane %v11712_v47, 1 }
 0x3a9   : > { %v3265_v54 = vsel %vm2402_vm10, %v3263_v23, %v3264_v55  ;;  %v11719_v55 = vld [vmem:[#allocation2 + $0x90] sm:$0xff]  }
 0x3aa   : > { %4333 = vmatpush1.bf16.msra.mxu0 %v11327_v17  ;;  %v3309_v17 = vsel %vm761_vm4, %v11709_v52, %v3223_v35  ;;  %v11716_v52 = vld [vmem:[#allocation2 + $0x80] ss:$0 sps:$4 sm:$0x11]  }
 0x3ab   : > { %4334 = vmatprep.subr.bf16.mxu0 %v15967_v56  ;;  %v3270_v10 = vrot.slane %v11716_v52, 1  ;;  %v3282_v52 = vrot.slane %v13150_v38, 1 }
 0x3ad   : > { %3548 = vmatmul.mubr.bf16.gmra.mrb[20].mxu0 %v3303_v58 }
 0x3ae   : > { %9322 = vmatprep.mubr.msk.bf16.mxu0 %vm761_vm4, %v3259_v3  ;;  %4335 = vmatpush1.bf16.msra.mxu0 %v11328_v50  ;;  %v3312_v50 = vsel %vm761_vm4, %v11711_v12, %v3225_v40  ;;  %v3227_v3 = vpop.permute.xlu0 %3226 }
 0x3af   : > { %4336 = vmatprep.subr.bf16.mxu0 %v15967_v56  ;;  %v3315_v30 = vsel %vm761_vm4, %v11713_v11, %v3227_v3 }
 0x3b2   : > { %4337 = vmatpush1.bf16.msra.mxu0 %v11329_v57  ;;  %v11715_v57 = vld [vmem:[#allocation2 + $0x78] sm:$0xff]   ;;  %v3231_v47 = vpop.permute.xlu0 %3230 }
 0x3b3   : > { %4338 = vmatprep.subr.bf16.mxu0 %v15967_v56  ;;  %v3269_v26 = vrot.slane %v11715_v57, 1 }
 0x3b5   : > { %3556 = vmatmul.mubr.bf16.gmra.mrb[24].mxu0 %v3306_v33  ;;  %v3271_v53 = vsel %vm2402_vm10, %v3269_v26, %v3270_v10  ;;  %v11717_v33 = vld [vmem:[#allocation2 + $0x84] sm:$0xff]  }
 0x3b6   : > { %9323 = vmatprep.mubr.msk.bf16.mxu0 %vm761_vm4, %v3262_v51  ;;  %4339 = vmatpush1.bf16.msra.mxu0 %v11330_v22  ;;  %v3229_v22 = vpop.permute.xlu1 %3228  ;;  %v3272_v51 = vrot.slane %v11717_v33, 1  ;;  %v3321_v40 = vsel %vm761_vm4, %v11717_v33, %v3231_v47 }
 0x3b7   : > { %4340 = vmatprep.subr.bf16.mxu0 %v15967_v56  ;;  %v3267_v56 = vrot.slane %v11714_v42, 1  ;;  %v3318_v12 = vsel %vm761_vm4, %v11715_v57, %v3229_v22  ;;  %v11720_v42 = vld [vmem:[#allocation2 + $0x9c] sm:$0xff]   ;;  %v11721_v57 = vld [vmem:[#allocation2 + $0xa8] sm:$0xff]   ;;  %v3285_v22 = vrot.slane %v13165_v37, 1 }
 0x3b8   : > { %v3281_v26 = vrot.slane %v11721_v57, 1 }
 0x3b9   : > { %v3268_v58 = vsel %vm2402_vm10, %v3266_v9, %v3267_v56  ;;  %v3278_v56 = vrot.slane %v11720_v42, 1 }
 0x3ba   : > { %4341 = vmatpush1.bf16.msra.mxu0 %v11331_v15  ;;  %v11718_v15 = vld [vmem:[#allocation2 + $0x8c] ss:$0 sps:$4 sm:$0x11]   ;;  %v3233_v9 = vpop.permute.xlu1 %3232 }
 0x3bb   : > { %10680 = vmatprep.subr.bf16.mxu0 %v15985_v0  ;;  %v3273_v35 = vrot.slane %v11718_v15, 1  ;;  %v11722_v15 = vld [vmem:[#allocation2 + $0xc0] sm:$0xff]  }
 0x3bd   : > { %3564 = vmatmul.mubr.bf16.gmra.mrb[28].mxu0 %v3309_v17  ;;  %v3274_v23 = vsel %vm2402_vm10, %v3272_v51, %v3273_v35  ;;  %v3275_v17 = vrot.slane %v11719_v55, 1  ;;  %v3287_v35 = vrot.slane %v11722_v15, 1 }
 0x3be   : > { %9324 = vmatprep.mubr.msk.bf16.mxu0 %vm761_vm4, %v3265_v54  ;;  %v3276_v54 = vrot.slane %v13139_v4, 1  ;;  %v3235_v4 = vpop.permute.xlu0 %3234 }
 0x3bf   : > { %v3327_v10 = vsel %vm761_vm4, %v11720_v42, %v3235_v4  ;;  %v4083_v4 = vrot.slane %v13178_v2, 1 }
 0x3c0   : > { %v3277_v11 = vsel %vm2402_vm10, %v3275_v17, %v3276_v54  ;;  %v4078_v17 = vrot.slane %v13187_v46, 1 }
 0x3c2   : > { %v3239_v38 = vpop.permute.xlu0 %3238 }
 0x3c5   : > { %3572 = vmatmul.mubr.bf16.gmra.mrb[32].mxu0 %v3312_v50  ;;  %v3279_v50 = vrot.slane %v13142_v32, 1  ;;  %v3237_v32 = vpop.permute.xlu1 %3236 }
 0x3c6   : > { %9325 = vmatprep.mubr.msk.bf16.mxu0 %vm761_vm4, %v3268_v58  ;;  %v3324_v58 = vsel %vm761_vm4, %v11719_v55, %v3233_v9  ;;  %v3330_v33 = vsel %vm761_vm4, %v11721_v57, %v3237_v32  ;;  %v4077_v55 = vrot.slane %v13167_v63, 1  ;;  %v4046_v46 = vpop.permute.xlu0 %4045  ;;  %v11723_v9 = vld [vmem:[#allocation2 + $0x24] sm:$0xff]   ;;  %v4084_v57 = vrot.slane %v13194_v34, 1 }
 0x3c7   : > { %v3280_v3 = vsel %vm2402_vm10, %v3278_v56, %v3279_v50  ;;  %v4080_v42 = vrot.slane %v11723_v9, 1  ;;  %v4081_v56 = vrot.slane %v13189_v41, 1  ;;  %v4126_v50 = vsel %vm761_vm4, %v13167_v63, %v4046_v46 }
 0x3c8   : > { %v4086_v63 = vrot.slane %v13180_v6, 1 }
 0x3c9   : > { %v3241_v37 = vpop.permute.xlu1 %3240 }
 0x3ca   : > { %v3336_v54 = vsel %vm761_vm4, %v11722_v15, %v3241_v37  ;;  %v4050_v41 = vpop.permute.xlu0 %4049  ;;  %v4099_v37 = vrot.slane %v13257_v14, 1 }
 0x3cd   : > { %3580 = vmatmul.mubr.bf16.gmra.mrb[36].mxu0 %v3315_v30  ;;  %v3283_v30 = vsel %vm2402_vm10, %v3281_v26, %v3282_v52  ;;  %v4085_v52 = vsel %vm2402_vm10, %v4083_v4, %v4084_v57  ;;  %v4114_v57 = vrot.slane %v13329_v25, 1  ;;  %v618_v25 = vld [vmem:[#allocation3 + $0x18] sm:$0x1] }
 0x3ce   : > { %9326 = vmatprep.mubr.msk.bf16.mxu0 %vm761_vm4, %v3271_v53  ;;  %v3284_v53 = vrot.slane %v13154_v36, 1 }
 0x3d0   : > { %v3286_v51 = vsel %vm2402_vm10, %v3284_v53, %v3285_v22  ;;  %v4089_v53 = vrot.slane %v13203_v27, 1  ;;  %v4090_v22 = vrot.slane %v13233_v19, 1 }
 0x3d5   : > { %3588 = vmatmul.mubr.bf16.gmra.mrb[40].mxu0 %v3318_v12  ;;  %v3288_v12 = vrot.slane %v13158_v48, 1  ;;  %v615_v48 = vld [vmem:[#allocation3 + $0xc] sm:$0x1] }
 0x3d6   : > { %9327 = vmatprep.mubr.msk.bf16.mxu0 %vm761_vm4, %v3274_v23  ;;  %v3333_v23 = vsel %vm761_vm4, %v13154_v36, %v3239_v38  ;;  %v15986_v36 = vmov 0  ;;  %v4093_v38 = vrot.slane %v13242_v16, 1 }
 0x3d7   : > { %v3289_v47 = vsel %vm2402_vm10, %v3287_v35, %v3288_v12  ;;  %v15987_v36 = vsel %vm13530_vm15, 4294967295, %v15986_v36  ;;  %v4096_v12 = vrot.slane %v13268_v59, 1 }
 0x3d8   : > { %15988 = vst [vmem:[#allocation16_spill] sm:$0xff] %v15987_v36 }
 0x3dd   : > { %3596 = vmatmul.mubr.bf16.gmra.mrb[44].mxu0 %v3321_v40  ;;  %v4079_v40 = vsel %vm2402_vm10, %v4077_v55, %v4078_v17 }
 0x3de   : > { %9328 = vmatprep.mubr.msk.bf16.mxu0 %vm761_vm4, %v3277_v11  ;;  %v616_v11 = vsel %vm13530_vm15, 0, %v615_v48 }
 0x3df   : > { %617 = vst [vmem:[#allocation3 + $0xc] sm:$0x1] %v616_v11  ;;  %v4105_v11 = vrot.slane %v13284_v5, 1 }
 0x3e5   : > { %3604 = vmatmul.mubr.bf16.gmra.mrb[48].mxu0 %v3324_v58  ;;  %v4082_v58 = vsel %vm2402_vm10, %v4080_v42, %v4081_v56  ;;  %v4108_v42 = vrot.slane %v13310_v44, 1 }
 0x3e6   : > { %9329 = vmatprep.mubr.msk.bf16.mxu0 %vm761_vm4, %v3280_v3  ;;  %v4048_v3 = vpop.permute.xlu1 %4047 }
 0x3e7   : > { %v4129_v26 = vsel %vm761_vm4, %v11723_v9, %v4048_v3 }
 0x3ea   : > { %v4052_v34 = vpop.permute.xlu1 %4051 }
 0x3ed   : > { %3612 = vmatmul.mubr.bf16.gmra.mrb[52].mxu0 %v3327_v10  ;;  %v4087_v10 = vrot.slane %v13201_v43, 1  ;;  %v4054_v43 = vpop.permute.xlu0 %4053 }
 0x3ee   : > { %9330 = vmatprep.mubr.msk.bf16.mxu0 %vm761_vm4, %v3283_v30  ;;  %v4132_v30 = vsel %vm761_vm4, %v13178_v2, %v4050_v41  ;;  %v4092_v2 = vrot.slane %v13208_v61, 1  ;;  %v4138_v15 = vsel %vm761_vm4, %v13203_v27, %v4054_v43  ;;  %v4056_v19 = vpop.permute.xlu1 %4055  ;;  %v4098_v27 = vrot.slane %v13225_v24, 1 }
 0x3ef   : > { %v4088_v32 = vsel %vm2402_vm10, %v4086_v63, %v4087_v10  ;;  %v619_v63 = vsel %vm13530_vm15, 0, %v618_v25  ;;  %v688_v25 = vld [vmem:[#allocation3 + $0x74] sm:$0x1] }
 0x3f0   : > { %v4094_v35 = vsel %vm2402_vm10, %v4092_v2, %v4093_v38  ;;  %v4100_v17 = vsel %vm2402_vm10, %v4098_v27, %v4099_v37  ;;  %620 = vst [vmem:[#allocation3 + $0x18] sm:$0x1] %v619_v63  ;;  %v4119_v38 = vrot.slane %v13317_v49, 1  ;;  %v689_v63 = vsel %vm13604_vm1, 0, %v688_v25 }
 0x3f1   : > { %v4058_v16 = vpop.permute.xlu0 %4057  ;;  %690 = vst [vmem:[#allocation3 + $0x74] sm:$0x1] %v689_v63 }
 0x3f2   : > { %v4144_v55 = vsel %vm761_vm4, %v13235_v18, %v4058_v16  ;;  %v4060_v59 = vpop.permute.xlu1 %4059 }
 0x3f5   : > { %3620 = vmatmul.mubr.bf16.gmra.mrb[56].mxu0 %v3330_v33  ;;  %v4135_v33 = vsel %vm761_vm4, %v13180_v6, %v4052_v34  ;;  %v4095_v6 = vrot.slane %v13235_v18, 1  ;;  %v4062_v14 = vpop.permute.xlu0 %4061  ;;  %v4104_v18 = vrot.slane %v13246_v20, 1 }
 0x3f6   : > { %9331 = vmatprep.mubr.msk.bf16.mxu0 %vm761_vm4, %v3286_v51  ;;  %v4091_v51 = vsel %vm2402_vm10, %v4089_v53, %v4090_v22  ;;  %v4150_v46 = vsel %vm761_vm4, %v13244_v31, %v4062_v14  ;;  %v667_v53 = vld [vmem:[#allocation3 + $0x20] sm:$0x1]  ;;  %v676_v14 = vld [vmem:[#allocation3 + $0x44] sm:$0x1] }
 0x3f7   : > { %v4106_v9 = vsel %vm2402_vm10, %v4104_v18, %v4105_v11  ;;  %v668_v22 = vsel %vm13604_vm1, 0, %v667_v53  ;;  %v677_v18 = vsel %vm13604_vm1, 0, %v676_v14  ;;  %v15991_v11 = vmov 0.0   ;;  %v4521_v53 = vld [vmem:[%s15865_s8 + $0x48] sm:$0xff]  ;;  %v709_v14 = vld [vmem:[#allocation3 + $0xc8] sm:$0x1] }
 0x3f8   : > { %669 = vst [vmem:[#allocation3 + $0x20] sm:$0x1] %v668_v22  ;;  %678 = vst [vmem:[#allocation3 + $0x44] sm:$0x1] %v677_v18  ;;  %v645_v22 = vld [vmem:[#allocation3 + $0x84] sm:$0x1] }
 0x3f9   : > { %v4066_v5 = vpop.permute.xlu0 %4065  ;;  %v710_v18 = vsel %vm13604_vm1, 0, %v709_v14 }
 0x3fa   : > { %v4156_v3 = vsel %vm761_vm4, %v13273_v39, %v4066_v5  ;;  %711 = vst [vmem:[#allocation3 + $0xc8] sm:$0x1] %v710_v18 }
 0x3fd   : > { %3628 = vmatmul.mubr.bf16.gmra.mrb[60].mxu0 %v3333_v23  ;;  %v4141_v23 = vsel %vm761_vm4, %v13208_v61, %v4056_v19  ;;  %v4101_v61 = vrot.slane %v13244_v31, 1  ;;  %v4110_v31 = vrot.slane %v13262_v29, 1  ;;  %v4070_v10 = vpop.permute.xlu0 %4069 }
 0x3fe   : > { %9332 = vmatprep.mubr.msk.bf16.mxu0 %vm761_vm4, %v3289_v47  ;;  %v4097_v47 = vsel %vm2402_vm10, %v4095_v6, %v4096_v12  ;;  %v670_v6 = vld [vmem:[#allocation3 + $0x2c] sm:$0x1] }
 0x3ff   : > { %v671_v12 = vsel %vm13604_vm1, 0, %v670_v6  ;;  %v651_v6 = vld [vmem:[#allocation3 + $0x9c] sm:$0x1] }
 0x400   : > { %672 = vst [vmem:[#allocation3 + $0x2c] sm:$0x1] %v671_v12 }
 0x401   : > { %v4074_v27 = vpop.permute.xlu0 %4073 }
 0x402   : > { %v4168_v37 = vsel %vm761_vm4, %v13317_v49, %v4074_v27 }
 0x405   : > { %3636 = vmatmul.mubr.bf16.gmra.mrb[64].mxu0 %v3336_v54  ;;  %v4102_v54 = vrot.slane %v13281_v13, 1  ;;  %v4064_v13 = vpop.permute.xlu1 %4063 }
 0x406   : > { %9401 = vmatprep.mubr.msk.bf16.mxu0 %vm761_vm4, %v4079_v40  ;;  %v4147_v40 = vsel %vm761_vm4, %v13225_v24, %v4060_v59  ;;  %v4107_v24 = vrot.slane %v13273_v39, 1  ;;  %v4153_v56 = vsel %vm761_vm4, %v13246_v20, %v4064_v13  ;;  %v4113_v20 = vrot.slane %v13291_v7, 1  ;;  %v4514_v59 = vld [vmem:[%s15865_s8 + $0x10] sm:$0xff] }
 0x407   : > { %v4103_v48 = vsel %vm2402_vm10, %v4101_v61, %v4102_v54  ;;  %v4515_v61 = vld [vmem:[%s15865_s8 + $0x18] sm:$0xff]  ;;  %v627_v54 = vld [vmem:[#allocation3 + $0x3c] sm:$0x1] }
 0x408   : > { %v4115_v41 = vsel %vm2402_vm10, %v4113_v20, %v4114_v57  ;;  %v628_v49 = vsel %vm13530_vm15, 0, %v627_v54  ;;  %v4518_v57 = vld [vmem:[%s15865_s8 + $0x30] sm:$0xff] }
 0x409   : > { %v4068_v44 = vpop.permute.xlu1 %4067  ;;  %629 = vst [vmem:[#allocation3 + $0x3c] sm:$0x1] %v628_v49  ;;  %v706_v54 = vld [vmem:[#allocation3 + $0xbc] sm:$0x1]  ;;  %v660_v49 = vld [vmem:[#allocation3 + $0xc0] sm:$0x1] }
 0x40a   : > { %v4159_v39 = vsel %vm761_vm4, %v13262_v29, %v4068_v44  ;;  %v4162_v29 = vsel %vm761_vm4, %v13291_v7, %v4070_v10  ;;  %v685_v44 = vld [vmem:[#allocation3 + $0x68] sm:$0x1]  ;;  %v642_v10 = vld [vmem:[#allocation3 + $0x78] sm:$0x1] }
 0x40b   : > { %v686_v20 = vsel %vm13604_vm1, 0, %v685_v44 }
 0x40c   : > { %687 = vst [vmem:[#allocation3 + $0x68] sm:$0x1] %v686_v20 }
 0x40d   : > { %4351 = vmatmul.mubr.bf16.vlgmr.msra.gmra.mrb[4].mxu0 %v4126_v50  ;;  %v4109_v50 = vsel %vm2402_vm10, %v4107_v24, %v4108_v42  ;;  %v4072_v2 = vpop.permute.xlu1 %4071  ;;  %v4516_v24 = vld [vmem:[%s15865_s8 + $0x20] sm:$0xff]  ;;  %v4517_v42 = vld [vmem:[%s15865_s8 + $0x28] sm:$0xff] }
 0x40e   : > { %9402 = vmatprep.mubr.msk.bf16.mxu0 %vm761_vm4, %v4082_v58  ;;  %v4111_v58 = vrot.slane %v13298_v45, 1  ;;  %v664_v45 = vld [vmem:[#allocation3 + $0x14] sm:$0x1] }
 0x410   : > { %v4112_v4 = vsel %vm2402_vm10, %v4110_v31, %v4111_v58  ;;  %v682_v31 = vld [vmem:[#allocation3 + $0x5c] sm:$0x1] }
 0x411   : > { %v683_v58 = vsel %vm13604_vm1, 0, %v682_v31 }
 0x412   : > { %684 = vst [vmem:[#allocation3 + $0x5c] sm:$0x1] %v683_v58 }
 0x415   : > { %4359 = vmatmul.mubr.bf16.gmra.mrb[8].mxu0 %v4129_v26 }
 0x416   : > { %9403 = vmatprep.mubr.msk.bf16.mxu0 %vm761_vm4, %v4085_v52  ;;  %v665_v52 = vsel %vm13604_vm1, 0, %v664_v45  ;;  %v4519_v45 = vld [vmem:[%s15865_s8 + $0x38] sm:$0xff] }
 0x417   : > { %666 = vst [vmem:[#allocation3 + $0x14] sm:$0x1] %v665_v52  ;;  %v10690_v52 = vpack.c.bf16 %v4519_v45, %v4518_v57 }
 0x41d   : > { %4367 = vmatmul.mubr.bf16.gmra.mrb[12].mxu0 %v4132_v30  ;;  %v4116_v30 = vrot.slane %v13293_v1, 1 }
 0x41e   : > { %9404 = vmatprep.mubr.msk.bf16.mxu0 %vm761_vm4, %v4088_v32  ;;  %v4117_v32 = vrot.slane %v13324_v21, 1  ;;  %v4513_v21 = vld [vmem:[%s15865_s8 + $0x8] sm:$0xff] }
 0x420   : > { %v4118_v34 = vsel %vm2402_vm10, %v4116_v30, %v4117_v32  ;;  %v643_v30 = vsel %vm13530_vm15, 0, %v642_v10  ;;  %v691_v32 = vld [vmem:[#allocation3 + $0x80] sm:$0x1] }
 0x421   : > { %644 = vst [vmem:[#allocation3 + $0x78] sm:$0x1] %v643_v30 }
 0x425   : > { %4375 = vmatmul.mubr.bf16.gmra.mrb[16].mxu0 %v4135_v33  ;;  %v4512_v33 = vld [vmem:[%s15865_s8] sm:$0xff] }
 0x426   : > { %9405 = vmatprep.mubr.msk.bf16.mxu0 %vm761_vm4, %v4091_v51  ;;  %v621_v51 = vld [vmem:[#allocation3 + $0x24] sm:$0x1]  ;;  %v10681_v7 = vpack.c.bf16 %v4513_v21, %v4512_v33  ;;  %v646_v21 = vsel %vm13530_vm15, 0, %v645_v22 }
 0x427   : > { %v622_v43 = vsel %vm13530_vm15, 0, %v621_v51  ;;  %647 = vst [vmem:[#allocation3 + $0x84] sm:$0x1] %v646_v21  ;;  %v694_v51 = vld [vmem:[#allocation3 + $0x8c] sm:$0x1] }
 0x428   : > { %623 = vst [vmem:[#allocation3 + $0x24] sm:$0x1] %v622_v43  ;;  %10682 = vmatpush3.bf16.msra.mxu0 %v10681_v7  ;;  %10706 = vmatpush3.bf16.msra.mxu1 %v10681_v7  ;;  %v695_v7 = vsel %vm13604_vm1, 0, %v694_v51  ;;  %v648_v43 = vld [vmem:[#allocation3 + $0x90] sm:$0x1] }
 0x429   : > { %10683 = vmatprep.subr.bf16.mxu0 %v15985_v0  ;;  %10707 = vmatprep.subr.bf16.mxu1 %v15985_v0  ;;  %696 = vst [vmem:[#allocation3 + $0x8c] sm:$0x1] %v695_v7 }
 0x42d   : > { %4383 = vmatmul.mubr.bf16.gmra.mrb[20].mxu0 %v4138_v15  ;;  %v4120_v15 = vrot.slane %v13344_v60, 1  ;;  %v4122_v60 = vrot.slane %v13423_v8, 1 }
 0x42e   : > { %9406 = vmatprep.mubr.msk.bf16.mxu0 %vm761_vm4, %v4094_v35  ;;  %v4165_v35 = vsel %vm761_vm4, %v13293_v1, %v4072_v2  ;;  %v649_v2 = vsel %vm13530_vm15, 0, %v648_v43 }
 0x42f   : > { %v4121_v19 = vsel %vm2402_vm10, %v4119_v38, %v4120_v15  ;;  %650 = vst [vmem:[#allocation3 + $0x90] sm:$0x1] %v649_v2  ;;  %v697_v38 = vld [vmem:[#allocation3 + $0x98] sm:$0x1] }
 0x430   : > { %v698_v15 = vsel %vm13604_vm1, 0, %v697_v38 }
 0x431   : > { %699 = vst [vmem:[#allocation3 + $0x98] sm:$0x1] %v698_v15 }
 0x435   : > { %4391 = vmatmul.mubr.bf16.gmra.mrb[24].mxu0 %v4141_v23  ;;  %v4123_v23 = vrot.slane %v13425_v28, 1  ;;  %v4076_v28 = vpop.permute.xlu1 %4075 }
 0x436   : > { %9407 = vmatprep.mubr.msk.bf16.mxu0 %vm761_vm4, %v4097_v47  ;;  %v624_v47 = vld [vmem:[#allocation3 + $0x30] sm:$0x1] }
 0x437   : > { %v625_v16 = vsel %vm13530_vm15, 0, %v624_v47  ;;  %v4124_v1 = vsel %vm2402_vm10, %v4122_v60, %v4123_v23  ;;  %v652_v60 = vsel %vm13530_vm15, 0, %v651_v6  ;;  %v700_v23 = vld [vmem:[#allocation3 + $0xa4] sm:$0x1] }
 0x438   : > { %626 = vst [vmem:[#allocation3 + $0x30] sm:$0x1] %v625_v16  ;;  %653 = vst [vmem:[#allocation3 + $0x9c] sm:$0x1] %v652_v60  ;;  %v701_v47 = vsel %vm13604_vm1, 0, %v700_v23 }
 0x439   : > { %702 = vst [vmem:[#allocation3 + $0xa4] sm:$0x1] %v701_v47  ;;  %v654_v16 = vld [vmem:[#allocation3 + $0xa8] sm:$0x1] }
 0x43a   : > { %v655_v27 = vsel %vm13530_vm15, 0, %v654_v16 }
 0x43b   : > { %656 = vst [vmem:[#allocation3 + $0xa8] sm:$0x1] %v655_v27 }
 0x43d   : > { %4399 = vmatmul.mubr.bf16.gmra.mrb[28].mxu0 %v4144_v55  ;;  %v673_v55 = vld [vmem:[#allocation3 + $0x38] sm:$0x1] }
 0x43e   : > { %9408 = vmatprep.mubr.msk.bf16.mxu0 %vm761_vm4, %v4100_v17  ;;  %v674_v17 = vsel %vm13604_vm1, 0, %v673_v55  ;;  %v4524_v55 = vld [vmem:[%s15865_s8 + $0x60] sm:$0xff] }
 0x43f   : > { %675 = vst [vmem:[#allocation3 + $0x38] sm:$0x1] %v674_v17  ;;  %v4525_v17 = vld [vmem:[%s15865_s8 + $0x68] sm:$0xff] }
 0x445   : > { %4407 = vmatmul.mubr.bf16.gmra.mrb[32].mxu0 %v4147_v40  ;;  %v10684_v40 = vpack.c.bf16 %v4515_v61, %v4514_v59  ;;  %v10699_v59 = vpack.c.bf16 %v4525_v17, %v4524_v55 }
 0x446   : > { %9409 = vmatprep.mubr.msk.bf16.mxu0 %vm761_vm4, %v4103_v48  ;;  %v4171_v48 = vsel %vm761_vm4, %v13423_v8, %v4076_v28  ;;  %v679_v8 = vld [vmem:[#allocation3 + $0x50] sm:$0x1]  ;;  %v657_v28 = vld [vmem:[#allocation3 + $0xb4] sm:$0x1] }
 0x447   : > { %10685 = vmatpush3.bf16.msra.mxu0 %v10684_v40  ;;  %10709 = vmatpush3.bf16.msra.mxu1 %v10684_v40  ;;  %v680_v13 = vsel %vm13604_vm1, 0, %v679_v8  ;;  %v658_v61 = vsel %vm13530_vm15, 0, %v657_v28  ;;  %v707_v40 = vsel %vm13604_vm1, 0, %v706_v54 }
 0x448   : > { %10686 = vmatprep.subr.bf16.mxu0 %v15985_v0  ;;  %10710 = vmatprep.subr.bf16.mxu1 %v15985_v0  ;;  %681 = vst [vmem:[#allocation3 + $0x50] sm:$0x1] %v680_v13  ;;  %659 = vst [vmem:[#allocation3 + $0xb4] sm:$0x1] %v658_v61 }
 0x449   : > { %708 = vst [vmem:[#allocation3 + $0xbc] sm:$0x1] %v707_v40 }
 0x44d   : > { %4415 = vmatmul.mubr.bf16.gmra.mrb[36].mxu0 %v4150_v46  ;;  %v630_v46 = vld [vmem:[#allocation3 + $0x48] sm:$0x1] }
 0x44e   : > { %9410 = vmatprep.mubr.msk.bf16.mxu0 %vm761_vm4, %v4106_v9  ;;  %v631_v9 = vsel %vm13530_vm15, 0, %v630_v46 }
 0x44f   : > { %632 = vst [vmem:[#allocation3 + $0x48] sm:$0x1] %v631_v9 }
 0x455   : > { %4423 = vmatmul.mubr.bf16.gmra.mrb[40].mxu0 %v4153_v56  ;;  %v633_v56 = vld [vmem:[#allocation3 + $0x54] sm:$0x1] }
 0x456   : > { %9411 = vmatprep.mubr.msk.bf16.mxu0 %vm761_vm4, %v4109_v50  ;;  %v10687_v50 = vpack.c.bf16 %v4517_v42, %v4516_v24  ;;  %v634_v5 = vsel %vm13530_vm15, 0, %v633_v56  ;;  %v4526_v56 = vld [vmem:[%s15865_s8 + $0x70] sm:$0xff] }
 0x457   : > { %635 = vst [vmem:[#allocation3 + $0x54] sm:$0x1] %v634_v5 }
 0x458   : > { %10688 = vmatpush3.bf16.msra.mxu0 %v10687_v50  ;;  %10712 = vmatpush3.bf16.msra.mxu1 %v10687_v50  ;;  %v4527_v50 = vld [vmem:[%s15865_s8 + $0x78] sm:$0xff] }
 0x459   : > { %10689 = vmatprep.subr.bf16.mxu0 %v15985_v0  ;;  %10713 = vmatprep.subr.bf16.mxu1 %v15985_v0  ;;  %v10702_v31 = vpack.c.bf16 %v4527_v50, %v4526_v56 }
 0x45c   : > { %10691 = vmatpush3.bf16.msra.mxu0 %v10690_v52  ;;  %10715 = vmatpush3.bf16.msra.mxu1 %v10690_v52  ;;  %v13762_v52 = vld [vmem:[%s15863_s6] ss:$0 sm:$0xff] }
 0x45d   : > { %4431 = vmatmul.mubr.bf16.gmra.mrb[44].mxu0 %v4156_v3  ;;  %v636_v3 = vld [vmem:[#allocation3 + $0x60] sm:$0x1]  ;;  %10692 = vmatprep.subr.bf16.mxu0 %v15985_v0 }
 0x45e   : > { %9412 = vmatprep.mubr.msk.bf16.mxu0 %vm761_vm4, %v4112_v4  ;;  %v637_v4 = vsel %vm13530_vm15, 0, %v636_v3  ;;  %10716 = vmatprep.subr.bf16.mxu1 %v15985_v0 }
 0x45f   : > { %638 = vst [vmem:[#allocation3 + $0x60] sm:$0x1] %v637_v4 }
 0x465   : > { %4439 = vmatmul.mubr.bf16.gmra.mrb[48].mxu0 %v4159_v39  ;;  %v639_v39 = vld [vmem:[#allocation3 + $0x6c] sm:$0x1] }
 0x466   : > { %9413 = vmatprep.mubr.msk.bf16.mxu0 %vm761_vm4, %v4115_v41  ;;  %v640_v41 = vsel %vm13530_vm15, 0, %v639_v39 }
 0x467   : > { %641 = vst [vmem:[#allocation3 + $0x6c] sm:$0x1] %v640_v41 }
 0x46d   : > { %4447 = vmatmul.mubr.bf16.gmra.mrb[52].mxu0 %v4162_v29  ;;  %v692_v29 = vsel %vm13604_vm1, 0, %v691_v32 }
 0x46e   : > { %9414 = vmatprep.mubr.msk.bf16.mxu0 %vm761_vm4, %v4118_v34  ;;  %693 = vst [vmem:[#allocation3 + $0x80] sm:$0x1] %v692_v29  ;;  %v4520_v34 = vld [vmem:[%s15865_s8 + $0x40] sm:$0xff] }
 0x46f   : > { %v10693_v33 = vpack.c.bf16 %v4521_v53, %v4520_v34 }
 0x471   : > { %10694 = vmatpush3.bf16.msra.mxu0 %v10693_v33  ;;  %10718 = vmatpush3.bf16.msra.mxu1 %v10693_v33 }
 0x472   : > { %10695 = vmatprep.subr.bf16.mxu0 %v15985_v0  ;;  %10719 = vmatprep.subr.bf16.mxu1 %v15985_v0 }
 0x475   : > { %4455 = vmatmul.mubr.bf16.gmra.mrb[56].mxu0 %v4165_v35  ;;  %v4522_v35 = vld [vmem:[%s15865_s8 + $0x50] sm:$0xff] }
 0x476   : > { %9415 = vmatprep.mubr.msk.bf16.mxu0 %vm761_vm4, %v4121_v19  ;;  %v4523_v19 = vld [vmem:[%s15865_s8 + $0x58] sm:$0xff] }
 0x477   : > { %v10696_v12 = vpack.c.bf16 %v4523_v19, %v4522_v35 }
 0x479   : > { %10697 = vmatpush3.bf16.msra.mxu0 %v10696_v12  ;;  %10721 = vmatpush3.bf16.msra.mxu1 %v10696_v12 }
 0x47a   : > { %10698 = vmatprep.subr.bf16.mxu0 %v15985_v0  ;;  %10722 = vmatprep.subr.bf16.mxu1 %v15985_v0 }
 0x47d   : > { %4463 = vmatmul.mubr.bf16.gmra.mrb[60].mxu0 %v4168_v37  ;;  %10724 = vmatpush3.bf16.msra.mxu1 %v10699_v59 }
 0x47e   : > { %9416 = vmatprep.mubr.msk.bf16.mxu0 %vm761_vm4, %v4124_v1  ;;  %v703_v1 = vld [vmem:[#allocation3 + $0xb0] sm:$0x1]  ;;  %10700 = vmatpush3.bf16.msra.mxu0 %v10699_v59 }
 0x47f   : > { %v704_v37 = vsel %vm13604_vm1, 0, %v703_v1  ;;  %10701 = vmatprep.subr.bf16.mxu0 %v15985_v0  ;;  %10725 = vmatprep.subr.bf16.mxu1 %v15985_v0 }
 0x480   : > { %705 = vst [vmem:[#allocation3 + $0xb0] sm:$0x1] %v704_v37 }
 0x481   : > { %10727 = vmatpush3.bf16.msra.mxu1 %v10702_v31 }
 0x482   : > { %10703 = vmatpush3.bf16.msra.mxu0 %v10702_v31  ;;  %10728 = vmatprep.subr.bf16.mxu1 %v15985_v0 }
 0x485   : > { %4471 = vmatmul.mubr.bf16.gmra.mrb[64].mxu0 %v4171_v48  ;;  %v661_v48 = vsel %vm13530_vm15, 0, %v660_v49 }
 0x486   : > { %10400 = vmatprep.mubr.msk.f32.mxu0 %vm11855_vm0, %v15991_v11  ;;  %662 = vst [vmem:[#allocation3 + $0xc0] sm:$0x1] %v661_v48 }
 0x4e0   : > { %v4352_v46 = vpop.f32.mrb[4].mxu0 }
 0x4e1   : > { %v4354_v9 = vpop.f32.mrb[5].mxu0  ;;  %v13768_v63 = vadd.f32 %v13762_v52, %v4352_v46 }
 0x4e2   : > { %v4355_v8 = vpop.f32.mrb[6].mxu0 }
 0x4e3   : > { %v4357_v13 = vpop.f32.mrb[7].mxu0  ;;  %v13765_v41 = vadd.f32 %v13762_v52, %v4355_v8  ;;  %v4573_v53 = vmul.f32 %v13768_v63, %v13768_v63 }
 0x4e5   : > { %v4574_v29 = vmul.f32 %v13765_v41, %v13765_v41  ;;  %v4536_v22 = vadd.f32 %v13765_v41, %v13768_v63 }
 0x4e7   : > { %v4605_v51 = vadd.f32 %v4574_v29, %v4573_v53 }
 0x4e8   : > { %v4360_v24 = vpop.f32.mrb[8].mxu0 }
 0x4e9   : > { %v4362_v42 = vpop.f32.mrb[9].mxu0  ;;  %v13771_v10 = vadd.f32 %v13762_v52, %v4360_v24 }
 0x4ea   : > { %v4363_v5 = vpop.f32.mrb[10].mxu0 }
 0x4eb   : > { %v4365_v58 = vpop.f32.mrb[11].mxu0  ;;  %v4575_v33 = vmul.f32 %v13771_v10, %v13771_v10  ;;  %v13782_v21 = vadd.f32 %v13762_v52, %v4363_v5  ;;  %v4537_v7 = vadd.f32 %v13771_v10, %v4536_v22 }
 0x4ed   : > { %v4606_v38 = vadd.f32 %v4605_v51, %v4575_v33  ;;  %v4576_v15 = vmul.f32 %v13782_v21, %v13782_v21  ;;  %v4538_v6 = vadd.f32 %v13782_v21, %v4537_v7 }
 0x4ef   : > { %v4607_v47 = vadd.f32 %v4606_v38, %v4576_v15 }
 0x4f0   : > { %v4368_v26 = vpop.f32.mrb[12].mxu0 }
 0x4f1   : > { %v4370_v3 = vpop.f32.mrb[13].mxu0  ;;  %v13786_v43 = vadd.f32 %v13762_v52, %v4368_v26 }
 0x4f2   : > { %v4371_v4 = vpop.f32.mrb[14].mxu0 }
 0x4f3   : > { %v4373_v44 = vpop.f32.mrb[15].mxu0  ;;  %v4577_v12 = vmul.f32 %v13786_v43, %v13786_v43  ;;  %v13794_v60 = vadd.f32 %v13762_v52, %v4371_v4  ;;  %v4539_v16 = vadd.f32 %v13786_v43, %v4538_v6 }
 0x4f5   : > { %v4608_v1 = vadd.f32 %v4607_v47, %v4577_v12  ;;  %v4578_v37 = vmul.f32 %v13794_v60, %v13794_v60  ;;  %v4540_v17 = vadd.f32 %v13794_v60, %v4539_v16 }
 0x4f7   : > { %v4609_v40 = vadd.f32 %v4608_v1, %v4578_v37 }
 0x4f8   : > { %v4376_v20 = vpop.f32.mrb[16].mxu0 }
 0x4f9   : > { %v4378_v57 = vpop.f32.mrb[17].mxu0  ;;  %v13798_v27 = vadd.f32 %v13762_v52, %v4376_v20 }
 0x4fa   : > { %v4379_v45 = vpop.f32.mrb[18].mxu0 }
 0x4fb   : > { %v4381_v39 = vpop.f32.mrb[19].mxu0  ;;  %v4579_v28 = vmul.f32 %v13798_v27, %v13798_v27  ;;  %v13806_v59 = vadd.f32 %v13762_v52, %v4379_v45  ;;  %v4541_v49 = vadd.f32 %v13798_v27, %v4540_v17 }
 0x4fd   : > { %v4610_v18 = vadd.f32 %v4609_v40, %v4579_v28  ;;  %v4580_v46 = vmul.f32 %v13806_v59, %v13806_v59  ;;  %v4542_v9 = vadd.f32 %v13806_v59, %v4541_v49 }
 0x4ff   : > { %v4611_v42 = vadd.f32 %v4610_v18, %v4580_v46 }
 0x500   : > { %v4384_v25 = vpop.f32.mrb[20].mxu0 }
 0x501   : > { %v4386_v30 = vpop.f32.mrb[21].mxu0  ;;  %v13810_v48 = vadd.f32 %v13762_v52, %v4384_v25 }
 0x502   : > { %v4387_v32 = vpop.f32.mrb[22].mxu0 }
 0x503   : > { %v4389_v34 = vpop.f32.mrb[23].mxu0  ;;  %v4581_v8 = vmul.f32 %v13810_v48, %v13810_v48  ;;  %v13818_v13 = vadd.f32 %v13762_v52, %v4387_v32  ;;  %v4543_v56 = vadd.f32 %v13810_v48, %v4542_v9 }
 0x505   : > { %v4612_v58 = vadd.f32 %v4611_v42, %v4581_v8  ;;  %v4582_v26 = vmul.f32 %v13818_v13, %v13818_v13  ;;  %v4544_v4 = vadd.f32 %v13818_v13, %v4543_v56 }
 0x507   : > { %v4613_v57 = vadd.f32 %v4612_v58, %v4582_v26 }
 0x508   : > { %v4392_v2 = vpop.f32.mrb[24].mxu0 }
 0x509   : > { %v4394_v35 = vpop.f32.mrb[25].mxu0  ;;  %v13822_v50 = vadd.f32 %v13762_v52, %v4392_v2 }
 0x50a   : > { %v4395_v19 = vpop.f32.mrb[26].mxu0 }
 0x50b   : > { %v4397_v23 = vpop.f32.mrb[27].mxu0  ;;  %v4583_v44 = vmul.f32 %v13822_v50, %v13822_v50  ;;  %v13830_v20 = vadd.f32 %v13762_v52, %v4395_v19  ;;  %v4545_v45 = vadd.f32 %v13822_v50, %v4544_v4 }
 0x50d   : > { %v4614_v30 = vadd.f32 %v4613_v57, %v4583_v44  ;;  %v4584_v32 = vmul.f32 %v13830_v20, %v13830_v20  ;;  %v4546_v53 = vadd.f32 %v13830_v20, %v4545_v45 }
 0x50f   : > { %v4615_v7 = vadd.f32 %v4614_v30, %v4584_v32 }
 0x510   : > { %v4400_v55 = vpop.f32.mrb[28].mxu0 }
 0x511   : > { %v4402_v61 = vpop.f32.mrb[29].mxu0  ;;  %v13834_v39 = vadd.f32 %v13762_v52, %v4400_v55 }
 0x512   : > { %v4403_v54 = vpop.f32.mrb[30].mxu0 }
 0x513   : > { %v4405_v14 = vpop.f32.mrb[31].mxu0  ;;  %v4585_v22 = vmul.f32 %v13834_v39, %v13834_v39  ;;  %v13842_v33 = vadd.f32 %v13762_v52, %v4403_v54  ;;  %v4547_v2 = vadd.f32 %v13834_v39, %v4546_v53 }
 0x515   : > { %v4616_v15 = vadd.f32 %v4615_v7, %v4585_v22  ;;  %v4586_v35 = vmul.f32 %v13842_v33, %v13842_v33  ;;  %v4548_v6 = vadd.f32 %v13842_v33, %v4547_v2 }
 0x517   : > { %v4617_v1 = vadd.f32 %v4616_v15, %v4586_v35 }
 0x518   : > { %v4408_v24 = vpop.f32.mrb[32].mxu0 }
 0x519   : > { %v4410_v5 = vpop.f32.mrb[33].mxu0  ;;  %v13846_v38 = vadd.f32 %v13762_v52, %v4408_v24 }
 0x51a   : > { %v4411_v31 = vpop.f32.mrb[34].mxu0 }
 0x51b   : > { %v4413_v3 = vpop.f32.mrb[35].mxu0  ;;  %v4587_v12 = vmul.f32 %v13846_v38, %v13846_v38  ;;  %v13854_v23 = vadd.f32 %v13762_v52, %v4411_v31  ;;  %v4549_v37 = vadd.f32 %v13846_v38, %v4548_v6 }
 0x51d   : > { %v4618_v28 = vadd.f32 %v4617_v1, %v4587_v12  ;;  %v4588_v61 = vmul.f32 %v13854_v23, %v13854_v23  ;;  %v4550_v54 = vadd.f32 %v13854_v23, %v4549_v37 }
 0x51f   : > { %v4619_v18 = vadd.f32 %v4618_v28, %v4588_v61 }
 0x520   : > { %v4416_v25 = vpop.f32.mrb[36].mxu0 }
 0x521   : > { %v4418_v29 = vpop.f32.mrb[37].mxu0  ;;  %v13858_v55 = vadd.f32 %v13762_v52, %v4416_v25 }
 0x522   : > { %v4419_v34 = vpop.f32.mrb[38].mxu0 }
 0x523   : > { %v4421_v51 = vpop.f32.mrb[39].mxu0  ;;  %v4589_v40 = vmul.f32 %v13858_v55, %v13858_v55  ;;  %v13866_v49 = vadd.f32 %v13762_v52, %v4419_v34  ;;  %v4551_v46 = vadd.f32 %v13858_v55, %v4550_v54 }
 0x525   : > { %v4620_v42 = vadd.f32 %v4619_v18, %v4589_v40  ;;  %v4590_v56 = vmul.f32 %v13866_v49, %v13866_v49  ;;  %v4552_v31 = vadd.f32 %v13866_v49, %v4551_v46 }
 0x527   : > { %v4621_v3 = vadd.f32 %v4620_v42, %v4590_v56 }
 0x528   : > { %v4424_v19 = vpop.f32.mrb[40].mxu0 }
 0x529   : > { %v4426_v47 = vpop.f32.mrb[41].mxu0  ;;  %v13870_v9 = vadd.f32 %v13762_v52, %v4424_v19 }
 0x52a   : > { %v4427_v16 = vpop.f32.mrb[42].mxu0 }
 0x52b   : > { %v4429_v17 = vpop.f32.mrb[43].mxu0  ;;  %v4591_v58 = vmul.f32 %v13870_v9, %v13870_v9  ;;  %v13878_v26 = vadd.f32 %v13762_v52, %v4427_v16  ;;  %v4553_v4 = vadd.f32 %v13870_v9, %v4552_v31 }
 0x52d   : > { %v4622_v45 = vadd.f32 %v4621_v3, %v4591_v58  ;;  %v4592_v25 = vmul.f32 %v13878_v26, %v13878_v26  ;;  %v4554_v29 = vadd.f32 %v13878_v26, %v4553_v4 }
 0x52f   : > { %v4623_v51 = vadd.f32 %v4622_v45, %v4592_v25 }
 0x530   : > { %v4432_v14 = vpop.f32.mrb[44].mxu0 }
 0x531   : > { %v4434_v8 = vpop.f32.mrb[45].mxu0  ;;  %v13882_v44 = vadd.f32 %v13762_v52, %v4432_v14 }
 0x532   : > { %v4435_v24 = vpop.f32.mrb[46].mxu0 }
 0x533   : > { %v4437_v5 = vpop.f32.mrb[47].mxu0  ;;  %v4593_v34 = vmul.f32 %v13882_v44, %v13882_v44  ;;  %v13890_v53 = vadd.f32 %v13762_v52, %v4435_v24  ;;  %v4555_v7 = vadd.f32 %v13882_v44, %v4554_v29 }
 0x535   : > { %v4624_v15 = vadd.f32 %v4623_v51, %v4593_v34  ;;  %v4594_v35 = vmul.f32 %v13890_v53, %v13890_v53  ;;  %v4556_v6 = vadd.f32 %v13890_v53, %v4555_v7 }
 0x537   : > { %v4625_v37 = vadd.f32 %v4624_v15, %v4594_v35 }
 0x538   : > { %v4440_v57 = vpop.f32.mrb[48].mxu0 }
 0x539   : > { %v4442_v30 = vpop.f32.mrb[49].mxu0  ;;  %v13894_v2 = vadd.f32 %v13762_v52, %v4440_v57 }
 0x53a   : > { %v4443_v32 = vpop.f32.mrb[50].mxu0 }
 0x53b   : > { %v4445_v22 = vpop.f32.mrb[51].mxu0  ;;  %v4595_v12 = vmul.f32 %v13894_v2, %v13894_v2  ;;  %v13902_v47 = vadd.f32 %v13762_v52, %v4443_v32  ;;  %v4557_v17 = vadd.f32 %v13894_v2, %v4556_v6 }
 0x53d   : > { %v4626_v54 = vadd.f32 %v4625_v37, %v4595_v12  ;;  %v4596_v40 = vmul.f32 %v13902_v47, %v13902_v47  ;;  %v4558_v14 = vadd.f32 %v13902_v47, %v4557_v17 }
 0x53f   : > { %v4627_v24 = vadd.f32 %v4626_v54, %v4596_v40 }
 0x540   : > { %v4448_v19 = vpop.f32.mrb[52].mxu0 }
 0x541   : > { %v4450_v16 = vpop.f32.mrb[53].mxu0  ;;  %v13906_v28 = vadd.f32 %v13762_v52, %v4448_v19 }
 0x542   : > { %v4451_v1 = vpop.f32.mrb[54].mxu0 }
 0x543   : > { %v4453_v61 = vpop.f32.mrb[55].mxu0  ;;  %v4597_v18 = vmul.f32 %v13906_v28, %v13906_v28  ;;  %v13914_v46 = vadd.f32 %v13762_v52, %v4451_v1  ;;  %v4559_v42 = vadd.f32 %v13906_v28, %v4558_v14 }
 0x545   : > { %v4628_v58 = vadd.f32 %v4627_v24, %v4597_v18  ;;  %v4598_v3 = vmul.f32 %v13914_v46, %v13914_v46  ;;  %v4560_v57 = vadd.f32 %v13914_v46, %v4559_v42 }
 0x547   : > { %v4629_v30 = vadd.f32 %v4628_v58, %v4598_v3 }
 0x548   : > { %v4456_v8 = vpop.f32.mrb[56].mxu0 }
 0x549   : > { %v13918_v56 = vadd.f32 %v13762_v52, %v4456_v8  ;;  %v4458_v5 = vpop.f32.mrb[57].mxu0 }
 0x54a   : > { %v4459_v31 = vpop.f32.mrb[58].mxu0 }
 0x54b   : > { %v4461_v4 = vpop.f32.mrb[59].mxu0  ;;  %v4599_v45 = vmul.f32 %v13918_v56, %v13918_v56  ;;  %v13926_v25 = vadd.f32 %v13762_v52, %v4459_v31  ;;  %v4561_v32 = vadd.f32 %v13918_v56, %v4560_v57 }
 0x54d   : > { %v4630_v34 = vadd.f32 %v4629_v30, %v4599_v45  ;;  %v4600_v22 = vmul.f32 %v13926_v25, %v13926_v25  ;;  %v4562_v35 = vadd.f32 %v13926_v25, %v4561_v32 }
 0x54f   : > { %v4631_v16 = vadd.f32 %v4630_v34, %v4600_v22 }
 0x550   : > { %v4464_v29 = vpop.f32.mrb[60].mxu0 }
 0x551   : > { %v13932_v51 = vadd.f32 %v13762_v52, %v4464_v29  ;;  %v4466_v7 = vpop.f32.mrb[61].mxu0 }
 0x552   : > { %v4467_v15 = vpop.f32.mrb[62].mxu0 }
 0x553   : > { %v4601_v19 = vmul.f32 %v13932_v51, %v13932_v51  ;;  %v13938_v6 = vadd.f32 %v13762_v52, %v4467_v15  ;;  %v4469_v12 = vpop.f32.mrb[63].mxu0  ;;  %v4563_v1 = vadd.f32 %v13932_v51, %v4562_v35 }
 0x555   : > { %v4632_v37 = vadd.f32 %v4631_v16, %v4601_v19  ;;  %v4602_v17 = vmul.f32 %v13938_v6, %v13938_v6  ;;  %v4564_v54 = vadd.f32 %v13938_v6, %v4563_v1  ;;  %v4532_v16 = vld [vmem:[%s15867_s10] sm:$0xff]  ;;  %v4533_v1 = vld [vmem:[%s15867_s10 + $0x8] sm:$0xff] }
 0x557   : > { %v4633_v8 = vadd.f32 %v4632_v37, %v4602_v17  ;;  %v4534_v37 = vld [vmem:[%s15867_s10 + $0x10] sm:$0xff]  ;;  %v10729_v17 = vpack.c.bf16 %v4533_v1, %v4532_v16  ;;  %v11335_v16 = vld [vmem:[%s15868_s11] sm:$0xff]  }
 0x558   : > { %v4472_v61 = vpop.f32.mrb[64].mxu0 }
 0x559   : > { %v13945_v40 = vadd.f32 %v13762_v52, %v4472_v61  ;;  %v4474_v14 = vpop.f32.mrb[65].mxu0  ;;  %v4535_v61 = vld [vmem:[%s15867_s10 + $0x18] sm:$0xff] }
 0x55a   : > { %v4475_v18 = vpop.f32.mrb[66].mxu0 }
 0x55b   : > { %v4565_v24 = vadd.f32 %v13945_v40, %v4564_v54  ;;  %v4603_v42 = vmul.f32 %v13945_v40, %v13945_v40  ;;  %v13951_v5 = vadd.f32 %v13762_v52, %v4475_v18  ;;  %v4477_v31 = vpop.f32.mrb[67].mxu0  ;;  %v10732_v54 = vpack.c.bf16 %v4535_v61, %v4534_v37 }
 0x55d   : > { %v4634_v58 = vadd.f32 %v4633_v8, %v4603_v42  ;;  %v4566_v3 = vadd.f32 %v13951_v5, %v4565_v24  ;;  %v4604_v4 = vmul.f32 %v13951_v5, %v13951_v5 }
 0x55f   : > { %v4567_v57 = vrot.slane %v4566_v3, 4  ;;  %v4635_v45 = vadd.f32 %v4634_v58, %v4604_v4 }
 0x561   : > { %v4568_v30 = vadd.f32 %v4567_v57, %v4566_v3  ;;  %v4636_v32 = vrot.slane %v4635_v45, 4 }
 0x563   : > { %v4569_v29 = vrot.slane %v4568_v30, 2  ;;  %v4637_v34 = vadd.f32 %v4636_v32, %v4635_v45  ;;  %v4528_v45 = vld [vmem:[%s15866_s9] sm:$0xff] }
 0x565   : > { %v4570_v22 = vadd.f32 %v4569_v29, %v4568_v30  ;;  %v4638_v7 = vrot.slane %v4637_v34, 2  ;;  %v4529_v30 = vld [vmem:[%s15866_s9 + $0x8] sm:$0xff]  ;;  %v4530_v29 = vld [vmem:[%s15866_s9 + $0x10] sm:$0xff] }
 0x566   : > { %v10735_v32 = vpack.c.bf16 %v4529_v30, %v4528_v45 }
 0x567   : > { %v4571_v15 = vrot.slane %v4570_v22, 1  ;;  %v4639_v35 = vadd.f32 %v4638_v7, %v4637_v34  ;;  %v4531_v34 = vld [vmem:[%s15866_s9 + $0x18] sm:$0xff] }
 0x568   : > { %v10738_v7 = vpack.c.bf16 %v4531_v34, %v4530_v29 }
 0x569   : > { %v4572_v19 = vadd.f32 %v4571_v15, %v4570_v22  ;;  %v4640_v52 = vrot.slane %v4639_v35, 1 }
 0x56b   : > { %10401 = vmatmul.mubr.f32.vlgmr.msra.gmra.mrb[68].mxu0 %v4572_v19  ;;  %v4641_v12 = vadd.f32 %v4640_v52, %v4639_v35  ;;  %v15992_v19 = vld [vmem:[#allocation15_spill] sm:$0xff] }
 0x56d   : > { %10436 = vmatmul.mubr.f32.vlgmr.msra.gmra.mrb[4].mxu1 %v4641_v12  ;;  %v11334_v12 = vld [vmem:[%s15868_s11 + $0x40] sm:$0xff]  }
 0x56e   : > { %10446 = vmatprep.mubr.msk.f32.mxu1 %vm11855_vm0, %v15991_v11  ;;  %10730 = vmatpush3.bf16.msra.mxu1 %v10729_v17 }
 0x56f   : > { %10731 = vmatprep.subr.bf16.mxu1 %v15985_v0 }
 0x572   : > { %10733 = vmatpush3.bf16.msra.mxu1 %v10732_v54 }
 0x573   : > { %10734 = vmatprep.subr.bf16.mxu1 %v15985_v0 }
 0x63e   : > { %v4708_v14 = vpop.f32.mrb[68].mxu0 }
 0x63f   : > { %v4782_v18 = vmul.f32 0.0009765625, %v4708_v14  ;;  %v10402_v8 = vpop.f32.mrb[69].mxu0 }
 0x640   : > { %v4778_v24 = vpop.f32.mrb[4].mxu1 }
 0x641   : > { %v4784_v42 = vmul.f32 %v4782_v18, %v4782_v18  ;;  %v4783_v31 = vmul.f32 0.0009765625, %v4778_v24  ;;  %v10437_v58 = vpop.f32.mrb[5].mxu1 }
 0x643   : > { %v4785_v3 = vsub.f32 %v4783_v31, %v4784_v42  ;;  %v11344_v42 = vld [vmem:[%s15868_s11 + $0x1c8] sm:$0xff]  }
 0x645   : > { %v4786_v4 = vmax.f32 %v4785_v3, 0.0 }
 0x647   : > { %v4787_v57 = vadd.f32 1e-05, %v4786_v4 }
 0x649   : > { %11572 = vrsqrt.f32 %v4787_v57 }
 0x653   : > { %v11573_v22 = vpop.eup %11572 }
 0x654   : > { %10447 = vmatmul.mubr.msk.f32.vlgmr.msra.gmra.mrb[6].mxu1 %vm1085_vm9, %v11573_v22 }
 0x655   : > { %10736 = vmatpush3.bf16.msra.mxu1 %v10735_v32  ;;  %10457 = vmatprep.mubr.msk.f32.mxu1 %vm11855_vm0, %v15991_v11  ;;  %v11336_v11 = vld [vmem:[%s15868_s11 + $0x48] sm:$0xff]   ;;  %vm5587_vm0 = vcmask 1043456  }
 0x656   : > { %10737 = vmatprep.subr.bf16.mxu1 %v15985_v0  ;;  %vm14615_vm2 = vmand %vm5587_vm0, %vm555_vm5 }
 0x659   : > { %10739 = vmatpush3.bf16.msra.mxu1 %v10738_v7 }
 0x65a   : > { %9880 = vmatprep.subr.bf16.mxu1 %v11334_v12 }
 0x65c   : > { %10458 = vmatmul.mubr.msk.f32.vlgmr.msra.gmra.mrb[8].mxu1 %vm1085_vm9, %v4782_v18 }
 0x65d   : > { %9881 = vmatpush3.bf16.msra.mxu1 %v11335_v16 }
 0x65e   : > { %9882 = vmatprep.subr.bf16.mxu1 %v11336_v11 }
 0x727   : > { %v4858_v15 = vpop.f32.mrb[6].mxu1 }
 0x728   : > { %v10448_v35 = vpop.f32.mrb[7].mxu1  ;;  %v4940_v52 = vrot.slane %v4858_v15, %v15992_v19 }
 0x72a   : > { %v4941_v0 = vmul.f32 %v13768_v63, %v4940_v52  ;;  %v4942_v1 = vmul.f32 %v13765_v41, %v4940_v52  ;;  %v4943_v37 = vmul.f32 %v13771_v10, %v4940_v52  ;;  %v4944_v17 = vmul.f32 %v13782_v21, %v4940_v52  ;;  %v11340_v63 = vld [vmem:[%s15868_s11 + $0x1c0] sm:$0xff]  }
 0x72b   : > { %v4945_v54 = vmul.f32 %v13786_v43, %v4940_v52  ;;  %v4946_v14 = vmul.f32 %v13794_v60, %v4940_v52  ;;  %v4947_v18 = vmul.f32 %v13798_v27, %v4940_v52  ;;  %v4948_v8 = vmul.f32 %v13806_v59, %v4940_v52  ;;  %v11342_v41 = vld [vmem:[%s15868_s11 + $0x180] sm:$0xff]   ;;  %v11337_v59 = vld [vmem:[%s15868_s11 + $0x8] sm:$0xff]   ;;  %10152 = vmatprep.subr.bf16.mxu0 %v11340_v63 }
 0x72c   : > { %v4949_v10 = vmul.f32 %v13810_v48, %v4940_v52  ;;  %v4950_v21 = vmul.f32 %v13818_v13, %v4940_v52  ;;  %v4951_v43 = vmul.f32 %v13822_v50, %v4940_v52  ;;  %v4952_v60 = vmul.f32 %v13830_v20, %v4940_v52  ;;  %v4511_v27 = vld [vmem:[%s15864_s7] sm:$0x1]  ;;  %v11338_v20 = vld [vmem:[%s15868_s11 + $0x50] sm:$0xff]   ;;  %10153 = vmatpush3.bf16.msra.mxu0 %v11342_v41 }
 0x72d   : > { %v4953_v48 = vmul.f32 %v13834_v39, %v4940_v52  ;;  %v4954_v13 = vmul.f32 %v13842_v33, %v4940_v52  ;;  %v4955_v31 = vmul.f32 %v13846_v38, %v4940_v52  ;;  %v4956_v58 = vmul.f32 %v13854_v23, %v4940_v52  ;;  %v11346_v39 = vld [vmem:[%s15868_s11 + $0x188] sm:$0xff]   ;;  %10154 = vmatprep.subr.bf16.mxu0 %v11344_v42  ;;  %v11348_v38 = vld [vmem:[%s15868_s11 + $0x1d0] sm:$0xff]   ;;  %v11356_v63 = vld [vmem:[%s15868_s11 + $0x1e0] sm:$0xff]  }
 0x72e   : > { %v4957_v3 = vmul.f32 %v13858_v55, %v4940_v52  ;;  %v4958_v4 = vmul.f32 %v13866_v49, %v4940_v52  ;;  %v4959_v33 = vmul.f32 %v13870_v9, %v4940_v52  ;;  %v4960_v57 = vmul.f32 %v13878_v26, %v4940_v52  ;;  %9883 = vmatpush3.bf16.msra.mxu1 %v11337_v59  ;;  %v11339_v9 = vld [vmem:[%s15868_s11 + $0x10] sm:$0xff]  }
 0x72f   : > { %v4931_v61 = vpop.f32.mrb[8].mxu1  ;;  %v4961_v45 = vmul.f32 %v13882_v44, %v4940_v52  ;;  %v4962_v23 = vmul.f32 %v13890_v53, %v4940_v52  ;;  %v4963_v55 = vmul.f32 %v13894_v2, %v4940_v52  ;;  %v4964_v49 = vmul.f32 %v13902_v47, %v4940_v52  ;;  %9884 = vmatprep.subr.bf16.mxu1 %v11338_v20  ;;  %v11341_v53 = vld [vmem:[%s15868_s11 + $0x58] sm:$0xff]  }
 0x730   : > { %v10459_v24 = vpop.f32.mrb[9].mxu1  ;;  %v4935_v50 = vmul.f32 %v4931_v61, %v4858_v15  ;;  %v4965_v32 = vmul.f32 %v13906_v28, %v4940_v52  ;;  %v4966_v26 = vmul.f32 %v13914_v46, %v4940_v52  ;;  %v4967_v44 = vmul.f32 %v13918_v56, %v4940_v52  ;;  %10155 = vmatpush3.bf16.msra.mxu0 %v11346_v39  ;;  %v11350_v46 = vld [vmem:[%s15868_s11 + $0x190] sm:$0xff]   ;;  %v11351_v39 = vld [vmem:[%s15868_s11 + $0x28] sm:$0xff]  }
 0x731   : > { %v4968_v29 = vmul.f32 %v13926_v25, %v4940_v52  ;;  %v4969_v2 = vmul.f32 %v13932_v51, %v4940_v52  ;;  %v4970_v47 = vmul.f32 %v13938_v6, %v4940_v52  ;;  %v4971_v28 = vmul.f32 %v13945_v40, %v4940_v52  ;;  %10156 = vmatprep.subr.bf16.mxu0 %v11348_v38  ;;  %v11352_v51 = vld [vmem:[%s15868_s11 + $0x1d8] sm:$0xff]   ;;  %v11361_v38 = vld [vmem:[#allocation3 + $0x8] ss:$0 sps:$4 sm:$0x11]  }
 0x732   : > { %v4936_v30 = vsub.f32 %v4511_v27, %v4935_v50  ;;  %v4972_v22 = vmul.f32 %v13951_v5, %v4940_v52  ;;  %9885 = vmatpush3.bf16.msra.mxu1 %v11339_v9  ;;  %v11357_v9 = vld [vmem:[%s15868_s11 + $0x78] sm:$0xff]  }
 0x733   : > { %9886 = vmatprep.subr.bf16.mxu1 %v11341_v53 }
 0x734   : > { %v4977_v34 = vrot.slane %v4936_v30, %v15992_v19  ;;  %v11343_v19 = vld [vmem:[%s15868_s11 + $0x18] sm:$0xff]   ;;  %10157 = vmatpush3.bf16.msra.mxu0 %v11350_v46 }
 0x735   : > { %10158 = vmatprep.subr.bf16.mxu0 %v11352_v51  ;;  %v11360_v30 = vld [vmem:[#allocation3] sm:$0xff]  }
 0x736   : > { %v14065_v56 = vadd.f32 %v4977_v34, %v4941_v0  ;;  %v14067_v25 = vadd.f32 %v4977_v34, %v4942_v1  ;;  %v14069_v7 = vadd.f32 %v4977_v34, %v4943_v37  ;;  %v14071_v15 = vadd.f32 %v4977_v34, %v4944_v17  ;;  %v11345_v0 = vld [vmem:[%s15868_s11 + $0x60] sm:$0xff]   ;;  %9887 = vmatpush3.bf16.msra.mxu1 %v11343_v19 }
 0x737   : > { %v14076_v6 = vadd.f32 %v4977_v34, %v4945_v54  ;;  %v14078_v40 = vadd.f32 %v4977_v34, %v4946_v14  ;;  %v14080_v5 = vadd.f32 %v4977_v34, %v4947_v18  ;;  %v14082_v35 = vadd.f32 %v4977_v34, %v4948_v8  ;;  %v11354_v54 = vld [vmem:[%s15868_s11 + $0x198] sm:$0xff]   ;;  %9888 = vmatprep.subr.bf16.mxu1 %v11345_v0  ;;  %v11364_v0 = vld [vmem:[%s15868_s11 + $0x80] sm:$0xff]  }
 0x738   : > { %v14087_v52 = vadd.f32 %v4977_v34, %v4949_v10  ;;  %v14089_v12 = vadd.f32 %v4977_v34, %v4950_v21  ;;  %v14091_v16 = vadd.f32 %v4977_v34, %v4951_v43  ;;  %v14093_v11 = vadd.f32 %v4977_v34, %v4952_v60  ;;  %v11347_v60 = vld [vmem:[%s15868_s11 + $0x20] sm:$0xff]   ;;  %10159 = vmatpush3.bf16.msra.mxu0 %v11354_v54 }
 0x739   : > { %v14098_v1 = vadd.f32 %v4977_v34, %v4953_v48  ;;  %v14100_v37 = vadd.f32 %v4977_v34, %v4954_v13  ;;  %v14102_v17 = vadd.f32 %v4977_v34, %v4955_v31  ;;  %v14104_v61 = vadd.f32 %v4977_v34, %v4956_v58  ;;  %v11349_v13 = vld [vmem:[%s15868_s11 + $0x68] sm:$0xff]   ;;  %10160 = vmatprep.subr.bf16.mxu0 %v11356_v63  ;;  %v11368_v63 = vld [vmem:[%s15868_s11 + $0x1b8] sm:$0xff]  }
 0x73a   : > { %v14109_v14 = vadd.f32 %v4977_v34, %v4957_v3  ;;  %v14111_v18 = vadd.f32 %v4977_v34, %v4958_v4  ;;  %v14113_v8 = vadd.f32 %v4977_v34, %v4959_v33  ;;  %v14115_v24 = vadd.f32 %v4977_v34, %v4960_v57  ;;  %v11358_v3 = vld [vmem:[%s15868_s11 + $0x1a0] sm:$0xff]   ;;  %v11362_v4 = vld [vmem:[%s15868_s11 + $0x1e8] sm:$0xff]   ;;  %9889 = vmatpush3.bf16.msra.mxu1 %v11347_v60  ;;  %v11353_v33 = vld [vmem:[%s15868_s11 + $0x70] sm:$0xff]  }
 0x73b   : > { %v14120_v41 = vadd.f32 %v4977_v34, %v4961_v45  ;;  %v14122_v10 = vadd.f32 %v4977_v34, %v4962_v23  ;;  %v14124_v21 = vadd.f32 %v4977_v34, %v4963_v55  ;;  %v14126_v43 = vadd.f32 %v4977_v34, %v4964_v49  ;;  %9890 = vmatprep.subr.bf16.mxu1 %v11349_v13  ;;  %v11363_v57 = vld [vmem:[%s15868_s11 + $0x1a8] sm:$0xff]   ;;  %v11365_v23 = vld [vmem:[%s15868_s11 + $0x1f0] sm:$0xff]  }
 0x73c   : > { %v14131_v27 = vadd.f32 %v4977_v34, %v4965_v32  ;;  %v14133_v59 = vadd.f32 %v4977_v34, %v4966_v26  ;;  %v14135_v42 = vadd.f32 %v4977_v34, %v4967_v44  ;;  %v14137_v48 = vadd.f32 %v4977_v34, %v4968_v29  ;;  %10161 = vmatpush3.bf16.msra.mxu0 %v11358_v3  ;;  %v11355_v49 = vld [vmem:[%s15868_s11 + $0x30] sm:$0xff]  }
 0x73d   : > { %v14142_v50 = vadd.f32 %v4977_v34, %v4969_v2  ;;  %v14144_v20 = vadd.f32 %v4977_v34, %v4970_v47  ;;  %v14146_v31 = vadd.f32 %v4977_v34, %v4971_v28  ;;  %v14148_v58 = vadd.f32 %v4977_v34, %v4972_v22  ;;  %10162 = vmatprep.subr.bf16.mxu0 %v11362_v4  ;;  %v11366_v29 = vld [vmem:[%s15868_s11 + $0x1b0] sm:$0xff]   ;;  %v11367_v47 = vld [vmem:[%s15868_s11 + $0x1f8] sm:$0xff]  }
 0x73e   : > { %v5011_v45 = vmul.f32 0.5, %v14065_v56  ;;  %v5012_v55 = vmul.f32 0.5, %v14067_v25  ;;  %9891 = vmatpush3.bf16.msra.mxu1 %v11351_v39  ;;  %v5013_v32 = vmul.f32 0.5, %v14069_v7  ;;  %v5014_v26 = vmul.f32 0.5, %v14071_v15  ;;  %v11359_v22 = vld [vmem:[%s15868_s11 + $0x38] sm:$0xff]  }
 0x73f   : > { %15993 = vst [vmem:[#allocation12_spill] sm:$0xff] %v14142_v50  ;;  %15994 = vst [vmem:[#allocation17_spill] sm:$0xff] %v14144_v20  ;;  %9892 = vmatprep.subr.bf16.mxu1 %v11353_v33  ;;  %v5015_v44 = vmul.f32 0.5, %v14076_v6  ;;  %v5895_v34 = vshrl.u32 %v11360_v30, 16  ;;  %v5897_v53 = vshll.u32 %v11360_v30, 16  ;;  %v5902_v2 = vshll.u32 %v11361_v38, 16 }
 0x740   : > { %15995 = vst [vmem:[#allocation13_spill] sm:$0xff] %v14146_v31  ;;  %10163 = vmatpush3.bf16.msra.mxu0 %v11363_v57  ;;  %11574 = vtanh.f32 %v5011_v45  ;;  %v5016_v28 = vmul.f32 0.5, %v14078_v40  ;;  %v5017_v46 = vmul.f32 0.5, %v14080_v5  ;;  %v5018_v54 = vmul.f32 0.5, %v14082_v35  ;;  %v11377_v38 = vld [vmem:[%s15868_s11 + $0x88] sm:$0xff]  }
 0x741   : > { %10164 = vmatprep.subr.bf16.mxu0 %v11365_v23  ;;  %11576 = vtanh.f32 %v5012_v55  ;;  %v5899_v51 = vrot.slane %v5897_v53, 1  ;;  %v5904_v19 = vrot.slane %v5902_v2, 1  ;;  %v5019_v60 = vmul.f32 0.5, %v14087_v52 }
 0x742   : > { %9893 = vmatpush3.bf16.msra.mxu1 %v11355_v49  ;;  %11578 = vtanh.f32 %v5013_v32  ;;  %v5020_v3 = vmul.f32 0.5, %v14089_v12  ;;  %v5021_v4 = vmul.f32 0.5, %v14091_v16  ;;  %v5022_v39 = vmul.f32 0.5, %v14093_v11 }
 0x743   : > { %9894 = vmatprep.subr.bf16.mxu1 %v11357_v9  ;;  %11580 = vtanh.f32 %v5014_v26  ;;  %v5900_v13 = vor.u32 %v5899_v51, %v5895_v34  ;;  %v5023_v33 = vmul.f32 0.5, %v14098_v1  ;;  %v5024_v57 = vmul.f32 0.5, %v14100_v37 }
 0x744   : > { %10165 = vmatpush3.bf16.msra.mxu0 %v11366_v29  ;;  %11582 = vtanh.f32 %v5015_v44  ;;  %v5025_v23 = vmul.f32 0.5, %v14102_v17  ;;  %v5026_v55 = vmul.f32 0.5, %v14104_v61  ;;  %v5027_v49 = vmul.f32 0.5, %v14109_v14 }
 0x745   : > { %10166 = vmatprep.subr.bf16.mxu0 %v11367_v47  ;;  %11584 = vtanh.f32 %v5016_v28  ;;  %v5905_v45 = vsel %vm2177_vm8, %v5900_v13, %v5904_v19  ;;  %v5028_v32 = vmul.f32 0.5, %v14111_v18  ;;  %v5029_v9 = vmul.f32 0.5, %v14113_v8 }
 0x746   : > { %9895 = vmatpush3.bf16.msra.mxu1 %v11359_v22  ;;  %11586 = vtanh.f32 %v5017_v46  ;;  %6390 = vmatprep.mubr.bf16.mxu1 %v5905_v45  ;;  %v5030_v26 = vmul.f32 0.5, %v14115_v24  ;;  %v5031_v44 = vmul.f32 0.5, %v14120_v41  ;;  %v14215_v29 = vmul.f32 0.5, %v14122_v10 }
 0x747   : > { %10460 = vmatprep.subr.bf16.mxu1 %v11364_v0  ;;  %11588 = vtanh.f32 %v5018_v54  ;;  %v14218_v34 = vmul.f32 0.5, %v14124_v21  ;;  %v14221_v2 = vmul.f32 0.5, %v14126_v43  ;;  %v14224_v47 = vmul.f32 0.5, %v14131_v27 }
 0x748   : > { %10167 = vmatpush3.bf16.msra.mxu0 %v11368_v63  ;;  %11590 = vtanh.f32 %v5019_v60  ;;  %v14227_v28 = vmul.f32 0.5, %v14133_v59  ;;  %v14233_v46 = vmul.f32 0.5, %v14135_v42  ;;  %v14236_v51 = vmul.f32 0.5, %v14137_v48 }
 0x749   : > { %6391 = vmatmul.mubr.bf16.vlgmr.msra.gmra.mrb[12].mxu1 %v11360_v30  ;;  %11592 = vtanh.f32 %v5020_v3  ;;  %v11386_v30 = vld [vmem:[%s15868_s11 + $0x90] sm:$0xff]   ;;  %v14239_v54 = vmul.f32 0.5, %v14142_v50  ;;  %v14242_v63 = vmul.f32 0.5, %v14144_v20  ;;  %v14245_v3 = vmul.f32 0.5, %v14146_v31 }
 0x74a   : > { %10461 = vmatpush3.bf16.msra.mxu1 %v11364_v0  ;;  %v11575_v53 = vpop.eup %11574  ;;  %11594 = vtanh.f32 %v5021_v4 }
 0x74b   : > { %10462 = vmatprep.subr.bf16.mxu1 %v11377_v38  ;;  %v11577_v22 = vpop.eup %11576  ;;  %11596 = vtanh.f32 %v5022_v39  ;;  %v5075_v19 = vmul.f32 0.5, %v11575_v53  ;;  %v14248_v39 = vmul.f32 0.5, %v14148_v58 }
 0x74c   : > { %v11579_v0 = vpop.eup %11578  ;;  %11598 = vtanh.f32 %v5023_v33  ;;  %v5076_v60 = vmul.f32 0.5, %v11577_v22 }
 0x74d   : > { %v11581_v13 = vpop.eup %11580  ;;  %11600 = vtanh.f32 %v5024_v57  ;;  %v5077_v4 = vmul.f32 0.5, %v11579_v0  ;;  %v5107_v45 = vadd.f32 0.5, %v5075_v19 }
 0x74e   : > { %10463 = vmatpush3.bf16.msra.mxu1 %v11377_v38  ;;  %v11583_v36 = vpop.eup %11582  ;;  %11602 = vtanh.f32 %v5025_v23  ;;  %v5078_v53 = vmul.f32 0.5, %v11581_v13  ;;  %v5108_v62 = vadd.f32 0.5, %v5076_v60  ;;  %v11395_v23 = vld [vmem:[%s15868_s11 + $0x98] sm:$0xff]  }
 0x74f   : > { %10464 = vmatprep.subr.bf16.mxu1 %v11386_v30  ;;  %v11585_v20 = vpop.eup %11584  ;;  %11604 = vtanh.f32 %v5026_v55  ;;  %v5079_v33 = vmul.f32 0.5, %v11583_v36  ;;  %v5109_v22 = vadd.f32 0.5, %v5077_v4  ;;  %v14251_v50 = vmul.f32 %v5107_v45, %v14065_v56 }
 0x750   : > { %v11587_v31 = vpop.eup %11586  ;;  %11606 = vtanh.f32 %v5027_v49  ;;  %v5080_v57 = vmul.f32 0.5, %v11585_v20  ;;  %v5110_v19 = vadd.f32 0.5, %v5078_v53  ;;  %v14254_v38 = vmul.f32 %v5108_v62, %v14067_v25 }
 0x751   : > { %v11589_v0 = vpop.eup %11588  ;;  %11608 = vtanh.f32 %v5028_v32  ;;  %v5081_v60 = vmul.f32 0.5, %v11587_v31  ;;  %v5111_v55 = vadd.f32 0.5, %v5079_v33  ;;  %v14260_v36 = vmul.f32 %v5109_v22, %v14069_v7 }
 0x752   : > { %10465 = vmatpush3.bf16.msra.mxu1 %v11386_v30  ;;  %v11591_v56 = vpop.eup %11590  ;;  %11610 = vtanh.f32 %v5029_v9  ;;  %v5082_v49 = vmul.f32 0.5, %v11589_v0  ;;  %v5112_v20 = vadd.f32 0.5, %v5080_v57  ;;  %v14263_v13 = vmul.f32 %v5110_v19, %v14071_v15 }
 0x753   : > { %10466 = vmatprep.subr.bf16.mxu1 %v11395_v23  ;;  %v11593_v62 = vpop.eup %11592  ;;  %11612 = vtanh.f32 %v5030_v26  ;;  %v5083_v25 = vmul.f32 0.5, %v11591_v56  ;;  %v5113_v4 = vadd.f32 0.5, %v5081_v60  ;;  %v14266_v32 = vmul.f32 %v5111_v55, %v14076_v6 }
 0x754   : > { %v11595_v31 = vpop.eup %11594  ;;  %11614 = vtanh.f32 %v5031_v44  ;;  %v5084_v7 = vmul.f32 0.5, %v11593_v62  ;;  %v5114_v45 = vadd.f32 0.5, %v5082_v49  ;;  %v14269_v30 = vmul.f32 %v5112_v20, %v14078_v40 }
 0x755   : > { %v11597_v9 = vpop.eup %11596  ;;  %11616 = vtanh.f32 %v14215_v29  ;;  %v5085_v15 = vmul.f32 0.5, %v11595_v31  ;;  %v5115_v53 = vadd.f32 0.5, %v5083_v25  ;;  %v14273_v33 = vmul.f32 %v5113_v4, %v14080_v5 }
 0x756   : > { %10467 = vmatpush3.bf16.msra.mxu1 %v11395_v23  ;;  %v11599_v26 = vpop.eup %11598  ;;  %11618 = vtanh.f32 %v14218_v34  ;;  %v5086_v6 = vmul.f32 0.5, %v11597_v9  ;;  %v5116_v22 = vadd.f32 0.5, %v5084_v7  ;;  %v14277_v44 = vmul.f32 %v5114_v45, %v14082_v35 }
 0x757   : > { %v11601_v57 = vpop.eup %11600  ;;  %11620 = vtanh.f32 %v14221_v2  ;;  %v5087_v40 = vmul.f32 0.5, %v11599_v26  ;;  %v5117_v19 = vadd.f32 0.5, %v5085_v15  ;;  %v14281_v29 = vmul.f32 %v5115_v53, %v14087_v52 }
 0x758   : > { %v11603_v0 = vpop.eup %11602  ;;  %11622 = vtanh.f32 %v14224_v47  ;;  %v5088_v5 = vmul.f32 0.5, %v11601_v57  ;;  %v5118_v23 = vadd.f32 0.5, %v5086_v6  ;;  %v14285_v34 = vmul.f32 %v5116_v22, %v14089_v12 }
 0x759   : > { %v11605_v60 = vpop.eup %11604  ;;  %11624 = vtanh.f32 %v14227_v28  ;;  %v5089_v35 = vmul.f32 0.5, %v11603_v0  ;;  %v5119_v55 = vadd.f32 0.5, %v5087_v40  ;;  %v14289_v2 = vmul.f32 %v5117_v19, %v14091_v16 }
 0x75a   : > { %v11607_v56 = vpop.eup %11606  ;;  %11626 = vtanh.f32 %v14233_v46  ;;  %v5090_v52 = vmul.f32 0.5, %v11605_v60  ;;  %v5120_v49 = vadd.f32 0.5, %v5088_v5  ;;  %v14293_v47 = vmul.f32 %v5118_v23, %v14093_v11 }
 0x75b   : > { %v11609_v20 = vpop.eup %11608  ;;  %11628 = vtanh.f32 %v14236_v51  ;;  %v5091_v12 = vmul.f32 0.5, %v11607_v56  ;;  %v5121_v62 = vadd.f32 0.5, %v5089_v35  ;;  %v14297_v28 = vmul.f32 %v5119_v55, %v14098_v1 }
 0x75c   : > { %v11611_v25 = vpop.eup %11610  ;;  %11630 = vtanh.f32 %v14239_v54  ;;  %v5092_v16 = vmul.f32 0.5, %v11609_v20  ;;  %v5122_v4 = vadd.f32 0.5, %v5090_v52  ;;  %v14301_v46 = vmul.f32 %v5120_v49, %v14100_v37 }
 0x75d   : > { %v11613_v31 = vpop.eup %11612  ;;  %11632 = vtanh.f32 %v14242_v63  ;;  %v5093_v11 = vmul.f32 0.5, %v11611_v25  ;;  %v5123_v7 = vadd.f32 0.5, %v5091_v12  ;;  %v14305_v51 = vmul.f32 %v5121_v62, %v14102_v17 }
 0x75e   : > { %v11615_v45 = vpop.eup %11614  ;;  %11634 = vtanh.f32 %v14245_v3  ;;  %v5094_v1 = vmul.f32 0.5, %v11613_v31  ;;  %v5124_v9 = vadd.f32 0.5, %v5092_v16  ;;  %v14309_v54 = vmul.f32 %v5122_v4, %v14104_v61  ;;  %v11404_v61 = vld [vmem:[%s15868_s11 + $0xa0] sm:$0xff]  }
 0x75f   : > { %v11617_v15 = vpop.eup %11616  ;;  %11636 = vtanh.f32 %v14248_v39  ;;  %v5095_v37 = vmul.f32 0.5, %v11615_v45  ;;  %v5125_v53 = vadd.f32 0.5, %v5093_v11  ;;  %v14313_v63 = vmul.f32 %v5123_v7, %v14109_v14  ;;  %10468 = vmatprep.subr.bf16.mxu1 %v11404_v61 }
 0x760   : > { %v11619_v26 = vpop.eup %11618  ;;  %v5096_v6 = vmul.f32 0.5, %v11617_v15  ;;  %v5126_v17 = vadd.f32 0.5, %v5094_v1  ;;  %v14316_v22 = vmul.f32 %v5124_v9, %v14111_v18  ;;  %v14320_v3 = vpack.c.bf16 %v14251_v50, %v14251_v50  ;;  %10469 = vmatpush3.bf16.msra.mxu1 %v11404_v61 }
 0x761   : > { %v11621_v39 = vpop.eup %11620  ;;  %v5097_v57 = vmul.f32 0.5, %v11619_v26  ;;  %v5127_v40 = vadd.f32 0.5, %v5095_v37  ;;  %v5157_v14 = vmul.f32 %v5125_v53, %v14113_v8  ;;  %v14328_v19 = vpack.c.bf16 %v14254_v38, %v14254_v38 }
 0x762   : > { %v11623_v0 = vpop.eup %11622  ;;  %v5098_v18 = vmul.f32 0.5, %v11621_v39  ;;  %v5128_v5 = vadd.f32 0.5, %v5096_v6  ;;  %v5158_v23 = vmul.f32 %v5126_v17, %v14115_v24  ;;  %v14333_v50 = vpack.c.bf16 %v14260_v36, %v14260_v36 }
 0x763   : > { %v11625_v60 = vpop.eup %11624  ;;  %v5099_v35 = vmul.f32 0.5, %v11623_v0  ;;  %v5129_v55 = vadd.f32 0.5, %v5097_v57  ;;  %v5159_v56 = vmul.f32 %v5127_v40, %v14120_v41  ;;  %v14338_v8 = vpack.c.bf16 %v14263_v13, %v14263_v13  ;;  %v15997_v40 = vld [vmem:[#allocation17_spill] sm:$0xff] }
 0x764   : > { %v11627_v38 = vpop.eup %11626  ;;  %v5100_v52 = vmul.f32 0.5, %v11625_v60  ;;  %v5130_v49 = vadd.f32 0.5, %v5098_v18  ;;  %v5160_v24 = vmul.f32 %v5128_v5, %v14122_v10  ;;  %v14343_v36 = vpack.c.bf16 %v14266_v32, %v14266_v32  ;;  %v15998_v18 = vld [vmem:[#allocation13_spill] sm:$0xff] }
 0x765   : > { %v11629_v20 = vpop.eup %11628  ;;  %v5101_v12 = vmul.f32 0.5, %v11627_v38  ;;  %v5131_v62 = vadd.f32 0.5, %v5099_v35  ;;  %v5161_v25 = vmul.f32 %v5129_v55, %v14124_v21  ;;  %v14348_v41 = vpack.c.bf16 %v14269_v30, %v14269_v30 }
 0x766   : > { %v11631_v13 = vpop.eup %11630  ;;  %v5102_v16 = vmul.f32 0.5, %v11629_v20  ;;  %v5132_v4 = vadd.f32 0.5, %v5100_v52  ;;  %v5162_v31 = vmul.f32 %v5130_v49, %v14126_v43  ;;  %v14353_v10 = vpack.c.bf16 %v14273_v33, %v14273_v33 }
 0x767   : > { %v11633_v32 = vpop.eup %11632  ;;  %v5103_v11 = vmul.f32 0.5, %v11631_v13  ;;  %v5133_v7 = vadd.f32 0.5, %v5101_v12  ;;  %v5163_v45 = vmul.f32 %v5131_v62, %v14131_v27  ;;  %v14358_v21 = vpack.c.bf16 %v14277_v44, %v14277_v44 }
 0x768   : > { %v11635_v30 = vpop.eup %11634  ;;  %v5104_v1 = vmul.f32 0.5, %v11633_v32  ;;  %v5134_v9 = vadd.f32 0.5, %v5102_v16  ;;  %v5164_v15 = vmul.f32 %v5132_v4, %v14133_v59  ;;  %v14363_v43 = vpack.c.bf16 %v14281_v29, %v14281_v29  ;;  %v15996_v29 = vld [vmem:[#allocation12_spill] sm:$0xff] }
 0x769   : > { %v11637_v33 = vpop.eup %11636  ;;  %v5105_v37 = vmul.f32 0.5, %v11635_v30  ;;  %v5135_v53 = vadd.f32 0.5, %v5103_v11  ;;  %v5165_v26 = vmul.f32 %v5133_v7, %v14135_v42  ;;  %v14368_v27 = vpack.c.bf16 %v14285_v34, %v14285_v34 }
 0x76a   : > { %v5106_v44 = vmul.f32 0.5, %v11637_v33  ;;  %v5136_v6 = vadd.f32 0.5, %v5104_v1  ;;  %v5166_v17 = vmul.f32 %v5134_v9, %v14137_v48  ;;  %v14373_v59 = vpack.c.bf16 %v14289_v2, %v14289_v2 }
 0x76b   : > { %v5137_v61 = vadd.f32 0.5, %v5105_v37  ;;  %v5167_v39 = vmul.f32 %v5135_v53, %v15996_v29  ;;  %v14378_v57 = vpack.c.bf16 %v14293_v47, %v14293_v47  ;;  %v14382_v42 = vpack.c.bf16 %v14297_v28, %v14297_v28 }
 0x76c   : > { %v5138_v34 = vadd.f32 0.5, %v5106_v44  ;;  %v5168_v0 = vmul.f32 %v5136_v6, %v15997_v40  ;;  %v14387_v48 = vpack.c.bf16 %v14301_v46, %v14301_v46  ;;  %v14391_v2 = vpack.c.bf16 %v14305_v51, %v14305_v51  ;;  %v5694_v6 = vld [vmem:[#allocation3 + $0xc0] sm:$0xf] }
 0x76d   : > { %v5169_v5 = vmul.f32 %v5137_v61, %v15998_v18  ;;  %v14396_v47 = vpack.c.bf16 %v14309_v54, %v14309_v54  ;;  %v14400_v28 = vpack.c.bf16 %v14313_v63, %v14313_v63  ;;  %v14404_v60 = vpack.c.bf16 %v14316_v22, %v14316_v22  ;;  %v5638_v18 = vld [vmem:[#allocation3 + $0x60] sm:$0xf] }
 0x76e   : > { %v5170_v46 = vmul.f32 %v5138_v34, %v14148_v58  ;;  %v14407_v35 = vpack.c.bf16 %v5157_v14, %v5157_v14  ;;  %v14409_v51 = vpack.c.bf16 %v5158_v23, %v5158_v23  ;;  %v14411_v55 = vpack.c.bf16 %v5159_v56, %v5159_v56  ;;  %v11413_v14 = vld [vmem:[%s15868_s11 + $0xa8] sm:$0xff]  }
 0x76f   : > { %v14413_v38 = vpack.c.bf16 %v5160_v24, %v5160_v24  ;;  %v14415_v54 = vpack.c.bf16 %v5161_v25, %v5161_v25  ;;  %v14417_v52 = vpack.c.bf16 %v5162_v31, %v5162_v31  ;;  %v14419_v63 = vpack.c.bf16 %v5163_v45, %v5163_v45  ;;  %10470 = vmatprep.subr.bf16.mxu1 %v11413_v14 }
 0x770   : > { %v14421_v49 = vpack.c.bf16 %v5164_v15, %v5164_v15  ;;  %v14423_v22 = vpack.c.bf16 %v5165_v26, %v5165_v26  ;;  %v14425_v20 = vpack.c.bf16 %v5166_v17, %v5166_v17  ;;  %v14427_v58 = vpack.c.bf16 %v5167_v39, %v5167_v39  ;;  %10471 = vmatpush3.bf16.msra.mxu1 %v11413_v14  ;;  %v5642_v26 = vld [vmem:[#allocation3 + $0x68] sm:$0x1] }
 0x771   : > { %v14432_v23 = vpack.c.bf16 %v5168_v0, %v5168_v0  ;;  %v14434_v56 = vpack.c.bf16 %v5169_v5, %v5169_v5  ;;  %v14436_v24 = vpack.c.bf16 %v5170_v46, %v5170_v46  ;;  %v5268_v12 = vshrl.u32 %v14320_v3, 16 }
 0x772   : > { %v5271_v62 = vshll.u32 %v14320_v3, 16  ;;  %v5276_v25 = vshrl.u32 %v14328_v19, 16  ;;  %v5279_v13 = vshll.u32 %v14328_v19, 16  ;;  %v5285_v16 = vshrl.u32 %v14333_v50, 16 }
 0x773   : > { %v5270_v4 = vrot.slane %v5268_v12, 7  ;;  %v5288_v31 = vshll.u32 %v14333_v50, 16  ;;  %v5293_v32 = vshrl.u32 %v14338_v8, 16  ;;  %v5296_v11 = vshll.u32 %v14338_v8, 16 }
 0x774   : > { %v14446_v7 = vrot.slane %v5276_v25, 7  ;;  %v5287_v45 = vrot.slane %v5285_v16, 7  ;;  %v5302_v3 = vshrl.u32 %v14343_v36, 16  ;;  %v5305_v30 = vshll.u32 %v14343_v36, 16 }
 0x775   : > { %v14450_v1 = vor.u32 %v5271_v62, %v5270_v4  ;;  %v5274_v19 = vrot.slane %v5270_v4, 4  ;;  %v14452_v9 = vrot.slane %v5293_v32, 7  ;;  %v5310_v15 = vshrl.u32 %v14348_v41, 16 }
 0x776   : > { %v5281_v50 = vor.u32 %v5279_v13, %v14446_v7  ;;  %v5283_v33 = vrot.slane %v14446_v7, 4  ;;  %v14457_v8 = vor.u32 %v5288_v31, %v5287_v45  ;;  %v5291_v37 = vrot.slane %v5287_v45, 4 }
 0x777   : > { %v5298_v53 = vor.u32 %v5296_v11, %v14452_v9  ;;  %v5304_v44 = vrot.slane %v5302_v3, 7  ;;  %v14461_v36 = vrot.slane %v5310_v15, 7  ;;  %v5313_v61 = vshll.u32 %v14348_v41, 16 }
 0x778   : > { %v5282_v17 = vsel %vm12820_vm12, %v5274_v19, %v5281_v50  ;;  %v5319_v29 = vshrl.u32 %v14353_v10, 16  ;;  %v5322_v39 = vshll.u32 %v14353_v10, 16  ;;  %v5327_v14 = vshrl.u32 %v14358_v21, 16 }
 0x779   : > { %v5299_v34 = vsel %vm12820_vm12, %v5291_v37, %v5298_v53  ;;  %v14470_v40 = vor.u32 %v5305_v30, %v5304_v44  ;;  %v5308_v0 = vrot.slane %v5304_v44, 4  ;;  %5592 = vst [vmem:[#allocation3 + $0x10] sm:$0xf] %v5282_v17  ;;  %v5315_v5 = vor.u32 %v5313_v61, %v14461_v36  ;;  %v11422_v61 = vld [vmem:[%s15868_s11 + $0xb0] sm:$0xff]  }
 0x77a   : > { %v5321_v46 = vrot.slane %v5319_v29, 7  ;;  %v5330_v41 = vshll.u32 %v14358_v21, 16  ;;  %5599 = vst [vmem:[#allocation3 + $0x1c] sm:$0xf] %v5299_v34  ;;  %v5336_v12 = vshrl.u32 %v14363_v43, 16  ;;  %v5339_v10 = vshll.u32 %v14363_v43, 16  ;;  %10472 = vmatprep.subr.bf16.mxu1 %v11422_v61 }
 0x77b   : > { %v5344_v62 = vshrl.u32 %v14368_v27, 16  ;;  %v5347_v25 = vshll.u32 %v14368_v27, 16  ;;  %v5316_v13 = vsel %vm12820_vm12, %v5308_v0, %v5315_v5  ;;  %v14484_v31 = vrot.slane %v5327_v14, 7  ;;  %10473 = vmatpush3.bf16.msra.mxu1 %v11422_v61  ;;  %v5635_v27 = vld [vmem:[#allocation3 + $0x5c] sm:$0x1] }
 0x77c   : > { %v14482_v16 = vor.u32 %v5322_v39, %v5321_v46  ;;  %v5325_v4 = vrot.slane %v5321_v46, 4  ;;  %v5338_v32 = vrot.slane %v5336_v12, 7  ;;  %v5353_v21 = vshrl.u32 %v14373_v59, 16  ;;  %5606 = vst [vmem:[#allocation3 + $0x28] sm:$0xf] %v5316_v13 }
 0x77d   : > { %v14486_v11 = vrot.slane %v5344_v62, 7  ;;  %v5356_v45 = vshll.u32 %v14373_v59, 16  ;;  %v5332_v43 = vor.u32 %v5330_v41, %v14484_v31  ;;  %v5361_v3 = vshrl.u32 %v14378_v57, 16 }
 0x77e   : > { %v5364_v30 = vshll.u32 %v14378_v57, 16  ;;  %v14494_v19 = vor.u32 %v5339_v10, %v5338_v32  ;;  %v5342_v15 = vrot.slane %v5338_v32, 4  ;;  %v5355_v59 = vrot.slane %v5353_v21, 7 }
 0x77f   : > { %v5349_v50 = vor.u32 %v5347_v25, %v14486_v11  ;;  %v5333_v53 = vsel %vm12820_vm12, %v5325_v4, %v5332_v43  ;;  %v14500_v44 = vrot.slane %v5361_v3, 7  ;;  %v5370_v17 = vshrl.u32 %v14382_v42, 16 }
 0x780   : > { %v5373_v29 = vshll.u32 %v14382_v42, 16  ;;  %v5378_v39 = vshrl.u32 %v14387_v48, 16  ;;  %v5381_v34 = vshll.u32 %v14387_v48, 16  ;;  %5613 = vst [vmem:[#allocation3 + $0x34] sm:$0xf] %v5333_v53  ;;  %v14511_v0 = vor.u32 %v5356_v45, %v5355_v59 }
 0x781   : > { %v5350_v57 = vsel %vm12820_vm12, %v5342_v15, %v5349_v50  ;;  %v5359_v5 = vrot.slane %v5355_v59, 4  ;;  %v5366_v46 = vor.u32 %v5364_v30, %v14500_v44  ;;  %v5372_v41 = vrot.slane %v5370_v17, 7  ;;  %v5628_v45 = vld [vmem:[#allocation3 + $0x50] sm:$0x1] }
 0x782   : > { %5620 = vst [vmem:[#allocation3 + $0x40] sm:$0xf] %v5350_v57  ;;  %v14515_v12 = vrot.slane %v5378_v39, 7  ;;  %v5387_v10 = vshrl.u32 %v14391_v2, 16  ;;  %v5390_v42 = vshll.u32 %v14391_v2, 16  ;;  %v5395_v62 = vshrl.u32 %v14396_v47, 16 }
 0x783   : > { %v5367_v48 = vsel %vm12820_vm12, %v5359_v5, %v5366_v46  ;;  %v5398_v25 = vshll.u32 %v14396_v47, 16  ;;  %v5404_v13 = vshrl.u32 %v14400_v28, 16  ;;  %v14524_v4 = vor.u32 %v5373_v29, %v5372_v41  ;;  %v5624_v57 = vld [vmem:[#allocation3 + $0x48] sm:$0xf] }
 0x784   : > { %v5376_v32 = vrot.slane %v5372_v41, 4  ;;  %v5383_v21 = vor.u32 %v5381_v34, %v14515_v12  ;;  %5627 = vst [vmem:[#allocation3 + $0x4c] sm:$0xf] %v5367_v48  ;;  %v5389_v43 = vrot.slane %v5387_v10, 7  ;;  %v14528_v2 = vrot.slane %v5395_v62, 7 }
 0x785   : > { %v5406_v3 = vrot.slane %v5404_v13, 7  ;;  %v5407_v30 = vshll.u32 %v14400_v28, 16  ;;  %v5412_v47 = vshrl.u32 %v14404_v60, 16  ;;  %v5415_v50 = vshll.u32 %v14404_v60, 16 }
 0x786   : > { %v5384_v15 = vsel %vm12820_vm12, %v5376_v32, %v5383_v21  ;;  %v5421_v53 = vshrl.u32 %v14407_v35, 16  ;;  %v14536_v59 = vor.u32 %v5390_v42, %v5389_v43  ;;  %v5393_v17 = vrot.slane %v5389_v43, 4 }
 0x787   : > { %v5400_v61 = vor.u32 %v5398_v25, %v14528_v2  ;;  %5634 = vst [vmem:[#allocation3 + $0x58] sm:$0xf] %v5384_v15  ;;  %v14540_v29 = vor.u32 %v5407_v30, %v5406_v3  ;;  %v5410_v28 = vrot.slane %v5406_v3, 4  ;;  %v14542_v39 = vrot.slane %v5412_v47, 7 }
 0x788   : > { %v5423_v34 = vrot.slane %v5421_v53, 7  ;;  %v5424_v60 = vshll.u32 %v14407_v35, 16  ;;  %v5429_v46 = vshrl.u32 %v14409_v51, 16  ;;  %v5432_v41 = vshll.u32 %v14409_v51, 16 }
 0x789   : > { %v5401_v5 = vsel %vm12820_vm12, %v5393_v17, %v5400_v61  ;;  %v5417_v10 = vor.u32 %v5415_v50, %v14542_v39  ;;  %v5438_v62 = vshrl.u32 %v14411_v55, 16  ;;  %v5441_v32 = vshll.u32 %v14411_v55, 16 }
 0x78a   : > { %v5427_v48 = vrot.slane %v5423_v34, 4  ;;  %5641 = vst [vmem:[#allocation3 + $0x64] sm:$0xf] %v5401_v5  ;;  %v14552_v25 = vor.u32 %v5424_v60, %v5423_v34  ;;  %v14554_v13 = vrot.slane %v5429_v46, 7  ;;  %v5446_v35 = vshrl.u32 %v14413_v38, 16 }
 0x78b   : > { %v5418_v21 = vsel %vm12820_vm12, %v5410_v28, %v5417_v10  ;;  %v5440_v51 = vrot.slane %v5438_v62, 7  ;;  %v5449_v43 = vshll.u32 %v14413_v38, 16  ;;  %v5455_v3 = vshrl.u32 %v14415_v54, 16 }
 0x78c   : > { %v5434_v30 = vor.u32 %v5432_v41, %v14554_v13  ;;  %v14564_v47 = vrot.slane %v5446_v35, 7  ;;  %v5458_v50 = vshll.u32 %v14415_v54, 16  ;;  %5648 = vst [vmem:[#allocation3 + $0x70] sm:$0xf] %v5418_v21  ;;  %v5463_v61 = vshrl.u32 %v14417_v52, 16  ;;  %v11431_v54 = vld [vmem:[%s15868_s11 + $0xb8] sm:$0xff]  }
 0x78d   : > { %v14567_v55 = vor.u32 %v5441_v32, %v5440_v51  ;;  %v5444_v53 = vrot.slane %v5440_v51, 4  ;;  %v5457_v17 = vrot.slane %v5455_v3, 7  ;;  %v5466_v5 = vshll.u32 %v14417_v52, 16  ;;  %10474 = vmatprep.subr.bf16.mxu1 %v11431_v54 }
 0x78e   : > { %v5435_v38 = vsel %vm12820_vm12, %v5427_v48, %v5434_v30  ;;  %v5451_v28 = vor.u32 %v5449_v43, %v14564_v47  ;;  %v14580_v41 = vrot.slane %v5463_v61, 7  ;;  %v5472_v10 = vshrl.u32 %v14419_v63, 16  ;;  %10475 = vmatpush3.bf16.msra.mxu1 %v11431_v54 }
 0x78f   : > { %v14578_v60 = vor.u32 %v5458_v50, %v5457_v17  ;;  %v5461_v46 = vrot.slane %v5457_v17, 4  ;;  %5655 = vst [vmem:[#allocation3 + $0x7c] sm:$0xf] %v5435_v38  ;;  %v5475_v62 = vshll.u32 %v14419_v63, 16  ;;  %v5480_v32 = vshrl.u32 %v14421_v49, 16 }
 0x790   : > { %v5452_v48 = vsel %vm12820_vm12, %v5444_v53, %v5451_v28  ;;  %v5483_v52 = vshll.u32 %v14421_v49, 16  ;;  %v5468_v35 = vor.u32 %v5466_v5, %v14580_v41  ;;  %v5474_v51 = vrot.slane %v5472_v10, 7  ;;  %v5593_v10 = vld [vmem:[#allocation3 + $0x14] sm:$0x1] }
 0x791   : > { %v5489_v43 = vshrl.u32 %v14423_v22, 16  ;;  %5662 = vst [vmem:[#allocation3 + $0x88] sm:$0xf] %v5452_v48  ;;  %v14591_v3 = vrot.slane %v5480_v32, 7  ;;  %v5492_v30 = vshll.u32 %v14423_v22, 16  ;;  %v5497_v63 = vshrl.u32 %v14425_v20, 16 }
 0x792   : > { %v5500_v50 = vshll.u32 %v14425_v20, 16  ;;  %v5469_v49 = vsel %vm12820_vm12, %v5461_v46, %v5468_v35  ;;  %v14598_v53 = vor.u32 %v5475_v62, %v5474_v51  ;;  %v5478_v17 = vrot.slane %v5474_v51, 4  ;;  %v5589_v22 = vld [vmem:[#allocation3 + $0xc] sm:$0xf]  ;;  %v5596_v48 = vld [vmem:[#allocation3 + $0x18] sm:$0xf] }
 0x793   : > { %v5491_v61 = vrot.slane %v5489_v43, 7  ;;  %v5485_v38 = vor.u32 %v5483_v52, %v14591_v3  ;;  %v14602_v5 = vrot.slane %v5497_v63, 7  ;;  %v5506_v54 = vshrl.u32 %v14427_v58, 16  ;;  %5669 = vst [vmem:[#allocation3 + $0x94] sm:$0xf] %v5469_v49 }
 0x794   : > { %v5509_v46 = vshll.u32 %v14427_v58, 16  ;;  %v5514_v62 = vshrl.u32 %v14432_v23, 16  ;;  %v5600_v35 = vld [vmem:[#allocation3 + $0x20] sm:$0x1]  ;;  %v5517_v28 = vshll.u32 %v14432_v23, 16  ;;  %v5523_v21 = vshrl.u32 %v14434_v56, 16 }
 0x795   : > { %16000 = vst [vmem:[#allocation11_spill] sm:$0xff] %v14602_v5  ;;  %v14605_v20 = vor.u32 %v5492_v30, %v5491_v61  ;;  %v5495_v32 = vrot.slane %v5491_v61, 4  ;;  %v5486_v52 = vsel %vm12820_vm12, %v5478_v17, %v5485_v38  ;;  %v5502_v51 = vor.u32 %v5500_v50, %v14602_v5  ;;  %v5603_v30 = vld [vmem:[#allocation3 + $0x24] sm:$0xf]  ;;  %v5607_v61 = vld [vmem:[#allocation3 + $0x2c] sm:$0x1] }
 0x796   : > { %v5508_v63 = vrot.slane %v5506_v54, 7  ;;  %v14619_v58 = vrot.slane %v5514_v62, 7  ;;  %v5526_v17 = vshll.u32 %v14434_v56, 16  ;;  %5676 = vst [vmem:[#allocation3 + $0xa0] sm:$0xf] %v5486_v52  ;;  %v5531_v62 = vshrl.u32 %v14436_v24, 16 }
 0x797   : > { %16001 = vst [vmem:[#allocation19_spill] sm:$0xff] %v14605_v20  ;;  %v5610_v50 = vld [vmem:[#allocation3 + $0x30] sm:$0xf]  ;;  %v5614_v38 = vld [vmem:[#allocation3 + $0x38] sm:$0x1]  ;;  %v5503_v34 = vsel %vm12820_vm12, %v5495_v32, %v5502_v51  ;;  %v5525_v52 = vrot.slane %v5523_v21, 7  ;;  %v5590_v51 = vsel %vm14615_vm2, %v14450_v1, %v5589_v22 }
 0x798   : > { %16004 = vst [vmem:[#allocation14_spill] sm:$0xff] %v14619_v58  ;;  %v5617_v54 = vld [vmem:[#allocation3 + $0x3c] sm:$0xf]  ;;  %v5621_v43 = vld [vmem:[#allocation3 + $0x44] sm:$0x1]  ;;  %v14626_v15 = vor.u32 %v5509_v46, %v5508_v63  ;;  %v5512_v42 = vrot.slane %v5508_v63, 4  ;;  %v5519_v14 = vor.u32 %v5517_v28, %v14619_v58  ;;  %v5594_v28 = vsel %vm13530_vm15, %v5283_v33, %v5593_v10 }
 0x799   : > { %v5631_v23 = vld [vmem:[#allocation3 + $0x54] sm:$0xf]  ;;  %v5534_v37 = vshll.u32 %v14436_v24, 16  ;;  %5683 = vst [vmem:[#allocation3 + $0xac] sm:$0xf] %v5503_v34  ;;  %v14632_v46 = vrot.slane %v5531_v62, 7  ;;  %v5597_v24 = vsel %vm14615_vm2, %v14457_v8, %v5596_v48 }
 0x79a   : > { %16005 = vst [vmem:[#allocation23_spill] sm:$0xff] %v14626_v15  ;;  %v5645_v32 = vld [vmem:[#allocation3 + $0x6c] sm:$0xf]  ;;  %v5649_v34 = vld [vmem:[#allocation3 + $0x74] sm:$0x1]  ;;  %v5520_v62 = vsel %vm12820_vm12, %v5512_v42, %v5519_v14  ;;  %v14646_v15 = vor.u32 %v5526_v17, %v5525_v52  ;;  %v5529_v5 = vrot.slane %v5525_v52, 4  ;;  %v5604_v14 = vsel %vm14615_vm2, %v14470_v40, %v5603_v30 }
 0x79b   : > { %v5652_v21 = vld [vmem:[#allocation3 + $0x78] sm:$0xf]  ;;  %v5656_v56 = vld [vmem:[#allocation3 + $0x80] sm:$0x1]  ;;  %v5659_v58 = vld [vmem:[#allocation3 + $0x84] sm:$0xf]  ;;  %v5536_v48 = vor.u32 %v5534_v37, %v14632_v46  ;;  %v5611_v37 = vsel %vm14615_vm2, %v14482_v16, %v5610_v50 }
 0x79c   : > { %5591 = vst [vmem:[#allocation3 + $0xc] sm:$0xf] %v5590_v51  ;;  %5595 = vst [vmem:[#allocation3 + $0x14] sm:$0x1] %v5594_v28  ;;  %v16007_v7 = vrot.slane %v14452_v9, 4  ;;  %v5538_v20 = vrot.slane %v14632_v46, 4 }
 0x79d   : > { %5598 = vst [vmem:[#allocation3 + $0x18] sm:$0xf] %v5597_v24  ;;  %v5663_v33 = vld [vmem:[#allocation3 + $0x8c] sm:$0x1]  ;;  %v5666_v8 = vld [vmem:[#allocation3 + $0x90] sm:$0xf]  ;;  %v5537_v16 = vsel %vm12820_vm12, %v5529_v5, %v5536_v48 }
 0x79e   : > { %v5601_v1 = vsel %vm13530_vm15, %v16007_v7, %v5600_v35  ;;  %v5670_v22 = vld [vmem:[#allocation3 + $0x98] sm:$0x1]  ;;  %v5673_v10 = vld [vmem:[#allocation3 + $0x9c] sm:$0xf]  ;;  %v16008_v42 = vrot.slane %v14461_v36, 4  ;;  %v16009_v28 = vrot.slane %v14484_v31, 4  ;;  %v5618_v36 = vsel %vm14615_vm2, %v14494_v19, %v5617_v54 }
 0x79f   : > { %5602 = vst [vmem:[#allocation3 + $0x20] sm:$0x1] %v5601_v1  ;;  %5690 = vst [vmem:[#allocation3 + $0xb8] sm:$0xf] %v5520_v62  ;;  %v5677_v35 = vld [vmem:[#allocation3 + $0xa4] sm:$0x1]  ;;  %v5625_v31 = vsel %vm14615_vm2, %v14511_v0, %v5624_v57  ;;  %v5646_v57 = vsel %vm14615_vm2, %v14540_v29, %v5645_v32  ;;  %v5695_v1 = vsel %vm14615_vm2, %v14646_v15, %v5694_v6 }
 0x7a0   : > { %v5608_v9 = vsel %vm13530_vm15, %v16008_v42, %v5607_v61  ;;  %v5680_v17 = vld [vmem:[#allocation3 + $0xa8] sm:$0xf]  ;;  %v5684_v52 = vld [vmem:[#allocation3 + $0xb0] sm:$0x1]  ;;  %v5687_v51 = vld [vmem:[#allocation3 + $0xb4] sm:$0xf]  ;;  %v5615_v40 = vsel %vm13530_vm15, %v16009_v28, %v5614_v38 }
 0x7a1   : > { %5605 = vst [vmem:[#allocation3 + $0x24] sm:$0xf] %v5604_v14  ;;  %5609 = vst [vmem:[#allocation3 + $0x2c] sm:$0x1] %v5608_v9  ;;  %v16010_v30 = vrot.slane %v14486_v11, 4  ;;  %v11436_v24 = vld [vmem:[%s15868_s11 + $0x100] sm:$0xff]  }
 0x7a2   : > { %5612 = vst [vmem:[#allocation3 + $0x30] sm:$0xf] %v5611_v37  ;;  %5616 = vst [vmem:[#allocation3 + $0x38] sm:$0x1] %v5615_v40  ;;  %v16011_v11 = vrot.slane %v14500_v44, 4  ;;  %v16012_v38 = vrot.slane %v14515_v12, 4  ;;  %v5639_v44 = vsel %vm14615_vm2, %v14536_v59, %v5638_v18  ;;  %10016 = vmatprep.subr.bf16.mxu1 %v11436_v24  ;;  %v5653_v12 = vsel %vm14615_vm2, %v14552_v25, %v5652_v21 }
 0x7a3   : > { %v5622_v61 = vsel %vm13530_vm15, %v16010_v30, %v5621_v43  ;;  %5619 = vst [vmem:[#allocation3 + $0x3c] sm:$0xf] %v5618_v36  ;;  %v5632_v43 = vsel %vm14615_vm2, %v14524_v4, %v5631_v23  ;;  %v5691_v50 = vld [vmem:[#allocation3 + $0xbc] sm:$0x1]  ;;  %v5698_v5 = vld [vmem:[#allocation3 + $0xc8] sm:$0x1]  ;;  %v5660_v59 = vsel %vm14615_vm2, %v14567_v55, %v5659_v58  ;;  %v5667_v25 = vsel %vm14615_vm2, %v14578_v60, %v5666_v8 }
 0x7a4   : > { %5623 = vst [vmem:[#allocation3 + $0x44] sm:$0x1] %v5622_v61  ;;  %v5629_v19 = vsel %vm13530_vm15, %v16011_v11, %v5628_v45  ;;  %5626 = vst [vmem:[#allocation3 + $0x48] sm:$0xf] %v5625_v31  ;;  %v5636_v0 = vsel %vm13530_vm15, %v16012_v38, %v5635_v27  ;;  %v16013_v45 = vrot.slane %v14528_v2, 4  ;;  %v16014_v27 = vrot.slane %v14542_v39, 4 }
 0x7a5   : > { %5630 = vst [vmem:[#allocation3 + $0x50] sm:$0x1] %v5629_v19  ;;  %5633 = vst [vmem:[#allocation3 + $0x54] sm:$0xf] %v5632_v43  ;;  %v16016_v29 = vrot.slane %v14564_v47, 4  ;;  %v5674_v55 = vsel %vm14615_vm2, %v14598_v53, %v5673_v10  ;;  %v16018_v47 = vrot.slane %v14591_v3, 4 }
 0x7a6   : > { %v5643_v4 = vsel %vm13530_vm15, %v16013_v45, %v5642_v26  ;;  %5697 = vst [vmem:[#allocation3 + $0xc4] sm:$0xf] %v5537_v16  ;;  %5637 = vst [vmem:[#allocation3 + $0x5c] sm:$0x1] %v5636_v0  ;;  %v5650_v18 = vsel %vm13530_vm15, %v16014_v27, %v5649_v34  ;;  %v16015_v26 = vrot.slane %v14554_v13, 4  ;;  %v16017_v13 = vrot.slane %v14580_v41, 4 }
 0x7a7   : > { %5640 = vst [vmem:[#allocation3 + $0x60] sm:$0xf] %v5639_v44  ;;  %5644 = vst [vmem:[#allocation3 + $0x68] sm:$0x1] %v5643_v4  ;;  %v5664_v39 = vsel %vm13530_vm15, %v16016_v29, %v5663_v33  ;;  %v5678_v58 = vsel %vm13530_vm15, %v16018_v47, %v5677_v35  ;;  %v16019_v23 = vld [vmem:[#allocation19_spill] sm:$0xff]  ;;  %v14746_v21 = vld [vmem:[#allocation3 + $0xc] sm:$0xff]   ;;  %v5699_v33 = vsel %vm13530_vm15, %v5538_v20, %v5698_v5 }
 0x7a8   : > { %5647 = vst [vmem:[#allocation3 + $0x6c] sm:$0xf] %v5646_v57  ;;  %v5657_v2 = vsel %vm13530_vm15, %v16015_v26, %v5656_v56  ;;  %5651 = vst [vmem:[#allocation3 + $0x74] sm:$0x1] %v5650_v18  ;;  %v5671_v54 = vsel %vm13530_vm15, %v16017_v13, %v5670_v22  ;;  %v5681_v60 = vsel %vm14615_vm2, %v16019_v23, %v5680_v17  ;;  %v16020_v41 = vld [vmem:[#allocation11_spill] sm:$0xff]  ;;  %v16023_v3 = vld [vmem:[#allocation14_spill] sm:$0xff] }
 0x7a9   : > { %5654 = vst [vmem:[#allocation3 + $0x78] sm:$0xf] %v5653_v12  ;;  %5658 = vst [vmem:[#allocation3 + $0x80] sm:$0x1] %v5657_v2  ;;  %v16021_v56 = vrot.slane %v16020_v41, 4  ;;  %v16022_v34 = vld [vmem:[#allocation23_spill] sm:$0xff] }
 0x7aa   : > { %5661 = vst [vmem:[#allocation3 + $0x84] sm:$0xf] %v5660_v59  ;;  %5665 = vst [vmem:[#allocation3 + $0x8c] sm:$0x1] %v5664_v39  ;;  %v5688_v53 = vsel %vm14615_vm2, %v16022_v34, %v5687_v51  ;;  %v16024_v62 = vrot.slane %v16023_v3, 4  ;;  %v11371_v22 = vld [vmem:[#allocation3 + $0x18] sm:$0xff]  }
 0x7ab   : > { %5668 = vst [vmem:[#allocation3 + $0x90] sm:$0xf] %v5667_v25  ;;  %5672 = vst [vmem:[#allocation3 + $0x98] sm:$0x1] %v5671_v54  ;;  %v5685_v32 = vsel %vm13530_vm15, %v16021_v56, %v5684_v52  ;;  %v5909_v10 = vshll.u32 %v14746_v21, 16  ;;  %v5907_v48 = vshrl.u32 %v14746_v21, 16 }
 0x7ac   : > { %5675 = vst [vmem:[#allocation3 + $0x9c] sm:$0xf] %v5674_v55  ;;  %5679 = vst [vmem:[#allocation3 + $0xa4] sm:$0x1] %v5678_v58  ;;  %v5692_v7 = vsel %vm13530_vm15, %v16024_v62, %v5691_v50  ;;  %v7925_v49 = vshll.u32 %v11371_v22, 16  ;;  %v14764_v9 = vld [vmem:[#allocation3 + $0x18] sm:$0xff]  }
 0x7ad   : > { %5682 = vst [vmem:[#allocation3 + $0xa8] sm:$0xf] %v5681_v60  ;;  %5686 = vst [vmem:[#allocation3 + $0xb0] sm:$0x1] %v5685_v32  ;;  %v5911_v15 = vrot.slane %v5909_v10, 1  ;;  %v7923_v46 = vshrl.u32 %v11371_v22, 16 }
 0x7ae   : > { %5689 = vst [vmem:[#allocation3 + $0xb4] sm:$0xf] %v5688_v53  ;;  %v14759_v8 = vld [vmem:[#allocation3 + $0x14] ss:$0 sps:$4 sm:$0x11]   ;;  %v7927_v63 = vrot.slane %v7925_v49, 1 }
 0x7af   : > { %5693 = vst [vmem:[#allocation3 + $0xbc] sm:$0x1] %v5692_v7  ;;  %5696 = vst [vmem:[#allocation3 + $0xc0] sm:$0xf] %v5695_v1  ;;  %v5914_v14 = vshll.u32 %v14759_v8, 16  ;;  %v5912_v17 = vor.u32 %v5911_v15, %v5907_v48  ;;  %v5921_v51 = vshll.u32 %v14764_v9, 16 }
 0x7b0   : > { %5700 = vst [vmem:[#allocation3 + $0xc8] sm:$0x1] %v5699_v33  ;;  %v11372_v42 = vld [vmem:[#allocation3 + $0x20] ss:$0 sps:$4 sm:$0x11]   ;;  %v11375_v37 = vld [vmem:[#allocation3 + $0x24] sm:$0xff]   ;;  %v7928_v40 = vor.u32 %v7927_v63, %v7923_v46 }
 0x7b1   : > { %v7930_v20 = vshll.u32 %v11372_v42, 16  ;;  %v14766_v35 = vld [vmem:[#allocation3 + $0x20] ss:$0 sps:$4 sm:$0x11]   ;;  %v5916_v52 = vrot.slane %v5914_v14, 1  ;;  %v14769_v28 = vld [vmem:[#allocation3 + $0x24] sm:$0xff]  }
 0x7b2   : > { %v5926_v30 = vshll.u32 %v14766_v35, 16  ;;  %v11376_v61 = vld [vmem:[#allocation3 + $0x2c] ss:$0 sps:$4 sm:$0x11]   ;;  %v14772_v24 = vld [vmem:[#allocation3 + $0x30] sm:$0xff]   ;;  %v5919_v31 = vshrl.u32 %v14764_v9, 16 }
 0x7b3   : > { %v7932_v36 = vrot.slane %v7930_v20, 1  ;;  %v5917_v16 = vsel %vm2177_vm8, %v5912_v17, %v5916_v52  ;;  %v5923_v11 = vrot.slane %v5921_v51, 1  ;;  %v7937_v19 = vshll.u32 %v11375_v37, 16  ;;  %v14777_v38 = vld [vmem:[#allocation3 + $0x30] sm:$0xff]   ;;  %v11384_v39 = vld [vmem:[#allocation3 + $0x3c] sm:$0xff]   ;;  %v14796_v7 = vld [vmem:[#allocation3 + $0x48] sm:$0xff]  }
 0x7b4   : > { %6398 = vmatprep.mubr.bf16.mxu1 %v5917_v16  ;;  %v5928_v50 = vrot.slane %v5926_v30, 1  ;;  %v7935_v6 = vshrl.u32 %v11375_v37, 16  ;;  %v7942_v5 = vshll.u32 %v11376_v61, 16  ;;  %v14780_v45 = vld [vmem:[#allocation3 + $0x2c] ss:$0 sps:$4 sm:$0x11]  }
 0x7b5   : > { %v7933_v43 = vsel %vm2177_vm8, %v7928_v40, %v7932_v36  ;;  %6399 = vmatmul.mubr.bf16.gmra.mrb[16].mxu1 %v14746_v21  ;;  %v5924_v0 = vor.u32 %v5923_v11, %v5919_v31  ;;  %v7939_v44 = vrot.slane %v7937_v19, 1  ;;  %v5931_v4 = vshrl.u32 %v14769_v28, 16  ;;  %v11381_v29 = vld [vmem:[#allocation3 + $0x38] ss:$0 sps:$4 sm:$0x11]   ;;  %v14794_v62 = vld [vmem:[#allocation3 + $0x3c] sm:$0xff]  }
 0x7b6   : > { %8419 = vmatprep.mubr.bf16.mxu0 %v7933_v43  ;;  %v5933_v57 = vshll.u32 %v14769_v28, 16  ;;  %v7944_v27 = vrot.slane %v7942_v5, 1  ;;  %v7949_v18 = vshll.u32 %v14772_v24, 16  ;;  %v5938_v59 = vshll.u32 %v14780_v45, 16  ;;  %v14807_v40 = vld [vmem:[#allocation3 + $0x48] sm:$0xff]   ;;  %v11393_v61 = vld [vmem:[#allocation3 + $0x54] sm:$0xff]  }
 0x7b7   : > { %8420 = vmatmul.mubr.bf16.vlgmr.msra.gmra.mrb[72].mxu0 %v11371_v22  ;;  %v5929_v12 = vsel %vm2177_vm8, %v5924_v0, %v5928_v50  ;;  %v7940_v26 = vor.u32 %v7939_v44, %v7935_v6  ;;  %v7947_v25 = vshrl.u32 %v14772_v24, 16  ;;  %v7954_v47 = vshll.u32 %v11381_v29, 16  ;;  %v14789_v58 = vld [vmem:[#allocation3 + $0x38] ss:$0 sps:$4 sm:$0x11]  }
 0x7b8   : > { %v5935_v2 = vrot.slane %v5933_v57, 1  ;;  %6406 = vmatprep.mubr.bf16.mxu1 %v5929_v12  ;;  %v7951_v13 = vrot.slane %v7949_v18, 1  ;;  %v5945_v60 = vshll.u32 %v14777_v38, 16  ;;  %v5940_v41 = vrot.slane %v5938_v59, 1  ;;  %v14819_v18 = vld [vmem:[#allocation3 + $0x54] sm:$0xff]  }
 0x7b9   : > { %v7945_v54 = vsel %vm2177_vm8, %v7940_v26, %v7944_v27  ;;  %v11385_v56 = vld [vmem:[#allocation3 + $0x44] ss:$0 sps:$4 sm:$0x11]   ;;  %v7961_v32 = vshll.u32 %v11384_v39, 16  ;;  %v7956_v34 = vrot.slane %v7954_v47, 1  ;;  %v5950_v33 = vshll.u32 %v14789_v58, 16 }
 0x7ba   : > { %v5936_v55 = vor.u32 %v5935_v2, %v5931_v4  ;;  %8427 = vmatprep.mubr.bf16.mxu0 %v7945_v54  ;;  %v7952_v23 = vor.u32 %v7951_v13, %v7947_v25  ;;  %v5947_v3 = vrot.slane %v5945_v60, 1  ;;  %v5943_v10 = vshrl.u32 %v14777_v38, 16  ;;  %v14803_v20 = vld [vmem:[#allocation3 + $0x44] ss:$0 sps:$4 sm:$0x11]  }
 0x7bb   : > { %v7963_v22 = vrot.slane %v7961_v32, 1  ;;  %v7959_v48 = vshrl.u32 %v11384_v39, 16  ;;  %v7966_v14 = vshll.u32 %v11385_v56, 16  ;;  %v5957_v49 = vshll.u32 %v14794_v62, 16  ;;  %v14822_v2 = vld [vmem:[#allocation3 + $0x60] sm:$0xff]  }
 0x7bc   : > { %v5941_v53 = vsel %vm2177_vm8, %v5936_v55, %v5940_v41  ;;  %v7957_v1 = vsel %vm2177_vm8, %v7952_v23, %v7956_v34  ;;  %v5948_v42 = vor.u32 %v5947_v3, %v5943_v10  ;;  %v5952_v15 = vrot.slane %v5950_v33, 1  ;;  %v11390_v17 = vld [vmem:[#allocation3 + $0x50] ss:$0 sps:$4 sm:$0x11]   ;;  %v14833_v3 = vld [vmem:[#allocation3 + $0x60] sm:$0xff]  }
 0x7bd   : > { %6407 = vmatmul.mubr.bf16.gmra.mrb[20].mxu1 %v14764_v9  ;;  %v7964_v46 = vor.u32 %v7963_v22, %v7959_v48  ;;  %v7973_v63 = vshll.u32 %v14796_v7, 16  ;;  %v7968_v52 = vrot.slane %v7966_v14, 1  ;;  %v5955_v16 = vshrl.u32 %v14794_v62, 16  ;;  %v11394_v4 = vld [vmem:[#allocation3 + $0x5c] ss:$0 sps:$4 sm:$0x11]  }
 0x7be   : > { %6414 = vmatprep.mubr.bf16.mxu1 %v5941_v53  ;;  %v5953_v51 = vsel %vm2177_vm8, %v5948_v42, %v5952_v15  ;;  %v5962_v31 = vshll.u32 %v14803_v20, 16  ;;  %v7971_v11 = vshrl.u32 %v14796_v7, 16  ;;  %v7978_v19 = vshll.u32 %v11390_v17, 16  ;;  %v14826_v54 = vld [vmem:[#allocation3 + $0x5c] ss:$0 sps:$4 sm:$0x11]  }
 0x7bf   : > { %8428 = vmatmul.mubr.bf16.gmra.mrb[76].mxu0 %v11375_v37  ;;  %v5959_v37 = vrot.slane %v5957_v49, 1  ;;  %v7969_v36 = vsel %vm2177_vm8, %v7964_v46, %v7968_v52  ;;  %v7975_v30 = vrot.slane %v7973_v63, 1  ;;  %v5969_v50 = vshll.u32 %v14807_v40, 16  ;;  %v11399_v41 = vld [vmem:[#allocation3 + $0x68] ss:$0 sps:$4 sm:$0x11]  }
 0x7c0   : > { %8435 = vmatprep.mubr.bf16.mxu0 %v7957_v1  ;;  %v7985_v5 = vshll.u32 %v11393_v61, 16  ;;  %v5964_v0 = vrot.slane %v5962_v31, 1  ;;  %v7980_v44 = vrot.slane %v7978_v19, 1  ;;  %v5967_v59 = vshrl.u32 %v14807_v40, 16  ;;  %v14837_v22 = vld [vmem:[#allocation3 + $0x6c] sm:$0xff]  }
 0x7c1   : > { %v5960_v43 = vor.u32 %v5959_v37, %v5955_v16  ;;  %v7976_v6 = vor.u32 %v7975_v30, %v7971_v11  ;;  %v5971_v27 = vrot.slane %v5969_v50, 1  ;;  %v7983_v25 = vshrl.u32 %v11393_v61, 16  ;;  %v11403_v17 = vld [vmem:[#allocation3 + $0x74] ss:$0 sps:$4 sm:$0x11]   ;;  %v14849_v30 = vld [vmem:[#allocation3 + $0x78] sm:$0xff]  }
 0x7c2   : > { %v7987_v26 = vrot.slane %v7985_v5, 1  ;;  %v7990_v13 = vshll.u32 %v11394_v4, 16  ;;  %v5981_v47 = vshll.u32 %v14819_v18, 16  ;;  %v5986_v53 = vshll.u32 %v14826_v54, 16  ;;  %v14852_v11 = vld [vmem:[#allocation3 + $0x78] sm:$0xff]  }
 0x7c3   : > { %v5965_v57 = vsel %vm2177_vm8, %v5960_v43, %v5964_v0  ;;  %v7981_v12 = vsel %vm2177_vm8, %v7976_v6, %v7980_v44  ;;  %v5972_v55 = vor.u32 %v5971_v27, %v5967_v59  ;;  %v5979_v10 = vshrl.u32 %v14819_v18, 16  ;;  %v14857_v5 = vld [vmem:[#allocation3 + $0x74] ss:$0 sps:$4 sm:$0x11]   ;;  %v14859_v0 = vld [vmem:[#allocation3 + $0x84] sm:$0xff]  }
 0x7c4   : > { %v7988_v23 = vor.u32 %v7987_v26, %v7983_v25  ;;  %v7992_v56 = vrot.slane %v7990_v13, 1  ;;  %v5983_v34 = vrot.slane %v5981_v47, 1  ;;  %v7995_v48 = vshrl.u32 %v14822_v2, 16  ;;  %v11408_v4 = vld [vmem:[#allocation3 + $0x80] ss:$0 sps:$4 sm:$0x11]  }
 0x7c5   : > { %6415 = vmatmul.mubr.bf16.gmra.mrb[24].mxu1 %v14769_v28  ;;  %v8002_v14 = vshll.u32 %v11399_v41, 16  ;;  %v5993_v49 = vshll.u32 %v14833_v3, 16  ;;  %v5988_v15 = vrot.slane %v5986_v53, 1  ;;  %v8009_v63 = vshll.u32 %v14837_v22, 16 }
 0x7c6   : > { %6422 = vmatprep.mubr.bf16.mxu1 %v5953_v51  ;;  %v7993_v1 = vsel %vm2177_vm8, %v7988_v23, %v7992_v56  ;;  %v5984_v42 = vor.u32 %v5983_v34, %v5979_v10  ;;  %v5991_v19 = vshrl.u32 %v14833_v3, 16  ;;  %v8007_v50 = vshrl.u32 %v14837_v22, 16  ;;  %v14878_v10 = vld [vmem:[#allocation3 + $0x90] sm:$0xff]  }
 0x7c7   : > { %8436 = vmatmul.mubr.bf16.gmra.mrb[80].mxu0 %v14772_v24  ;;  %v14815_v24 = vld [vmem:[#allocation3 + $0x50] ss:$0 sps:$4 sm:$0x11]   ;;  %v8004_v52 = vrot.slane %v8002_v14, 1  ;;  %v5995_v37 = vrot.slane %v5993_v49, 1  ;;  %v8011_v31 = vrot.slane %v8009_v63, 1 }
 0x7c8   : > { %8443 = vmatprep.mubr.bf16.mxu0 %v7969_v36  ;;  %v5974_v29 = vshll.u32 %v14815_v24, 16  ;;  %v5989_v51 = vsel %vm2177_vm8, %v5984_v42, %v5988_v15  ;;  %v14847_v36 = vld [vmem:[#allocation3 + $0x6c] sm:$0xff]   ;;  %v8014_v6 = vshll.u32 %v11403_v17, 16  ;;  %v6017_v26 = vshll.u32 %v14852_v11, 16 }
 0x7c9   : > { %v5996_v44 = vor.u32 %v5995_v37, %v5991_v19  ;;  %v8012_v27 = vor.u32 %v8011_v31, %v8007_v50  ;;  %v6003_v25 = vshrl.u32 %v14847_v36, 16  ;;  %v8033_v13 = vshll.u32 %v14859_v0, 16  ;;  %v14882_v17 = vld [vmem:[#allocation3 + $0x8c] ss:$0 sps:$4 sm:$0x11]  }
 0x7ca   : > { %v5976_v60 = vrot.slane %v5974_v29, 1  ;;  %v8016_v29 = vrot.slane %v8014_v6, 1  ;;  %v6019_v56 = vrot.slane %v6017_v26, 1  ;;  %v8019_v34 = vshrl.u32 %v14849_v30, 16 }
 0x7cb   : > { %v8026_v53 = vshll.u32 %v11408_v4, 16  ;;  %v8031_v15 = vshrl.u32 %v14859_v0, 16  ;;  %v8045_v19 = vshll.u32 %v14878_v10, 16  ;;  %v6034_v4 = vshll.u32 %v14882_v17, 16 }
 0x7cc   : > { %v5977_v32 = vsel %vm2177_vm8, %v5972_v55, %v5976_v60  ;;  %v14868_v55 = vld [vmem:[#allocation3 + $0x84] sm:$0xff]   ;;  %v8017_v41 = vsel %vm2177_vm8, %v8012_v27, %v8016_v29  ;;  %v8043_v27 = vshrl.u32 %v14878_v10, 16  ;;  %v6109_v29 = vrot.slane %v14766_v35, 1 }
 0x7cd   : > { %6423 = vmatmul.mubr.bf16.gmra.mrb[28].mxu1 %v14777_v38  ;;  %v6029_v14 = vshll.u32 %v14868_v55, 16  ;;  %v14911_v35 = vld [vmem:[#allocation3 + $0xa4] ss:$0 sps:$4 sm:$0x11]  }
 0x7ce   : > { %6430 = vmatprep.mubr.bf16.mxu1 %v5965_v57  ;;  %v8021_v57 = vshll.u32 %v14849_v30, 16 }
 0x7cf   : > { %8444 = vmatmul.mubr.bf16.gmra.mrb[84].mxu0 %v11384_v39  ;;  %v7997_v39 = vshll.u32 %v14822_v2, 16  ;;  %v6031_v31 = vrot.slane %v6029_v14, 1 }
 0x7d0   : > { %8451 = vmatprep.mubr.bf16.mxu0 %v7981_v12  ;;  %v14863_v12 = vld [vmem:[#allocation3 + $0x80] ss:$0 sps:$4 sm:$0x11]   ;;  %v8023_v60 = vrot.slane %v8021_v57, 1  ;;  %v14894_v57 = vld [vmem:[#allocation3 + $0x90] sm:$0xff]  }
 0x7d1   : > { %v7999_v33 = vrot.slane %v7997_v39, 1  ;;  %v6010_v39 = vshll.u32 %v14857_v5, 16 }
 0x7d2   : > { %v8024_v49 = vor.u32 %v8023_v60, %v8019_v34  ;;  %v6112_v60 = vrot.slane %v14780_v45, 1  ;;  %v6118_v34 = vrot.slane %v14803_v20, 1  ;;  %v6124_v20 = vrot.slane %v14826_v54, 1  ;;  %v14946_v54 = vld [vmem:[#allocation3 + $0x9c] sm:$0xff]  }
 0x7d3   : > { %v8000_v46 = vor.u32 %v7999_v33, %v7995_v48  ;;  %v6022_v33 = vshll.u32 %v14863_v12, 16  ;;  %v8035_v48 = vrot.slane %v8033_v13, 1  ;;  %v8047_v13 = vrot.slane %v8045_v19, 1 }
 0x7d5   : > { %6431 = vmatmul.mubr.bf16.gmra.mrb[32].mxu1 %v14794_v62  ;;  %v8005_v16 = vsel %vm2177_vm8, %v8000_v46, %v8004_v52  ;;  %v8028_v52 = vrot.slane %v8026_v53, 1  ;;  %v6024_v37 = vrot.slane %v6022_v33, 1  ;;  %v14916_v53 = vld [vmem:[#allocation3 + $0x9c] sm:$0xff]   ;;  %v6123_v33 = vrot.slane %v14819_v18, 1 }
 0x7d6   : > { %6438 = vmatprep.mubr.bf16.mxu1 %v5977_v32  ;;  %v11412_v32 = vld [vmem:[#allocation3 + $0x8c] ss:$0 sps:$4 sm:$0x11]  }
 0x7d7   : > { %8452 = vmatmul.mubr.bf16.gmra.mrb[88].mxu0 %v14796_v7  ;;  %v14843_v7 = vld [vmem:[#allocation3 + $0x68] ss:$0 sps:$4 sm:$0x11]   ;;  %v8038_v63 = vshll.u32 %v11412_v32, 16  ;;  %v8029_v50 = vsel %vm2177_vm8, %v8024_v49, %v8028_v52  ;;  %v6117_v32 = vrot.slane %v14794_v62, 1  ;;  %v6132_v49 = vrot.slane %v14852_v11, 1 }
 0x7d8   : > { %8459 = vmatprep.mubr.bf16.mxu0 %v7993_v1  ;;  %v5998_v43 = vshll.u32 %v14843_v7, 16  ;;  %v6015_v1 = vshrl.u32 %v14852_v11, 16  ;;  %v6127_v14 = vrot.slane %v14843_v7, 1  ;;  %v14951_v7 = vsel %vm2402_vm10, %v6123_v33, %v6124_v20  ;;  %v11426_v20 = vld [vmem:[#allocation3 + $0xb0] ss:$0 sps:$4 sm:$0x11]  }
 0x7d9   : > { %v14931_v62 = vsel %vm2402_vm10, %v6117_v32, %v6118_v34  ;;  %v6039_v32 = vshrl.u32 %v14894_v57, 16  ;;  %v8055_v34 = vshrl.u32 %v14946_v54, 16 }
 0x7da   : > { %v6000_v59 = vrot.slane %v5998_v43, 1  ;;  %v6020_v46 = vor.u32 %v6019_v56, %v6015_v1  ;;  %v6115_v56 = vrot.slane %v14789_v58, 1  ;;  %v14918_v1 = vld [vmem:[#allocation3 + $0xb0] ss:$0 sps:$4 sm:$0x11]   ;;  %v6121_v58 = vrot.slane %v14815_v24, 1 }
 0x7db   : > { %v6129_v24 = vrot.slane %v14847_v36, 1 }
 0x7dc   : > { %v6001_v47 = vsel %vm2177_vm8, %v5996_v44, %v6000_v59  ;;  %v6025_v6 = vsel %vm2177_vm8, %v6020_v46, %v6024_v37  ;;  %v8040_v44 = vrot.slane %v8038_v63, 1  ;;  %v6108_v59 = vrot.slane %v14764_v9, 1 }
 0x7dd   : > { %6439 = vmatmul.mubr.bf16.gmra.mrb[36].mxu1 %v14807_v40  ;;  %v6041_v9 = vshll.u32 %v14894_v57, 16  ;;  %v6133_v46 = vrot.slane %v14863_v12, 1  ;;  %v6138_v63 = vrot.slane %v14894_v57, 1  ;;  %v6141_v37 = vrot.slane %v14916_v53, 1 }
 0x7de   : > { %6446 = vmatprep.mubr.bf16.mxu1 %v5989_v51  ;;  %v14884_v51 = vld [vmem:[#allocation3 + $0x98] ss:$0 sps:$4 sm:$0x11]  }
 0x7df   : > { %8460 = vmatmul.mubr.bf16.gmra.mrb[92].mxu0 %v11393_v61  ;;  %v6005_v61 = vshll.u32 %v14847_v36, 16  ;;  %v8050_v26 = vshll.u32 %v14884_v51, 16  ;;  %v14965_v51 = vsel %vm2402_vm10, %v6132_v49, %v6133_v46  ;;  %v6051_v49 = vshrl.u32 %v14916_v53, 16 }
 0x7e0   : > { %8467 = vmatprep.mubr.bf16.mxu0 %v8005_v16  ;;  %v8036_v16 = vor.u32 %v8035_v48, %v8031_v15  ;;  %v14928_v48 = vld [vmem:[#allocation3 + $0xa8] sm:$0xff]   ;;  %v6058_v46 = vshll.u32 %v14911_v35, 16 }
 0x7e1   : > { %v6007_v23 = vrot.slane %v6005_v61, 1  ;;  %v6027_v61 = vshrl.u32 %v14868_v55, 16  ;;  %v6144_v12 = vrot.slane %v14928_v48, 1 }
 0x7e3   : > { %v6008_v42 = vor.u32 %v6007_v23, %v6003_v25  ;;  %v6032_v25 = vor.u32 %v6031_v31, %v6027_v61  ;;  %v14902_v23 = vld [vmem:[#allocation3 + $0x98] ss:$0 sps:$4 sm:$0x11]  }
 0x7e4   : > { %v6139_v52 = vrot.slane %v14902_v23, 1 }
 0x7e5   : > { %6447 = vmatmul.mubr.bf16.gmra.mrb[40].mxu1 %v14819_v18  ;;  %v6130_v18 = vrot.slane %v14857_v5, 1 }
 0x7e6   : > { %6454 = vmatprep.mubr.bf16.mxu1 %v6001_v47  ;;  %v6111_v47 = vrot.slane %v14769_v28, 1  ;;  %v6120_v28 = vrot.slane %v14807_v40, 1  ;;  %v6126_v40 = vrot.slane %v14833_v3, 1  ;;  %v14974_v19 = vsel %vm2402_vm10, %v6138_v63, %v6139_v52 }
 0x7e7   : > { %8468 = vmatmul.mubr.bf16.gmra.mrb[96].mxu0 %v14822_v2  ;;  %v6012_v2 = vrot.slane %v6010_v39, 1  ;;  %v14905_v39 = vsel %vm2402_vm10, %v6108_v59, %v6109_v29  ;;  %v14959_v5 = vsel %vm2402_vm10, %v6129_v24, %v6130_v18  ;;  %v6036_v29 = vrot.slane %v6034_v4, 1  ;;  %v11425_v4 = vld [vmem:[#allocation3 + $0xa8] sm:$0xff]   ;;  %v11429_v18 = vld [vmem:[#allocation3 + $0xb4] sm:$0xff]  }
 0x7e8   : > { %8475 = vmatprep.mubr.bf16.mxu0 %v8017_v41  ;;  %v6114_v41 = vrot.slane %v14777_v38, 1  ;;  %v14921_v45 = vsel %vm2402_vm10, %v6111_v47, %v6112_v60  ;;  %v14954_v15 = vsel %vm2402_vm10, %v6126_v40, %v6127_v14  ;;  %v8052_v47 = vrot.slane %v8050_v26, 1  ;;  %v11421_v60 = vld [vmem:[#allocation3 + $0xa4] ss:$0 sps:$4 sm:$0x11]  }
 0x7e9   : > { %v6013_v43 = vsel %vm2177_vm8, %v6008_v42, %v6012_v2  ;;  %v14937_v42 = vld [vmem:[#allocation3 + $0xb4] sm:$0xff]   ;;  %v14940_v2 = vsel %vm2402_vm10, %v6120_v28, %v6121_v58  ;;  %v6046_v26 = vshll.u32 %v14902_v23, 16  ;;  %v8062_v28 = vshll.u32 %v11421_v60, 16 }
 0x7ea   : > { %v14924_v38 = vsel %vm2402_vm10, %v6114_v41, %v6115_v56 }
 0x7eb   : > { %v6048_v33 = vrot.slane %v6046_v26, 1 }
 0x7ed   : > { %6455 = vmatmul.mubr.bf16.gmra.mrb[44].mxu1 %v14833_v3  ;;  %v14948_v3 = vld [vmem:[#allocation3 + $0xbc] ss:$0 sps:$4 sm:$0x11]  }
 0x7ee   : > { %6462 = vmatprep.mubr.bf16.mxu1 %v6013_v43  ;;  %v6145_v43 = vrot.slane %v14918_v1, 1  ;;  %v6148_v59 = vrot.slane %v14948_v3, 1 }
 0x7ef   : > { %8476 = vmatmul.mubr.bf16.gmra.mrb[100].mxu0 %v14837_v22  ;;  %v8041_v22 = vsel %vm2177_vm8, %v8036_v16, %v8040_v44  ;;  %v6142_v16 = vrot.slane %v14911_v35, 1  ;;  %v8057_v44 = vshll.u32 %v14946_v54, 16 }
 0x7f0   : > { %8483 = vmatprep.mubr.bf16.mxu0 %v8029_v50  ;;  %v6147_v50 = vrot.slane %v14937_v42, 1 }
 0x7f1   : > { %v14980_v61 = vsel %vm2402_vm10, %v6141_v37, %v6142_v16  ;;  %v8081_v37 = vshll.u32 %v11429_v18, 16  ;;  %v6060_v16 = vrot.slane %v6058_v46, 1 }
 0x7f2   : > { %v14989_v41 = vsel %vm2402_vm10, %v6147_v50, %v6148_v59  ;;  %v6063_v59 = vshrl.u32 %v14928_v48, 16 }
 0x7f5   : > { %6463 = vmatmul.mubr.bf16.gmra.mrb[48].mxu1 %v14847_v36  ;;  %v6135_v36 = vrot.slane %v14868_v55, 1 }
 0x7f6   : > { %6470 = vmatprep.mubr.bf16.mxu1 %v6025_v6  ;;  %v8048_v6 = vor.u32 %v8047_v13, %v8043_v27  ;;  %v6037_v27 = vsel %vm2177_vm8, %v6032_v25, %v6036_v29  ;;  %v6043_v13 = vrot.slane %v6041_v9, 1  ;;  %v8069_v9 = vshll.u32 %v11425_v4, 16 }
 0x7f7   : > { %8484 = vmatmul.mubr.bf16.gmra.mrb[104].mxu0 %v14849_v30  ;;  %v6136_v30 = vrot.slane %v14882_v17, 1  ;;  %v8059_v17 = vrot.slane %v8057_v44, 1  ;;  %v11434_v44 = vld [vmem:[#allocation3 + $0xc0] sm:$0xff]   ;;  %v6070_v29 = vshll.u32 %v14918_v1, 16 }
 0x7f8   : > { %8491 = vmatprep.mubr.bf16.mxu0 %v8041_v22  ;;  %v14986_v22 = vsel %vm2402_vm10, %v6144_v12, %v6145_v43  ;;  %v8053_v56 = vsel %vm2177_vm8, %v8048_v6, %v8052_v47  ;;  %v6044_v58 = vor.u32 %v6043_v13, %v6039_v32  ;;  %v8071_v24 = vrot.slane %v8069_v9, 1  ;;  %v11435_v32 = vld [vmem:[#allocation3 + $0xc8] ss:$0 sps:$4 sm:$0x11]  }
 0x7f9   : > { %v14971_v31 = vsel %vm2402_vm10, %v6135_v36, %v6136_v30  ;;  %v8060_v25 = vor.u32 %v8059_v17, %v8055_v34  ;;  %v8067_v36 = vshrl.u32 %v11425_v4, 16  ;;  %v8074_v30 = vshll.u32 %v11426_v20, 16 }
 0x7fa   : > { %v6049_v40 = vsel %vm2177_vm8, %v6044_v58, %v6048_v33  ;;  %v8083_v6 = vrot.slane %v8081_v37, 1  ;;  %v8079_v47 = vshrl.u32 %v11429_v18, 16  ;;  %v6072_v17 = vrot.slane %v6070_v29, 1  ;;  %v11437_v37 = vld [vmem:[%s15868_s11 + $0xc0] sm:$0xff]  }
 0x7fb   : > { %v8072_v52 = vor.u32 %v8071_v24, %v8067_v36  ;;  %v8076_v12 = vrot.slane %v8074_v30, 1  ;;  %v6075_v58 = vshrl.u32 %v14937_v42, 16  ;;  %v8098_v9 = vshll.u32 %v11435_v32, 16  ;;  %v11725_v24 = vld [vmem:[#allocation3 + $0x8] ss:$0 sps:$4 sm:$0x11]  }
 0x7fc   : > { %v8084_v13 = vor.u32 %v8083_v6, %v8079_v47  ;;  %v11449_v6 = vld [vmem:[%s15868_s11 + $0xf0] sm:$0xff]  }
 0x7fd   : > { %6471 = vmatmul.mubr.bf16.gmra.mrb[52].mxu1 %v14852_v11  ;;  %v6053_v11 = vshll.u32 %v14916_v53, 16  ;;  %v8077_v35 = vsel %vm2177_vm8, %v8072_v52, %v8076_v12  ;;  %v6106_v52 = vrot.slane %v14759_v8, 1  ;;  %v11440_v8 = vld [vmem:[%s15868_s11 + $0x110] sm:$0xff]  }
 0x7fe   : > { %6478 = vmatprep.mubr.bf16.mxu1 %v6037_v27  ;;  %v15095_v47 = vld [vmem:[#allocation3 + $0x18] sm:$0xff]  }
 0x7ff   : > { %8492 = vmatmul.mubr.bf16.gmra.mrb[108].mxu0 %v14859_v0  ;;  %v8064_v0 = vrot.slane %v8062_v28, 1  ;;  %v6055_v14 = vrot.slane %v6053_v11, 1  ;;  %v6082_v11 = vshll.u32 %v14948_v3, 16 }
 0x800   : > { %8499 = vmatprep.mubr.bf16.mxu0 %v8053_v56  ;;  %v8093_v56 = vshll.u32 %v11434_v44, 16 }
 0x801   : > { %v8065_v23 = vsel %vm2177_vm8, %v8060_v25, %v8064_v0  ;;  %v6056_v63 = vor.u32 %v6055_v14, %v6051_v49  ;;  %v8091_v25 = vshrl.u32 %v11434_v44, 16  ;;  %v6084_v20 = vrot.slane %v6082_v11, 1  ;;  %v11724_v14 = vld [vmem:[#allocation3] sm:$0xff]  }
 0x802   : > { %v8095_v1 = vrot.slane %v8093_v56, 1  ;;  %v6103_v49 = vrot.slane %v11725_v24, 1  ;;  %v11492_v56 = vld [vmem:[#allocation3 + $0xcc] sm:$0xff]  }
 0x803   : > { %v6061_v43 = vsel %vm2177_vm8, %v6056_v63, %v6060_v16  ;;  %v11438_v16 = vld [vmem:[%s15868_s11 + $0x108] sm:$0xff]  }
 0x804   : > { %v8096_v0 = vor.u32 %v8095_v1, %v8091_v25  ;;  %v15110_v25 = vld [vmem:[#allocation3 + $0x2c] ss:$0 sps:$4 sm:$0x11]  }
 0x805   : > { %6479 = vmatmul.mubr.bf16.gmra.mrb[56].mxu1 %v14868_v55  ;;  %v6065_v55 = vshll.u32 %v14928_v48, 16 }
 0x806   : > { %6486 = vmatprep.mubr.bf16.mxu1 %v6049_v40  ;;  %v8100_v40 = vrot.slane %v8098_v9, 1  ;;  %v11459_v9 = vld [vmem:[%s15868_s11 + $0x148] sm:$0xff]  }
 0x807   : > { %8500 = vmatmul.mubr.bf16.gmra.mrb[112].mxu0 %v14878_v10  ;;  %v11430_v10 = vld [vmem:[#allocation3 + $0xbc] ss:$0 sps:$4 sm:$0x11]   ;;  %v6067_v50 = vrot.slane %v6065_v55, 1  ;;  %v6105_v55 = vrot.slane %v14746_v21, 1  ;;  %v11439_v21 = vld [vmem:[%s15868_s11 + $0xc8] sm:$0xff]  }
 0x808   : > { %8507 = vmatprep.mubr.bf16.mxu0 %v8065_v23  ;;  %v8086_v60 = vshll.u32 %v11430_v10, 16  ;;  %v6102_v23 = vrot.slane %v11724_v14, 1  ;;  %v11442_v10 = vld [vmem:[%s15868_s11 + $0x118] sm:$0xff]   ;;  %v6942_v14 = vshll.u32 %v15110_v25, 16 }
 0x809   : > { %v6068_v27 = vor.u32 %v6067_v50, %v6063_v59  ;;  %v6107_v12 = vsel %vm2402_vm10, %v6105_v55, %v6106_v52  ;;  %v11445_v50 = vld [vmem:[%s15868_s11 + $0xe0] sm:$0xff]   ;;  %v15092_v59 = vld [vmem:[#allocation3 + $0x14] ss:$0 sps:$4 sm:$0x11]   ;;  %v15133_v55 = vld [vmem:[#allocation3 + $0x3c] sm:$0xff]  }
 0x80a   : > { %v6104_v46 = vsel %vm2402_vm10, %v6102_v23, %v6103_v49  ;;  %v11464_v23 = vld [vmem:[%s15868_s11 + $0x150] sm:$0xff]  }
 0x80b   : > { %v6073_v26 = vsel %vm2177_vm8, %v6068_v27, %v6072_v17  ;;  %v6923_v17 = vshrl.u32 %v15095_v47, 16 }
 0x80d   : > { %6487 = vmatmul.mubr.bf16.gmra.mrb[60].mxu1 %v14894_v57  ;;  %v6077_v57 = vshll.u32 %v14937_v42, 16 }
 0x80e   : > { %6494 = vmatprep.mubr.bf16.mxu1 %v6061_v43  ;;  %v11444_v43 = vld [vmem:[%s15868_s11 + $0x120] sm:$0xff]  }
 0x80f   : > { %8508 = vmatmul.mubr.bf16.gmra.mrb[116].mxu0 %v14946_v54  ;;  %v8088_v54 = vrot.slane %v8086_v60, 1  ;;  %v6079_v34 = vrot.slane %v6077_v57, 1  ;;  %v6925_v60 = vshll.u32 %v15095_v47, 16 }
 0x810   : > { %8515 = vmatprep.mubr.bf16.mxu0 %v8077_v35  ;;  %v11448_v35 = vld [vmem:[%s15868_s11 + $0x130] sm:$0xff]  }
 0x811   : > { %v8089_v28 = vsel %vm2177_vm8, %v8084_v13, %v8088_v54  ;;  %v6080_v33 = vor.u32 %v6079_v34, %v6075_v58  ;;  %v15105_v13 = vld [vmem:[#allocation3 + $0x24] sm:$0xff]   ;;  %v8103_v54 = vshrl.u32 %v11492_v56, 16 }
 0x812   : > { %v6937_v1 = vshll.u32 %v15105_v13, 16 }
 0x815   : > { %6495 = vmatmul.mubr.bf16.gmra.mrb[64].mxu1 %v14916_v53  ;;  %v6085_v53 = vsel %vm2177_vm8, %v6080_v33, %v6084_v20  ;;  %v6939_v20 = vrot.slane %v6937_v1, 1 }
 0x816   : > { %6502 = vmatprep.mubr.bf16.mxu1 %v6073_v26  ;;  %v8105_v26 = vshll.u32 %v11492_v56, 16 }
 0x817   : > { %8516 = vmatmul.mubr.bf16.gmra.mrb[120].mxu0 %v11425_v4  ;;  %v8101_v4 = vsel %vm2177_vm8, %v8096_v0, %v8100_v40  ;;  %v15117_v40 = vld [vmem:[#allocation3 + $0x30] sm:$0xff]  }
 0x818   : > { %8523 = vmatprep.mubr.bf16.mxu0 %v8089_v28  ;;  %v8107_v58 = vrot.slane %v8105_v26, 1  ;;  %v6949_v49 = vshll.u32 %v15117_v40, 16  ;;  %v6947_v52 = vshrl.u32 %v15117_v40, 16 }
 0x81a   : > { %v8108_v33 = vor.u32 %v8107_v58, %v8103_v54 }
 0x81c   : > { %v9896_v3 = vpop.f32.mrb[12].mxu1 }
 0x81d   : > { %6503 = vmatmul.mubr.bf16.gmra.mrb[68].mxu1 %v14928_v48  ;;  %v9897_v36 = vpop.f32.mrb[13].mxu1 }
 0x81e   : > { %6510 = vmatprep.mubr.bf16.mxu1 %v6085_v53  ;;  %v15022_v30 = vadd.f32 %v9897_v36, %v9896_v3  ;;  %v9899_v63 = vpop.f32.mrb[14].mxu1  ;;  %v6944_v3 = vrot.slane %v6942_v14, 1  ;;  %v11469_v36 = vld [vmem:[%s15868_s11 + $0x158] sm:$0xff]  }
 0x81f   : > { %8524 = vmatmul.mubr.bf16.gmra.mrb[124].mxu0 %v11429_v18  ;;  %v9900_v48 = vpop.f32.mrb[15].mxu1 }
 0x820   : > { %8531 = vmatprep.mubr.bf16.mxu0 %v8101_v4  ;;  %v15025_v18 = vadd.f32 %v9900_v48, %v9899_v63  ;;  %v6935_v4 = vshrl.u32 %v15105_v13, 16  ;;  %v6951_v48 = vrot.slane %v6949_v49, 1 }
 0x822   : > { %v6940_v24 = vor.u32 %v6939_v20, %v6935_v4 }
 0x824   : > { %v6945_v63 = vsel %vm2177_vm8, %v6940_v24, %v6944_v3 }
 0x825   : > { %6511 = vmatmul.mubr.bf16.gmra.mrb[72].mxu1 %v14937_v42  ;;  %v11441_v42 = vld [vmem:[%s15868_s11 + $0xd0] sm:$0xff]  }
 0x826   : > { %10476 = vmatprep.mubr.bf16.mxu1 %v6104_v46  ;;  %v15126_v46 = vld [vmem:[#allocation3 + $0x38] ss:$0 sps:$4 sm:$0x11]  }
 0x827   : > { %8532 = vmatmul.mubr.bf16.gmra.mrb[128].mxu0 %v11434_v44  ;;  %v11454_v44 = vld [vmem:[%s15868_s11 + $0x140] sm:$0xff]  }
 0x82d   : > { %10477 = vmatmul.mubr.bf16.vlgmr.msra.gmra.mrb[76].mxu1 %v6107_v12  ;;  %v6952_v12 = vor.u32 %v6951_v48, %v6947_v52 }
 0x82e   : > { %10017 = vmatpush3.bf16.msra.mxu1 %v11437_v37  ;;  %10480 = vmatprep.mubr.bf16.mxu1 %v14905_v39  ;;  %v11443_v39 = vld [vmem:[%s15868_s11 + $0xd8] sm:$0xff]   ;;  %v6954_v37 = vshll.u32 %v15126_v46, 16 }
 0x82f   : > { %10018 = vmatprep.subr.bf16.mxu1 %v11438_v16  ;;  %v11474_v16 = vld [vmem:[%s15868_s11 + $0x160] sm:$0xff]  }
 0x832   : > { %10019 = vmatpush3.bf16.msra.mxu1 %v11439_v21  ;;  %v6961_v21 = vshll.u32 %v15133_v55, 16 }
 0x833   : > { %10020 = vmatprep.subr.bf16.mxu1 %v11440_v8  ;;  %v6956_v8 = vrot.slane %v6954_v37, 1 }
 0x835   : > { %10481 = vmatmul.mubr.bf16.gmra.mrb[80].mxu1 %v14921_v45  ;;  %v11446_v45 = vld [vmem:[%s15868_s11 + $0x128] sm:$0xff]  }
 0x836   : > { %10484 = vmatprep.mubr.bf16.mxu1 %v14924_v38  ;;  %10021 = vmatpush3.bf16.msra.mxu1 %v11441_v42  ;;  %v11447_v38 = vld [vmem:[%s15868_s11 + $0xe8] sm:$0xff]   ;;  %v15141_v42 = vld [vmem:[#allocation3 + $0x44] ss:$0 sps:$4 sm:$0x11]  }
 0x837   : > { %10022 = vmatprep.subr.bf16.mxu1 %v11442_v10  ;;  %v11479_v10 = vld [vmem:[%s15868_s11 + $0x168] sm:$0xff]  }
 0x83a   : > { %10023 = vmatpush3.bf16.msra.mxu1 %v11443_v39  ;;  %v6957_v39 = vsel %vm2177_vm8, %v6952_v12, %v6956_v8  ;;  %v15195_v8 = vld [vmem:[#allocation3 + $0x68] ss:$0 sps:$4 sm:$0x11]  }
 0x83b   : > { %10024 = vmatprep.subr.bf16.mxu1 %v11444_v43  ;;  %v6963_v43 = vrot.slane %v6961_v21, 1 }
 0x83d   : > { %10485 = vmatmul.mubr.bf16.gmra.mrb[84].mxu1 %v14931_v62  ;;  %v11450_v62 = vld [vmem:[%s15868_s11 + $0x138] sm:$0xff]  }
 0x83e   : > { %10488 = vmatprep.mubr.bf16.mxu1 %v14940_v2  ;;  %10025 = vmatpush3.bf16.msra.mxu1 %v11445_v50  ;;  %v11451_v2 = vld [vmem:[%s15868_s11 + $0xf8] sm:$0xff]   ;;  %v15148_v50 = vld [vmem:[#allocation3 + $0x48] sm:$0xff]  }
 0x83f   : > { %10026 = vmatprep.subr.bf16.mxu1 %v11446_v45  ;;  %v6959_v45 = vshrl.u32 %v15133_v55, 16 }
 0x842   : > { %10027 = vmatpush3.bf16.msra.mxu1 %v11447_v38  ;;  %v6966_v38 = vshll.u32 %v15141_v42, 16 }
 0x843   : > { %10028 = vmatprep.subr.bf16.mxu1 %v11448_v35  ;;  %v11484_v35 = vld [vmem:[%s15868_s11 + $0x170] sm:$0xff]  }
 0x845   : > { %10489 = vmatmul.mubr.bf16.gmra.mrb[88].mxu1 %v14951_v7  ;;  %v15088_v7 = vld [vmem:[#allocation3 + $0xc] sm:$0xff]  }
 0x846   : > { %10492 = vmatprep.mubr.bf16.mxu1 %v14954_v15  ;;  %10029 = vmatpush3.bf16.msra.mxu1 %v11449_v6  ;;  %v6913_v15 = vshll.u32 %v15088_v7, 16  ;;  %v6964_v6 = vor.u32 %v6963_v43, %v6959_v45 }
 0x847   : > { %10030 = vmatprep.subr.bf16.mxu1 %v11450_v62  ;;  %v6973_v62 = vshll.u32 %v15148_v50, 16 }
 0x848   : > { %v6915_v29 = vrot.slane %v6913_v15, 1  ;;  %v11489_v15 = vld [vmem:[%s15868_s11 + $0x178] sm:$0xff]  }
 0x84a   : > { %10031 = vmatpush3.bf16.msra.mxu1 %v11451_v2  ;;  %v6968_v2 = vrot.slane %v6966_v38, 1 }
 0x84b   : > { %10508 = vmatprep.subr.bf16.mxu1 %v11454_v44 }
 0x84d   : > { %10493 = vmatmul.mubr.bf16.gmra.mrb[92].mxu1 %v14959_v5  ;;  %v6911_v5 = vshrl.u32 %v15088_v7, 16 }
 0x84e   : > { %10496 = vmatprep.mubr.bf16.mxu1 %v14965_v51  ;;  %v6918_v51 = vshll.u32 %v15092_v59, 16 }
 0x850   : > { %v6920_v27 = vrot.slane %v6918_v51, 1  ;;  %v15163_v51 = vld [vmem:[#allocation3 + $0x54] sm:$0xff]  }
 0x851   : > { %v6983_v4 = vshrl.u32 %v15163_v51, 16 }
 0x855   : > { %10497 = vmatmul.mubr.bf16.gmra.mrb[96].mxu1 %v14971_v31  ;;  %v6916_v31 = vor.u32 %v6915_v29, %v6911_v5  ;;  %v6969_v29 = vsel %vm2177_vm8, %v6964_v6, %v6968_v2  ;;  %v6975_v5 = vrot.slane %v6973_v62, 1  ;;  %v7002_v62 = vshll.u32 %v15195_v8, 16 }
 0x856   : > { %10500 = vmatprep.mubr.bf16.mxu1 %v14974_v19  ;;  %v15101_v19 = vld [vmem:[#allocation3 + $0x20] ss:$0 sps:$4 sm:$0x11]  }
 0x857   : > { %v6921_v57 = vsel %vm2177_vm8, %v6916_v31, %v6920_v27  ;;  %v6930_v32 = vshll.u32 %v15101_v19, 16  ;;  %v6971_v31 = vshrl.u32 %v15148_v50, 16  ;;  %v15170_v27 = vld [vmem:[%s15868_s11 + $0x200] sm:$0xff]  }
 0x859   : > { %v6932_v11 = vrot.slane %v6930_v32, 1 }
 0x85d   : > { %10501 = vmatmul.mubr.bf16.gmra.mrb[100].mxu1 %v14980_v61  ;;  %v6927_v61 = vrot.slane %v6925_v60, 1 }
 0x85e   : > { %10504 = vmatprep.mubr.bf16.mxu1 %v14986_v22  ;;  %v11493_v22 = vld [vmem:[#allocation3 + $0xd4] ss:$0 sps:$4 sm:$0x11]  }
 0x85f   : > { %v8110_v34 = vshll.u32 %v11493_v22, 16  ;;  %v6928_v28 = vor.u32 %v6927_v61, %v6923_v17  ;;  %v6976_v22 = vor.u32 %v6975_v5, %v6971_v31  ;;  %v6985_v17 = vshll.u32 %v15163_v51, 16 }
 0x861   : > { %v6933_v0 = vsel %vm2177_vm8, %v6928_v28, %v6932_v11  ;;  %v6987_v20 = vrot.slane %v6985_v17, 1 }
 0x863   : > { %v6988_v3 = vor.u32 %v6987_v20, %v6983_v4  ;;  %v15220_v20 = vld [vmem:[#allocation3 + $0x78] sm:$0xff]  }
 0x865   : > { %10505 = vmatmul.mubr.bf16.gmra.mrb[104].mxu1 %v14989_v41  ;;  %v8112_v41 = vrot.slane %v8110_v34, 1 }
 0x866   : > { %7407 = vmatprep.mubr.bf16.mxu1 %v6921_v57 }
 0x867   : > { %v8113_v53 = vsel %vm2177_vm8, %v8108_v33, %v8112_v41  ;;  %v15177_v41 = vld [vmem:[#allocation3 + $0x5c] ss:$0 sps:$4 sm:$0x11]  }
 0x868   : > { %8539 = vmatprep.mubr.bf16.mxu0 %v8113_v53  ;;  %v15186_v53 = vld [vmem:[#allocation3 + $0x60] sm:$0xff]   ;;  %v6990_v14 = vshll.u32 %v15177_v41, 16 }
 0x869   : > { %8540 = vmatmul.mubr.bf16.gmra.mrb[132].mxu0 %v11492_v56  ;;  %v6995_v6 = vshrl.u32 %v15186_v53, 16 }
 0x86a   : > { %v6992_v21 = vrot.slane %v6990_v14, 1 }
 0x86c   : > { %v6993_v45 = vsel %vm2177_vm8, %v6988_v3, %v6992_v21 }
 0x86d   : > { %7408 = vmatmul.mubr.bf16.vlgmr.msra.gmra.mrb[108].mxu1 %v15088_v7 }
 0x86e   : > { %10509 = vmatpush3.bf16.msra.mxu1 %v11454_v44  ;;  %7415 = vmatprep.mubr.bf16.mxu1 %v6933_v0  ;;  %v15156_v44 = vld [vmem:[#allocation3 + $0x50] ss:$0 sps:$4 sm:$0x11]  }
 0x86f   : > { %10510 = vmatprep.subr.bf16.mxu1 %v11459_v9  ;;  %v6978_v60 = vshll.u32 %v15156_v44, 16 }
 0x871   : > { %v6980_v58 = vrot.slane %v6978_v60, 1 }
 0x872   : > { %10511 = vmatpush3.bf16.msra.mxu1 %v11459_v9 }
 0x873   : > { %10512 = vmatprep.subr.bf16.mxu1 %v11464_v23  ;;  %v6981_v0 = vsel %vm2177_vm8, %v6976_v22, %v6980_v58 }
 0x875   : > { %7416 = vmatmul.mubr.bf16.gmra.mrb[112].mxu1 %v15095_v47 }
 0x876   : > { %7423 = vmatprep.mubr.bf16.mxu1 %v6945_v63  ;;  %10513 = vmatpush3.bf16.msra.mxu1 %v11464_v23 }
 0x877   : > { %10514 = vmatprep.subr.bf16.mxu1 %v11469_v36 }
 0x87a   : > { %10515 = vmatpush3.bf16.msra.mxu1 %v11469_v36  ;;  %v6997_v36 = vshll.u32 %v15186_v53, 16 }
 0x87b   : > { %10516 = vmatprep.subr.bf16.mxu1 %v11474_v16 }
 0x87c   : > { %v6999_v38 = vrot.slane %v6997_v36, 1  ;;  %v7021_v36 = vshll.u32 %v15220_v20, 16 }
 0x87d   : > { %7424 = vmatmul.mubr.bf16.gmra.mrb[116].mxu1 %v15105_v13 }
 0x87e   : > { %7431 = vmatprep.mubr.bf16.mxu1 %v6957_v39  ;;  %10517 = vmatpush3.bf16.msra.mxu1 %v11474_v16  ;;  %v7000_v5 = vor.u32 %v6999_v38, %v6995_v6  ;;  %v15229_v38 = vld [vmem:[#allocation3 + $0x80] ss:$0 sps:$4 sm:$0x11]  }
 0x87f   : > { %10518 = vmatprep.subr.bf16.mxu1 %v11479_v10 }
 0x882   : > { %10519 = vmatpush3.bf16.msra.mxu1 %v11479_v10 }
 0x883   : > { %10520 = vmatprep.subr.bf16.mxu1 %v11484_v35 }
 0x885   : > { %7432 = vmatmul.mubr.bf16.gmra.mrb[120].mxu1 %v15117_v40 }
 0x886   : > { %7439 = vmatprep.mubr.bf16.mxu1 %v6969_v29  ;;  %10521 = vmatpush3.bf16.msra.mxu1 %v11484_v35  ;;  %v15203_v35 = vld [vmem:[#allocation3 + $0x6c] sm:$0xff]  }
 0x887   : > { %10522 = vmatprep.subr.bf16.mxu1 %v11489_v15  ;;  %v7009_v31 = vshll.u32 %v15203_v35, 16  ;;  %v7007_v4 = vshrl.u32 %v15203_v35, 16 }
 0x888   : > { %v9902_v57 = vpop.f32.mrb[16].mxu1 }
 0x889   : > { %v9903_v56 = vpop.f32.mrb[17].mxu1 }
 0x88a   : > { %v10168_v61 = vpop.f32.mrb[72].mxu0  ;;  %v15173_v32 = vadd.f32 %v9903_v56, %v9902_v57  ;;  %v9905_v26 = vpop.f32.mrb[18].mxu1  ;;  %10523 = vmatpush3.bf16.msra.mxu1 %v11489_v15 }
 0x88b   : > { %v10169_v54 = vpop.f32.mrb[73].mxu0  ;;  %v9906_v1 = vpop.f32.mrb[19].mxu1  ;;  %10556 = vmatprep.subr.bf16.mxu1 %v15170_v27 }
 0x88c   : > { %v15175_v34 = vadd.f32 %v10169_v54, %v10168_v61  ;;  %v10171_v28 = vpop.f32.mrb[74].mxu0  ;;  %v15180_v11 = vadd.f32 %v9906_v1, %v9905_v26  ;;  %v7004_v54 = vrot.slane %v7002_v62, 1  ;;  %v15212_v26 = vld [vmem:[#allocation3 + $0x74] ss:$0 sps:$4 sm:$0x11]  }
 0x88d   : > { %v10172_v9 = vpop.f32.mrb[75].mxu0  ;;  %7440 = vmatmul.mubr.bf16.gmra.mrb[124].mxu1 %v15133_v55  ;;  %v7014_v14 = vshll.u32 %v15212_v26, 16 }
 0x88e   : > { %v15182_v33 = vadd.f32 %v10172_v9, %v10171_v28  ;;  %7447 = vmatprep.mubr.bf16.mxu1 %v6981_v0  ;;  %v7005_v9 = vsel %vm2177_vm8, %v7000_v5, %v7004_v54  ;;  %v7011_v0 = vrot.slane %v7009_v31, 1  ;;  %v15237_v5 = vld [vmem:[#allocation3 + $0x84] sm:$0xff]   ;;  %v7019_v31 = vshrl.u32 %v15220_v20, 16 }
 0x890   : > { %v9908_v23 = vpop.f32.mrb[20].mxu1  ;;  %v7012_v3 = vor.u32 %v7011_v0, %v7007_v4 }
 0x891   : > { %v9909_v49 = vpop.f32.mrb[21].mxu1 }
 0x892   : > { %v10174_v24 = vpop.f32.mrb[76].mxu0  ;;  %v15191_v63 = vadd.f32 %v9909_v49, %v9908_v23  ;;  %v9911_v52 = vpop.f32.mrb[22].mxu1 }
 0x893   : > { %v10175_v48 = vpop.f32.mrb[77].mxu0  ;;  %v9912_v12 = vpop.f32.mrb[23].mxu1 }
 0x894   : > { %v15193_v37 = vadd.f32 %v10175_v48, %v10174_v24  ;;  %v10177_v16 = vpop.f32.mrb[78].mxu0  ;;  %v15197_v10 = vadd.f32 %v9912_v12, %v9911_v52 }
 0x895   : > { %v10178_v39 = vpop.f32.mrb[79].mxu0  ;;  %7448 = vmatmul.mubr.bf16.gmra.mrb[128].mxu1 %v15148_v50 }
 0x896   : > { %v15199_v43 = vadd.f32 %v10178_v39, %v10177_v16  ;;  %7455 = vmatprep.mubr.bf16.mxu1 %v6993_v45  ;;  %v7016_v45 = vrot.slane %v7014_v14, 1 }
 0x898   : > { %v9914_v2 = vpop.f32.mrb[24].mxu1 }
 0x899   : > { %v9915_v29 = vpop.f32.mrb[25].mxu1 }
 0x89a   : > { %v10180_v15 = vpop.f32.mrb[80].mxu0  ;;  %v15208_v60 = vadd.f32 %v9915_v29, %v9914_v2  ;;  %v9917_v61 = vpop.f32.mrb[26].mxu1  ;;  %v7023_v29 = vrot.slane %v7021_v36, 1 }
 0x89b   : > { %v10181_v57 = vpop.f32.mrb[81].mxu0  ;;  %v9918_v17 = vpop.f32.mrb[27].mxu1 }
 0x89c   : > { %v15210_v56 = vadd.f32 %v10181_v57, %v10180_v15  ;;  %v10183_v22 = vpop.f32.mrb[82].mxu0  ;;  %v15214_v28 = vadd.f32 %v9918_v17, %v9917_v61  ;;  %v7017_v15 = vsel %vm2177_vm8, %v7012_v3, %v7016_v45  ;;  %v7026_v57 = vshll.u32 %v15229_v38, 16  ;;  %v15246_v3 = vld [vmem:[#allocation3 + $0x8c] ss:$0 sps:$4 sm:$0x11]   ;;  %v15254_v45 = vld [vmem:[#allocation3 + $0x90] sm:$0xff]  }
 0x89d   : > { %v10184_v1 = vpop.f32.mrb[83].mxu0  ;;  %7456 = vmatmul.mubr.bf16.gmra.mrb[132].mxu1 %v15163_v51  ;;  %v7024_v54 = vor.u32 %v7023_v29, %v7019_v31 }
 0x89e   : > { %v15216_v58 = vadd.f32 %v10184_v1, %v10183_v22  ;;  %7463 = vmatprep.mubr.bf16.mxu1 %v7005_v9  ;;  %v7033_v1 = vshll.u32 %v15237_v5, 16 }
 0x8a0   : > { %16025 = vst [vmem:[#allocation20_spill] sm:$0xff] %v15216_v58  ;;  %v9920_v23 = vpop.f32.mrb[28].mxu1 }
 0x8a1   : > { %v9921_v49 = vpop.f32.mrb[29].mxu1 }
 0x8a2   : > { %v10186_v24 = vpop.f32.mrb[84].mxu0  ;;  %v15225_v48 = vadd.f32 %v9921_v49, %v9920_v23  ;;  %v9923_v16 = vpop.f32.mrb[30].mxu1  ;;  %v7028_v49 = vrot.slane %v7026_v57, 1 }
 0x8a3   : > { %v10187_v52 = vpop.f32.mrb[85].mxu0  ;;  %v9924_v39 = vpop.f32.mrb[31].mxu1 }
 0x8a4   : > { %16026 = vst [vmem:[#allocation22_spill] sm:$0xff] %v15225_v48  ;;  %v15227_v12 = vadd.f32 %v10187_v52, %v10186_v24  ;;  %v10189_v21 = vpop.f32.mrb[86].mxu0  ;;  %v15231_v6 = vadd.f32 %v9924_v39, %v9923_v16  ;;  %v7035_v39 = vrot.slane %v7033_v1, 1 }
 0x8a5   : > { %v10190_v62 = vpop.f32.mrb[87].mxu0  ;;  %7464 = vmatmul.mubr.bf16.gmra.mrb[136].mxu1 %v15186_v53 }
 0x8a6   : > { %16027 = vst [vmem:[#allocation10_spill] sm:$0xff] %v15227_v12  ;;  %16028 = vst [vmem:[#allocation21_spill] sm:$0xff] %v15231_v6  ;;  %v15233_v2 = vadd.f32 %v10190_v62, %v10189_v21  ;;  %7471 = vmatprep.mubr.bf16.mxu1 %v7017_v15  ;;  %v7029_v21 = vsel %vm2177_vm8, %v7024_v54, %v7028_v49  ;;  %v7031_v62 = vshrl.u32 %v15237_v5, 16  ;;  %v7038_v15 = vshll.u32 %v15246_v3, 16 }
 0x8a7   : > { %v15263_v49 = vld [vmem:[#allocation3 + $0x98] ss:$0 sps:$4 sm:$0x11]  }
 0x8a8   : > { %16029 = vst [vmem:[#allocation24_spill] sm:$0xff] %v15233_v2  ;;  %v9926_v61 = vpop.f32.mrb[32].mxu1 }
 0x8a9   : > { %v9927_v17 = vpop.f32.mrb[33].mxu1 }
 0x8aa   : > { %v10192_v22 = vpop.f32.mrb[88].mxu0  ;;  %v15242_v9 = vadd.f32 %v9927_v17, %v9926_v61  ;;  %v9929_v4 = vpop.f32.mrb[34].mxu1  ;;  %v7036_v61 = vor.u32 %v7035_v39, %v7031_v62 }
 0x8ab   : > { %v10193_v0 = vpop.f32.mrb[89].mxu0  ;;  %v9930_v24 = vpop.f32.mrb[35].mxu1 }
 0x8ac   : > { %16030 = vst [vmem:[#allocation18_spill] sm:$0xff] %v15242_v9  ;;  %v15244_v14 = vadd.f32 %v10193_v0, %v10192_v22  ;;  %v10195_v23 = vpop.f32.mrb[90].mxu0  ;;  %v15248_v36 = vadd.f32 %v9930_v24, %v9929_v4  ;;  %v7045_v22 = vshll.u32 %v15254_v45, 16  ;;  %v7040_v24 = vrot.slane %v7038_v15, 1 }
 0x8ad   : > { %v10196_v52 = vpop.f32.mrb[91].mxu0  ;;  %7472 = vmatmul.mubr.bf16.gmra.mrb[140].mxu1 %v15203_v35 }
 0x8ae   : > { %16031 = vst [vmem:[#allocation15_spill] sm:$0xff] %v15244_v14  ;;  %16032 = vst [vmem:[#allocation12_spill] sm:$0xff] %v15248_v36  ;;  %v15250_v16 = vadd.f32 %v10196_v52, %v10195_v23  ;;  %7479 = vmatprep.mubr.bf16.mxu1 %v7029_v21  ;;  %v7041_v39 = vsel %vm2177_vm8, %v7036_v61, %v7040_v24  ;;  %v7047_v62 = vrot.slane %v7045_v22, 1 }
 0x8b0   : > { %16033 = vst [vmem:[#allocation17_spill] sm:$0xff] %v15250_v16  ;;  %v9932_v29 = vpop.f32.mrb[36].mxu1 }
 0x8b1   : > { %v9933_v57 = vpop.f32.mrb[37].mxu1 }
 0x8b2   : > { %v10198_v31 = vpop.f32.mrb[92].mxu0  ;;  %v15259_v17 = vadd.f32 %v9933_v57, %v9932_v29  ;;  %v9935_v4 = vpop.f32.mrb[38].mxu1  ;;  %v15271_v29 = vld [vmem:[#allocation3 + $0x9c] sm:$0xff]   ;;  %v7050_v57 = vshll.u32 %v15263_v49, 16 }
 0x8b3   : > { %v10199_v0 = vpop.f32.mrb[93].mxu0  ;;  %v9936_v1 = vpop.f32.mrb[39].mxu1 }
 0x8b4   : > { %16034 = vst [vmem:[#allocation13_spill] sm:$0xff] %v15259_v17  ;;  %v15261_v23 = vadd.f32 %v10199_v0, %v10198_v31  ;;  %v10201_v54 = vpop.f32.mrb[94].mxu0  ;;  %v15265_v52 = vadd.f32 %v9936_v1, %v9935_v4  ;;  %v7043_v31 = vshrl.u32 %v15254_v45, 16  ;;  %v7057_v1 = vshll.u32 %v15271_v29, 16 }
 0x8b5   : > { %v10202_v21 = vpop.f32.mrb[95].mxu0  ;;  %7480 = vmatmul.mubr.bf16.gmra.mrb[144].mxu1 %v15220_v20  ;;  %v7052_v24 = vrot.slane %v7050_v57, 1 }
 0x8b6   : > { %16035 = vst [vmem:[#allocation25_spill] sm:$0xff] %v15261_v23  ;;  %16036 = vst [vmem:[#allocation16_spill] sm:$0xff] %v15265_v52  ;;  %v15267_v16 = vadd.f32 %v10202_v21, %v10201_v54  ;;  %7487 = vmatprep.mubr.bf16.mxu1 %v7041_v39  ;;  %v7048_v4 = vor.u32 %v7047_v62, %v7043_v31  ;;  %v15280_v39 = vld [vmem:[#allocation3 + $0xa4] ss:$0 sps:$4 sm:$0x11]   ;;  %v15288_v31 = vld [vmem:[#allocation3 + $0xa8] sm:$0xff]  }
 0x8b8   : > { %16037 = vst [vmem:[#allocation19_spill] sm:$0xff] %v15267_v16  ;;  %v9938_v15 = vpop.f32.mrb[40].mxu1  ;;  %v7053_v62 = vsel %vm2177_vm8, %v7048_v4, %v7052_v24 }
 0x8b9   : > { %v9939_v23 = vpop.f32.mrb[41].mxu1 }
 0x8ba   : > { %v10204_v0 = vpop.f32.mrb[96].mxu0  ;;  %v15276_v54 = vadd.f32 %v9939_v23, %v9938_v15  ;;  %v9941_v16 = vpop.f32.mrb[42].mxu1  ;;  %v7059_v23 = vrot.slane %v7057_v1, 1  ;;  %v7055_v15 = vshrl.u32 %v15271_v29, 16 }
 0x8bb   : > { %v10205_v21 = vpop.f32.mrb[97].mxu0  ;;  %v9942_v22 = vpop.f32.mrb[43].mxu1 }
 0x8bc   : > { %16038 = vst [vmem:[#allocation11_spill] sm:$0xff] %v15276_v54  ;;  %v15278_v52 = vadd.f32 %v10205_v21, %v10204_v0  ;;  %v10207_v61 = vpop.f32.mrb[98].mxu0  ;;  %v15282_v17 = vadd.f32 %v9942_v22, %v9941_v16  ;;  %v7062_v0 = vshll.u32 %v15280_v39, 16  ;;  %v7060_v16 = vor.u32 %v7059_v23, %v7055_v15  ;;  %v15305_v15 = vld [vmem:[#allocation3 + $0xb4] sm:$0xff]  }
 0x8bd   : > { %v10208_v36 = vpop.f32.mrb[99].mxu0  ;;  %7488 = vmatmul.mubr.bf16.gmra.mrb[148].mxu1 %v15237_v5  ;;  %v7069_v22 = vshll.u32 %v15288_v31, 16 }
 0x8be   : > { %16039 = vst [vmem:[#allocation23_spill] sm:$0xff] %v15278_v52  ;;  %16040 = vst [vmem:[#allocation14_spill] sm:$0xff] %v15282_v17  ;;  %v15284_v14 = vadd.f32 %v10208_v36, %v10207_v61  ;;  %7495 = vmatprep.mubr.bf16.mxu1 %v7053_v62  ;;  %v7064_v24 = vrot.slane %v7062_v0, 1  ;;  %v15297_v62 = vld [vmem:[#allocation3 + $0xb0] ss:$0 sps:$4 sm:$0x11]  }
 0x8c0   : > { %16041 = vst [vmem:[#allocation26_spill] sm:$0xff] %v15284_v14  ;;  %v9944_v57 = vpop.f32.mrb[44].mxu1  ;;  %v7065_v23 = vsel %vm2177_vm8, %v7060_v16, %v7064_v24 }
 0x8c1   : > { %v9945_v52 = vpop.f32.mrb[45].mxu1 }
 0x8c2   : > { %v10210_v21 = vpop.f32.mrb[100].mxu0  ;;  %v15293_v36 = vadd.f32 %v9945_v52, %v9944_v57  ;;  %v9947_v14 = vpop.f32.mrb[46].mxu1  ;;  %v7071_v52 = vrot.slane %v7069_v22, 1  ;;  %v7067_v57 = vshrl.u32 %v15288_v31, 16 }
 0x8c3   : > { %v10211_v61 = vpop.f32.mrb[101].mxu0  ;;  %v9948_v1 = vpop.f32.mrb[47].mxu1 }
 0x8c4   : > { %16042 = vst [vmem:[#allocation27_spill] sm:$0xff] %v15293_v36  ;;  %v15295_v17 = vadd.f32 %v10211_v61, %v10210_v21  ;;  %v10213_v4 = vpop.f32.mrb[102].mxu0  ;;  %v15299_v54 = vadd.f32 %v9948_v1, %v9947_v14  ;;  %v7074_v21 = vshll.u32 %v15297_v62, 16  ;;  %v7072_v14 = vor.u32 %v7071_v52, %v7067_v57  ;;  %v15322_v57 = vld [vmem:[#allocation3 + $0xc0] sm:$0xff]  }
 0x8c5   : > { %v10214_v9 = vpop.f32.mrb[103].mxu0  ;;  %7496 = vmatmul.mubr.bf16.gmra.mrb[152].mxu1 %v15254_v45  ;;  %v7081_v1 = vshll.u32 %v15305_v15, 16 }
 0x8c6   : > { %16043 = vst [vmem:[#allocation28_spill] sm:$0xff] %v15295_v17  ;;  %16044 = vst [vmem:[#allocation29_spill] sm:$0xff] %v15299_v54  ;;  %v15301_v2 = vadd.f32 %v10214_v9, %v10213_v4  ;;  %7503 = vmatprep.mubr.bf16.mxu1 %v7065_v23  ;;  %v7076_v24 = vrot.slane %v7074_v21, 1  ;;  %v15314_v23 = vld [vmem:[#allocation3 + $0xbc] ss:$0 sps:$4 sm:$0x11]  }
 0x8c8   : > { %16045 = vst [vmem:[#allocation30_spill] sm:$0xff] %v15301_v2  ;;  %v9950_v0 = vpop.f32.mrb[48].mxu1  ;;  %v7077_v52 = vsel %vm2177_vm8, %v7072_v14, %v7076_v24 }
 0x8c9   : > { %v9951_v17 = vpop.f32.mrb[49].mxu1 }
 0x8ca   : > { %v10216_v61 = vpop.f32.mrb[104].mxu0  ;;  %v15310_v9 = vadd.f32 %v9951_v17, %v9950_v0  ;;  %v9953_v2 = vpop.f32.mrb[50].mxu1  ;;  %v7083_v17 = vrot.slane %v7081_v1, 1  ;;  %v7079_v0 = vshrl.u32 %v15305_v15, 16 }
 0x8cb   : > { %v10217_v4 = vpop.f32.mrb[105].mxu0  ;;  %v9954_v22 = vpop.f32.mrb[51].mxu1 }
 0x8cc   : > { %16046 = vst [vmem:[#allocation31_spill] sm:$0xff] %v15310_v9  ;;  %v15312_v54 = vadd.f32 %v10217_v4, %v10216_v61  ;;  %v10219_v16 = vpop.f32.mrb[106].mxu0  ;;  %v15316_v36 = vadd.f32 %v9954_v22, %v9953_v2  ;;  %v7086_v61 = vshll.u32 %v15314_v23, 16  ;;  %v7084_v2 = vor.u32 %v7083_v17, %v7079_v0 }
 0x8cd   : > { %v10220_v6 = vpop.f32.mrb[107].mxu0  ;;  %7504 = vmatmul.mubr.bf16.gmra.mrb[156].mxu1 %v15271_v29  ;;  %v7093_v22 = vshll.u32 %v15322_v57, 16  ;;  %v7091_v0 = vshrl.u32 %v15322_v57, 16 }
 0x8ce   : > { %16047 = vst [vmem:[#allocation32_spill] sm:$0xff] %v15312_v54  ;;  %16048 = vst [vmem:[#allocation33_spill] sm:$0xff] %v15316_v36  ;;  %v15318_v12 = vadd.f32 %v10220_v6, %v10219_v16  ;;  %7511 = vmatprep.mubr.bf16.mxu1 %v7077_v52  ;;  %v7088_v24 = vrot.slane %v7086_v61, 1  ;;  %v15331_v52 = vld [vmem:[#allocation3 + $0xc8] ss:$0 sps:$4 sm:$0x11]  }
 0x8d0   : > { %16049 = vst [vmem:[#allocation34_spill] sm:$0xff] %v15318_v12  ;;  %v9956_v21 = vpop.f32.mrb[52].mxu1  ;;  %v7089_v17 = vsel %vm2177_vm8, %v7084_v2, %v7088_v24 }
 0x8d1   : > { %v9957_v54 = vpop.f32.mrb[53].mxu1 }
 0x8d2   : > { %v10222_v4 = vpop.f32.mrb[108].mxu0  ;;  %v15327_v6 = vadd.f32 %v9957_v54, %v9956_v21  ;;  %v9959_v12 = vpop.f32.mrb[54].mxu1  ;;  %v7095_v54 = vrot.slane %v7093_v22, 1  ;;  %v7098_v21 = vshll.u32 %v15331_v52, 16 }
 0x8d3   : > { %v10223_v16 = vpop.f32.mrb[109].mxu0  ;;  %v9960_v1 = vpop.f32.mrb[55].mxu1 }
 0x8d4   : > { %16050 = vst [vmem:[#allocation35_spill] sm:$0xff] %v15327_v6  ;;  %v15329_v36 = vadd.f32 %v10223_v16, %v10222_v4  ;;  %v10225_v14 = vpop.f32.mrb[110].mxu0  ;;  %v15333_v9 = vadd.f32 %v9960_v1, %v9959_v12 }
 0x8d5   : > { %v10226_v48 = vpop.f32.mrb[111].mxu0  ;;  %7512 = vmatmul.mubr.bf16.gmra.mrb[160].mxu1 %v15288_v31 }
 0x8d6   : > { %16051 = vst [vmem:[#allocation36_spill] sm:$0xff] %v15329_v36  ;;  %16052 = vst [vmem:[#allocation37_spill] sm:$0xff] %v15333_v9  ;;  %v15335_v58 = vadd.f32 %v10226_v48, %v10225_v14  ;;  %7519 = vmatprep.mubr.bf16.mxu1 %v7089_v17  ;;  %v7096_v36 = vor.u32 %v7095_v54, %v7091_v0  ;;  %v7100_v9 = vrot.slane %v7098_v21, 1 }
 0x8d8   : > { %16053 = vst [vmem:[#allocation38_spill] sm:$0xff] %v15335_v58  ;;  %v9962_v4 = vpop.f32.mrb[56].mxu1  ;;  %v7101_v17 = vsel %vm2177_vm8, %v7096_v36, %v7100_v9 }
 0x8d9   : > { %v9963_v61 = vpop.f32.mrb[57].mxu1 }
 0x8da   : > { %v10228_v16 = vpop.f32.mrb[112].mxu0  ;;  %v15341_v6 = vadd.f32 %v9963_v61, %v9962_v4  ;;  %v9965_v1 = vpop.f32.mrb[58].mxu1  ;;  %v7118_v61 = vrot.slane %v15088_v7, 1 }
 0x8db   : > { %v10229_v12 = vpop.f32.mrb[113].mxu0  ;;  %v9966_v58 = vpop.f32.mrb[59].mxu1 }
 0x8dc   : > { %v15343_v48 = vadd.f32 %v10229_v12, %v10228_v16  ;;  %v10231_v14 = vpop.f32.mrb[114].mxu0  ;;  %v15345_v2 = vadd.f32 %v9966_v58, %v9965_v1  ;;  %v7119_v16 = vrot.slane %v15092_v59, 1  ;;  %v7121_v59 = vrot.slane %v15095_v47, 1  ;;  %v11495_v47 = vld [vmem:[%s15868_s11 + $0x208] sm:$0xff]  }
 0x8dd   : > { %v10232_v22 = vpop.f32.mrb[115].mxu0  ;;  %7520 = vmatmul.mubr.bf16.gmra.mrb[164].mxu1 %v15305_v15 }
 0x8de   : > { %16054 = vst [vmem:[#allocation39_spill] sm:$0xff] %v15345_v2  ;;  %v15347_v24 = vadd.f32 %v10232_v22, %v10231_v14  ;;  %7527 = vmatprep.mubr.bf16.mxu1 %v7101_v17  ;;  %v7120_v9 = vsel %vm2402_vm10, %v7118_v61, %v7119_v16  ;;  %v7122_v17 = vrot.slane %v15101_v19, 1 }
 0x8e0   : > { %16055 = vst [vmem:[#allocation40_spill] sm:$0xff] %v15347_v24  ;;  %v9968_v54 = vpop.f32.mrb[60].mxu1 }
 0x8e1   : > { %v9969_v4 = vpop.f32.mrb[61].mxu1 }
 0x8e2   : > { %v10234_v0 = vpop.f32.mrb[116].mxu0  ;;  %v15353_v12 = vadd.f32 %v9969_v4, %v9968_v54  ;;  %v9971_v58 = vpop.f32.mrb[62].mxu1  ;;  %v7124_v4 = vrot.slane %v15105_v13, 1 }
 0x8e3   : > { %v10235_v21 = vpop.f32.mrb[117].mxu0  ;;  %v9972_v22 = vpop.f32.mrb[63].mxu1 }
 0x8e4   : > { %v15355_v1 = vadd.f32 %v10235_v21, %v10234_v0  ;;  %v10237_v14 = vpop.f32.mrb[118].mxu0  ;;  %v15357_v24 = vadd.f32 %v9972_v22, %v9971_v58  ;;  %v7125_v21 = vrot.slane %v15110_v25, 1 }
 0x8e5   : > { %v10238_v2 = vpop.f32.mrb[119].mxu0  ;;  %7528 = vmatmul.mubr.bf16.gmra.mrb[168].mxu1 %v15322_v57 }
 0x8e6   : > { %v15359_v36 = vadd.f32 %v10238_v2, %v10237_v14  ;;  %10524 = vmatprep.mubr.bf16.mxu1 %v7120_v9  ;;  %v7123_v9 = vsel %vm2402_vm10, %v7121_v59, %v7122_v17  ;;  %v7126_v25 = vsel %vm2402_vm10, %v7124_v4, %v7125_v21  ;;  %v7131_v17 = vrot.slane %v15141_v42, 1 }
 0x8e8   : > { %16056 = vst [vmem:[#allocation41_spill] sm:$0xff] %v15359_v36  ;;  %v9974_v7 = vpop.f32.mrb[64].mxu1 }
 0x8e9   : > { %v9975_v0 = vpop.f32.mrb[65].mxu1 }
 0x8ea   : > { %v10240_v54 = vpop.f32.mrb[120].mxu0  ;;  %v15367_v58 = vadd.f32 %v9975_v0, %v9974_v7  ;;  %v9977_v14 = vpop.f32.mrb[66].mxu1  ;;  %v11496_v7 = vld [vmem:[%s15868_s11 + $0x210] sm:$0xff]   ;;  %v7127_v0 = vrot.slane %v15117_v40, 1  ;;  %v11497_v40 = vld [vmem:[%s15868_s11 + $0x218] sm:$0xff]  }
 0x8eb   : > { %v10241_v2 = vpop.f32.mrb[121].mxu0  ;;  %v9978_v61 = vpop.f32.mrb[67].mxu1 }
 0x8ec   : > { %v15369_v22 = vadd.f32 %v10241_v2, %v10240_v54  ;;  %v10243_v36 = vpop.f32.mrb[122].mxu0  ;;  %v15374_v16 = vadd.f32 %v9978_v61, %v9977_v14  ;;  %v7128_v2 = vrot.slane %v15126_v46, 1 }
 0x8ed   : > { %v10244_v19 = vpop.f32.mrb[123].mxu0  ;;  %10525 = vmatmul.mubr.bf16.vlgmr.msra.gmra.mrb[76].mxu1 %v7123_v9 }
 0x8ee   : > { %v15377_v13 = vadd.f32 %v10244_v19, %v10243_v36  ;;  %10557 = vmatpush3.bf16.msra.mxu1 %v15170_v27  ;;  %10528 = vmatprep.mubr.bf16.mxu1 %v7126_v25  ;;  %v7130_v36 = vrot.slane %v15133_v55, 1  ;;  %v7129_v55 = vsel %vm2402_vm10, %v7127_v0, %v7128_v2  ;;  %v7136_v0 = vrot.slane %v15163_v51, 1 }
 0x8ef   : > { %10558 = vmatprep.subr.bf16.mxu1 %v11495_v47  ;;  %v7137_v2 = vrot.slane %v15177_v41, 1 }
 0x8f0   : > { %v9980_v54 = vpop.f32.mrb[68].mxu1 }
 0x8f1   : > { %v9981_v59 = vpop.f32.mrb[69].mxu1 }
 0x8f2   : > { %v10246_v14 = vpop.f32.mrb[124].mxu0  ;;  %v15388_v4 = vadd.f32 %v9981_v59, %v9980_v54  ;;  %v9983_v21 = vpop.f32.mrb[70].mxu1  ;;  %10559 = vmatpush3.bf16.msra.mxu1 %v11495_v47  ;;  %v7132_v54 = vsel %vm2402_vm10, %v7130_v36, %v7131_v17  ;;  %v11498_v47 = vld [vmem:[%s15868_s11 + $0x220] sm:$0xff]   ;;  %v7133_v59 = vrot.slane %v15148_v50, 1  ;;  %v11499_v50 = vld [vmem:[%s15868_s11 + $0x228] sm:$0xff]  }
 0x8f3   : > { %v10247_v27 = vpop.f32.mrb[125].mxu0  ;;  %v9984_v9 = vpop.f32.mrb[71].mxu1  ;;  %10560 = vmatprep.subr.bf16.mxu1 %v11496_v7 }
 0x8f4   : > { %v15390_v61 = vadd.f32 %v10247_v27, %v10246_v14  ;;  %v10249_v19 = vpop.f32.mrb[126].mxu0  ;;  %v15395_v46 = vadd.f32 %v9984_v9, %v9983_v21  ;;  %v7134_v27 = vrot.slane %v15156_v44, 1 }
 0x8f5   : > { %v10250_v25 = vpop.f32.mrb[127].mxu0  ;;  %10529 = vmatmul.mubr.bf16.gmra.mrb[80].mxu1 %v7129_v55 }
 0x8f6   : > { %v15398_v42 = vadd.f32 %v10250_v25, %v10249_v19  ;;  %10532 = vmatprep.mubr.bf16.mxu1 %v7132_v54  ;;  %10561 = vmatpush3.bf16.msra.mxu1 %v11496_v7  ;;  %v7135_v51 = vsel %vm2402_vm10, %v7133_v59, %v7134_v27  ;;  %v7143_v59 = vrot.slane %v15212_v26, 1  ;;  %v11501_v27 = vld [vmem:[%s15868_s11 + $0x238] sm:$0xff]   ;;  %v7148_v26 = vrot.slane %v15237_v5, 1 }
 0x8f7   : > { %10562 = vmatprep.subr.bf16.mxu1 %v11497_v40 }
 0x8f8   : > { %v9986_v14 = vpop.f32.mrb[72].mxu1 }
 0x8f9   : > { %v9987_v9 = vpop.f32.mrb[73].mxu1 }
 0x8fa   : > { %v10252_v21 = vpop.f32.mrb[128].mxu0  ;;  %v15408_v19 = vadd.f32 %v9987_v9, %v9986_v14  ;;  %v9989_v7 = vpop.f32.mrb[74].mxu1  ;;  %10563 = vmatpush3.bf16.msra.mxu1 %v11497_v40  ;;  %v7138_v14 = vsel %vm2402_vm10, %v7136_v0, %v7137_v2  ;;  %v11500_v40 = vld [vmem:[%s15868_s11 + $0x230] sm:$0xff]   ;;  %v7140_v9 = vrot.slane %v15195_v8, 1  ;;  %v7145_v8 = vrot.slane %v15220_v20, 1 }
 0x8fb   : > { %v10253_v36 = vpop.f32.mrb[129].mxu0  ;;  %v9990_v55 = vpop.f32.mrb[75].mxu1  ;;  %10564 = vmatprep.subr.bf16.mxu1 %v11498_v47  ;;  %v7149_v2 = vrot.slane %v15246_v3, 1  ;;  %v7154_v20 = vrot.slane %v15271_v29, 1 }
 0x8fc   : > { %v15410_v17 = vadd.f32 %v10253_v36, %v10252_v21  ;;  %v10255_v25 = vpop.f32.mrb[130].mxu0  ;;  %v15415_v44 = vadd.f32 %v9990_v55, %v9989_v7  ;;  %v7139_v21 = vrot.slane %v15186_v53, 1  ;;  %v7142_v36 = vrot.slane %v15203_v35, 1  ;;  %v11502_v53 = vld [vmem:[%s15870_s13] sm:$0xff]  }
 0x8fd   : > { %v10256_v54 = vpop.f32.mrb[131].mxu0  ;;  %10533 = vmatmul.mubr.bf16.gmra.mrb[84].mxu1 %v7135_v51  ;;  %v7146_v35 = vrot.slane %v15229_v38, 1  ;;  %v7151_v55 = vrot.slane %v15254_v45, 1  ;;  %v7155_v38 = vrot.slane %v15280_v39, 1  ;;  %v7158_v51 = vrot.slane %v15297_v62, 1 }
 0x8fe   : > { %v15418_v41 = vadd.f32 %v10256_v54, %v10255_v25  ;;  %10536 = vmatprep.mubr.bf16.mxu1 %v7138_v14  ;;  %10565 = vmatpush3.bf16.msra.mxu1 %v11498_v47  ;;  %v7141_v47 = vsel %vm2402_vm10, %v7139_v21, %v7140_v9  ;;  %v7144_v0 = vsel %vm2402_vm10, %v7142_v36, %v7143_v59  ;;  %v7157_v54 = vrot.slane %v15288_v31, 1  ;;  %v11726_v21 = vld [vmem:[#allocation3 + $0x18] sm:$0xff]   ;;  %v11727_v36 = vld [vmem:[#allocation3 + $0x20] ss:$0 sps:$4 sm:$0x11]  }
 0x8ff   : > { %10566 = vmatprep.subr.bf16.mxu1 %v11499_v50  ;;  %v7147_v7 = vsel %vm2402_vm10, %v7145_v8, %v7146_v35  ;;  %v7150_v25 = vsel %vm2402_vm10, %v7148_v26, %v7149_v2  ;;  %v7156_v3 = vsel %vm2402_vm10, %v7154_v20, %v7155_v38  ;;  %v7160_v14 = vrot.slane %v15305_v15, 1  ;;  %v11731_v35 = vld [vmem:[#allocation3 + $0x38] ss:$0 sps:$4 sm:$0x11]   ;;  %v11734_v38 = vld [vmem:[#allocation3 + $0x48] sm:$0xff]  }
 0x900   : > { %v7161_v45 = vrot.slane %v15314_v23, 1  ;;  %v7163_v39 = vrot.slane %v15322_v57, 1  ;;  %v8130_v9 = vrot.slane %v11726_v21, 1  ;;  %v8131_v31 = vrot.slane %v11727_v36, 1  ;;  %v11728_v23 = vld [vmem:[#allocation3 + $0x24] sm:$0xff]  }
 0x901   : > { %v8133_v59 = vrot.slane %v11728_v23, 1  ;;  %v8137_v57 = vrot.slane %v11731_v35, 1  ;;  %v11742_v35 = vld [vmem:[#allocation3 + $0x78] sm:$0xff]  }
 0x902   : > { %10567 = vmatpush3.bf16.msra.mxu1 %v11499_v50  ;;  %v7152_v50 = vrot.slane %v15263_v49, 1  ;;  %v7159_v49 = vsel %vm2402_vm10, %v7157_v54, %v7158_v51  ;;  %v7162_v29 = vsel %vm2402_vm10, %v7160_v14, %v7161_v45  ;;  %v8132_v15 = vsel %vm2402_vm10, %v8130_v9, %v8131_v31  ;;  %v11736_v45 = vld [vmem:[#allocation3 + $0x54] sm:$0xff]   ;;  %v11739_v9 = vld [vmem:[#allocation3 + $0x68] ss:$0 sps:$4 sm:$0x11]  }
 0x903   : > { %10568 = vmatprep.subr.bf16.mxu1 %v11500_v40  ;;  %v8149_v36 = vrot.slane %v11739_v9, 1 }
 0x904   : > { %v7153_v5 = vsel %vm2402_vm10, %v7151_v55, %v7152_v50  ;;  %v11733_v50 = vld [vmem:[#allocation3 + $0x44] ss:$0 sps:$4 sm:$0x11]  }
 0x905   : > { %10537 = vmatmul.mubr.bf16.gmra.mrb[88].mxu1 %v7141_v47  ;;  %v8140_v20 = vrot.slane %v11733_v50, 1 }
 0x906   : > { %10540 = vmatprep.mubr.bf16.mxu1 %v7144_v0  ;;  %10569 = vmatpush3.bf16.msra.mxu1 %v11500_v40  ;;  %v7164_v40 = vrot.slane %v15331_v52, 1  ;;  %v11730_v0 = vld [vmem:[#allocation3 + $0x30] sm:$0xff]  }
 0x907   : > { %10570 = vmatprep.subr.bf16.mxu1 %v11501_v27  ;;  %v8136_v8 = vrot.slane %v11730_v0, 1  ;;  %v11503_v52 = vld [vmem:[%s15870_s13 + $0x8] sm:$0xff]  }
 0x908   : > { %v7165_v62 = vsel %vm2402_vm10, %v7163_v39, %v7164_v40  ;;  %v11738_v40 = vld [vmem:[#allocation3 + $0x60] sm:$0xff]  }
 0x909   : > { %v8138_v2 = vsel %vm2402_vm10, %v8136_v8, %v8137_v57  ;;  %v8148_v21 = vrot.slane %v11738_v40, 1  ;;  %v8154_v57 = vrot.slane %v11742_v35, 1 }
 0x90a   : > { %10571 = vmatpush3.bf16.msra.mxu1 %v11501_v27  ;;  %v11729_v27 = vld [vmem:[#allocation3 + $0x2c] ss:$0 sps:$4 sm:$0x11]  }
 0x90b   : > { %10604 = vmatprep.subr.bf16.mxu1 %v11502_v53  ;;  %v8134_v47 = vrot.slane %v11729_v27, 1 }
 0x90d   : > { %10541 = vmatmul.mubr.bf16.gmra.mrb[92].mxu1 %v7147_v7  ;;  %v8135_v26 = vsel %vm2402_vm10, %v8133_v59, %v8134_v47  ;;  %v11504_v7 = vld [vmem:[%s15870_s13 + $0x10] sm:$0xff]   ;;  %v11740_v59 = vld [vmem:[#allocation3 + $0x6c] sm:$0xff]   ;;  %v11741_v47 = vld [vmem:[#allocation3 + $0x74] ss:$0 sps:$4 sm:$0x11]  }
 0x90e   : > { %10544 = vmatprep.mubr.bf16.mxu1 %v7150_v25  ;;  %v11732_v25 = vld [vmem:[#allocation3 + $0x3c] sm:$0xff]   ;;  %v8151_v27 = vrot.slane %v11740_v59, 1  ;;  %v8152_v0 = vrot.slane %v11741_v47, 1 }
 0x90f   : > { %v8139_v55 = vrot.slane %v11732_v25, 1 }
 0x911   : > { %v8141_v51 = vsel %vm2402_vm10, %v8139_v55, %v8140_v20 }
 0x915   : > { %10545 = vmatmul.mubr.bf16.gmra.mrb[96].mxu1 %v7153_v5  ;;  %v8142_v5 = vrot.slane %v11734_v38, 1 }
 0x916   : > { %10548 = vmatprep.mubr.bf16.mxu1 %v7156_v3  ;;  %v11735_v3 = vld [vmem:[#allocation3 + $0x50] ss:$0 sps:$4 sm:$0x11]  }
 0x917   : > { %v8143_v54 = vrot.slane %v11735_v3, 1  ;;  %v8153_v3 = vsel %vm2402_vm10, %v8151_v27, %v8152_v0 }
 0x919   : > { %v8144_v14 = vsel %vm2402_vm10, %v8142_v5, %v8143_v54 }
 0x91d   : > { %10549 = vmatmul.mubr.bf16.gmra.mrb[100].mxu1 %v7159_v49  ;;  %v8145_v49 = vrot.slane %v11736_v45, 1 }
 0x91e   : > { %10552 = vmatprep.mubr.bf16.mxu1 %v7162_v29  ;;  %v11737_v29 = vld [vmem:[#allocation3 + $0x5c] ss:$0 sps:$4 sm:$0x11]  }
 0x91f   : > { %v8146_v39 = vrot.slane %v11737_v29, 1 }
 0x921   : > { %v8147_v31 = vsel %vm2402_vm10, %v8145_v49, %v8146_v39  ;;  %v11744_v39 = vld [vmem:[#allocation3 + $0x84] sm:$0xff]  }
 0x922   : > { %v8157_v40 = vrot.slane %v11744_v39, 1 }
 0x925   : > { %10553 = vmatmul.mubr.bf16.gmra.mrb[104].mxu1 %v7165_v62  ;;  %v8150_v62 = vsel %vm2402_vm10, %v8148_v21, %v8149_v36  ;;  %v11746_v36 = vld [vmem:[#allocation3 + $0x90] sm:$0xff]  }
 0x926   : > { %10572 = vmatprep.mubr.bf16.mxu1 %v8132_v15  ;;  %v15476_v15 = vld [vmem:[%s15869_s12] ss:$0 sm:$0xff] }
 0x927   : > { %v10787_v20 = vadd.f32 %v15025_v18, %v15476_v15  ;;  %v11745_v18 = vld [vmem:[#allocation3 + $0x8c] ss:$0 sps:$4 sm:$0x11]   ;;  %v10772_v59 = vadd.f32 %v15173_v32, %v15476_v15  ;;  %v10782_v35 = vadd.f32 %v15180_v11, %v15476_v15 }
 0x928   : > { %v8158_v21 = vrot.slane %v11745_v18, 1 }
 0x92d   : > { %10573 = vmatmul.mubr.bf16.vlgmr.msra.gmra.mrb[76].mxu1 %v8135_v26 }
 0x92e   : > { %10605 = vmatpush3.bf16.msra.mxu1 %v11502_v53  ;;  %10576 = vmatprep.mubr.bf16.mxu1 %v8138_v2  ;;  %v11505_v53 = vld [vmem:[%s15870_s13 + $0x18] sm:$0xff]   ;;  %v10777_v2 = vadd.f32 %v15022_v30, %v15476_v15 }
 0x92f   : > { %10606 = vmatprep.subr.bf16.mxu1 %v11503_v52 }
 0x932   : > { %10607 = vmatpush3.bf16.msra.mxu1 %v11503_v52  ;;  %v11743_v52 = vld [vmem:[#allocation3 + $0x80] ss:$0 sps:$4 sm:$0x11]  }
 0x933   : > { %10608 = vmatprep.subr.bf16.mxu1 %v11504_v7  ;;  %v8155_v26 = vrot.slane %v11743_v52, 1 }
 0x935   : > { %10577 = vmatmul.mubr.bf16.gmra.mrb[80].mxu1 %v8141_v51 }
 0x936   : > { %10580 = vmatprep.mubr.bf16.mxu1 %v8144_v14  ;;  %10609 = vmatpush3.bf16.msra.mxu1 %v11504_v7 }
 0x937   : > { %10610 = vmatprep.subr.bf16.mxu1 %v11505_v53 }
 0x93a   : > { %10611 = vmatpush3.bf16.msra.mxu1 %v11505_v53  ;;  %v8156_v53 = vsel %vm2402_vm10, %v8154_v57, %v8155_v26  ;;  %v8159_v26 = vsel %vm2402_vm10, %v8157_v40, %v8158_v21 }
 0x93c   : > { %v10258_v50 = vpop.f32.mrb[132].mxu0 }
 0x93d   : > { %10581 = vmatmul.mubr.bf16.gmra.mrb[84].mxu1 %v8147_v31  ;;  %v10259_v54 = vpop.f32.mrb[133].mxu0  ;;  %v8160_v31 = vrot.slane %v11746_v36, 1 }
 0x93e   : > { %10584 = vmatprep.mubr.bf16.mxu1 %v8150_v62  ;;  %v15484_v51 = vadd.f32 %v10259_v54, %v10258_v50  ;;  %v10261_v14 = vpop.f32.mrb[134].mxu0  ;;  %v11747_v62 = vld [vmem:[#allocation3 + $0x98] ss:$0 sps:$4 sm:$0x11]  }
 0x93f   : > { %v10262_v30 = vpop.f32.mrb[135].mxu0 }
 0x940   : > { %v10032_v23 = vpop.f32.mrb[108].mxu1  ;;  %v15486_v49 = vadd.f32 %v10262_v30, %v10261_v14 }
 0x941   : > { %v10033_v8 = vpop.f32.mrb[109].mxu1 }
 0x942   : > { %v10034_v7 = vadd.f32 %v10033_v8, %v10032_v23  ;;  %v10035_v25 = vpop.f32.mrb[110].mxu1  ;;  %v8161_v23 = vrot.slane %v11747_v62, 1 }
 0x943   : > { %v10036_v55 = vpop.f32.mrb[111].mxu1 }
 0x944   : > { %v10778_v38 = vadd.f32 %v10777_v2, %v10034_v7  ;;  %v10037_v5 = vadd.f32 %v10036_v55, %v10035_v25  ;;  %v8162_v2 = vsel %vm2402_vm10, %v8160_v31, %v8161_v23  ;;  %v11748_v55 = vld [vmem:[#allocation3 + $0x9c] sm:$0xff]   ;;  %v11752_v31 = vld [vmem:[#allocation3 + $0xb4] sm:$0xff]  }
 0x945   : > { %10585 = vmatmul.mubr.bf16.gmra.mrb[88].mxu1 %v8153_v3  ;;  %v8163_v50 = vrot.slane %v11748_v55, 1  ;;  %v11751_v3 = vld [vmem:[#allocation3 + $0xb0] ss:$0 sps:$4 sm:$0x11]   ;;  %v8169_v62 = vrot.slane %v11752_v31, 1 }
 0x946   : > { %v10788_v45 = vadd.f32 %v10787_v20, %v10037_v5  ;;  %10588 = vmatprep.mubr.bf16.mxu1 %v8156_v53  ;;  %v15491_v8 = vadd.f32 %v10778_v38, %v15175_v34  ;;  %v11749_v34 = vld [vmem:[#allocation3 + $0xa4] ss:$0 sps:$4 sm:$0x11]   ;;  %v11750_v5 = vld [vmem:[#allocation3 + $0xa8] sm:$0xff]   ;;  %v8167_v54 = vrot.slane %v11751_v3, 1  ;;  %v10797_v53 = vadd.f32 %v15191_v63, %v15476_v15 }
 0x947   : > { %v8164_v20 = vrot.slane %v11749_v34, 1  ;;  %v8166_v11 = vrot.slane %v11750_v5, 1  ;;  %v16057_v34 = vld [vmem:[#allocation20_spill] sm:$0xff]  ;;  %v11757_v5 = vld [vmem:[#allocation3 + $0xd4] ss:$0 sps:$4 sm:$0x11]  }
 0x948   : > { %v10038_v29 = vpop.f32.mrb[112].mxu1  ;;  %v15498_v7 = vadd.f32 %v10788_v45, %v15182_v33  ;;  %v10807_v45 = vadd.f32 %v15197_v10, %v15476_v15 }
 0x949   : > { %v10039_v9 = vpop.f32.mrb[113].mxu1  ;;  %v8165_v18 = vsel %vm2402_vm10, %v8163_v50, %v8164_v20  ;;  %v8168_v21 = vsel %vm2402_vm10, %v8166_v11, %v8167_v54  ;;  %v8176_v11 = vrot.slane %v11757_v5, 1  ;;  %v16058_v54 = vld [vmem:[#allocation22_spill] sm:$0xff] }
 0x94a   : > { %v10040_v27 = vadd.f32 %v10039_v9, %v10038_v29  ;;  %v10041_v47 = vpop.f32.mrb[114].mxu1 }
 0x94b   : > { %v10042_v0 = vpop.f32.mrb[115].mxu1 }
 0x94c   : > { %v10773_v57 = vadd.f32 %v10772_v59, %v10040_v27  ;;  %v10043_v52 = vadd.f32 %v10042_v0, %v10041_v47  ;;  %v11754_v27 = vld [vmem:[#allocation3 + $0xc0] sm:$0xff]   ;;  %v11755_v47 = vld [vmem:[#allocation3 + $0xc8] ss:$0 sps:$4 sm:$0x11]  }
 0x94d   : > { %10589 = vmatmul.mubr.bf16.gmra.mrb[92].mxu1 %v8159_v26  ;;  %v8172_v10 = vrot.slane %v11754_v27, 1  ;;  %v8173_v0 = vrot.slane %v11755_v47, 1 }
 0x94e   : > { %v10783_v32 = vadd.f32 %v10782_v35, %v10043_v52  ;;  %10592 = vmatprep.mubr.bf16.mxu1 %v8162_v2  ;;  %v15503_v33 = vadd.f32 %v10773_v57, %v15193_v37  ;;  %v11753_v37 = vld [vmem:[#allocation3 + $0xbc] ss:$0 sps:$4 sm:$0x11]   ;;  %v10792_v35 = vadd.f32 %v15208_v60, %v15476_v15  ;;  %v10802_v2 = vadd.f32 %v15214_v28, %v15476_v15 }
 0x94f   : > { %v8170_v23 = vrot.slane %v11753_v37, 1  ;;  %v8174_v50 = vsel %vm2402_vm10, %v8172_v10, %v8173_v0  ;;  %v11760_v0 = vld [vmem:[%s12041_s24 + $0x10] sm:$0xff] }
 0x950   : > { %v10044_v25 = vpop.f32.mrb[116].mxu1  ;;  %v15510_v9 = vadd.f32 %v10783_v32, %v15199_v43 }
 0x951   : > { %v10045_v38 = vpop.f32.mrb[117].mxu1  ;;  %v8171_v55 = vsel %vm2402_vm10, %v8169_v62, %v8170_v23  ;;  %v16061_v23 = vld [vmem:[#allocation24_spill] sm:$0xff] }
 0x952   : > { %v10046_v14 = vadd.f32 %v10045_v38, %v10044_v25  ;;  %v10047_v30 = vpop.f32.mrb[118].mxu1  ;;  %v11756_v38 = vld [vmem:[#allocation3 + $0xcc] sm:$0xff]  }
 0x953   : > { %v10048_v29 = vpop.f32.mrb[119].mxu1 }
 0x954   : > { %v10798_v39 = vadd.f32 %v10797_v53, %v10046_v14  ;;  %v10049_v40 = vadd.f32 %v10048_v29, %v10047_v30  ;;  %v10817_v53 = vadd.f32 %v16058_v54, %v15476_v15 }
 0x955   : > { %10593 = vmatmul.mubr.bf16.gmra.mrb[96].mxu1 %v8165_v18 }
 0x956   : > { %v10808_v63 = vadd.f32 %v10807_v45, %v10049_v40  ;;  %10596 = vmatprep.mubr.bf16.mxu1 %v8168_v21  ;;  %v15515_v43 = vadd.f32 %v10798_v39, %v15210_v56  ;;  %v8175_v56 = vrot.slane %v11756_v38, 1  ;;  %v11758_v45 = vld [vmem:[%s12041_s24] sm:$0xff]  ;;  %v11759_v39 = vld [vmem:[%s12041_s24 + $0x8] sm:$0xff]  ;;  %v16059_v21 = vld [vmem:[#allocation10_spill] sm:$0xff] }
 0x957   : > { %v8741_v40 = vpack.c.bf16 %v11759_v39, %v11758_v45  ;;  %v11765_v45 = vld [vmem:[%s12041_s24 + $0x38] sm:$0xff] }
 0x958   : > { %v10050_v36 = vpop.f32.mrb[120].mxu1  ;;  %v15522_v60 = vadd.f32 %v10808_v63, %v16057_v34  ;;  %v8177_v29 = vsel %vm2402_vm10, %v8175_v56, %v8176_v11  ;;  %v16064_v56 = vld [vmem:[#allocation12_spill] sm:$0xff] }
 0x959   : > { %v10051_v59 = vpop.f32.mrb[121].mxu1  ;;  %v10822_v5 = vadd.f32 %v16064_v56, %v15476_v15 }
 0x95a   : > { %v10052_v57 = vadd.f32 %v10051_v59, %v10050_v36  ;;  %v10053_v52 = vpop.f32.mrb[122].mxu1  ;;  %v16060_v36 = vld [vmem:[#allocation21_spill] sm:$0xff] }
 0x95b   : > { %v10054_v26 = vpop.f32.mrb[123].mxu1  ;;  %v10827_v31 = vadd.f32 %v16060_v36, %v15476_v15 }
 0x95c   : > { %v10793_v32 = vadd.f32 %v10792_v35, %v10052_v57  ;;  %v10055_v25 = vadd.f32 %v10054_v26, %v10053_v52  ;;  %v11761_v35 = vld [vmem:[%s12041_s24 + $0x18] sm:$0xff]  ;;  %v16062_v52 = vld [vmem:[#allocation18_spill] sm:$0xff] }
 0x95d   : > { %10597 = vmatmul.mubr.bf16.gmra.mrb[100].mxu1 %v8171_v55  ;;  %v8742_v57 = vpack.c.bf16 %v11761_v35, %v11760_v0  ;;  %v10812_v26 = vadd.f32 %v16062_v52, %v15476_v15  ;;  %v11763_v55 = vld [vmem:[%s12041_s24 + $0x28] sm:$0xff]  ;;  %v16069_v52 = vld [vmem:[#allocation19_spill] sm:$0xff] }
 0x95e   : > { %v10803_v20 = vadd.f32 %v10802_v2, %v10055_v25  ;;  %10600 = vmatprep.mubr.bf16.mxu1 %v8174_v50  ;;  %v15530_v63 = vadd.f32 %v10793_v32, %v16059_v21  ;;  %v11762_v25 = vld [vmem:[%s12041_s24 + $0x20] sm:$0xff] }
 0x95f   : > { %v8743_v50 = vpack.c.bf16 %v11763_v55, %v11762_v25  ;;  %v11768_v55 = vld [vmem:[%s12041_s24 + $0x50] sm:$0xff] }
 0x960   : > { %v10056_v3 = vpop.f32.mrb[124].mxu1  ;;  %v15535_v59 = vadd.f32 %v10803_v20, %v16061_v23  ;;  %v16063_v20 = vld [vmem:[#allocation15_spill] sm:$0xff] }
 0x961   : > { %v10057_v28 = vpop.f32.mrb[125].mxu1 }
 0x962   : > { %v10058_v14 = vadd.f32 %v10057_v28, %v10056_v3  ;;  %v10059_v30 = vpop.f32.mrb[126].mxu1  ;;  %v16065_v28 = vld [vmem:[#allocation17_spill] sm:$0xff] }
 0x963   : > { %v10060_v18 = vpop.f32.mrb[127].mxu1 }
 0x964   : > { %v10818_v62 = vadd.f32 %v10817_v53, %v10058_v14  ;;  %v10061_v37 = vadd.f32 %v10060_v18, %v10059_v30 }
 0x965   : > { %10601 = vmatmul.mubr.bf16.gmra.mrb[104].mxu1 %v8177_v29  ;;  %v11764_v29 = vld [vmem:[%s12041_s24 + $0x30] sm:$0xff] }
 0x966   : > { %v10828_v27 = vadd.f32 %v10827_v31, %v10061_v37  ;;  %10612 = vmatprep.mubr.msk.bf16.mxu1 %vm761_vm4, %v8741_v40  ;;  %v15545_v38 = vadd.f32 %v10818_v62, %v16063_v20  ;;  %v8744_v39 = vpack.c.bf16 %v11765_v45, %v11764_v29  ;;  %v16066_v40 = vld [vmem:[#allocation13_spill] sm:$0xff]  ;;  %v11766_v31 = vld [vmem:[%s12041_s24 + $0x40] sm:$0xff]  ;;  %v16070_v20 = vld [vmem:[#allocation11_spill] sm:$0xff] }
 0x967   : > { %v10837_v18 = vadd.f32 %v16066_v40, %v15476_v15  ;;  %v11767_v62 = vld [vmem:[%s12041_s24 + $0x48] sm:$0xff]  ;;  %v10832_v56 = vadd.f32 %v16070_v20, %v15476_v15  ;;  %v16072_v45 = vld [vmem:[#allocation14_spill] sm:$0xff] }
 0x968   : > { %v10062_v10 = vpop.f32.mrb[128].mxu1  ;;  %v15551_v54 = vadd.f32 %v10828_v27, %v16065_v28  ;;  %v8745_v37 = vpack.c.bf16 %v11767_v62, %v11766_v31  ;;  %v16067_v27 = vld [vmem:[#allocation25_spill] sm:$0xff] }
 0x969   : > { %v10063_v47 = vpop.f32.mrb[129].mxu1  ;;  %v11771_v28 = vld [vmem:[%s12041_s24 + $0x68] sm:$0xff] }
 0x96a   : > { %v10064_v2 = vadd.f32 %v10063_v47, %v10062_v10  ;;  %v10065_v32 = vpop.f32.mrb[130].mxu1  ;;  %v16068_v47 = vld [vmem:[#allocation16_spill] sm:$0xff]  ;;  %v16076_v20 = vld [vmem:[#allocation29_spill] sm:$0xff] }
 0x96b   : > { %v10066_v34 = vpop.f32.mrb[131].mxu1  ;;  %v10847_v0 = vadd.f32 %v16068_v47, %v15476_v15 }
 0x96c   : > { %v10813_v11 = vadd.f32 %v10812_v26, %v10064_v2  ;;  %v10067_v3 = vadd.f32 %v10066_v34, %v10065_v32 }
 0x96d   : > { %10613 = vmatmul.mubr.msk.bf16.vlgmr.msra.gmra.mrb[76].mxu1 %vm761_vm4, %v8742_v57 }
 0x96e   : > { %v10823_v53 = vadd.f32 %v10822_v5, %v10067_v3  ;;  %10616 = vmatprep.mubr.msk.bf16.mxu1 %vm761_vm4, %v8743_v50  ;;  %v15561_v10 = vadd.f32 %v10813_v11, %v16067_v27  ;;  %v11769_v50 = vld [vmem:[%s12041_s24 + $0x58] sm:$0xff]  ;;  %v11770_v3 = vld [vmem:[%s12041_s24 + $0x60] sm:$0xff] }
 0x96f   : > { %v8746_v34 = vpack.c.bf16 %v11769_v50, %v11768_v55  ;;  %v11773_v27 = vld [vmem:[%s12041_s24 + $0x78] sm:$0xff]  ;;  %v16075_v50 = vld [vmem:[#allocation28_spill] sm:$0xff] }
 0x970   : > { %v10068_v14 = vpop.f32.mrb[132].mxu1  ;;  %v15567_v26 = vadd.f32 %v10823_v53, %v16069_v52 }
 0x971   : > { %v10069_v30 = vpop.f32.mrb[133].mxu1 }
 0x972   : > { %v10070_v21 = vadd.f32 %v10069_v30, %v10068_v14  ;;  %v10071_v36 = vpop.f32.mrb[134].mxu1  ;;  %v8747_v14 = vpack.c.bf16 %v11771_v28, %v11770_v3  ;;  %v16071_v30 = vld [vmem:[#allocation23_spill] sm:$0xff]  ;;  %v16077_v3 = vld [vmem:[#allocation30_spill] sm:$0xff] }
 0x973   : > { %v10072_v23 = vpop.f32.mrb[135].mxu1 }
 0x974   : > { %v10838_v35 = vadd.f32 %v10837_v18, %v10070_v21  ;;  %v10073_v57 = vadd.f32 %v10072_v23, %v10071_v36  ;;  %v16073_v21 = vld [vmem:[#allocation26_spill] sm:$0xff] }
 0x975   : > { %10617 = vmatmul.mubr.msk.bf16.gmra.mrb[80].mxu1 %vm761_vm4, %v8744_v39  ;;  %v10842_v39 = vadd.f32 %v16072_v45, %v15476_v15  ;;  %v11772_v23 = vld [vmem:[%s12041_s24 + $0x70] sm:$0xff] }
 0x976   : > { %v10848_v2 = vadd.f32 %v10847_v0, %v10073_v57  ;;  %10620 = vmatprep.mubr.msk.bf16.mxu1 %vm761_vm4, %v8745_v37  ;;  %v15577_v29 = vadd.f32 %v10838_v35, %v16071_v30  ;;  %v8748_v47 = vpack.c.bf16 %v11773_v27, %v11772_v23  ;;  %v16074_v0 = vld [vmem:[#allocation27_spill] sm:$0xff]  ;;  %v11776_v45 = vld [vmem:[%s12041_s24 + $0x90] sm:$0xff]  ;;  %v11778_v23 = vld [vmem:[%s12041_s24 + $0xa0] sm:$0xff] }
 0x977   : > { %v10857_v35 = vadd.f32 %v16074_v0, %v15476_v15  ;;  %v11779_v27 = vld [vmem:[%s12041_s24 + $0xa8] sm:$0xff]  ;;  %v16079_v0 = vld [vmem:[#allocation32_spill] sm:$0xff] }
 0x978   : > { %v10074_v32 = vpop.f32.mrb[136].mxu1  ;;  %v15583_v36 = vadd.f32 %v10848_v2, %v16073_v21 }
 0x979   : > { %v10075_v25 = vpop.f32.mrb[137].mxu1 }
 0x97a   : > { %v10076_v5 = vadd.f32 %v10075_v25, %v10074_v32  ;;  %v10077_v11 = vpop.f32.mrb[138].mxu1  ;;  %v11774_v32 = vld [vmem:[%s12041_s24 + $0x80] sm:$0xff]  ;;  %v11775_v25 = vld [vmem:[%s12041_s24 + $0x88] sm:$0xff] }
 0x97b   : > { %v10078_v53 = vpop.f32.mrb[139].mxu1  ;;  %v8749_v55 = vpack.c.bf16 %v11775_v25, %v11774_v32 }
 0x97c   : > { %v10833_v40 = vadd.f32 %v10832_v56, %v10076_v5  ;;  %v10079_v18 = vadd.f32 %v10078_v53, %v10077_v11  ;;  %v10867_v56 = vadd.f32 %v16076_v20, %v15476_v15 }
 0x97d   : > { %10621 = vmatmul.mubr.msk.bf16.gmra.mrb[84].mxu1 %vm761_vm4, %v8746_v34 }
 0x97e   : > { %v10843_v31 = vadd.f32 %v10842_v39, %v10079_v18  ;;  %10624 = vmatprep.mubr.msk.bf16.mxu1 %vm761_vm4, %v8747_v14  ;;  %v15593_v34 = vadd.f32 %v10833_v40, %v16075_v50  ;;  %v11777_v39 = vld [vmem:[%s12041_s24 + $0x98] sm:$0xff] }
 0x97f   : > { %v8750_v40 = vpack.c.bf16 %v11777_v39, %v11776_v45  ;;  %v16078_v18 = vld [vmem:[#allocation31_spill] sm:$0xff] }
 0x980   : > { %v10080_v62 = vpop.f32.mrb[140].mxu1  ;;  %v15599_v28 = vadd.f32 %v10843_v31, %v16077_v3  ;;  %v10852_v21 = vadd.f32 %v16078_v18, %v15476_v15  ;;  %v11782_v18 = vld [vmem:[%s12041_s24 + $0xc0] sm:$0xff] }
 0x981   : > { %v10081_v37 = vpop.f32.mrb[141].mxu1 }
 0x982   : > { %v10082_v57 = vadd.f32 %v10081_v37, %v10080_v62  ;;  %v10083_v52 = vpop.f32.mrb[142].mxu1 }
 0x983   : > { %v10084_v2 = vpop.f32.mrb[143].mxu1 }
 0x984   : > { %v10858_v5 = vadd.f32 %v10857_v35, %v10082_v57  ;;  %v10085_v11 = vadd.f32 %v10084_v2, %v10083_v52  ;;  %v16080_v57 = vld [vmem:[#allocation33_spill] sm:$0xff] }
 0x985   : > { %10625 = vmatmul.mubr.msk.bf16.gmra.mrb[88].mxu1 %vm761_vm4, %v8748_v47  ;;  %v8751_v47 = vpack.c.bf16 %v11779_v27, %v11778_v23  ;;  %v10862_v52 = vadd.f32 %v16080_v57, %v15476_v15  ;;  %v16084_v23 = vld [vmem:[#allocation37_spill] sm:$0xff] }
 0x986   : > { %v10868_v14 = vadd.f32 %v10867_v56, %v10085_v11  ;;  %10628 = vmatprep.mubr.msk.bf16.mxu1 %vm761_vm4, %v8749_v55  ;;  %v15609_v35 = vadd.f32 %v10858_v5, %v16079_v0  ;;  %v16081_v55 = vld [vmem:[#allocation34_spill] sm:$0xff]  ;;  %v11781_v5 = vld [vmem:[%s12041_s24 + $0xb8] sm:$0xff]  ;;  %v10887_v27 = vadd.f32 %v16084_v23, %v15476_v15 }
 0x987   : > { %v11780_v11 = vld [vmem:[%s12041_s24 + $0xb0] sm:$0xff] }
 0x988   : > { %v10086_v53 = vpop.f32.mrb[144].mxu1  ;;  %v15615_v2 = vadd.f32 %v10868_v14, %v16081_v55  ;;  %v8752_v3 = vpack.c.bf16 %v11781_v5, %v11780_v11  ;;  %v16085_v0 = vld [vmem:[#allocation38_spill] sm:$0xff]  ;;  %v10872_v11 = vadd.f32 %v15341_v6, %v15476_v15 }
 0x989   : > { %v10087_v30 = vpop.f32.mrb[145].mxu1 }
 0x98a   : > { %v10088_v62 = vadd.f32 %v10087_v30, %v10086_v53  ;;  %v10089_v37 = vpop.f32.mrb[146].mxu1  ;;  %v16082_v53 = vld [vmem:[#allocation35_spill] sm:$0xff] }
 0x98b   : > { %v10090_v31 = vpop.f32.mrb[147].mxu1  ;;  %v10877_v30 = vadd.f32 %v16082_v53, %v15476_v15 }
 0x98c   : > { %v10853_v32 = vadd.f32 %v10852_v21, %v10088_v62  ;;  %v10091_v25 = vadd.f32 %v10090_v31, %v10089_v37  ;;  %v16083_v62 = vld [vmem:[#allocation36_spill] sm:$0xff] }
 0x98d   : > { %10629 = vmatmul.mubr.msk.bf16.gmra.mrb[92].mxu1 %vm761_vm4, %v8750_v40  ;;  %v11783_v40 = vld [vmem:[%s12041_s24 + $0xc8] sm:$0xff] }
 0x98e   : > { %v10863_v50 = vadd.f32 %v10862_v52, %v10091_v25  ;;  %10632 = vmatprep.mubr.msk.bf16.mxu1 %vm761_vm4, %v8751_v47  ;;  %v8753_v21 = vpack.c.bf16 %v11783_v40, %v11782_v18  ;;  %v15625_v37 = vadd.f32 %v10853_v32, %v16083_v62  ;;  %v11785_v32 = vld [vmem:[%s12041_s24 + $0xd8] sm:$0xff]  ;;  %v16087_v62 = vld [vmem:[#allocation40_spill] sm:$0xff] }
 0x98f   : > { %v16086_v18 = vld [vmem:[#allocation39_spill] sm:$0xff] }
 0x990   : > { %v10092_v20 = vpop.f32.mrb[148].mxu1  ;;  %v15631_v57 = vadd.f32 %v10863_v50, %v16085_v0  ;;  %v10882_v40 = vadd.f32 %v16086_v18, %v15476_v15  ;;  %v11788_v0 = vld [vmem:[%s12041_s24 + $0xf0] sm:$0xff] }
 0x991   : > { %v10093_v56 = vpop.f32.mrb[149].mxu1 }
 0x992   : > { %v10094_v45 = vadd.f32 %v10093_v56, %v10092_v20  ;;  %v10095_v39 = vpop.f32.mrb[150].mxu1  ;;  %v11784_v20 = vld [vmem:[%s12041_s24 + $0xd0] sm:$0xff] }
 0x993   : > { %v10096_v14 = vpop.f32.mrb[151].mxu1  ;;  %v8754_v56 = vpack.c.bf16 %v11785_v32, %v11784_v20 }
 0x994   : > { %v10878_v47 = vadd.f32 %v10877_v30, %v10094_v45  ;;  %v10097_v31 = vadd.f32 %v10096_v14, %v10095_v39  ;;  %v11786_v30 = vld [vmem:[%s12041_s24 + $0xe0] sm:$0xff] }
 0x995   : > { %10633 = vmatmul.mubr.msk.bf16.gmra.mrb[96].mxu1 %vm761_vm4, %v8752_v3  ;;  %v11787_v3 = vld [vmem:[%s12041_s24 + $0xe8] sm:$0xff] }
 0x996   : > { %v10888_v52 = vadd.f32 %v10887_v27, %v10097_v31  ;;  %10636 = vmatprep.mubr.msk.bf16.mxu1 %vm761_vm4, %v8753_v21  ;;  %v8755_v45 = vpack.c.bf16 %v11787_v3, %v11786_v30  ;;  %v15641_v39 = vadd.f32 %v10878_v47, %v15343_v48  ;;  %v10897_v48 = vadd.f32 %v15353_v12, %v15476_v15 }
 0x997   : > { %v10892_v12 = vadd.f32 %v15367_v58, %v15476_v15  ;;  %v10917_v58 = vadd.f32 %v15388_v4, %v15476_v15  ;;  %v10912_v4 = vadd.f32 %v15408_v19, %v15476_v15 }
 0x998   : > { %v10098_v25 = vpop.f32.mrb[152].mxu1  ;;  %v15647_v6 = vadd.f32 %v10888_v52, %v16087_v62  ;;  %v10907_v52 = vadd.f32 %v15357_v24, %v15476_v15  ;;  %v10902_v24 = vadd.f32 %v15374_v16, %v15476_v15  ;;  %v10927_v16 = vadd.f32 %v15395_v46, %v15476_v15 }
 0x999   : > { %v10099_v55 = vpop.f32.mrb[153].mxu1  ;;  %v10922_v46 = vadd.f32 %v15415_v44, %v15476_v15 }
 0x99a   : > { %v10100_v5 = vadd.f32 %v10099_v55, %v10098_v25  ;;  %v10101_v53 = vpop.f32.mrb[154].mxu1  ;;  %v11789_v25 = vld [vmem:[%s12041_s24 + $0xf8] sm:$0xff]  ;;  %s485_s24 = sand.u32 1, %s11844_s19  }
 0x99b   : > { %v10102_v50 = vpop.f32.mrb[155].mxu1  ;;  %v8756_v55 = vpack.c.bf16 %v11789_v25, %v11788_v0  ;;  %s9149_s0 = sshll.u32 %s485_s24, 8  ;;  %s15816_s27 = scalar_lea.sflag [#allocation5], %s485_s24 }
 0x99c   : > { %v10873_v21 = vadd.f32 %v10872_v11, %v10100_v5  ;;  %v10103_v14 = vadd.f32 %v10102_v50, %v10101_v53  ;;  %v16088_v53 = vld [vmem:[#allocation41_spill] sm:$0xff]  ;;  %s15715_s16 = scalar_lea.vmem [#allocation4], %s9149_s0  ;;  %s11859_s0 = smov [#allocation4]  }
 0x99d   : > { %10637 = vmatmul.mubr.msk.bf16.gmra.mrb[100].mxu1 %vm761_vm4, %v8754_v56  ;;  %s9083_s17 = sshll.u32 %s15715_s16, 4  ;;  %s11794_s26 = sshll.u32 %s11859_s0, 4  ;;  %s15809_s17 = int_to_ptr.vmem [resolvable:$true] %s9083_s17  ;;  %s11795_s26 = int_to_ptr.vmem [resolvable:$false] %s11794_s26 }
 0x99e   : > { %v10883_v23 = vadd.f32 %v10882_v40, %v10103_v14  ;;  %10640 = vmatprep.mubr.msk.bf16.mxu1 %vm761_vm4, %v8755_v45  ;;  %v15655_v11 = vadd.f32 %v10873_v21, %v15355_v1  ;;  %s11790_s25 = scalar_lea.vmem %s15809_s17, 4096  ;;  %s11796_s30 = scalar_lea.vmem %s11795_s26, 8192 }
 0x99f   : > { %p11791_p11 = scmp.ne.s32.totalorder %s15809_s17, %s11790_s25  ;;  %p11797_p0 = scmp.lt.s32.totalorder %s15809_s17, %s11795_s26 }
 0x9a0   : > { %v10104_v27 = vpop.f32.mrb[156].mxu1  ;;  %v15661_v30 = vadd.f32 %v10883_v23, %v16088_v53  ;;  %p11798_p1 = scmp.lt.s32.totalorder %s11796_s30, %s11790_s25 }
 0x9a1   : > { %v10105_v31 = vpop.f32.mrb[157].mxu1  ;;  %p11792_p12 = pnand %p11791_p11, %p11980_p5 }
 0x9a2   : > { %v10106_v47 = vadd.f32 %v10105_v31, %v10104_v27  ;;  %v10107_v20 = vpop.f32.mrb[158].mxu1  ;;  %p11799_p2 = por %p11798_p1, %p11797_p0 }
 0x9a3   : > { %v10108_v32 = vpop.f32.mrb[159].mxu1  ;;  %p11793_p13 = pneg %p11792_p12 }
 0x9a4   : > { %v10898_v56 = vadd.f32 %v10897_v48, %v10106_v47  ;;  %v10109_v5 = vadd.f32 %v10108_v32, %v10107_v20 }
 0x9a5   : > { %10641 = vmatmul.mubr.msk.bf16.gmra.mrb[104].mxu1 %vm761_vm4, %v8756_v55  ;;  %p11800_p3 = pnand %p11799_p2, %p11793_p13 }
 0x9a6   : > { %v10908_v3 = vadd.f32 %v10907_v52, %v10109_v5  ;;  %v15666_v21 = vadd.f32 %v10898_v56, %v15369_v22 }
 0x9a8   : > { %v10110_v45 = vpop.f32.mrb[160].mxu1  ;;  %v15671_v23 = vadd.f32 %v10908_v3, %v15377_v13 }
 0x9a9   : > { %v10111_v50 = vpop.f32.mrb[161].mxu1 }
 0x9aa   : > { %v10112_v18 = vadd.f32 %v10111_v50, %v10110_v45  ;;  %v10113_v40 = vpop.f32.mrb[162].mxu1 }
 0x9ab   : > { %v10114_v1 = vpop.f32.mrb[163].mxu1 }
 0x9ac   : > { %v10893_v14 = vadd.f32 %v10892_v12, %v10112_v18  ;;  %v10115_v62 = vadd.f32 %v10114_v1, %v10113_v40 }
 0x9ae   : > { %v10903_v27 = vadd.f32 %v10902_v24, %v10115_v62  ;;  %v15676_v22 = vadd.f32 %v10893_v14, %v15390_v61 }
 0x9b0   : > { %v10116_v31 = vpop.f32.mrb[164].mxu1  ;;  %v15681_v13 = vadd.f32 %v10903_v27, %v15398_v42 }
 0x9b1   : > { %v10117_v0 = vpop.f32.mrb[165].mxu1 }
 0x9b2   : > { %v10118_v25 = vadd.f32 %v10117_v0, %v10116_v31  ;;  %v10119_v55 = vpop.f32.mrb[166].mxu1 }
 0x9b3   : > { %v10120_v48 = vpop.f32.mrb[167].mxu1 }
 0x9b4   : > { %v10918_v47 = vadd.f32 %v10917_v58, %v10118_v25  ;;  %v10121_v20 = vadd.f32 %v10120_v48, %v10119_v55 }
 0x9b6   : > { %v10928_v32 = vadd.f32 %v10927_v16, %v10121_v20  ;;  %v15686_v3 = vadd.f32 %v10918_v47, %v15410_v17  ;;  %v15705_v17 = vld [vmem:[%s15871_s14] ss:$0 sm:$0xff] }
 0x9b7   : > { %v10785_v40 = vadd.f32 %v15510_v9, %v15705_v17  ;;  %v10805_v58 = vadd.f32 %v15535_v59, %v15705_v17  ;;  %v10810_v48 = vadd.f32 %v15522_v60, %v15705_v17  ;;  %v10820_v20 = vadd.f32 %v15545_v38, %v15705_v17 }
 0x9b8   : > { %v10122_v52 = vpop.f32.mrb[168].mxu1  ;;  %v15691_v50 = vadd.f32 %v10928_v32, %v15418_v41  ;;  %v10835_v38 = vadd.f32 %v15593_v34, %v15705_v17 }
 0x9b9   : > { %v10123_v56 = vpop.f32.mrb[169].mxu1 }
 0x9ba   : > { %v10124_v5 = vadd.f32 %v10123_v56, %v10122_v52  ;;  %v10125_v53 = vpop.f32.mrb[170].mxu1  ;;  %v10825_v52 = vadd.f32 %v15567_v26, %v15705_v17 }
 0x9bb   : > { %v10126_v61 = vpop.f32.mrb[171].mxu1 }
 0x9bc   : > { %v10913_v45 = vadd.f32 %v10912_v4, %v10124_v5  ;;  %v10127_v42 = vadd.f32 %v10126_v61, %v10125_v53  ;;  %v10830_v5 = vadd.f32 %v15551_v54, %v15705_v17 }
 0x9be   : > { %v10923_v12 = vadd.f32 %v10922_v46, %v10127_v42  ;;  %v15694_v18 = vadd.f32 %v10913_v45, %v15484_v51  ;;  %v10840_v46 = vadd.f32 %v15577_v29, %v15705_v17  ;;  %v10845_v42 = vadd.f32 %v15599_v28, %v15705_v17 }
 0x9bf   : > { %v10855_v29 = vadd.f32 %v15625_v37, %v15705_v17 }
 0x9c0   : > { %v15697_v19 = vadd.f32 %v10923_v12, %v15486_v49  ;;  %v10790_v49 = vadd.f32 %v15498_v7, %v15705_v17 }
 0xa40   : > { %v10614_v44 = vpop.f32.mrb[76].mxu1 }
 0xa41   : > { %v10775_v15 = vadd.f32 %v15503_v33, %v10614_v44  ;;  %v8878_v41 = vpop.f32.mrb[77].mxu1  ;;  %v10800_v33 = vadd.f32 %v15515_v43, %v15705_v17  ;;  %v10815_v43 = vadd.f32 %v15561_v10, %v15705_v17 }
 0xa42   : > { %v10780_v51 = vadd.f32 %v15491_v8, %v8878_v41  ;;  %v10615_v1 = vpop.f32.mrb[78].mxu1  ;;  %v10795_v8 = vadd.f32 %v15530_v63, %v15705_v17 }
 0xa43   : > { %v10776_v24 = vadd.f32 %v10775_v15, %v15705_v17  ;;  %v10786_v14 = vadd.f32 %v10785_v40, %v10615_v1  ;;  %v8881_v62 = vpop.f32.mrb[79].mxu1  ;;  %v10850_v15 = vadd.f32 %v15583_v36, %v15705_v17 }
 0xa44   : > { %v10781_v27 = vadd.f32 %v10780_v51, %v15705_v17  ;;  %v10791_v31 = vadd.f32 %v10790_v49, %v8881_v62  ;;  %v10860_v51 = vadd.f32 %v15609_v35, %v15705_v17  ;;  %v10865_v49 = vadd.f32 %v15631_v57, %v15705_v17 }
 0xa45   : > { %9039 = vst [vmem:[%s15715_s16 + $0x10] sm:$0xff] %v10776_v24  ;;  %9040 = vst [vmem:[%s15715_s16 + $0x18] sm:$0xff] %v10786_v14  ;;  %v10870_v62 = vadd.f32 %v15615_v2, %v15705_v17  ;;  %v10875_v35 = vadd.f32 %v15655_v11, %v15705_v17 }
 0xa46   : > { %9037 = vst [vmem:[%s15715_s16] sm:$0xff] %v10781_v27  ;;  %9038 = vst [vmem:[%s15715_s16 + $0x8] sm:$0xff] %v10791_v31 }
 0xa48   : > { %v10618_v7 = vpop.f32.mrb[80].mxu1 }
 0xa49   : > { %v10796_v9 = vadd.f32 %v10795_v8, %v10618_v7  ;;  %v8894_v0 = vpop.f32.mrb[81].mxu1  ;;  %v10880_v8 = vadd.f32 %v15641_v39, %v15705_v17  ;;  %v10895_v39 = vadd.f32 %v15676_v22, %v15705_v17 }
 0xa4a   : > { %v10801_v25 = vadd.f32 %v10800_v33, %v8894_v0  ;;  %v10619_v55 = vpop.f32.mrb[82].mxu1  ;;  %v10885_v33 = vadd.f32 %v15661_v30, %v15705_v17 }
 0xa4b   : > { %9043 = vst [vmem:[%s15715_s16 + $0x30] sm:$0xff] %v10796_v9  ;;  %v10806_v16 = vadd.f32 %v10805_v58, %v10619_v55  ;;  %v8897_v47 = vpop.f32.mrb[83].mxu1  ;;  %v10890_v58 = vadd.f32 %v15647_v6, %v15705_v17 }
 0xa4c   : > { %9041 = vst [vmem:[%s15715_s16 + $0x20] sm:$0xff] %v10801_v25  ;;  %v10811_v63 = vadd.f32 %v10810_v48, %v8897_v47  ;;  %v10900_v48 = vadd.f32 %v15666_v21, %v15705_v17  ;;  %v10905_v47 = vadd.f32 %v15681_v13, %v15705_v17  ;;  %v10915_v21 = vadd.f32 %v15694_v18, %v15705_v17 }
 0xa4d   : > { %9044 = vst [vmem:[%s15715_s16 + $0x38] sm:$0xff] %v10806_v16  ;;  %v10920_v13 = vadd.f32 %v15686_v3, %v15705_v17  ;;  %v10930_v18 = vadd.f32 %v15691_v50, %v15705_v17 }
 0xa4e   : > { %9042 = vst [vmem:[%s15715_s16 + $0x28] sm:$0xff] %v10811_v63 }
 0xa50   : > { %v10622_v59 = vpop.f32.mrb[84].mxu1 }
 0xa51   : > { %v10816_v32 = vadd.f32 %v10815_v43, %v10622_v59  ;;  %v8910_v60 = vpop.f32.mrb[85].mxu1  ;;  %v10910_v59 = vadd.f32 %v15671_v23, %v15705_v17 }
 0xa52   : > { %v10821_v56 = vadd.f32 %v10820_v20, %v8910_v60  ;;  %v10623_v4 = vpop.f32.mrb[86].mxu1 }
 0xa53   : > { %9047 = vst [vmem:[%s15715_s16 + $0x50] sm:$0xff] %v10816_v32  ;;  %v10826_v53 = vadd.f32 %v10825_v52, %v10623_v4  ;;  %v8913_v61 = vpop.f32.mrb[87].mxu1 }
 0xa54   : > { %9045 = vst [vmem:[%s15715_s16 + $0x40] sm:$0xff] %v10821_v56  ;;  %v10831_v10 = vadd.f32 %v10830_v5, %v8913_v61  ;;  %v10925_v56 = vadd.f32 %v15697_v19, %v15705_v17 }
 0xa55   : > { %9048 = vst [vmem:[%s15715_s16 + $0x58] sm:$0xff] %v10826_v53 }
 0xa56   : > { %9046 = vst [vmem:[%s15715_s16 + $0x48] sm:$0xff] %v10831_v10 }
 0xa58   : > { %v10626_v26 = vpop.f32.mrb[88].mxu1 }
 0xa59   : > { %v10836_v45 = vadd.f32 %v10835_v38, %v10626_v26  ;;  %v8926_v54 = vpop.f32.mrb[89].mxu1 }
 0xa5a   : > { %v10841_v12 = vadd.f32 %v10840_v46, %v8926_v54  ;;  %v10627_v44 = vpop.f32.mrb[90].mxu1 }
 0xa5b   : > { %9051 = vst [vmem:[%s15715_s16 + $0x70] sm:$0xff] %v10836_v45  ;;  %v10846_v41 = vadd.f32 %v10845_v42, %v10627_v44  ;;  %v8929_v40 = vpop.f32.mrb[91].mxu1 }
 0xa5c   : > { %9049 = vst [vmem:[%s15715_s16 + $0x60] sm:$0xff] %v10841_v12  ;;  %v10851_v34 = vadd.f32 %v10850_v15, %v8929_v40 }
 0xa5d   : > { %9052 = vst [vmem:[%s15715_s16 + $0x78] sm:$0xff] %v10846_v41 }
 0xa5e   : > { %9050 = vst [vmem:[%s15715_s16 + $0x68] sm:$0xff] %v10851_v34 }
 0xa60   : > { %v10630_v28 = vpop.f32.mrb[92].mxu1 }
 0xa61   : > { %v10856_v1 = vadd.f32 %v10855_v29, %v10630_v28  ;;  %v8942_v36 = vpop.f32.mrb[93].mxu1 }
 0xa62   : > { %v10861_v24 = vadd.f32 %v10860_v51, %v8942_v36  ;;  %v10631_v14 = vpop.f32.mrb[94].mxu1 }
 0xa63   : > { %9055 = vst [vmem:[%s15715_s16 + $0x90] sm:$0xff] %v10856_v1  ;;  %v10866_v27 = vadd.f32 %v10865_v49, %v10631_v14  ;;  %v8945_v31 = vpop.f32.mrb[95].mxu1 }
 0xa64   : > { %9053 = vst [vmem:[%s15715_s16 + $0x80] sm:$0xff] %v10861_v24  ;;  %v10871_v37 = vadd.f32 %v10870_v62, %v8945_v31 }
 0xa65   : > { %9056 = vst [vmem:[%s15715_s16 + $0x98] sm:$0xff] %v10866_v27 }
 0xa66   : > { %9054 = vst [vmem:[%s15715_s16 + $0x88] sm:$0xff] %v10871_v37 }
 0xa68   : > { %v10634_v57 = vpop.f32.mrb[96].mxu1 }
 0xa69   : > { %v10876_v7 = vadd.f32 %v10875_v35, %v10634_v57  ;;  %v8958_v2 = vpop.f32.mrb[97].mxu1 }
 0xa6a   : > { %v10881_v9 = vadd.f32 %v10880_v8, %v8958_v2  ;;  %v10635_v0 = vpop.f32.mrb[98].mxu1 }
 0xa6b   : > { %9059 = vst [vmem:[%s15715_s16 + $0xb0] sm:$0xff] %v10876_v7  ;;  %v10886_v25 = vadd.f32 %v10885_v33, %v10635_v0  ;;  %v8961_v55 = vpop.f32.mrb[99].mxu1 }
 0xa6c   : > { %9057 = vst [vmem:[%s15715_s16 + $0xa0] sm:$0xff] %v10881_v9  ;;  %v10891_v11 = vadd.f32 %v10890_v58, %v8961_v55 }
 0xa6d   : > { %9060 = vst [vmem:[%s15715_s16 + $0xb8] sm:$0xff] %v10886_v25 }
 0xa6e   : > { %9058 = vst [vmem:[%s15715_s16 + $0xa8] sm:$0xff] %v10891_v11 }
 0xa70   : > { %v10638_v30 = vpop.f32.mrb[100].mxu1 }
 0xa71   : > { %v10896_v16 = vadd.f32 %v10895_v39, %v10638_v30  ;;  %v8974_v6 = vpop.f32.mrb[101].mxu1 }
 0xa72   : > { %v10901_v63 = vadd.f32 %v10900_v48, %v8974_v6  ;;  %v10639_v43 = vpop.f32.mrb[102].mxu1 }
 0xa73   : > { %9063 = vst [vmem:[%s15715_s16 + $0xd0] sm:$0xff] %v10896_v16  ;;  %v10906_v20 = vadd.f32 %v10905_v47, %v10639_v43  ;;  %v8977_v32 = vpop.f32.mrb[103].mxu1 }
 0xa74   : > { %9061 = vst [vmem:[%s15715_s16 + $0xc0] sm:$0xff] %v10901_v63  ;;  %v10911_v22 = vadd.f32 %v10910_v59, %v8977_v32 }
 0xa75   : > { %9064 = vst [vmem:[%s15715_s16 + $0xd8] sm:$0xff] %v10906_v20 }
 0xa76   : > { %9062 = vst [vmem:[%s15715_s16 + $0xc8] sm:$0xff] %v10911_v22 }
 0xa78   : > { %v10642_v60 = vpop.f32.mrb[104].mxu1 }
 0xa79   : > { %v10916_v23 = vadd.f32 %v10915_v21, %v10642_v60  ;;  %v8990_v52 = vpop.f32.mrb[105].mxu1 }
 0xa7a   : > { %v10921_v4 = vadd.f32 %v10920_v13, %v8990_v52  ;;  %v10643_v5 = vpop.f32.mrb[106].mxu1 }
 0xa7b   : > { %9067 = vst [vmem:[%s15715_s16 + $0xf0] sm:$0xff] %v10916_v23  ;;  %v10926_v53 = vadd.f32 %v10925_v56, %v10643_v5  ;;  %v8993_v61 = vpop.f32.mrb[107].mxu1 }
 0xa7c   : > { %9065 = vst [vmem:[%s15715_s16 + $0xe0] sm:$0xff] %v10921_v4  ;;  %v10931_v3 = vadd.f32 %v10930_v18, %v8993_v61 }
 0xa7d   : > { %9068 = vst [vmem:[%s15715_s16 + $0xf8] sm:$0xff] %v10926_v53 }
 0xa7e   : > { %9066 = vst [vmem:[%s15715_s16 + $0xe8] sm:$0xff] %v10931_v3 }
 0xa7f   : > { %11803 = shalt.err (!%p11800_p3)
}
 0xa80   : > { %s11804_s24 = scalar_lea.hbm %s15807_s22, 4096  ;;  %s11808_s23 = scalar_lea.hbm %s15872_s15, 8192 }
 0xa81   : > { %p11805_p4 = scmp.ne.s32.totalorder %s15807_s22, %s11804_s24  ;;  %p11809_p9 = scmp.lt.u32.totalorder %s15807_s22, %s15872_s15 }
 0xa82   : > { %p11810_p10 = scmp.lt.u32.totalorder %s11808_s23, %s11804_s24  ;;  %p11812_p12 = scmp.lt.u32.totalorder %s11804_s24, %s15807_s22 }
 0xa83   : > { %p11806_p7 = pnand %p11805_p4, %p11980_p5 }
 0xa84   : > { %p11811_p11 = por %p11810_p10, %p11809_p9 }
 0xa85   : > { %p11807_p8 = pneg %p11806_p7 }
 0xa86   : > { %p11813_p13 = por %p11812_p12, %p11811_p11 }
 0xa88   : > { %p11814_p0 = pnand %p11813_p13, %p11807_p8 }
 0xa8a   : > { %11817 = shalt.err (!%p11814_p0)
}
 0xa8b   : > { %s11860_s25 = smov 128   ;;  %s11861_s26 = smov 8  }
 0xa8c   : > { %11156 = dma.vmem_to_hbm [thread:$0]  (%p11980_p5), %s15809_s17, 4096, %s15807_s22, %s15816_s27, %s11860_s25, %s11860_s25, %s11861_s26  }
 0xa8d PF: > { %p11162_p1 = scmp.ge.s32.totalorder %s11852_s21, 2  ;;  %s9098_s30 = sand.u32 1, %s11840_s18  }
 0xa8e   : > { %s9099_s24 = scalar_lea.sflag [#allocation5], %s9098_s30 }
 0xa8f   : > { %p11159_p2 = pnand %p11162_p1, %p11984_p6 }
 0xa91   : > { %11835 = dma.done.wait (!%p11159_p2), %s9099_s24, 4096  }
 0xa92   : > { %11837 = vsyncadd (!%p11159_p2), %s9099_s24, 4294963200  ;;  %s16089_s21 = sld [smem:[#allocation8_spill]]  ;;  %s16090_s16 = sld [smem:[#allocation7_spill]] }
 0xa93   : > { %s16091_s20 = sld [smem:[#allocation9_spill]]  ;;  %s16092_s18 = smov %s11844_s19 }
 0xa98   : > { %p25_p3 = scmp.ge.s32.totalorder %s16089_s21, 4   ;;  %s16093_s19 = smov %s16090_s16 }
 0xa9a   :  { %27 = sbr.rel (!%p25_p3) target bundleno = 6 (0x6), region = 125 }
 0xaa1   :  { %9104 = vsyncpa [#allocation5], 1 }
 0xaa2   :  { %9106 = vsyncpa [#allocation5 + $0x1], 1 }

</bundles_post_ra>
